<compile_context>
chip_gen: v7x
topology: tpu7x:2x2x1
jax: 0.10.0
libtpu: 0.0.40
codegen_flags: <defaults>
</compile_context>

<pallas_src>
import functools

import numpy as np

import jax
import jax.numpy as jnp
from jax.experimental import pallas as pl
from jax.experimental.pallas import tpu as pltpu


# ----------------------------------------------------------------------------
# Constant tables (registered buffers in the torch module)
# ----------------------------------------------------------------------------
def _relative_coords_table(Wh, Ww):
    """norm8_log continuous relative-coordinate table, flattened to (T, 2)."""
    rh = np.arange(-(Wh - 1), Wh, dtype=np.float32)
    rw = np.arange(-(Ww - 1), Ww, dtype=np.float32)
    t = np.stack(np.meshgrid(rh, rw, indexing="ij"), axis=-1)  # (2Wh-1, 2Ww-1, 2)
    t[..., 0] /= (Wh - 1)
    t[..., 1] /= (Ww - 1)
    t *= 8.0
    t = np.sign(t) * np.log2(np.abs(t) + 1.0) / np.log2(8.0)
    return jnp.asarray(t.reshape(-1, 2), dtype=jnp.float32)


def _relative_position_index(Wh, Ww):
    """(N, N) int32 index into the (2Wh-1)*(2Ww-1) RPE table."""
    ch = np.arange(Wh)
    cw = np.arange(Ww)
    coords = np.stack(np.meshgrid(ch, cw, indexing="ij"))          # (2, Wh, Ww)
    cf = coords.reshape(2, -1)                                     # (2, N)
    rel = cf[:, :, None] - cf[:, None, :]                          # (2, N, N)
    rel = rel.transpose(1, 2, 0).astype(np.int64)                  # (N, N, 2)
    rel[..., 0] += Wh - 1
    rel[..., 1] += Ww - 1
    rel[..., 0] *= 2 * Ww - 1
    return jnp.asarray(rel.sum(-1), dtype=jnp.int32)


# ----------------------------------------------------------------------------
# Kernel 1: RPE MLP  —  Linear(2, Hr) + ReLU + LinearFP32(Hr, num_heads, no bias)
# ----------------------------------------------------------------------------
def rpe_mlp_kernel(tab_ref, w1_ref, b1_ref, w2_ref, o_ref):
    # tab_ref: (T, 2)   w1_ref: (2, Hr)   b1_ref: (1, Hr)   w2_ref: (Hr, nH)
    tab = tab_ref[...].astype(jnp.float32)
    w1 = w1_ref[...].astype(jnp.float32)
    # First layer has K=2: express as broadcast mul-add (VPU) instead of a
    # degenerate MXU matmul.
    h = (tab[:, 0:1] * w1[0:1, :] + tab[:, 1:2] * w1[1:2, :]
         + b1_ref[...].astype(jnp.float32))
    h = jnp.maximum(h, 0.0)                                    # ReLU
    o_ref[...] = jnp.dot(h, w2_ref[...].astype(jnp.float32),   # LinearFP32, no bias
                         preferred_element_type=jnp.float32)


# ----------------------------------------------------------------------------
# Kernel 2: fused window attention
#   qkv = x @ Wqkv + [q_bias, 0, v_bias]
#   per head: attn = (q*scale) @ k^T + rel_bias ; softmax ; out = attn @ v
#   y = concat_heads(out) @ Wproj + bproj
# ----------------------------------------------------------------------------
def window_attn_kernel(x_ref, wqkv_ref, bqkv_ref, bias_ref, wp_ref, bp_ref, o_ref,
                       *, num_heads, scale):
    TB, N, C = x_ref.shape
    hd = C // num_heads

    xf = x_ref[...].reshape(TB * N, C)
    # Native-dtype operands into the MXU, f32 accumulation.
    qkv = jnp.dot(xf, wqkv_ref[...], preferred_element_type=jnp.float32)
    qkv = qkv + bqkv_ref[...].astype(jnp.float32)              # (TB*N, 3C), f32

    head_outs = []
    for h in range(num_heads):
        q = qkv[:, h * hd:(h + 1) * hd].reshape(TB, N, hd) * scale
        k = qkv[:, C + h * hd:C + (h + 1) * hd].reshape(TB, N, hd)
        v = qkv[:, 2 * C + h * hd:2 * C + (h + 1) * hd].reshape(TB, N, hd)

        attn = jnp.einsum("bqd,bkd->bqk", q, k,
                          preferred_element_type=jnp.float32)   # (TB, N, N), f32
        attn = attn + bias_ref[h][None, :, :].astype(jnp.float32)

        m = jnp.max(attn, axis=-1, keepdims=True)
        e = jnp.exp(attn - m)
        p = e / jnp.sum(e, axis=-1, keepdims=True)              # softmax, f32
        p = p.astype(x_ref.dtype)                               # attn.type_as(x)

        oh = jnp.einsum("bqk,bkd->bqd", p, v,
                        preferred_element_type=jnp.float32)     # (TB, N, hd)
        head_outs.append(oh.reshape(TB * N, hd))

    merged = jnp.concatenate(head_outs, axis=-1)                # (TB*N, C), lane-dense
    y = jnp.dot(merged.astype(x_ref.dtype), wp_ref[...],
                preferred_element_type=jnp.float32)
    y = y + bp_ref[...].astype(jnp.float32)
    o_ref[...] = y.reshape(TB, N, C).astype(o_ref.dtype)


# ----------------------------------------------------------------------------
# Wrapper
# ----------------------------------------------------------------------------
def window_attention_forward(x, wqkv, q_bias, v_bias, rpe_w1, rpe_b1, rpe_w2,
                             wp, bp, *, window_size, num_heads, tb=4):
    """WindowAttention forward (mask=None path).

    x      : (B_, N, C)  windows of tokens, N == Wh*Ww
    wqkv   : (C, 3C)     == torch qkv.weight.T ; bias is cat(q_bias, 0, v_bias)
    rpe_w1 : (2, Hr), rpe_b1: (Hr,), rpe_w2: (Hr, num_heads)   (rpe_mlp)
    wp     : (C, C)      == torch proj.weight.T ; bp: (C,)
    returns (B_, N, C)
    """
    B_, N, C = x.shape
    Wh, Ww = window_size
    assert N == Wh * Ww
    hd = C // num_heads
    scale = float(hd) ** -0.5
    Hr = rpe_w1.shape[1]

    # --- constant tables -----------------------------------------------------
    coords_table = _relative_coords_table(Wh, Ww)          # (T, 2)
    rel_index = _relative_position_index(Wh, Ww)            # (N, N)
    T = coords_table.shape[0]

    # --- RPE MLP (Pallas) -----------------------------------------------------
    rpe_table = pl.pallas_call(
        rpe_mlp_kernel,
        out_shape=jax.ShapeDtypeStruct((T, num_heads), jnp.float32),
        grid=(1,),
        in_specs=[
            pl.BlockSpec((T, 2), lambda i: (0, 0)),
            pl.BlockSpec((2, Hr), lambda i: (0, 0)),
            pl.BlockSpec((1, Hr), lambda i: (0, 0)),
            pl.BlockSpec((Hr, num_heads), lambda i: (0, 0)),
        ],
        out_specs=pl.BlockSpec((T, num_heads), lambda i: (0, 0)),
    )(coords_table, rpe_w1, rpe_b1.reshape(1, Hr), rpe_w2)

    # Gather by the constant relative_position_index (index plumbing, plain JAX).
    rel_bias = rpe_table[rel_index.reshape(-1)]
    rel_bias = rel_bias.reshape(N, N, num_heads).transpose(2, 0, 1)  # (nH, N, N)
    rel_bias = rel_bias.astype(jnp.float32)

    # qkv bias: cat(q_bias, zeros, v_bias)  (k has no bias in Swin-V2)
    bqkv = jnp.concatenate([q_bias, jnp.zeros_like(v_bias), v_bias]).reshape(1, 3 * C)
    bp2d = bp.reshape(1, C)

    # --- fused attention (Pallas) ---------------------------------------------
    tb = max(1, min(tb, B_))
    num_blocks = pl.cdiv(B_, tb)
    Bp = num_blocks * tb
    xp = jnp.pad(x, ((0, Bp - B_), (0, 0), (0, 0))) if Bp != B_ else x

    cost = pl.CostEstimate(
        flops=int(2 * Bp * (N * C * 3 * C + 2 * num_heads * N * N * hd + N * C * C)),
        transcendentals=int(Bp * num_heads * N * N),
        bytes_accessed=int((xp.size + Bp * N * C + wqkv.size + wp.size
                            + num_heads * N * N) * 4),
    )

    kern = functools.partial(window_attn_kernel, num_heads=num_heads, scale=scale)
    out = pl.pallas_call(
        kern,
        out_shape=jax.ShapeDtypeStruct((Bp, N, C), x.dtype),
        grid_spec=pltpu.PrefetchScalarGridSpec(
            num_scalar_prefetch=0,
            grid=(num_blocks,),
            in_specs=[
                pl.BlockSpec((tb, N, C), lambda i: (i, 0, 0)),          # x tile
                pl.BlockSpec((C, 3 * C), lambda i: (0, 0)),             # Wqkv (resident)
                pl.BlockSpec((1, 3 * C), lambda i: (0, 0)),             # qkv bias
                pl.BlockSpec((num_heads, N, N), lambda i: (0, 0, 0)),   # rel pos bias
                pl.BlockSpec((C, C), lambda i: (0, 0)),                 # Wproj
                pl.BlockSpec((1, C), lambda i: (0, 0)),                 # bproj
            ],
            out_specs=pl.BlockSpec((tb, N, C), lambda i: (i, 0, 0)),
        ),
        compiler_params=pltpu.CompilerParams(dimension_semantics=("parallel",)),
        cost_estimate=cost,
    )(xp, wqkv, bqkv, rel_bias, wp, bp2d)

    return out[:B_] if Bp != B_ else out
    # TODO(synk): optional shifted-window `mask` (nW, N, N) path is not implemented
    # (the test exercises mask=None, matching the module default call).


# ----------------------------------------------------------------------------
# Pure-JAX reference (sanity check)
# ----------------------------------------------------------------------------
def window_attention_reference(x, wqkv, q_bias, v_bias, rpe_w1, rpe_b1, rpe_w2,
                               wp, bp, *, window_size, num_heads):
    B_, N, C = x.shape
    Wh, Ww = window_size
    hd = C // num_heads
    scale = float(hd) ** -0.5

    bqkv = jnp.concatenate([q_bias, jnp.zeros_like(v_bias), v_bias])
    qkv = x @ wqkv + bqkv                                   # (B_, N, 3C)
    qkv = qkv.reshape(B_, N, 3, num_heads, hd).transpose(2, 0, 3, 1, 4)
    q, k, v = qkv[0], qkv[1], qkv[2]                        # (B_, nH, N, hd)

    attn = (q * scale).astype(jnp.float32) @ jnp.swapaxes(k.astype(jnp.float32), -2, -1)

    table = _relative_coords_table(Wh, Ww)
    h = jnp.maximum(table @ rpe_w1 + rpe_b1, 0.0)
    rpe_tab = h @ rpe_w2                                    # (T, nH)
    rel_index = _relative_position_index(Wh, Ww)
    bias = rpe_tab[rel_index.reshape(-1)].reshape(N, N, num_heads).transpose(2, 0, 1)
    attn = attn + bias[None]

    attn = jax.nn.softmax(attn, axis=-1).astype(x.dtype)
    out = (attn @ v).transpose(0, 2, 1, 3).reshape(B_, N, C)
    return out @ wp + bp


# ----------------------------------------------------------------------------
if __name__ == "__main__":
    # Small shapes consistent with the module: 2 images x 4 windows, window 8x8
    # (N=64 tokens), dim=128 (lane-dense), 4 heads (head_dim=32), rpe hidden 128.
    B, nW = 2, 4
    Wh = Ww = 8
    N = Wh * Ww
    C = 128
    NUM_HEADS = 4
    HR = 128
    B_ = B * nW

    key = jax.random.PRNGKey(0)
    ks = jax.random.split(key, 9)

    x = jax.random.normal(ks[0], (B_, N, C), dtype=jnp.float32)
    wqkv = jax.random.normal(ks[1], (C, 3 * C), dtype=jnp.float32) * (C ** -0.5)
    q_bias = jax.random.normal(ks[2], (C,), dtype=jnp.float32) * 0.02
    v_bias = jax.random.normal(ks[3], (C,), dtype=jnp.float32) * 0.02
    rpe_w1 = jax.random.normal(ks[4], (2, HR), dtype=jnp.float32) * 0.5
    rpe_b1 = jax.random.normal(ks[5], (HR,), dtype=jnp.float32) * 0.02
    rpe_w2 = jax.random.normal(ks[6], (HR, NUM_HEADS), dtype=jnp.float32) * (HR ** -0.5)
    wp = jax.random.normal(ks[7], (C, C), dtype=jnp.float32) * (C ** -0.5)
    bp = jax.random.normal(ks[8], (C,), dtype=jnp.float32) * 0.02

    fwd = jax.jit(functools.partial(window_attention_forward,
                                    window_size=(Wh, Ww), num_heads=NUM_HEADS, tb=4))
    out = fwd(x, wqkv, q_bias, v_bias, rpe_w1, rpe_b1, rpe_w2, wp, bp)
    out = jax.block_until_ready(out)

    ref = window_attention_reference(x, wqkv, q_bias, v_bias, rpe_w1, rpe_b1, rpe_w2,
                                     wp, bp, window_size=(Wh, Ww), num_heads=NUM_HEADS)
    assert out.shape == (B_, N, C), out.shape
    max_err = float(jnp.abs(out - ref).max())
    assert jnp.allclose(out, ref, atol=2e-3, rtol=2e-3), max_err

    print("KERNEL_OK")
</pallas_src>

<mosaic_0001>
module attributes {stable_mosaic.version = 11 : i64} {
  func.func @rpe_mlp_kernel(%arg0: i32, %arg1: memref<225x2xf32, #tpu.memory_space<vmem>>, %arg2: memref<2x128xf32, #tpu.memory_space<vmem>>, %arg3: memref<1x128xf32, #tpu.memory_space<vmem>>, %arg4: memref<128x4xf32, #tpu.memory_space<vmem>>, %arg5: memref<225x4xf32, #tpu.memory_space<vmem>>) attributes {dimension_semantics = [#tpu.dimension_semantics<arbitrary>], iteration_bounds = array<i64: 1>, scalar_prefetch = 0 : i64, scratch_operands = 0 : i64, tpu.core_type = #tpu.core_type<tc>, window_params = [{pipeline_mode = #tpu.pipeline_mode<synchronous>, transform_indices = @transform_0, window_bounds = array<i64: 225, 2>}, {pipeline_mode = #tpu.pipeline_mode<synchronous>, transform_indices = @transform_1, window_bounds = array<i64: 2, 128>}, {pipeline_mode = #tpu.pipeline_mode<synchronous>, transform_indices = @transform_2, window_bounds = array<i64: 1, 128>}, {pipeline_mode = #tpu.pipeline_mode<synchronous>, transform_indices = @transform_3, window_bounds = array<i64: 128, 4>}, {pipeline_mode = #tpu.pipeline_mode<synchronous>, transform_indices = @transform_4, window_bounds = array<i64: 225, 4>}]} {
    %c0 = arith.constant 0 : index
    %c0_0 = arith.constant 0 : index
    %0 = vector.load %arg1[%c0, %c0_0] : memref<225x2xf32, #tpu.memory_space<vmem>>, vector<225x2xf32>
    %c0_1 = arith.constant 0 : index
    %c0_2 = arith.constant 0 : index
    %1 = vector.load %arg2[%c0_1, %c0_2] : memref<2x128xf32, #tpu.memory_space<vmem>>, vector<2x128xf32>
    %2 = vector.extract_strided_slice %0 {offsets = [0, 0], sizes = [225, 1], strides = [1, 1]} : vector<225x2xf32> to vector<225x1xf32>
    %3 = vector.extract_strided_slice %1 {offsets = [0, 0], sizes = [1, 128], strides = [1, 1]} : vector<2x128xf32> to vector<1x128xf32>
    %4 = vector.broadcast %2 : vector<225x1xf32> to vector<225x128xf32>
    %5 = vector.broadcast %3 : vector<1x128xf32> to vector<225x128xf32>
    %6 = arith.mulf %4, %5 : vector<225x128xf32>
    %7 = vector.extract_strided_slice %0 {offsets = [0, 1], sizes = [225, 1], strides = [1, 1]} : vector<225x2xf32> to vector<225x1xf32>
    %8 = vector.extract_strided_slice %1 {offsets = [1, 0], sizes = [1, 128], strides = [1, 1]} : vector<2x128xf32> to vector<1x128xf32>
    %9 = vector.broadcast %7 : vector<225x1xf32> to vector<225x128xf32>
    %10 = vector.broadcast %8 : vector<1x128xf32> to vector<225x128xf32>
    %11 = arith.mulf %9, %10 : vector<225x128xf32>
    %12 = arith.addf %6, %11 : vector<225x128xf32>
    %c0_3 = arith.constant 0 : index
    %c0_4 = arith.constant 0 : index
    %13 = vector.load %arg3[%c0_3, %c0_4] : memref<1x128xf32, #tpu.memory_space<vmem>>, vector<1x128xf32>
    %14 = vector.broadcast %13 : vector<1x128xf32> to vector<225x128xf32>
    %15 = arith.addf %12, %14 : vector<225x128xf32>
    %cst = arith.constant 0.000000e+00 : f32
    %16 = vector.broadcast %cst : f32 to vector<225x128xf32>
    %17 = arith.maximumf %15, %16 : vector<225x128xf32>
    %c0_5 = arith.constant 0 : index
    %c0_6 = arith.constant 0 : index
    %18 = vector.load %arg4[%c0_5, %c0_6] : memref<128x4xf32, #tpu.memory_space<vmem>>, vector<128x4xf32>
    %cst_7 = arith.constant dense<0.000000e+00> : vector<225x4xf32>
    %19 = tpu.matmul %17, %18, %cst_7 {dimension_numbers = #tpu.dot_dimension_numbers<[1], [0], [0], [1], [0, 0, 1, 1], [], []>} : vector<225x128xf32>, vector<128x4xf32>, vector<225x4xf32> -> vector<225x4xf32>
    %c0_8 = arith.constant 0 : index
    %c0_9 = arith.constant 0 : index
    %20 = vector.load %arg5[%c0_8, %c0_9] : memref<225x4xf32, #tpu.memory_space<vmem>>, vector<225x4xf32>
    tpu.vector_store %arg5[%c0_8, %c0_9], %19 {strides = array<i32>} : memref<225x4xf32, #tpu.memory_space<vmem>>, vector<225x4xf32>,
    return
  }
  func.func @transform_0(%arg0: i32) -> (i32, i32) {
    %c0_i32 = arith.constant 0 : i32
    %c0_i32_0 = arith.constant 0 : i32
    %c0_i32_1 = arith.constant 0 : i32
    return %c0_i32, %c0_i32_0 : i32, i32
  }
  func.func @transform_1(%arg0: i32) -> (i32, i32) {
    %c0_i32 = arith.constant 0 : i32
    %c0_i32_0 = arith.constant 0 : i32
    %c0_i32_1 = arith.constant 0 : i32
    return %c0_i32, %c0_i32_0 : i32, i32
  }
  func.func @transform_2(%arg0: i32) -> (i32, i32) {
    %c0_i32 = arith.constant 0 : i32
    %c0_i32_0 = arith.constant 0 : i32
    %c0_i32_1 = arith.constant 0 : i32
    return %c0_i32, %c0_i32_0 : i32, i32
  }
  func.func @transform_3(%arg0: i32) -> (i32, i32) {
    %c0_i32 = arith.constant 0 : i32
    %c0_i32_0 = arith.constant 0 : i32
    %c0_i32_1 = arith.constant 0 : i32
    return %c0_i32, %c0_i32_0 : i32, i32
  }
  func.func @transform_4(%arg0: i32) -> (i32, i32) {
    %c0_i32 = arith.constant 0 : i32
    %c0_i32_0 = arith.constant 0 : i32
    %c0_i32_1 = arith.constant 0 : i32
    return %c0_i32, %c0_i32_0 : i32, i32
  }
}

module attributes {stable_mosaic.version = 11 : i64} {
  func.func @window_attn_kernel(%arg0: i32, %arg1: memref<4x64x128xf32, #tpu.memory_space<vmem>>, %arg2: memref<128x384xf32, #tpu.memory_space<vmem>>, %arg3: memref<1x384xf32, #tpu.memory_space<vmem>>, %arg4: memref<4x64x64xf32, #tpu.memory_space<vmem>>, %arg5: memref<128x128xf32, #tpu.memory_space<vmem>>, %arg6: memref<1x128xf32, #tpu.memory_space<vmem>>, %arg7: memref<4x64x128xf32, #tpu.memory_space<vmem>>) attributes {dimension_semantics = [#tpu.dimension_semantics<parallel>], iteration_bounds = array<i64: 2>, scalar_prefetch = 0 : i64, scratch_operands = 0 : i64, tpu.core_type = #tpu.core_type<tc>, window_params = [{transform_indices = @transform_0, window_bounds = array<i64: 4, 64, 128>}, {pipeline_mode = #tpu.pipeline_mode<synchronous>, transform_indices = @transform_1, window_bounds = array<i64: 128, 384>}, {pipeline_mode = #tpu.pipeline_mode<synchronous>, transform_indices = @transform_2, window_bounds = array<i64: 1, 384>}, {pipeline_mode = #tpu.pipeline_mode<synchronous>, transform_indices = @transform_3, window_bounds = array<i64: 4, 64, 64>}, {pipeline_mode = #tpu.pipeline_mode<synchronous>, transform_indices = @transform_4, window_bounds = array<i64: 128, 128>}, {pipeline_mode = #tpu.pipeline_mode<synchronous>, transform_indices = @transform_5, window_bounds = array<i64: 1, 128>}, {transform_indices = @transform_6, window_bounds = array<i64: 4, 64, 128>}]} {
    %c0 = arith.constant 0 : index
    %c0_0 = arith.constant 0 : index
    %c0_1 = arith.constant 0 : index
    %0 = vector.load %arg1[%c0, %c0_0, %c0_1] : memref<4x64x128xf32, #tpu.memory_space<vmem>>, vector<4x64x128xf32>
    %1 = vector.shape_cast %0 : vector<4x64x128xf32> to vector<256x128xf32>
    %c0_2 = arith.constant 0 : index
    %c0_3 = arith.constant 0 : index
    %2 = vector.load %arg2[%c0_2, %c0_3] : memref<128x384xf32, #tpu.memory_space<vmem>>, vector<128x384xf32>
    %cst = arith.constant dense<0.000000e+00> : vector<256x384xf32>
    %3 = tpu.matmul %1, %2, %cst {dimension_numbers = #tpu.dot_dimension_numbers<[1], [0], [0], [1], [0, 0, 1, 1], [], []>} : vector<256x128xf32>, vector<128x384xf32>, vector<256x384xf32> -> vector<256x384xf32>
    %c0_4 = arith.constant 0 : index
    %c0_5 = arith.constant 0 : index
    %4 = vector.load %arg3[%c0_4, %c0_5] : memref<1x384xf32, #tpu.memory_space<vmem>>, vector<1x384xf32>
    %5 = vector.broadcast %4 : vector<1x384xf32> to vector<256x384xf32>
    %6 = arith.addf %3, %5 : vector<256x384xf32>
    %7 = vector.extract_strided_slice %6 {offsets = [0, 0], sizes = [256, 32], strides = [1, 1]} : vector<256x384xf32> to vector<256x32xf32>
    %8 = vector.shape_cast %7 : vector<256x32xf32> to vector<4x64x32xf32>
    %cst_6 = arith.constant 0.176776692 : f32
    %9 = vector.broadcast %cst_6 : f32 to vector<4x64x32xf32>
    %10 = arith.mulf %8, %9 : vector<4x64x32xf32>
    %11 = vector.extract_strided_slice %6 {offsets = [0, 128], sizes = [256, 32], strides = [1, 1]} : vector<256x384xf32> to vector<256x32xf32>
    %12 = vector.shape_cast %11 : vector<256x32xf32> to vector<4x64x32xf32>
    %13 = vector.extract_strided_slice %6 {offsets = [0, 256], sizes = [256, 32], strides = [1, 1]} : vector<256x384xf32> to vector<256x32xf32>
    %14 = vector.shape_cast %13 : vector<256x32xf32> to vector<4x64x32xf32>
    "tpu.trace_start"() <{level = 10 : i32, message = "bqd,bkd->bqk"}> : () -> ()
    %cst_7 = arith.constant dense<0.000000e+00> : vector<4x64x64xf32>
    %15 = tpu.matmul %10, %12, %cst_7 {dimension_numbers = #tpu.dot_dimension_numbers<[2], [2], [1], [1], [0, 0, 0, 1, 1, 1], [0], [0]>} : vector<4x64x32xf32>, vector<4x64x32xf32>, vector<4x64x64xf32> -> vector<4x64x64xf32>
    "tpu.trace_stop"() : () -> ()
    %c0_8 = arith.constant 0 : index
    %c0_9 = arith.constant 0 : index
    %c0_10 = arith.constant 0 : index
    %16 = vector.load %arg4[%c0_8, %c0_9, %c0_10] : memref<4x64x64xf32, #tpu.memory_space<vmem>>, vector<1x64x64xf32>
    %17 = vector.shape_cast %16 : vector<1x64x64xf32> to vector<64x64xf32>
    %18 = vector.shape_cast %17 : vector<64x64xf32> to vector<1x64x64xf32>
    %19 = vector.broadcast %18 : vector<1x64x64xf32> to vector<4x64x64xf32>
    %20 = arith.addf %15, %19 : vector<4x64x64xf32>
    %cst_11 = arith.constant dense<0xFF800000> : vector<4x64xf32>
    %21 = vector.multi_reduction <maximumf>, %20, %cst_11 [2] : vector<4x64x64xf32> to vector<4x64xf32>
    %22 = vector.shape_cast %21 : vector<4x64xf32> to vector<4x64x1xf32>
    %23 = vector.broadcast %22 : vector<4x64x1xf32> to vector<4x64x64xf32>
    %24 = arith.subf %20, %23 : vector<4x64x64xf32>
    %25 = math.exp %24 : vector<4x64x64xf32>
    %cst_12 = arith.constant dense<0.000000e+00> : vector<4x64xf32>
    %26 = vector.multi_reduction <add>, %25, %cst_12 [2] : vector<4x64x64xf32> to vector<4x64xf32>
    %27 = vector.shape_cast %26 : vector<4x64xf32> to vector<4x64x1xf32>
    %28 = vector.broadcast %27 : vector<4x64x1xf32> to vector<4x64x64xf32>
    %29 = arith.divf %25, %28 : vector<4x64x64xf32>
    "tpu.trace_start"() <{level = 10 : i32, message = "bqk,bkd->bqd"}> : () -> ()
    %cst_13 = arith.constant dense<0.000000e+00> : vector<4x64x32xf32>
    %30 = tpu.matmul %29, %14, %cst_13 {dimension_numbers = #tpu.dot_dimension_numbers<[2], [1], [1], [2], [0, 0, 0, 1, 1, 2], [0], [0]>} : vector<4x64x64xf32>, vector<4x64x32xf32>, vector<4x64x32xf32> -> vector<4x64x32xf32>
    "tpu.trace_stop"() : () -> ()
    %31 = vector.shape_cast %30 : vector<4x64x32xf32> to vector<256x32xf32>
    %32 = vector.extract_strided_slice %6 {offsets = [0, 32], sizes = [256, 32], strides = [1, 1]} : vector<256x384xf32> to vector<256x32xf32>
    %33 = vector.shape_cast %32 : vector<256x32xf32> to vector<4x64x32xf32>
    %cst_14 = arith.constant 0.176776692 : f32
    %34 = vector.broadcast %cst_14 : f32 to vector<4x64x32xf32>
    %35 = arith.mulf %33, %34 : vector<4x64x32xf32>
    %36 = vector.extract_strided_slice %6 {offsets = [0, 160], sizes = [256, 32], strides = [1, 1]} : vector<256x384xf32> to vector<256x32xf32>
    %37 = vector.shape_cast %36 : vector<256x32xf32> to vector<4x64x32xf32>
    %38 = vector.extract_strided_slice %6 {offsets = [0, 288], sizes = [256, 32], strides = [1, 1]} : vector<256x384xf32> to vector<256x32xf32>
    %39 = vector.shape_cast %38 : vector<256x32xf32> to vector<4x64x32xf32>
    "tpu.trace_start"() <{level = 10 : i32, message = "bqd,bkd->bqk"}> : () -> ()
    %cst_15 = arith.constant dense<0.000000e+00> : vector<4x64x64xf32>
    %40 = tpu.matmul %35, %37, %cst_15 {dimension_numbers = #tpu.dot_dimension_numbers<[2], [2], [1], [1], [0, 0, 0, 1, 1, 1], [0], [0]>} : vector<4x64x32xf32>, vector<4x64x32xf32>, vector<4x64x64xf32> -> vector<4x64x64xf32>
    "tpu.trace_stop"() : () -> ()
    %c1 = arith.constant 1 : index
    %c0_16 = arith.constant 0 : index
    %c0_17 = arith.constant 0 : index
    %41 = vector.load %arg4[%c1, %c0_16, %c0_17] : memref<4x64x64xf32, #tpu.memory_space<vmem>>, vector<1x64x64xf32>
    %42 = vector.shape_cast %41 : vector<1x64x64xf32> to vector<64x64xf32>
    %43 = vector.shape_cast %42 : vector<64x64xf32> to vector<1x64x64xf32>
    %44 = vector.broadcast %43 : vector<1x64x64xf32> to vector<4x64x64xf32>
    %45 = arith.addf %40, %44 : vector<4x64x64xf32>
    %cst_18 = arith.constant dense<0xFF800000> : vector<4x64xf32>
    %46 = vector.multi_reduction <maximumf>, %45, %cst_18 [2] : vector<4x64x64xf32> to vector<4x64xf32>
    %47 = vector.shape_cast %46 : vector<4x64xf32> to vector<4x64x1xf32>
    %48 = vector.broadcast %47 : vector<4x64x1xf32> to vector<4x64x64xf32>
    %49 = arith.subf %45, %48 : vector<4x64x64xf32>
    %50 = math.exp %49 : vector<4x64x64xf32>
    %cst_19 = arith.constant dense<0.000000e+00> : vector<4x64xf32>
    %51 = vector.multi_reduction <add>, %50, %cst_19 [2] : vector<4x64x64xf32> to vector<4x64xf32>
    %52 = vector.shape_cast %51 : vector<4x64xf32> to vector<4x64x1xf32>
    %53 = vector.broadcast %52 : vector<4x64x1xf32> to vector<4x64x64xf32>
    %54 = arith.divf %50, %53 : vector<4x64x64xf32>
    "tpu.trace_start"() <{level = 10 : i32, message = "bqk,bkd->bqd"}> : () -> ()
    %cst_20 = arith.constant dense<0.000000e+00> : vector<4x64x32xf32>
    %55 = tpu.matmul %54, %39, %cst_20 {dimension_numbers = #tpu.dot_dimension_numbers<[2], [1], [1], [2], [0, 0, 0, 1, 1, 2], [0], [0]>} : vector<4x64x64xf32>, vector<4x64x32xf32>, vector<4x64x32xf32> -> vector<4x64x32xf32>
    "tpu.trace_stop"() : () -> ()
    %56 = vector.shape_cast %55 : vector<4x64x32xf32> to vector<256x32xf32>
    %57 = vector.extract_strided_slice %6 {offsets = [0, 64], sizes = [256, 32], strides = [1, 1]} : vector<256x384xf32> to vector<256x32xf32>
    %58 = vector.shape_cast %57 : vector<256x32xf32> to vector<4x64x32xf32>
    %cst_21 = arith.constant 0.176776692 : f32
    %59 = vector.broadcast %cst_21 : f32 to vector<4x64x32xf32>
    %60 = arith.mulf %58, %59 : vector<4x64x32xf32>
    %61 = vector.extract_strided_slice %6 {offsets = [0, 192], sizes = [256, 32], strides = [1, 1]} : vector<256x384xf32> to vector<256x32xf32>
    %62 = vector.shape_cast %61 : vector<256x32xf32> to vector<4x64x32xf32>
    %63 = vector.extract_strided_slice %6 {offsets = [0, 320], sizes = [256, 32], strides = [1, 1]} : vector<256x384xf32> to vector<256x32xf32>
    %64 = vector.shape_cast %63 : vector<256x32xf32> to vector<4x64x32xf32>
    "tpu.trace_start"() <{level = 10 : i32, message = "bqd,bkd->bqk"}> : () -> ()
    %cst_22 = arith.constant dense<0.000000e+00> : vector<4x64x64xf32>
    %65 = tpu.matmul %60, %62, %cst_22 {dimension_numbers = #tpu.dot_dimension_numbers<[2], [2], [1], [1], [0, 0, 0, 1, 1, 1], [0], [0]>} : vector<4x64x32xf32>, vector<4x64x32xf32>, vector<4x64x64xf32> -> vector<4x64x64xf32>
    "tpu.trace_stop"() : () -> ()
    %c2 = arith.constant 2 : index
    %c0_23 = arith.constant 0 : index
    %c0_24 = arith.constant 0 : index
    %66 = vector.load %arg4[%c2, %c0_23, %c0_24] : memref<4x64x64xf32, #tpu.memory_space<vmem>>, vector<1x64x64xf32>
    %67 = vector.shape_cast %66 : vector<1x64x64xf32> to vector<64x64xf32>
    %68 = vector.shape_cast %67 : vector<64x64xf32> to vector<1x64x64xf32>
    %69 = vector.broadcast %68 : vector<1x64x64xf32> to vector<4x64x64xf32>
    %70 = arith.addf %65, %69 : vector<4x64x64xf32>
    %cst_25 = arith.constant dense<0xFF800000> : vector<4x64xf32>
    %71 = vector.multi_reduction <maximumf>, %70, %cst_25 [2] : vector<4x64x64xf32> to vector<4x64xf32>
    %72 = vector.shape_cast %71 : vector<4x64xf32> to vector<4x64x1xf32>
    %73 = vector.broadcast %72 : vector<4x64x1xf32> to vector<4x64x64xf32>
    %74 = arith.subf %70, %73 : vector<4x64x64xf32>
    %75 = math.exp %74 : vector<4x64x64xf32>
    %cst_26 = arith.constant dense<0.000000e+00> : vector<4x64xf32>
    %76 = vector.multi_reduction <add>, %75, %cst_26 [2] : vector<4x64x64xf32> to vector<4x64xf32>
    %77 = vector.shape_cast %76 : vector<4x64xf32> to vector<4x64x1xf32>
    %78 = vector.broadcast %77 : vector<4x64x1xf32> to vector<4x64x64xf32>
    %79 = arith.divf %75, %78 : vector<4x64x64xf32>
    "tpu.trace_start"() <{level = 10 : i32, message = "bqk,bkd->bqd"}> : () -> ()
    %cst_27 = arith.constant dense<0.000000e+00> : vector<4x64x32xf32>
    %80 = tpu.matmul %79, %64, %cst_27 {dimension_numbers = #tpu.dot_dimension_numbers<[2], [1], [1], [2], [0, 0, 0, 1, 1, 2], [0], [0]>} : vector<4x64x64xf32>, vector<4x64x32xf32>, vector<4x64x32xf32> -> vector<4x64x32xf32>
    "tpu.trace_stop"() : () -> ()
    %81 = vector.shape_cast %80 : vector<4x64x32xf32> to vector<256x32xf32>
    %82 = vector.extract_strided_slice %6 {offsets = [0, 96], sizes = [256, 32], strides = [1, 1]} : vector<256x384xf32> to vector<256x32xf32>
    %83 = vector.shape_cast %82 : vector<256x32xf32> to vector<4x64x32xf32>
    %cst_28 = arith.constant 0.176776692 : f32
    %84 = vector.broadcast %cst_28 : f32 to vector<4x64x32xf32>
    %85 = arith.mulf %83, %84 : vector<4x64x32xf32>
    %86 = vector.extract_strided_slice %6 {offsets = [0, 224], sizes = [256, 32], strides = [1, 1]} : vector<256x384xf32> to vector<256x32xf32>
    %87 = vector.shape_cast %86 : vector<256x32xf32> to vector<4x64x32xf32>
    %88 = vector.extract_strided_slice %6 {offsets = [0, 352], sizes = [256, 32], strides = [1, 1]} : vector<256x384xf32> to vector<256x32xf32>
    %89 = vector.shape_cast %88 : vector<256x32xf32> to vector<4x64x32xf32>
    "tpu.trace_start"() <{level = 10 : i32, message = "bqd,bkd->bqk"}> : () -> ()
    %cst_29 = arith.constant dense<0.000000e+00> : vector<4x64x64xf32>
    %90 = tpu.matmul %85, %87, %cst_29 {dimension_numbers = #tpu.dot_dimension_numbers<[2], [2], [1], [1], [0, 0, 0, 1, 1, 1], [0], [0]>} : vector<4x64x32xf32>, vector<4x64x32xf32>, vector<4x64x64xf32> -> vector<4x64x64xf32>
    "tpu.trace_stop"() : () -> ()
    %c3 = arith.constant 3 : index
    %c0_30 = arith.constant 0 : index
    %c0_31 = arith.constant 0 : index
    %91 = vector.load %arg4[%c3, %c0_30, %c0_31] : memref<4x64x64xf32, #tpu.memory_space<vmem>>, vector<1x64x64xf32>
    %92 = vector.shape_cast %91 : vector<1x64x64xf32> to vector<64x64xf32>
    %93 = vector.shape_cast %92 : vector<64x64xf32> to vector<1x64x64xf32>
    %94 = vector.broadcast %93 : vector<1x64x64xf32> to vector<4x64x64xf32>
    %95 = arith.addf %90, %94 : vector<4x64x64xf32>
    %cst_32 = arith.constant dense<0xFF800000> : vector<4x64xf32>
    %96 = vector.multi_reduction <maximumf>, %95, %cst_32 [2] : vector<4x64x64xf32> to vector<4x64xf32>
    %97 = vector.shape_cast %96 : vector<4x64xf32> to vector<4x64x1xf32>
    %98 = vector.broadcast %97 : vector<4x64x1xf32> to vector<4x64x64xf32>
    %99 = arith.subf %95, %98 : vector<4x64x64xf32>
    %100 = math.exp %99 : vector<4x64x64xf32>
    %cst_33 = arith.constant dense<0.000000e+00> : vector<4x64xf32>
    %101 = vector.multi_reduction <add>, %100, %cst_33 [2] : vector<4x64x64xf32> to vector<4x64xf32>
    %102 = vector.shape_cast %101 : vector<4x64xf32> to vector<4x64x1xf32>
    %103 = vector.broadcast %102 : vector<4x64x1xf32> to vector<4x64x64xf32>
    %104 = arith.divf %100, %103 : vector<4x64x64xf32>
    "tpu.trace_start"() <{level = 10 : i32, message = "bqk,bkd->bqd"}> : () -> ()
    %cst_34 = arith.constant dense<0.000000e+00> : vector<4x64x32xf32>
    %105 = tpu.matmul %104, %89, %cst_34 {dimension_numbers = #tpu.dot_dimension_numbers<[2], [1], [1], [2], [0, 0, 0, 1, 1, 2], [0], [0]>} : vector<4x64x64xf32>, vector<4x64x32xf32>, vector<4x64x32xf32> -> vector<4x64x32xf32>
    "tpu.trace_stop"() : () -> ()
    %106 = vector.shape_cast %105 : vector<4x64x32xf32> to vector<256x32xf32>
    %107 = tpu.concatenate %31, %56, %81, %106 in 1 : vector<256x32xf32>, vector<256x32xf32>, vector<256x32xf32>, vector<256x32xf32> -> vector<256x128xf32>
    %c0_35 = arith.constant 0 : index
    %c0_36 = arith.constant 0 : index
    %108 = vector.load %arg5[%c0_35, %c0_36] : memref<128x128xf32, #tpu.memory_space<vmem>>, vector<128x128xf32>
    %cst_37 = arith.constant dense<0.000000e+00> : vector<256x128xf32>
    %109 = tpu.matmul %107, %108, %cst_37 {dimension_numbers = #tpu.dot_dimension_numbers<[1], [0], [0], [1], [0, 0, 1, 1], [], []>} : vector<256x128xf32>, vector<128x128xf32>, vector<256x128xf32> -> vector<256x128xf32>
    %c0_38 = arith.constant 0 : index
    %c0_39 = arith.constant 0 : index
    %110 = vector.load %arg6[%c0_38, %c0_39] : memref<1x128xf32, #tpu.memory_space<vmem>>, vector<1x128xf32>
    %111 = vector.broadcast %110 : vector<1x128xf32> to vector<256x128xf32>
    %112 = arith.addf %109, %111 : vector<256x128xf32>
    %113 = vector.shape_cast %112 : vector<256x128xf32> to vector<4x64x128xf32>
    %c0_40 = arith.constant 0 : index
    %c0_41 = arith.constant 0 : index
    %c0_42 = arith.constant 0 : index
    %114 = vector.load %arg7[%c0_40, %c0_41, %c0_42] : memref<4x64x128xf32, #tpu.memory_space<vmem>>, vector<4x64x128xf32>
    tpu.vector_store %arg7[%c0_40, %c0_41, %c0_42], %113 {strides = array<i32>} : memref<4x64x128xf32, #tpu.memory_space<vmem>>, vector<4x64x128xf32>,
    return
  }
  func.func @transform_0(%arg0: i32) -> (i32, i32, i32) {
    %c0_i32 = arith.constant 0 : i32
    %c0_i32_0 = arith.constant 0 : i32
    %c0_i32_1 = arith.constant 0 : i32
    return %arg0, %c0_i32, %c0_i32_0 : i32, i32, i32
  }
  func.func @transform_1(%arg0: i32) -> (i32, i32) {
    %c0_i32 = arith.constant 0 : i32
    %c0_i32_0 = arith.constant 0 : i32
    %c0_i32_1 = arith.constant 0 : i32
    return %c0_i32, %c0_i32_0 : i32, i32
  }
  func.func @transform_2(%arg0: i32) -> (i32, i32) {
    %c0_i32 = arith.constant 0 : i32
    %c0_i32_0 = arith.constant 0 : i32
    %c0_i32_1 = arith.constant 0 : i32
    return %c0_i32, %c0_i32_0 : i32, i32
  }
  func.func @transform_3(%arg0: i32) -> (i32, i32, i32) {
    %c0_i32 = arith.constant 0 : i32
    %c0_i32_0 = arith.constant 0 : i32
    %c0_i32_1 = arith.constant 0 : i32
    %c0_i32_2 = arith.constant 0 : i32
    return %c0_i32, %c0_i32_0, %c0_i32_1 : i32, i32, i32
  }
  func.func @transform_4(%arg0: i32) -> (i32, i32) {
    %c0_i32 = arith.constant 0 : i32
    %c0_i32_0 = arith.constant 0 : i32
    %c0_i32_1 = arith.constant 0 : i32
    return %c0_i32, %c0_i32_0 : i32, i32
  }
  func.func @transform_5(%arg0: i32) -> (i32, i32) {
    %c0_i32 = arith.constant 0 : i32
    %c0_i32_0 = arith.constant 0 : i32
    %c0_i32_1 = arith.constant 0 : i32
    return %c0_i32, %c0_i32_0 : i32, i32
  }
  func.func @transform_6(%arg0: i32) -> (i32, i32, i32) {
    %c0_i32 = arith.constant 0 : i32
    %c0_i32_0 = arith.constant 0 : i32
    %c0_i32_1 = arith.constant 0 : i32
    return %arg0, %c0_i32, %c0_i32_0 : i32, i32, i32
  }
}

</mosaic_0001>

<bundles_post_ra>
// kernel: window_attention_forward.2
= control target key start
LH: loop header
LB: loop body
LE: loop exit
PB: predicated region body
PF: predicated region fallthrough
CT: control target
= control target key end

     0   :  { %9 = vsyncpa [#allocation3], 0  ;;  %s1561_s0 = inlined_call_operand.hbm [shape: f32[225,2], index: 0, kind: input, shape index: {}]   ;;  %s1562_s1 = inlined_call_operand.hbm [shape: f32[2,128], index: 1, kind: input, shape index: {}]   ;;  %s1563_s2 = inlined_call_operand.hbm [shape: f32[1,128], index: 2, kind: input, shape index: {}]   ;;  %s1564_s3 = inlined_call_operand.vmem [shape: f32[128,4], index: 3, kind: input, shape index: {}]   ;;  %s1565_s4 = inlined_call_operand.vmem [shape: f32[225,4], index: 4, kind: output, shape index: {}]  }
   0x1   :  { %10 = vsyncpa [#allocation5], 0  ;;  %s1085_s15 = smov [#allocation4]   ;;  %s1086_s17 = smov [#allocation2]  }
   0x2   :  { %s29_s16 = sshll.u32 %s1085_s15, 4  ;;  %s16_s18 = sshll.u32 %s1086_s17, 4  ;;  %s30_s16 = int_to_ptr.vmem [resolvable:$true] %s29_s16  ;;  %s1120_s18 = int_to_ptr.vmem [resolvable:$true] %s16_s18 }
   0x3   :  { %s1015_s21 = scalar_lea.hbm %s1562_s1, 32 }
   0x4   :  { %p1016_p0 = scmp.ne.s32.totalorder %s1562_s1, %s1015_s21  ;;  %p1019_p1 = scmp.lt.u32.totalorder %s1015_s21, %s1562_s1 }
   0x6   :  { %p1021_p2 = pnand %p1019_p1, %p1016_p0 }
   0x8   :  { %1024 = shalt.err (!%p1021_p2)
}
   0x9   :  { %s1025_s26 = scalar_lea.vmem %s30_s16, 32  ;;  %p1030_p4 = scmp.lt.s32.totalorder %s30_s16, %s30_s16 }
   0xa   :  { %p1026_p3 = scmp.ne.s32.totalorder %s30_s16, %s1025_s26  ;;  %p1031_p5 = scmp.lt.s32.totalorder %s1025_s26, %s1025_s26 }
   0xc   :  { %p1032_p6 = por %p1031_p5, %p1030_p4 }
   0xe   :  { %p1033_p7 = pnand %p1032_p6, %p1026_p3 }
  0x10   :  { %1036 = shalt.err (!%p1033_p7)
}
  0x11   :  { %32 = dma.hbm_to_vmem [thread:$0]  %s1562_s1, 32, %s30_s16, [#allocation5]  }
  0x12   :  { %s1037_s5 = scalar_lea.hbm %s1561_s0, 3712 }
  0x13   :  { %p1038_p8 = scmp.ne.s32.totalorder %s1561_s0, %s1037_s5  ;;  %p1041_p9 = scmp.lt.u32.totalorder %s1037_s5, %s1561_s0 }
  0x15   :  { %p1043_p10 = pnand %p1041_p9, %p1038_p8 }
  0x17   :  { %1046 = shalt.err (!%p1043_p10)
}
  0x18   :  { %s1047_s10 = scalar_lea.vmem %s1120_s18, 3712  ;;  %p1052_p12 = scmp.lt.s32.totalorder %s1120_s18, %s1120_s18 }
  0x19   :  { %p1048_p11 = scmp.ne.s32.totalorder %s1120_s18, %s1047_s10  ;;  %p1053_p13 = scmp.lt.s32.totalorder %s1047_s10, %s1047_s10 }
  0x1b   :  { %p1054_p0 = por %p1053_p13, %p1052_p12 }
  0x1d   :  { %p1055_p1 = pnand %p1054_p0, %p1048_p11 }
  0x1f   :  { %1058 = shalt.err (!%p1055_p1)
}
  0x20   :  { %s1087_s1 = smov 128   ;;  %s1088_s11 = smov 8  }
  0x21   :  { %22 = dma.hbm_to_vmem [thread:$0]  %s1561_s0, 3712, %s1120_s18, [#allocation3], %s1087_s1, %s1087_s1, %s1088_s11  }
  0x22   :  { %s1089_s14 = smov [#allocation6]   ;;  %s1059_s19 = scalar_lea.hbm %s1563_s2, 16 }
  0x23   :  { %s39_s15 = sshll.u32 %s1089_s14, 4  ;;  %p1060_p2 = scmp.ne.s32.totalorder %s1563_s2, %s1059_s19  ;;  %s40_s15 = int_to_ptr.vmem [resolvable:$true] %s39_s15 }
  0x24   :  { %p1063_p3 = scmp.lt.u32.totalorder %s1059_s19, %s1563_s2 }
  0x26   :  { %p1065_p4 = pnand %p1063_p3, %p1060_p2 }
  0x28   :  { %1068 = shalt.err (!%p1065_p4)
}
  0x29   :  { %s1069_s24 = scalar_lea.vmem %s40_s15, 16  ;;  %s1073_s0 = scalar_lea.vmem %s40_s15, 32 }
  0x2a   :  { %p1070_p5 = scmp.ne.s32.totalorder %s40_s15, %s1069_s24  ;;  %p1074_p6 = scmp.lt.s32.totalorder %s40_s15, %s40_s15 }
  0x2b   :  { %p1075_p7 = scmp.lt.s32.totalorder %s1073_s0, %s1069_s24 }
  0x2d   :  { %p1076_p8 = por %p1075_p7, %p1074_p6 }
  0x2f   :  { %p1077_p9 = pnand %p1076_p8, %p1070_p5 }
  0x31   :  { %1080 = shalt.err (!%p1077_p9)
}
  0x32   :  { %42 = dma.hbm_to_vmem [thread:$0]  %s1563_s2, 16, %s40_s15, [#allocation5]  }
  0x33   :  { %1081 = dma.done.wait [#allocation3], 3712  }
  0x34   :  { %1082 = vsyncadd [#allocation3], 4294963584 }
  0x35   :  { %1083 = dma.done.wait [#allocation5], 48  }
  0x36   :  { %1084 = vsyncadd [#allocation5], 4294967248  ;;  %v1090_v0 = vmov 0   ;;  %v1091_v1 = vmov 0.0|0.0   ;;  %v55_v2 = vld [vmem:[#allocation2 + $0x8] sm:$0xff]  ;;  %v54_v3 = vld [vmem:[#allocation2] sm:$0xff]  ;;  %v229_v53 = vlaneseq }
  0x37   :  { %985 = vset.pattern.permute.xlu1 %v1090_v0  ;;  %983 = vset.pattern.permute.xlu0 %v1090_v0  ;;  %v69_v4 = vld [vmem:[#allocation2 + $0x78] sm:$0xff]  ;;  %v1092_v5 = vmov 1   ;;  %v505_v6 = vld [vmem:[%s1564_s3] sm:$0xff]  ;;  %v506_v7 = vld [vmem:[%s1564_s3 + $0x8] sm:$0xff]  ;;  %vm1093_vm0 = vmmov 0   ;;  %v1094_v16 = vmov 0.0  }
  0x38   :  { %933 = vmatprep.subr.bf16.mxu0 %v1091_v1  ;;  %957 = vmatprep.subr.bf16.mxu1 %v1091_v1  ;;  %v507_v8 = vld [vmem:[%s1564_s3 + $0x10] sm:$0xff]  ;;  %v934_v9 = vpack.c.bf16 %v506_v7, %v505_v6  ;;  %v508_v10 = vld [vmem:[%s1564_s3 + $0x18] sm:$0xff]  ;;  %v509_v14 = vld [vmem:[%s1564_s3 + $0x20] sm:$0xff]  ;;  %v230_v55 = vshrl.u32 %v229_v53, 7  ;;  %vm731_vm1 = vcmask 31744   ;;  %vm760_vm2 = vcmask 24576  }
  0x39   :  { %91 = vperm.xlu1 %985, %v55_v2   ;;  %86 = vperm.xlu0 %983, %v54_v3   ;;  %v1181_v11 = vld [vmem:[#allocation2 + $0x18] sm:$0xff]  ;;  %v937_v12 = vpack.c.bf16 %v508_v10, %v507_v8  ;;  %v56_v13 = vld [vmem:[#allocation2 + $0x10] sm:$0xff]  ;;  %v510_v15 = vld [vmem:[%s1564_s3 + $0x28] sm:$0xff] }
  0x3a   :  { %935 = vmatpush3.bf16.msra.mxu0 %v934_v9  ;;  %965 = vmatpush3.bf16.msra.mxu1 %v934_v9  ;;  %v1197_v17 = vld [vmem:[#allocation2 + $0x28] sm:$0xff]  ;;  %v940_v18 = vpack.c.bf16 %v510_v15, %v509_v14  ;;  %v511_v19 = vld [vmem:[%s1564_s3 + $0x30] sm:$0xff]  ;;  %v512_v20 = vld [vmem:[%s1564_s3 + $0x38] sm:$0xff]  ;;  %v231_v56 = vsub.s32 0, %v230_v55  ;;  %v380_v57 = vsub.s32 1, %v230_v55 }
  0x3b   :  { %936 = vmatprep.subr.bf16.mxu0 %v1091_v1  ;;  %958 = vmatprep.subr.bf16.mxu1 %v1091_v1  ;;  %v1209_v21 = vld [vmem:[#allocation2 + $0x38] sm:$0xff]  ;;  %v943_v22 = vpack.c.bf16 %v512_v20, %v511_v19  ;;  %v513_v23 = vld [vmem:[%s1564_s3 + $0x40] sm:$0xff]  ;;  %v514_v24 = vld [vmem:[%s1564_s3 + $0x48] sm:$0xff] }
  0x3c   :  { %846 = vmatprep.mubr.msk.f32.mxu0 %vm1093_vm0, %v1094_v16  ;;  %891 = vmatprep.mubr.msk.f32.mxu1 %vm1093_vm0, %v1094_v16  ;;  %v70_v25 = vld [vmem:[#allocation2 + $0x80] sm:$0xff]  ;;  %v1220_v26 = vld [vmem:[#allocation2 + $0x48] sm:$0xff]  ;;  %v946_v27 = vpack.c.bf16 %v514_v24, %v513_v23  ;;  %v515_v28 = vld [vmem:[%s1564_s3 + $0x50] sm:$0xff] }
  0x3d   :  { %161 = vperm.xlu1 %985, %v69_v4   ;;  %984 = vset.pattern.permute.xlu0 %v1092_v5  ;;  %v516_v29 = vld [vmem:[%s1564_s3 + $0x58] sm:$0xff]  ;;  %v71_v30 = vld [vmem:[#allocation2 + $0x88] sm:$0xff]  ;;  %v517_v33 = vld [vmem:[%s1564_s3 + $0x60] sm:$0xff] }
  0x3e   :  { %263 = vperm.xlu0 %984, %v54_v3   ;;  %938 = vmatpush3.bf16.msra.mxu0 %v937_v12  ;;  %v65_v31 = vld [vmem:[#allocation2 + $0x58] sm:$0xff]  ;;  %v949_v32 = vpack.c.bf16 %v516_v29, %v515_v28  ;;  %v518_v34 = vld [vmem:[%s1564_s3 + $0x68] sm:$0xff]  ;;  %v519_v37 = vld [vmem:[%s1564_s3 + $0x70] sm:$0xff] }
  0x3f   :  { %939 = vmatprep.subr.bf16.mxu0 %v1091_v1  ;;  %966 = vmatpush3.bf16.msra.mxu1 %v937_v12  ;;  %v67_v35 = vld [vmem:[#allocation2 + $0x68] sm:$0xff]  ;;  %v952_v36 = vpack.c.bf16 %v518_v34, %v517_v33  ;;  %v520_v38 = vld [vmem:[%s1564_s3 + $0x78] sm:$0xff]  ;;  %v58_v39 = vld [vmem:[#allocation2 + $0x20] sm:$0xff] }
  0x40   :  { %959 = vmatprep.subr.bf16.mxu1 %v1091_v1  ;;  %v955_v40 = vpack.c.bf16 %v520_v38, %v519_v37  ;;  %v72_v41 = vld [vmem:[#allocation2 + $0x90] sm:$0xff]  ;;  %v73_v42 = vld [vmem:[#allocation2 + $0x98] sm:$0xff]  ;;  %v74_v43 = vld [vmem:[#allocation2 + $0xa0] sm:$0xff] }
  0x41   :  { %986 = vset.pattern.permute.xlu1 %v1092_v5  ;;  %v60_v44 = vld [vmem:[#allocation2 + $0x30] sm:$0xff]  ;;  %v78_v46 = vld [vmem:[#allocation2 + $0xc0] sm:$0xff]  ;;  %v75_v47 = vld [vmem:[#allocation2 + $0xa8] sm:$0xff] }
  0x42   :  { %267 = vperm.xlu1 %986, %v55_v2   ;;  %323 = vperm.xlu0 %984, %v69_v4   ;;  %v76_v45 = vld [vmem:[#allocation2 + $0xb0] sm:$0xff]  ;;  %v62_v49 = vld [vmem:[#allocation2 + $0x40] sm:$0xff]  ;;  %v77_v51 = vld [vmem:[#allocation2 + $0xb8] sm:$0xff] }
  0x43   :  { %941 = vmatpush3.bf16.msra.mxu0 %v940_v18  ;;  %967 = vmatpush3.bf16.msra.mxu1 %v940_v18  ;;  %v1263_v48 = vld [vmem:[#allocation2 + $0xd0] sm:$0xff]  ;;  %v1267_v50 = vld [vmem:[#allocation2 + $0xe0] sm:$0x1]  ;;  %v79_v54 = vld [vmem:[#allocation2 + $0xc8] sm:$0xff] }
  0x44   :  { %942 = vmatprep.subr.bf16.mxu0 %v1091_v1  ;;  %960 = vmatprep.subr.bf16.mxu1 %v1091_v1  ;;  %v64_v52 = vld [vmem:[#allocation2 + $0x50] sm:$0xff]  ;;  %v83_v58 = vld [vmem:[#allocation4] sm:$0x3]  ;;  %v66_v2 = vld [vmem:[#allocation2 + $0x60] sm:$0xff] }
  0x45   :  { %v1279_v61 = vrot.slane %v83_v58, %v231_v56  ;;  %v1281_v62 = vrot.slane %v83_v58, %v380_v57  ;;  %v1286_v6 = vld [vmem:[#allocation6] ss:$0 sm:$0xff]  ;;  %v68_v37 = vld [vmem:[#allocation2 + $0x70] sm:$0xff] }
  0x46   :  { %987 = vset.pattern.permute.xlu1 %v1090_v0  ;;  %275 = vperm.xlu0 %984, %v1181_v11  }
  0x47   :  { %96 = vperm.xlu1 %987, %v56_v13   ;;  %944 = vmatpush3.bf16.msra.mxu0 %v943_v22 }
  0x48   :  { %945 = vmatprep.subr.bf16.mxu0 %v1091_v1  ;;  %968 = vmatpush3.bf16.msra.mxu1 %v943_v22 }
  0x49   :  { %961 = vmatprep.subr.bf16.mxu1 %v1091_v1 }
  0x4a   :  { %283 = vperm.xlu0 %984, %v1197_v17  }
  0x4b   :  { %988 = vset.pattern.permute.xlu1 %v1092_v5  ;;  %947 = vmatpush3.bf16.msra.mxu0 %v946_v27 }
  0x4c   :  { %271 = vperm.xlu1 %988, %v56_v13   ;;  %948 = vmatprep.subr.bf16.mxu0 %v1091_v1 }
  0x4d   :  { %969 = vmatpush3.bf16.msra.mxu1 %v946_v27 }
  0x4e   :  { %291 = vperm.xlu0 %984, %v1209_v21   ;;  %962 = vmatprep.subr.bf16.mxu1 %v1091_v1 }
  0x4f   :  { %950 = vmatpush3.bf16.msra.mxu0 %v949_v32 }
  0x50   :  { %327 = vperm.xlu1 %988, %v70_v25   ;;  %951 = vmatprep.subr.bf16.mxu0 %v1091_v1 }
  0x51   :  { %970 = vmatpush3.bf16.msra.mxu1 %v949_v32 }
  0x52   :  { %299 = vperm.xlu0 %984, %v1220_v26   ;;  %963 = vmatprep.subr.bf16.mxu1 %v1091_v1 }
  0x53   :  { %953 = vmatpush3.bf16.msra.mxu0 %v952_v36 }
  0x54   :  { %989 = vset.pattern.permute.xlu1 %v1090_v0  ;;  %954 = vmatprep.subr.bf16.mxu0 %v1091_v1 }
  0x55   :  { %171 = vperm.xlu1 %989, %v71_v30   ;;  %971 = vmatpush3.bf16.msra.mxu1 %v952_v36 }
  0x56   :  { %307 = vperm.xlu0 %984, %v65_v31   ;;  %964 = vmatprep.subr.bf16.mxu1 %v1091_v1 }
  0x57   :  { %956 = vmatpush3.bf16.msra.mxu0 %v955_v40 }
  0x59   :  { %990 = vset.pattern.permute.xlu1 %v1092_v5  ;;  %972 = vmatpush3.bf16.msra.mxu1 %v955_v40 }
  0x5a   :  { %331 = vperm.xlu1 %990, %v71_v30   ;;  %315 = vperm.xlu0 %984, %v67_v35  }
  0x5e   :  { %991 = vset.pattern.permute.xlu1 %v1090_v0  ;;  %1010 = vset.pattern.permute.xlu0 %v1090_v0 }
  0x5f   :  { %106 = vperm.xlu1 %991, %v58_v39   ;;  %166 = vperm.xlu0 %1010, %v70_v25  }
  0x63   :  { %992 = vset.pattern.permute.xlu1 %v1092_v5  ;;  %101 = vperm.xlu0 %1010, %v1181_v11  }
  0x64   :  { %279 = vperm.xlu1 %992, %v58_v39  }
  0x67   :  { %176 = vperm.xlu0 %1010, %v72_v41  }
  0x68   :  { %335 = vperm.xlu1 %992, %v72_v41  }
  0x6b   :  { %111 = vperm.xlu0 %1010, %v1197_v17  }
  0x6c   :  { %993 = vset.pattern.permute.xlu1 %v1090_v0 }
  0x6d   :  { %181 = vperm.xlu1 %993, %v73_v42  }
  0x6f   :  { %186 = vperm.xlu0 %1010, %v74_v43  }
  0x71   :  { %994 = vset.pattern.permute.xlu1 %v1092_v5 }
  0x72   :  { %339 = vperm.xlu1 %994, %v73_v42  }
  0x73   :  { %121 = vperm.xlu0 %1010, %v1209_v21  }
  0x76   :  { %995 = vset.pattern.permute.xlu1 %v1090_v0 }
  0x77   :  { %116 = vperm.xlu1 %995, %v60_v44   ;;  %196 = vperm.xlu0 %1010, %v76_v45  }
  0x7b   :  { %996 = vset.pattern.permute.xlu1 %v1092_v5  ;;  %131 = vperm.xlu0 %1010, %v1220_v26   ;;  %v81_v26 = vld [vmem:[#allocation2 + $0xd8] sm:$0xff] }
  0x7c   :  { %287 = vperm.xlu1 %996, %v60_v44  }
  0x7f   :  { %206 = vperm.xlu0 %1010, %v78_v46  }
  0x80   :  { %343 = vperm.xlu1 %996, %v74_v43  }
  0x83   :  { %141 = vperm.xlu0 %1010, %v65_v31  }
  0x84   :  { %997 = vset.pattern.permute.xlu1 %v1090_v0 }
  0x85   :  { %191 = vperm.xlu1 %997, %v75_v47  }
  0x87   :  { %216 = vperm.xlu0 %1010, %v1263_v48  }
  0x89   :  { %998 = vset.pattern.permute.xlu1 %v1092_v5 }
  0x8a   :  { %347 = vperm.xlu1 %998, %v75_v47  }
  0x8b   :  { %151 = vperm.xlu0 %1010, %v67_v35  }
  0x8e   :  { %999 = vset.pattern.permute.xlu1 %v1090_v0 }
  0x8f   :  { %126 = vperm.xlu1 %999, %v62_v49   ;;  %226 = vperm.xlu0 %1010, %v1267_v50  }
  0x93   :  { %1000 = vset.pattern.permute.xlu1 %v1092_v5  ;;  %1014 = vset.pattern.permute.xlu0 %v1092_v5 }
  0x94   :  { %295 = vperm.xlu1 %1000, %v62_v49  }
  0x98   :  { %351 = vperm.xlu1 %1000, %v76_v45  }
  0x9c   :  { %1001 = vset.pattern.permute.xlu1 %v1090_v0 }
  0x9d   :  { %201 = vperm.xlu1 %1001, %v77_v51  }
  0xa1   :  { %1002 = vset.pattern.permute.xlu1 %v1092_v5 }
  0xa2   :  { %355 = vperm.xlu1 %1002, %v77_v51  }
  0xa6   :  { %1003 = vset.pattern.permute.xlu1 %v1090_v0 }
  0xa7   :  { %136 = vperm.xlu1 %1003, %v64_v52  }
  0xab   :  { %1004 = vset.pattern.permute.xlu1 %v1092_v5 }
  0xac   :  { %303 = vperm.xlu1 %1004, %v64_v52  }
  0xb0   :  { %359 = vperm.xlu1 %1004, %v78_v46  }
  0xb4   :  { %1005 = vset.pattern.permute.xlu1 %v1090_v0 }
  0xb5   :  { %211 = vperm.xlu1 %1005, %v79_v54  }
  0xb8   :  { %v92_v59 = vpop.permute.xlu1 %91  ;;  %v87_v60 = vpop.permute.xlu0 %86 }
  0xb9   :  { %1006 = vset.pattern.permute.xlu1 %v1092_v5  ;;  %v233_v63 = vmul.f32 %v1279_v61, %v87_v60  ;;  %v234_v8 = vmul.f32 %v1279_v61, %v92_v59 }
  0xba   :  { %363 = vperm.xlu1 %1006, %v79_v54  }
  0xbc   :  { %v162_v1 = vpop.permute.xlu1 %161 }
  0xbd   :  { %v264_v3 = vpop.permute.xlu0 %263  ;;  %v248_v11 = vmul.f32 %v1279_v61, %v162_v1 }
  0xbe   :  { %v382_v4 = vmul.f32 %v1281_v62, %v264_v3  ;;  %1007 = vset.pattern.permute.xlu1 %v1090_v0 }
  0xbf   :  { %146 = vperm.xlu1 %1007, %v66_v2  }
  0xc0   :  { %v411_v7 = vadd.f32 %v382_v4, %v233_v63 }
  0xc1   :  { %v268_v9 = vpop.permute.xlu1 %267  ;;  %v324_v10 = vpop.permute.xlu0 %323 }
  0xc2   :  { %v383_v12 = vmul.f32 %v1281_v62, %v268_v9  ;;  %v397_v13 = vmul.f32 %v1281_v62, %v324_v10  ;;  %v447_v14 = vadd.f32 %v1286_v6, %v411_v7 }
  0xc3   :  { %1008 = vset.pattern.permute.xlu1 %v1092_v5 }
  0xc4   :  { %v412_v15 = vadd.f32 %v383_v12, %v234_v8  ;;  %v426_v17 = vadd.f32 %v397_v13, %v248_v11  ;;  %311 = vperm.xlu1 %1008, %v66_v2   ;;  %v476_v18 = vmax.f32 %v447_v14, 0.0 }
  0xc5   :  { %v276_v19 = vpop.permute.xlu0 %275 }
  0xc6   :  { %v97_v20 = vpop.permute.xlu1 %96  ;;  %847 = vmatmul.mubr.f32.vlgmr.msra.gmra.mrb[0].mxu0 %v476_v18  ;;  %v448_v21 = vadd.f32 %v1286_v6, %v412_v15  ;;  %v462_v22 = vadd.f32 %v1286_v6, %v426_v17 }
  0xc7   :  { %849 = vmatprep.mubr.msk.f32.mxu0 %vm1093_vm0, %v1094_v16  ;;  %v235_v28 = vmul.f32 %v1279_v61, %v97_v20 }
  0xc8   :  { %367 = vperm.xlu1 %1008, %v1263_v48   ;;  %v477_v23 = vmax.f32 %v448_v21, 0.0  ;;  %v491_v24 = vmax.f32 %v462_v22, 0.0 }
  0xc9   :  { %v284_v25 = vpop.permute.xlu0 %283 }
  0xca   :  { %850 = vmatmul.mubr.f32.gmra.mrb[2].mxu0 %v477_v23  ;;  %892 = vmatmul.mubr.f32.vlgmr.msra.gmra.mrb[0].mxu1 %v491_v24  ;;  %v387_v2 = vmul.f32 %v1281_v62, %v284_v25 }
  0xcb   :  { %v272_v27 = vpop.permute.xlu1 %271  ;;  %852 = vmatprep.mubr.msk.f32.mxu0 %vm1093_vm0, %v1094_v16  ;;  %894 = vmatprep.mubr.msk.f32.mxu1 %vm1093_vm0, %v1094_v16 }
  0xcc   :  { %v384_v29 = vmul.f32 %v1281_v62, %v272_v27  ;;  %1009 = vset.pattern.permute.xlu1 %v1090_v0 }
  0xcd   :  { %221 = vperm.xlu1 %1009, %v81_v26   ;;  %v1306_v30 = vpop.permute.xlu0 %291 }
  0xce   :  { %v413_v31 = vadd.f32 %v384_v29, %v235_v28  ;;  %v389_v27 = vmul.f32 %v1281_v62, %v1306_v30 }
  0xcf   :  { %v328_v32 = vpop.permute.xlu1 %327 }
  0xd0   :  { %v449_v33 = vadd.f32 %v1286_v6, %v413_v31  ;;  %v398_v44 = vmul.f32 %v1281_v62, %v328_v32 }
  0xd1   :  { %1011 = vset.pattern.permute.xlu1 %v1092_v5  ;;  %v1310_v34 = vpop.permute.xlu0 %299 }
  0xd2   :  { %371 = vperm.xlu1 %1011, %v81_v26   ;;  %v478_v35 = vmax.f32 %v449_v33, 0.0 }
  0xd4   :  { %v172_v36 = vpop.permute.xlu1 %171  ;;  %853 = vmatmul.mubr.f32.gmra.mrb[4].mxu0 %v478_v35 }
  0xd5   :  { %v1312_v38 = vpop.permute.xlu0 %307  ;;  %855 = vmatprep.mubr.msk.f32.mxu0 %vm1093_vm0, %v1094_v16  ;;  %v250_v45 = vmul.f32 %v1279_v61, %v172_v36 }
  0xd6   :  { %1012 = vset.pattern.permute.xlu1 %v1090_v0  ;;  %v385_v0 = vmul.f32 %v1281_v62, %v276_v19 }
  0xd7   :  { %156 = vperm.xlu1 %1012, %v68_v37  }
  0xd9   :  { %v332_v39 = vpop.permute.xlu1 %331  ;;  %v1317_v40 = vpop.permute.xlu0 %315 }
  0xda   :  { %v399_v41 = vmul.f32 %v1281_v62, %v332_v39 }
  0xdb   :  { %1013 = vset.pattern.permute.xlu1 %v1092_v5 }
  0xdc   :  { %319 = vperm.xlu1 %1013, %v68_v37   ;;  %v428_v47 = vadd.f32 %v399_v41, %v250_v45 }
  0xde   :  { %v107_v42 = vpop.permute.xlu1 %106  ;;  %v167_v43 = vpop.permute.xlu0 %166  ;;  %v464_v57 = vadd.f32 %v1286_v6, %v428_v47 }
  0xdf   :  { %v249_v46 = vmul.f32 %v1279_v61, %v167_v43  ;;  %v237_v53 = vmul.f32 %v1279_v61, %v107_v42 }
  0xe0   :  { %375 = vperm.xlu1 %1013, %v1267_v50   ;;  %v493_v4 = vmax.f32 %v464_v57, 0.0  ;;  %v391_v57 = vmul.f32 %v1281_v62, %v1310_v34 }
  0xe1   :  { %v427_v48 = vadd.f32 %v398_v44, %v249_v46 }
  0xe2   :  { %v102_v49 = vpop.permute.xlu0 %101 }
  0xe3   :  { %v236_v5 = vmul.f32 %v1279_v61, %v102_v49  ;;  %v280_v51 = vpop.permute.xlu1 %279  ;;  %v463_v52 = vadd.f32 %v1286_v6, %v427_v48 }
  0xe4   :  { %v386_v54 = vmul.f32 %v1281_v62, %v280_v51 }
  0xe5   :  { %v414_v55 = vadd.f32 %v385_v0, %v236_v5  ;;  %v492_v56 = vmax.f32 %v463_v52, 0.0 }
  0xe6   :  { %v415_v58 = vadd.f32 %v386_v54, %v237_v53  ;;  %v177_v50 = vpop.permute.xlu0 %176 }
  0xe7   :  { %v336_v59 = vpop.permute.xlu1 %335  ;;  %895 = vmatmul.mubr.f32.gmra.mrb[2].mxu1 %v492_v56  ;;  %v251_v60 = vmul.f32 %v1279_v61, %v177_v50  ;;  %v450_v63 = vadd.f32 %v1286_v6, %v414_v55 }
  0xe8   :  { %v400_v1 = vmul.f32 %v1281_v62, %v336_v59  ;;  %897 = vmatprep.mubr.msk.f32.mxu1 %vm1093_vm0, %v1094_v16  ;;  %v451_v7 = vadd.f32 %v1286_v6, %v415_v58 }
  0xe9   :  { %v479_v3 = vmax.f32 %v450_v63, 0.0 }
  0xea   :  { %v429_v8 = vadd.f32 %v400_v1, %v251_v60  ;;  %v112_v9 = vpop.permute.xlu0 %111  ;;  %v480_v14 = vmax.f32 %v451_v7, 0.0 }
  0xeb   :  { %856 = vmatmul.mubr.f32.gmra.mrb[6].mxu0 %v479_v3  ;;  %898 = vmatmul.mubr.f32.gmra.mrb[4].mxu1 %v493_v4  ;;  %v238_v10 = vmul.f32 %v1279_v61, %v112_v9 }
  0xec   :  { %v182_v11 = vpop.permute.xlu1 %181  ;;  %858 = vmatprep.mubr.msk.f32.mxu0 %vm1093_vm0, %v1094_v16  ;;  %900 = vmatprep.mubr.msk.f32.mxu1 %vm1093_vm0, %v1094_v16  ;;  %v465_v12 = vadd.f32 %v1286_v6, %v429_v8 }
  0xed   :  { %v416_v13 = vadd.f32 %v387_v2, %v238_v10  ;;  %v252_v21 = vmul.f32 %v1279_v61, %v182_v11 }
  0xee   :  { %v494_v15 = vmax.f32 %v465_v12, 0.0  ;;  %v187_v19 = vpop.permute.xlu0 %186 }
  0xef   :  { %859 = vmatmul.mubr.f32.gmra.mrb[8].mxu0 %v480_v14  ;;  %v452_v17 = vadd.f32 %v1286_v6, %v416_v13  ;;  %v253_v36 = vmul.f32 %v1279_v61, %v187_v19 }
  0xf0   :  { %901 = vmatmul.mubr.f32.gmra.mrb[6].mxu1 %v494_v15  ;;  %861 = vmatprep.mubr.msk.f32.mxu0 %vm1093_vm0, %v1094_v16 }
  0xf1   :  { %v340_v18 = vpop.permute.xlu1 %339  ;;  %903 = vmatprep.mubr.msk.f32.mxu1 %vm1093_vm0, %v1094_v16  ;;  %v481_v20 = vmax.f32 %v452_v17, 0.0 }
  0xf2   :  { %v401_v22 = vmul.f32 %v1281_v62, %v340_v18  ;;  %v122_v26 = vpop.permute.xlu0 %121 }
  0xf3   :  { %862 = vmatmul.mubr.f32.gmra.mrb[10].mxu0 %v481_v20  ;;  %v240_v28 = vmul.f32 %v1279_v61, %v122_v26 }
  0xf4   :  { %v430_v23 = vadd.f32 %v401_v22, %v252_v21  ;;  %864 = vmatprep.mubr.msk.f32.mxu0 %vm1093_vm0, %v1094_v16 }
  0xf5   :  { %v418_v33 = vadd.f32 %v389_v27, %v240_v28 }
  0xf6   :  { %v117_v24 = vpop.permute.xlu1 %116  ;;  %v466_v25 = vadd.f32 %v1286_v6, %v430_v23  ;;  %v197_v51 = vpop.permute.xlu0 %196 }
  0xf7   :  { %v239_v32 = vmul.f32 %v1279_v61, %v117_v24  ;;  %v454_v42 = vadd.f32 %v1286_v6, %v418_v33  ;;  %v255_v63 = vmul.f32 %v1279_v61, %v197_v51  ;;  %v393_v24 = vmul.f32 %v1281_v62, %v1312_v38 }
  0xf8   :  { %v495_v29 = vmax.f32 %v466_v25, 0.0 }
  0xf9   :  { %v483_v0 = vmax.f32 %v454_v42, 0.0 }
  0xfa   :  { %904 = vmatmul.mubr.f32.gmra.mrb[8].mxu1 %v495_v29  ;;  %v132_v56 = vpop.permute.xlu0 %131 }
  0xfb   :  { %v288_v31 = vpop.permute.xlu1 %287  ;;  %906 = vmatprep.mubr.msk.f32.mxu1 %vm1093_vm0, %v1094_v16  ;;  %v242_v58 = vmul.f32 %v1279_v61, %v132_v56 }
  0xfc   :  { %v388_v35 = vmul.f32 %v1281_v62, %v288_v31 }
  0xfd   :  { %v420_v1 = vadd.f32 %v391_v57, %v242_v58 }
  0xfe   :  { %v417_v37 = vadd.f32 %v388_v35, %v239_v32  ;;  %v207_v18 = vpop.permute.xlu0 %206 }
  0xff   :  { %v344_v39 = vpop.permute.xlu1 %343  ;;  %v456_v9 = vadd.f32 %v1286_v6, %v420_v1  ;;  %v257_v29 = vmul.f32 %v1279_v61, %v207_v18 }
 0x100   :  { %v402_v41 = vmul.f32 %v1281_v62, %v344_v39  ;;  %v453_v30 = vadd.f32 %v1286_v6, %v417_v37 }
 0x101   :  { %v485_v12 = vmax.f32 %v456_v9, 0.0 }
 0x102   :  { %v431_v43 = vadd.f32 %v402_v41, %v253_v36  ;;  %v482_v44 = vmax.f32 %v453_v30, 0.0  ;;  %v142_v23 = vpop.permute.xlu0 %141 }
 0x103   :  { %v244_v25 = vmul.f32 %v1279_v61, %v142_v23 }
 0x104   :  { %v192_v45 = vpop.permute.xlu1 %191  ;;  %865 = vmatmul.mubr.f32.gmra.mrb[12].mxu0 %v482_v44  ;;  %v467_v46 = vadd.f32 %v1286_v6, %v431_v43 }
 0x105   :  { %867 = vmatprep.mubr.msk.f32.mxu0 %vm1093_vm0, %v1094_v16  ;;  %v254_v49 = vmul.f32 %v1279_v61, %v192_v45  ;;  %v422_v31 = vadd.f32 %v393_v24, %v244_v25 }
 0x106   :  { %v496_v47 = vmax.f32 %v467_v46, 0.0  ;;  %v217_v44 = vpop.permute.xlu0 %216 }
 0x107   :  { %v458_v39 = vadd.f32 %v1286_v6, %v422_v31 }
 0x108   :  { %907 = vmatmul.mubr.f32.gmra.mrb[10].mxu1 %v496_v47  ;;  %868 = vmatmul.mubr.f32.gmra.mrb[14].mxu0 %v483_v0 }
 0x109   :  { %v348_v48 = vpop.permute.xlu1 %347  ;;  %909 = vmatprep.mubr.msk.f32.mxu1 %vm1093_vm0, %v1094_v16  ;;  %870 = vmatprep.mubr.msk.f32.mxu0 %vm1093_vm0, %v1094_v16  ;;  %v487_v42 = vmax.f32 %v458_v39, 0.0 }
 0x10a   :  { %v403_v5 = vmul.f32 %v1281_v62, %v348_v48 }
 0x10c   :  { %v432_v52 = vadd.f32 %v403_v5, %v254_v49  ;;  %v152_v5 = vpop.permute.xlu0 %151 }
 0x10e   :  { %v127_v53 = vpop.permute.xlu1 %126  ;;  %v468_v54 = vadd.f32 %v1286_v6, %v432_v52  ;;  %v395_v52 = vmul.f32 %v1281_v62, %v1317_v40 }
 0x10f   :  { %v241_v59 = vmul.f32 %v1279_v61, %v127_v53  ;;  %v246_v53 = vmul.f32 %v1279_v61, %v152_v5 }
 0x110   :  { %v497_v55 = vmax.f32 %v468_v54, 0.0 }
 0x111   :  { %v424_v57 = vadd.f32 %v395_v52, %v246_v53 }
 0x112   :  { %910 = vmatmul.mubr.f32.gmra.mrb[12].mxu1 %v497_v55 }
 0x113   :  { %v296_v50 = vpop.permute.xlu1 %295  ;;  %912 = vmatprep.mubr.msk.f32.mxu1 %vm1093_vm0, %v1094_v16 }
 0x114   :  { %v390_v60 = vmul.f32 %v1281_v62, %v296_v50 }
 0x116   :  { %v419_v2 = vadd.f32 %v390_v60, %v241_v59  ;;  %v259_v59 = vmul.f32 %v1279_v61, %v217_v44 }
 0x117   :  { %v352_v3 = vpop.permute.xlu1 %351 }
 0x118   :  { %v404_v4 = vmul.f32 %v1281_v62, %v352_v3  ;;  %v455_v34 = vadd.f32 %v1286_v6, %v419_v2  ;;  %v460_v2 = vadd.f32 %v1286_v6, %v424_v57 }
 0x11a   :  { %v433_v7 = vadd.f32 %v404_v4, %v255_v63  ;;  %v484_v8 = vmax.f32 %v455_v34, 0.0  ;;  %v489_v34 = vmax.f32 %v460_v2, 0.0 }
 0x11c   :  { %v202_v10 = vpop.permute.xlu1 %201  ;;  %871 = vmatmul.mubr.f32.gmra.mrb[16].mxu0 %v484_v8  ;;  %v469_v11 = vadd.f32 %v1286_v6, %v433_v7 }
 0x11d   :  { %873 = vmatprep.mubr.msk.f32.mxu0 %vm1093_vm0, %v1094_v16  ;;  %v256_v15 = vmul.f32 %v1279_v61, %v202_v10 }
 0x11e   :  { %v498_v13 = vmax.f32 %v469_v11, 0.0 }
 0x120   :  { %874 = vmatmul.mubr.f32.gmra.mrb[18].mxu0 %v485_v12  ;;  %913 = vmatmul.mubr.f32.gmra.mrb[14].mxu1 %v498_v13 }
 0x121   :  { %v356_v14 = vpop.permute.xlu1 %355  ;;  %915 = vmatprep.mubr.msk.f32.mxu1 %vm1093_vm0, %v1094_v16  ;;  %876 = vmatprep.mubr.msk.f32.mxu0 %vm1093_vm0, %v1094_v16 }
 0x122   :  { %v405_v17 = vmul.f32 %v1281_v62, %v356_v14 }
 0x124   :  { %v434_v19 = vadd.f32 %v405_v17, %v256_v15 }
 0x126   :  { %v137_v20 = vpop.permute.xlu1 %136  ;;  %v470_v21 = vadd.f32 %v1286_v6, %v434_v19  ;;  %v227_v19 = vpop.permute.xlu0 %226 }
 0x127   :  { %v243_v27 = vmul.f32 %v1279_v61, %v137_v20 }
 0x128   :  { %v499_v22 = vmax.f32 %v470_v21, 0.0 }
 0x12a   :  { %916 = vmatmul.mubr.f32.gmra.mrb[16].mxu1 %v499_v22  ;;  %v261_v22 = vmul.f32 %v1279_v61, %v227_v19 }
 0x12b   :  { %v304_v26 = vpop.permute.xlu1 %303  ;;  %918 = vmatprep.mubr.msk.f32.mxu1 %vm1093_vm0, %v1094_v16 }
 0x12c   :  { %v392_v28 = vmul.f32 %v1281_v62, %v304_v26 }
 0x12e   :  { %v421_v32 = vadd.f32 %v392_v28, %v243_v27 }
 0x12f   :  { %v360_v33 = vpop.permute.xlu1 %359 }
 0x130   :  { %v406_v35 = vmul.f32 %v1281_v62, %v360_v33  ;;  %v457_v38 = vadd.f32 %v1286_v6, %v421_v32 }
 0x132   :  { %v435_v36 = vadd.f32 %v406_v35, %v257_v29  ;;  %v486_v37 = vmax.f32 %v457_v38, 0.0 }
 0x134   :  { %v212_v41 = vpop.permute.xlu1 %211  ;;  %877 = vmatmul.mubr.f32.gmra.mrb[20].mxu0 %v486_v37  ;;  %v471_v30 = vadd.f32 %v1286_v6, %v435_v36 }
 0x135   :  { %879 = vmatprep.mubr.msk.f32.mxu0 %vm1093_vm0, %v1094_v16  ;;  %v258_v46 = vmul.f32 %v1279_v61, %v212_v41 }
 0x136   :  { %v500_v43 = vmax.f32 %v471_v30, 0.0 }
 0x138   :  { %880 = vmatmul.mubr.f32.gmra.mrb[22].mxu0 %v487_v42  ;;  %919 = vmatmul.mubr.f32.gmra.mrb[18].mxu1 %v500_v43 }
 0x139   :  { %v364_v45 = vpop.permute.xlu1 %363  ;;  %921 = vmatprep.mubr.msk.f32.mxu1 %vm1093_vm0, %v1094_v16  ;;  %882 = vmatprep.mubr.msk.f32.mxu0 %vm1093_vm0, %v1094_v16 }
 0x13a   :  { %v407_v0 = vmul.f32 %v1281_v62, %v364_v45 }
 0x13c   :  { %v436_v47 = vadd.f32 %v407_v0, %v258_v46 }
 0x13e   :  { %v147_v48 = vpop.permute.xlu1 %146  ;;  %v472_v49 = vadd.f32 %v1286_v6, %v436_v47 }
 0x13f   :  { %v245_v55 = vmul.f32 %v1279_v61, %v147_v48 }
 0x140   :  { %v501_v51 = vmax.f32 %v472_v49, 0.0 }
 0x142   :  { %922 = vmatmul.mubr.f32.gmra.mrb[20].mxu1 %v501_v51 }
 0x143   :  { %v312_v54 = vpop.permute.xlu1 %311  ;;  %924 = vmatprep.mubr.msk.f32.mxu1 %vm1093_vm0, %v1094_v16 }
 0x144   :  { %v394_v56 = vmul.f32 %v1281_v62, %v312_v54 }
 0x146   :  { %v423_v58 = vadd.f32 %v394_v56, %v245_v55 }
 0x147   :  { %v368_v50 = vpop.permute.xlu1 %367 }
 0x148   :  { %v408_v60 = vmul.f32 %v1281_v62, %v368_v50  ;;  %v459_v40 = vadd.f32 %v1286_v6, %v423_v58 }
 0x14a   :  { %v437_v63 = vadd.f32 %v408_v60, %v259_v59  ;;  %v488_v1 = vmax.f32 %v459_v40, 0.0 }
 0x14c   :  { %v222_v3 = vpop.permute.xlu1 %221  ;;  %883 = vmatmul.mubr.f32.gmra.mrb[24].mxu0 %v488_v1  ;;  %v473_v4 = vadd.f32 %v1286_v6, %v437_v63 }
 0x14d   :  { %885 = vmatprep.mubr.msk.f32.mxu0 %vm1093_vm0, %v1094_v16  ;;  %v260_v9 = vmul.f32 %v1279_v61, %v222_v3 }
 0x14e   :  { %v502_v7 = vmax.f32 %v473_v4, 0.0 }
 0x150   :  { %886 = vmatmul.mubr.f32.gmra.mrb[26].mxu0 %v489_v34  ;;  %925 = vmatmul.mubr.f32.gmra.mrb[22].mxu1 %v502_v7 }
 0x151   :  { %v372_v8 = vpop.permute.xlu1 %371  ;;  %927 = vmatprep.mubr.msk.f32.mxu1 %vm1093_vm0, %v1094_v16  ;;  %888 = vmatprep.mubr.msk.f32.mxu0 %vm1093_vm0, %v1094_v16 }
 0x152   :  { %v409_v10 = vmul.f32 %v1281_v62, %v372_v8 }
 0x154   :  { %v438_v11 = vadd.f32 %v409_v10, %v260_v9 }
 0x156   :  { %v157_v12 = vpop.permute.xlu1 %156  ;;  %v474_v13 = vadd.f32 %v1286_v6, %v438_v11 }
 0x157   :  { %v247_v17 = vmul.f32 %v1279_v61, %v157_v12 }
 0x158   :  { %v503_v14 = vmax.f32 %v474_v13, 0.0 }
 0x15a   :  { %928 = vmatmul.mubr.f32.gmra.mrb[24].mxu1 %v503_v14 }
 0x15b   :  { %v320_v15 = vpop.permute.xlu1 %319  ;;  %930 = vmatprep.mubr.msk.f32.mxu1 %vm1093_vm0, %v1094_v16 }
 0x15c   :  { %v396_v18 = vmul.f32 %v1281_v62, %v320_v15 }
 0x15e   :  { %v425_v20 = vadd.f32 %v396_v18, %v247_v17 }
 0x15f   :  { %v376_v21 = vpop.permute.xlu1 %375 }
 0x160   :  { %v410_v23 = vmul.f32 %v1281_v62, %v376_v21  ;;  %v461_v24 = vadd.f32 %v1286_v6, %v425_v20 }
 0x162   :  { %v439_v25 = vadd.f32 %v410_v23, %v261_v22  ;;  %v490_v26 = vmax.f32 %v461_v24, 0.0 }
 0x164   :  { %889 = vmatmul.mubr.f32.gmra.mrb[28].mxu0 %v490_v26  ;;  %v475_v27 = vadd.f32 %v1286_v6, %v439_v25 }
 0x166   :  { %v504_v28 = vmax.f32 %v475_v27, 0.0 }
 0x168   :  { %931 = vmatmul.mubr.f32.gmra.mrb[26].mxu1 %v504_v28 }
 0x199   :  { %v587_v16 = vpop.f32.mrb[0].mxu0 }
 0x19a   :  { %732 = vst.msk [vmem:[%s1565_s4] sm:$0xff] %vm731_vm1, %v587_v16  ;;  %v848_v29 = vpop.f32.mrb[1].mxu0 }
 0x19d   :  { %v592_v61 = vpop.f32.mrb[2].mxu0  ;;  %v662_v31 = vpop.f32.mrb[0].mxu1 }
 0x19e   :  { %733 = vst.msk [vmem:[%s1565_s4 + $0x8] sm:$0xff] %vm731_vm1, %v592_v61  ;;  %747 = vst.msk [vmem:[%s1565_s4 + $0x78] sm:$0xff] %vm731_vm1, %v662_v31  ;;  %v851_v62 = vpop.f32.mrb[3].mxu0  ;;  %v893_v6 = vpop.f32.mrb[1].mxu1 }
 0x1a7   :  { %v597_v32 = vpop.f32.mrb[4].mxu0 }
 0x1a8   :  { %734 = vst.msk [vmem:[%s1565_s4 + $0x10] sm:$0xff] %vm731_vm1, %v597_v32  ;;  %v854_v33 = vpop.f32.mrb[5].mxu0 }
 0x1ba   :  { %v667_v35 = vpop.f32.mrb[2].mxu1 }
 0x1bb   :  { %748 = vst.msk [vmem:[%s1565_s4 + $0x80] sm:$0xff] %vm731_vm1, %v667_v35  ;;  %v896_v38 = vpop.f32.mrb[3].mxu1 }
 0x1be   :  { %v672_v36 = vpop.f32.mrb[4].mxu1  ;;  %v602_v37 = vpop.f32.mrb[6].mxu0 }
 0x1bf   :  { %749 = vst.msk [vmem:[%s1565_s4 + $0x88] sm:$0xff] %vm731_vm1, %v672_v36  ;;  %v899_v39 = vpop.f32.mrb[5].mxu1  ;;  %735 = vst.msk [vmem:[%s1565_s4 + $0x18] sm:$0xff] %vm731_vm1, %v602_v37  ;;  %v857_v41 = vpop.f32.mrb[7].mxu0 }
 0x1c2   :  { %v607_v30 = vpop.f32.mrb[8].mxu0 }
 0x1c3   :  { %736 = vst.msk [vmem:[%s1565_s4 + $0x20] sm:$0xff] %vm731_vm1, %v607_v30  ;;  %v860_v42 = vpop.f32.mrb[9].mxu0  ;;  %v677_v43 = vpop.f32.mrb[6].mxu1 }
 0x1c4   :  { %750 = vst.msk [vmem:[%s1565_s4 + $0x90] sm:$0xff] %vm731_vm1, %v677_v43  ;;  %v902_v44 = vpop.f32.mrb[7].mxu1 }
 0x1c6   :  { %v612_v45 = vpop.f32.mrb[10].mxu0 }
 0x1c7   :  { %737 = vst.msk [vmem:[%s1565_s4 + $0x28] sm:$0xff] %vm731_vm1, %v612_v45  ;;  %v863_v46 = vpop.f32.mrb[11].mxu0 }
 0x1cd   :  { %v682_v0 = vpop.f32.mrb[8].mxu1 }
 0x1ce   :  { %751 = vst.msk [vmem:[%s1565_s4 + $0x98] sm:$0xff] %vm731_vm1, %v682_v0  ;;  %v905_v47 = vpop.f32.mrb[9].mxu1 }
 0x1d7   :  { %v617_v48 = vpop.f32.mrb[12].mxu0 }
 0x1d8   :  { %738 = vst.msk [vmem:[%s1565_s4 + $0x30] sm:$0xff] %vm731_vm1, %v617_v48  ;;  %v866_v49 = vpop.f32.mrb[13].mxu0 }
 0x1db   :  { %v687_v5 = vpop.f32.mrb[10].mxu1  ;;  %v622_v51 = vpop.f32.mrb[14].mxu0 }
 0x1dc   :  { %752 = vst.msk [vmem:[%s1565_s4 + $0xa0] sm:$0xff] %vm731_vm1, %v687_v5  ;;  %v908_v52 = vpop.f32.mrb[11].mxu1  ;;  %739 = vst.msk [vmem:[%s1565_s4 + $0x38] sm:$0xff] %vm731_vm1, %v622_v51  ;;  %v869_v53 = vpop.f32.mrb[15].mxu0 }
 0x1e5   :  { %v692_v54 = vpop.f32.mrb[12].mxu1 }
 0x1e6   :  { %753 = vst.msk [vmem:[%s1565_s4 + $0xa8] sm:$0xff] %vm731_vm1, %v692_v54  ;;  %v911_v55 = vpop.f32.mrb[13].mxu1 }
 0x1ef   :  { %v627_v56 = vpop.f32.mrb[16].mxu0 }
 0x1f0   :  { %740 = vst.msk [vmem:[%s1565_s4 + $0x40] sm:$0xff] %vm731_vm1, %v627_v56  ;;  %v872_v57 = vpop.f32.mrb[17].mxu0 }
 0x1f3   :  { %v632_v58 = vpop.f32.mrb[18].mxu0  ;;  %v697_v50 = vpop.f32.mrb[14].mxu1 }
 0x1f4   :  { %741 = vst.msk [vmem:[%s1565_s4 + $0x48] sm:$0xff] %vm731_vm1, %v632_v58  ;;  %754 = vst.msk [vmem:[%s1565_s4 + $0xb0] sm:$0xff] %vm731_vm1, %v697_v50  ;;  %v875_v59 = vpop.f32.mrb[19].mxu0  ;;  %v914_v60 = vpop.f32.mrb[15].mxu1 }
 0x1fd   :  { %v702_v40 = vpop.f32.mrb[16].mxu1 }
 0x1fe   :  { %755 = vst.msk [vmem:[%s1565_s4 + $0xb8] sm:$0xff] %vm731_vm1, %v702_v40  ;;  %v917_v63 = vpop.f32.mrb[17].mxu1 }
 0x207   :  { %v637_v1 = vpop.f32.mrb[20].mxu0 }
 0x208   :  { %742 = vst.msk [vmem:[%s1565_s4 + $0x50] sm:$0xff] %vm731_vm1, %v637_v1  ;;  %v878_v2 = vpop.f32.mrb[21].mxu0 }
 0x20b   :  { %v642_v3 = vpop.f32.mrb[22].mxu0  ;;  %v707_v4 = vpop.f32.mrb[18].mxu1 }
 0x20c   :  { %743 = vst.msk [vmem:[%s1565_s4 + $0x58] sm:$0xff] %vm731_vm1, %v642_v3  ;;  %756 = vst.msk [vmem:[%s1565_s4 + $0xc0] sm:$0xff] %vm731_vm1, %v707_v4  ;;  %v881_v34 = vpop.f32.mrb[23].mxu0  ;;  %v920_v7 = vpop.f32.mrb[19].mxu1 }
 0x215   :  { %v712_v8 = vpop.f32.mrb[20].mxu1 }
 0x216   :  { %757 = vst.msk [vmem:[%s1565_s4 + $0xc8] sm:$0xff] %vm731_vm1, %v712_v8  ;;  %v923_v9 = vpop.f32.mrb[21].mxu1 }
 0x21f   :  { %v647_v10 = vpop.f32.mrb[24].mxu0 }
 0x220   :  { %744 = vst.msk [vmem:[%s1565_s4 + $0x60] sm:$0xff] %vm731_vm1, %v647_v10  ;;  %v884_v11 = vpop.f32.mrb[25].mxu0 }
 0x223   :  { %v652_v12 = vpop.f32.mrb[26].mxu0  ;;  %v717_v13 = vpop.f32.mrb[22].mxu1 }
 0x224   :  { %745 = vst.msk [vmem:[%s1565_s4 + $0x68] sm:$0xff] %vm731_vm1, %v652_v12  ;;  %758 = vst.msk [vmem:[%s1565_s4 + $0xd0] sm:$0xff] %vm731_vm1, %v717_v13  ;;  %v887_v14 = vpop.f32.mrb[27].mxu0  ;;  %v926_v15 = vpop.f32.mrb[23].mxu1 }
 0x22d   :  { %v722_v17 = vpop.f32.mrb[24].mxu1 }
 0x22e   :  { %759 = vst.msk [vmem:[%s1565_s4 + $0xd8] sm:$0xff] %vm731_vm1, %v722_v17  ;;  %v929_v18 = vpop.f32.mrb[25].mxu1 }
 0x237   :  { %v657_v19 = vpop.f32.mrb[28].mxu0 }
 0x238   :  { %746 = vst.msk [vmem:[%s1565_s4 + $0x70] sm:$0xff] %vm731_vm1, %v657_v19  ;;  %v890_v20 = vpop.f32.mrb[29].mxu0 }
 0x23b   :  { %v727_v21 = vpop.f32.mrb[26].mxu1 }
 0x23c   :  { %761 = vst.msk [vmem:[%s1565_s4 + $0xe0] sm:$0x1] %vm760_vm2, %v727_v21  ;;  %v932_v22 = vpop.f32.mrb[27].mxu1 }
 0x23d   :  { %766 = vsyncpa [#allocation3], 1 }
 0x23e   :  { %767 = vsyncpa [#allocation5], 1 }

// kernel: window_attention_forward.3
= control target key start
LH: loop header
LB: loop body
LE: loop exit
PB: predicated region body
PF: predicated region fallthrough
CT: control target
= control target key end

     0   :  { %11 = vsyncpa [#allocation3], 0  ;;  %s16842_s0 = inlined_call_operand.vmem [shape: f32[8,64,128], index: 0, kind: input, shape index: {}]   ;;  %s16843_s1 = inlined_call_operand.vmem [shape: f32[128,384], index: 1, kind: input, shape index: {}]   ;;  %s16844_s2 = inlined_call_operand.vmem [shape: f32[1,384], index: 2, kind: input, shape index: {}]   ;;  %s16845_s3 = inlined_call_operand.vmem [shape: f32[4,64,64], index: 3, kind: input, shape index: {}]   ;;  %s16846_s4 = inlined_call_operand.vmem [shape: f32[128,128], index: 4, kind: input, shape index: {}]   ;;  %s16847_s5 = inlined_call_operand.vmem [shape: f32[1,128], index: 5, kind: input, shape index: {}]   ;;  %s16848_s6 = inlined_call_operand.hbm [shape: f32[8,64,128], index: 6, kind: output, shape index: {}]  }
   0x1   :  { %13 = vsyncpa [#allocation3 + $0x1], 0  ;;  %s12399_s21 = smov 0   ;;  %s12401_s22 = smov 0  }
   0x2   :  { %s12403_s23 = smov 0   ;;  %s12405_s24 = smov 0  }
   0x3 LB: > { %s12420_s25 = sadd.s32 4294967295, %s12355_s24   ;;  %s8174_s26 = sadd.s32 4294967294, %s12355_s24   ;;  %s12355_s24 = sphi %s12405_s24, %s17546_s24   ;;  %s12351_s23 = sphi %s12403_s23, %s17545_s23   ;;  %s12347_s22 = sphi %s12401_s22, %s17544_s22   ;;  %s12343_s21 = sphi %s12399_s21, %s17543_s21  }
   0x4   : > { %s12424_s27 = sadd.s32 1, %s12355_s24   ;;  %s157_s28 = sadd.s32 1, %s12351_s23 }
   0x5   : > { %s154_s29 = ssub.s32 %s12355_s24, %s12424_s27  ;;  %p167_p0 = scmp.ne.s32.totalorder %s12351_s23, %s12347_s22 }
   0x6   : > { %p155_p1 = scmp.eq.s32.totalorder %s154_s29, 0  ;;  %p168_p2 = scmp.eq.s32.totalorder %s12420_s25, 1 }
   0x7   : > { %p173_p3 = scmp.ne.s32.totalorder %s12347_s22, %s12343_s21  ;;  %p174_p4 = scmp.eq.s32.totalorder %s8174_s26, 1 }
   0x8   : > { %s12435_s30 = scalar_select %p155_p1, %s12351_s23, %s157_s28  }
   0x9   : > { %p12437_p5 = por %p168_p2, %p167_p0  ;;  %p12441_p6 = por %p174_p4, %p173_p3 }
   0xa   : > { %p8177_p7 = scmp.ge.s32.totalorder %s12355_s24, 1  ;;  %p217_p8 = scmp.lt.s32.totalorder %s12355_s24, 3 }
   0xc   : > { %p218_p9 = pnand %p8177_p7, %p217_p8 }
   0xe   : > { %221 = sbr.rel (%p218_p9) target bundleno = 3568 (0xdf0), region = 44 }
  0x15   : > { %v289_v0 = vld [vmem:[%s16843_s1 + $0x8] sm:$0xff]  ;;  %v292_v1 = vld [vmem:[%s16843_s1 + $0x20] sm:$0xff]  ;;  %v291_v4 = vld [vmem:[%s16843_s1 + $0x18] sm:$0xff]  ;;  %v12357_v7 = vmov 0.0   ;;  %s8179_s29 = sshll.u32 %s12420_s25, 2  ;;  %vm875_vm0 = vcmask 261120  }
  0x16   : > { %v288_v2 = vld [vmem:[%s16843_s1] sm:$0xff]  ;;  %v10264_v3 = vpack.c.bf16 %v292_v1, %v289_v0  ;;  %v295_v5 = vld [vmem:[%s16843_s1 + $0x38] sm:$0xff]  ;;  %v298_v6 = vld [vmem:[%s16843_s1 + $0x50] sm:$0xff]  ;;  %417 = vmatprep.mubr.f32.mxu0 %v12357_v7  ;;  %549 = vmatprep.mubr.f32.mxu1 %v12357_v7  ;;  %p249_p10 = scmp.lt.s32.totalorder %s8179_s29, 7  ;;  %s12358_s9 = smov 96   ;;  %vm1488_vm2 = vcmask 523264  }
  0x17   : > { %v10266_v8 = vpack.c.bf16 %v291_v4, %v288_v2  ;;  %v10268_v9 = vpack.c.bf16 %v298_v6, %v295_v5  ;;  %v294_v10 = vld [vmem:[%s16843_s1 + $0x30] sm:$0xff]  ;;  %v297_v11 = vld [vmem:[%s16843_s1 + $0x48] sm:$0xff]  ;;  %v304_v13 = vld [vmem:[%s16843_s1 + $0x80] sm:$0xff]  ;;  %s12359_s12 = smov 64   ;;  %s12360_s16 = smov 32   ;;  %vm7784_vm3 = vcmask 785408  }
  0x18   : > { %v301_v12 = vld [vmem:[%s16843_s1 + $0x68] sm:$0xff]  ;;  %10265 = vmatprep.subr.bf16.mxu0 %v10264_v3  ;;  %11000 = vmatprep.subr.bf16.mxu1 %v10264_v3  ;;  %v10270_v14 = vpack.c.bf16 %v297_v11, %v294_v10  ;;  %v300_v16 = vld [vmem:[%s16843_s1 + $0x60] sm:$0xff]  ;;  %v303_v17 = vld [vmem:[%s16843_s1 + $0x78] sm:$0xff]  ;;  %s17548_s29 = smov (!%p249_p10, %s8179_s29), 7  ;;  %s12361_s17 = smov [#allocation2]  }
  0x19   : > { %10267 = vmatpush1.bf16.msra.mxu0 %v10266_v8  ;;  %11008 = vmatpush1.bf16.msra.mxu1 %v10266_v8  ;;  %v10272_v15 = vpack.c.bf16 %v304_v13, %v301_v12  ;;  %v307_v18 = vld [vmem:[%s16843_s1 + $0x98] sm:$0xff]  ;;  %v310_v19 = vld [vmem:[%s16843_s1 + $0xb0] sm:$0xff]  ;;  %v10274_v20 = vpack.c.bf16 %v303_v17, %v300_v16  ;;  %v309_v23 = vld [vmem:[%s16843_s1 + $0xa8] sm:$0xff]  ;;  %s8597_s15 = sshll.u32 %s17548_s29, 6  ;;  %s8599_s29 = sshll.u32 %s12420_s25, 12 }
  0x1a   : > { %10269 = vmatprep.subr.bf16.mxu0 %v10268_v9  ;;  %11001 = vmatprep.subr.bf16.mxu1 %v10268_v9  ;;  %v10276_v21 = vpack.c.bf16 %v310_v19, %v307_v18  ;;  %v306_v22 = vld [vmem:[%s16843_s1 + $0x90] sm:$0xff]  ;;  %v313_v24 = vld [vmem:[%s16843_s1 + $0xc8] sm:$0xff]  ;;  %v316_v25 = vld [vmem:[%s16843_s1 + $0xe0] sm:$0xff]  ;;  %s12555_s28 = scalar_lea.vmem %s16842_s0, %s8597_s15  ;;  %s16792_s14 = scalar_lea.hbm %s16848_s6, %s8599_s29 }
  0x1b   : > { %v10278_v26 = vpack.c.bf16 %v309_v23, %v306_v22  ;;  %v10280_v27 = vpack.c.bf16 %v316_v25, %v313_v24  ;;  %v312_v28 = vld [vmem:[%s16843_s1 + $0xc0] sm:$0xff]  ;;  %v315_v29 = vld [vmem:[%s16843_s1 + $0xd8] sm:$0xff]  ;;  %v322_v31 = vld [vmem:[%s16843_s1 + $0x110] sm:$0xff]  ;;  %s12297_s18 = sshll.u32 %s12361_s17, 4  ;;  %s12298_s18 = int_to_ptr.vmem [resolvable:$false] %s12297_s18 }
  0x1c   : > { %v319_v30 = vld [vmem:[%s16843_s1 + $0xf8] sm:$0xff]  ;;  %v10282_v32 = vpack.c.bf16 %v315_v29, %v312_v28  ;;  %v318_v34 = vld [vmem:[%s16843_s1 + $0xf0] sm:$0xff]  ;;  %v321_v35 = vld [vmem:[%s16843_s1 + $0x108] sm:$0xff]  ;;  %s12299_s19 = scalar_lea.vmem %s12298_s18, 8192 }
  0x1d   : > { %10271 = vmatpush1.bf16.msra.mxu0 %v10270_v14  ;;  %11009 = vmatpush1.bf16.msra.mxu1 %v10270_v14  ;;  %v10284_v33 = vpack.c.bf16 %v322_v31, %v319_v30  ;;  %v325_v36 = vld [vmem:[%s16843_s1 + $0x128] sm:$0xff]  ;;  %v328_v37 = vld [vmem:[%s16843_s1 + $0x140] sm:$0xff]  ;;  %v10286_v38 = vpack.c.bf16 %v321_v35, %v318_v34  ;;  %v327_v41 = vld [vmem:[%s16843_s1 + $0x138] sm:$0xff] }
  0x1e   : > { %10273 = vmatprep.subr.bf16.mxu0 %v10272_v15  ;;  %11002 = vmatprep.subr.bf16.mxu1 %v10272_v15  ;;  %v10288_v39 = vpack.c.bf16 %v328_v37, %v325_v36  ;;  %v324_v40 = vld [vmem:[%s16843_s1 + $0x120] sm:$0xff]  ;;  %v331_v42 = vld [vmem:[%s16843_s1 + $0x158] sm:$0xff]  ;;  %v334_v43 = vld [vmem:[%s16843_s1 + $0x170] sm:$0xff] }
  0x1f   : > { %v10290_v44 = vpack.c.bf16 %v327_v41, %v324_v40  ;;  %v10292_v45 = vpack.c.bf16 %v334_v43, %v331_v42  ;;  %v330_v46 = vld [vmem:[%s16843_s1 + $0x150] sm:$0xff]  ;;  %v333_v47 = vld [vmem:[%s16843_s1 + $0x168] sm:$0xff]  ;;  %v296_v52 = vld [vmem:[%s16843_s1 + $0x40] sm:$0xff] }
  0x20   : > { %v290_v48 = vld [vmem:[%s16843_s1 + $0x10] sm:$0xff]  ;;  %v293_v49 = vld [vmem:[%s16843_s1 + $0x28] sm:$0xff]  ;;  %v10294_v50 = vpack.c.bf16 %v333_v47, %v330_v46  ;;  %v299_v53 = vld [vmem:[%s16843_s1 + $0x58] sm:$0xff] }
  0x21   : > { %10275 = vmatpush1.bf16.msra.mxu0 %v10274_v20  ;;  %11010 = vmatpush1.bf16.msra.mxu1 %v10274_v20  ;;  %v10296_v51 = vpack.c.bf16 %v293_v49, %v290_v48  ;;  %v12564_v54 = vld [vmem:[%s12555_s28] sm:$0xff]  ;;  %v12567_v55 = vld [vmem:[%s12555_s28 + $0xb0] sm:$0xff]  ;;  %v10300_v56 = vpack.c.bf16 %v299_v53, %v296_v52  ;;  %v305_v58 = vld [vmem:[%s16843_s1 + $0x88] sm:$0xff] }
  0x22   : > { %10277 = vmatprep.subr.bf16.mxu0 %v10276_v21  ;;  %11003 = vmatprep.subr.bf16.mxu1 %v10276_v21  ;;  %v302_v57 = vld [vmem:[%s16843_s1 + $0x70] sm:$0xff]  ;;  %v12579_v59 = vld [vmem:[%s12555_s28 + $0x8] sm:$0xff]  ;;  %v12583_v60 = vld [vmem:[%s12555_s28 + $0xb8] sm:$0xff] }
  0x23   : > { %v10304_v61 = vpack.c.bf16 %v305_v58, %v302_v57  ;;  %v308_v62 = vld [vmem:[%s16843_s1 + $0xa0] sm:$0xff]  ;;  %v311_v63 = vld [vmem:[%s16843_s1 + $0xb8] sm:$0xff]  ;;  %v12595_v0 = vld [vmem:[%s12555_s28 + $0x10] sm:$0xff] }
  0x24   : > { %v12599_v1 = vld [vmem:[%s12555_s28 + $0xc0] sm:$0xff]  ;;  %v10308_v2 = vpack.c.bf16 %v311_v63, %v308_v62  ;;  %v314_v3 = vld [vmem:[%s16843_s1 + $0xd0] sm:$0xff]  ;;  %v317_v4 = vld [vmem:[%s16843_s1 + $0xe8] sm:$0xff] }
  0x25   : > { %10279 = vmatpush1.bf16.msra.mxu0 %v10278_v26  ;;  %11011 = vmatpush1.bf16.msra.mxu1 %v10278_v26  ;;  %v12611_v5 = vld [vmem:[%s12555_s28 + $0x18] sm:$0xff]  ;;  %v12615_v6 = vld [vmem:[%s12555_s28 + $0xc8] sm:$0xff]  ;;  %v10312_v8 = vpack.c.bf16 %v317_v4, %v314_v3  ;;  %v320_v9 = vld [vmem:[%s16843_s1 + $0x100] sm:$0xff] }
  0x26   : > { %10281 = vmatprep.subr.bf16.mxu0 %v10280_v27  ;;  %11004 = vmatprep.subr.bf16.mxu1 %v10280_v27  ;;  %v323_v10 = vld [vmem:[%s16843_s1 + $0x118] sm:$0xff]  ;;  %v260_v11 = vld [vmem:[%s12555_s28 + $0x20] sm:$0xff]  ;;  %v12629_v12 = vld [vmem:[%s12555_s28 + $0xd0] sm:$0xff] }
  0x27   : > { %v10316_v13 = vpack.c.bf16 %v323_v10, %v320_v9  ;;  %v326_v14 = vld [vmem:[%s16843_s1 + $0x130] sm:$0xff]  ;;  %v329_v15 = vld [vmem:[%s16843_s1 + $0x148] sm:$0xff]  ;;  %v12642_v17 = vld [vmem:[%s12555_s28 + $0xd8] sm:$0xff] }
  0x28   : > { %v261_v16 = vld [vmem:[%s12555_s28 + $0x28] sm:$0xff]  ;;  %v10320_v18 = vpack.c.bf16 %v329_v15, %v326_v14  ;;  %v332_v19 = vld [vmem:[%s16843_s1 + $0x160] sm:$0xff]  ;;  %v335_v20 = vld [vmem:[%s16843_s1 + $0x178] sm:$0xff] }
  0x29   : > { %10283 = vmatpush1.bf16.msra.mxu0 %v10282_v32  ;;  %11012 = vmatpush1.bf16.msra.mxu1 %v10282_v32  ;;  %v262_v21 = vld [vmem:[%s12555_s28 + $0x30] sm:$0xff]  ;;  %v12655_v22 = vld [vmem:[%s12555_s28 + $0xe0] sm:$0xff]  ;;  %v10324_v23 = vpack.c.bf16 %v335_v20, %v332_v19  ;;  %v263_v24 = vld [vmem:[%s12555_s28 + $0x38] sm:$0xff] }
  0x2a   : > { %10285 = vmatprep.subr.bf16.mxu0 %v10284_v33  ;;  %11005 = vmatprep.subr.bf16.mxu1 %v10284_v33  ;;  %v12662_v25 = vld [vmem:[%s12555_s28 + $0xe8] sm:$0xff]  ;;  %v264_v26 = vld [vmem:[%s12555_s28 + $0x40] sm:$0xff]  ;;  %v12669_v27 = vld [vmem:[%s12555_s28 + $0xf0] sm:$0xff] }
  0x2b   : > { %v265_v28 = vld [vmem:[%s12555_s28 + $0x48] sm:$0xff]  ;;  %v12676_v29 = vld [vmem:[%s12555_s28 + $0xf8] sm:$0xff]  ;;  %v266_v30 = vld [vmem:[%s12555_s28 + $0x50] sm:$0xff] }
  0x2c   : > { %v267_v31 = vld [vmem:[%s12555_s28 + $0x58] sm:$0xff]  ;;  %v268_v32 = vld [vmem:[%s12555_s28 + $0x60] sm:$0xff]  ;;  %v269_v33 = vld [vmem:[%s12555_s28 + $0x68] sm:$0xff] }
  0x2d   : > { %10287 = vmatpush1.bf16.msra.mxu0 %v10286_v38  ;;  %11013 = vmatpush1.bf16.msra.mxu1 %v10286_v38  ;;  %v270_v34 = vld [vmem:[%s12555_s28 + $0x70] sm:$0xff]  ;;  %v271_v35 = vld [vmem:[%s12555_s28 + $0x78] sm:$0xff]  ;;  %v272_v36 = vld [vmem:[%s12555_s28 + $0x80] sm:$0xff] }
  0x2e   : > { %10289 = vmatprep.subr.bf16.mxu0 %v10288_v39  ;;  %11006 = vmatprep.subr.bf16.mxu1 %v10288_v39  ;;  %v273_v37 = vld [vmem:[%s12555_s28 + $0x88] sm:$0xff]  ;;  %v274_v38 = vld [vmem:[%s12555_s28 + $0x90] sm:$0xff]  ;;  %v275_v39 = vld [vmem:[%s12555_s28 + $0x98] sm:$0xff] }
  0x2f   : > { %v276_v40 = vld [vmem:[%s12555_s28 + $0xa0] sm:$0xff]  ;;  %v277_v41 = vld [vmem:[%s12555_s28 + $0xa8] sm:$0xff]  ;;  %vm12752_vm1 = vmpackc.low %vm875_vm0, %vm875_vm0 }
  0x31   : > { %10291 = vmatpush1.bf16.msra.mxu0 %v10290_v44  ;;  %11014 = vmatpush1.bf16.msra.mxu1 %v10290_v44  ;;  %v12723_v44 = vld [vmem:[%s16844_s2] sm:$0x7] }
  0x32   : > { %10293 = vmatprep.subr.bf16.mxu0 %v10292_v45  ;;  %11007 = vmatprep.subr.bf16.mxu1 %v10292_v45 }
  0x35   : > { %10295 = vmatpush1.bf16.msra.mxu0 %v10294_v50  ;;  %11015 = vmatpush1.bf16.msra.mxu1 %v10294_v50 }
  0x36   : > { %10297 = vmatprep.subr.bf16.mxu1 %v10296_v51 }
  0x38   : > { %418 = vmatmul.mubr.f32.vlgmr.msra.gmra.mrb[0].mxu0 %v12564_v54  ;;  %550 = vmatmul.mubr.f32.vlgmr.msra.gmra.mrb[0].mxu1 %v12567_v55 }
  0x39   : > { %423 = vmatprep.mubr.f32.mxu0 %v12357_v7  ;;  %555 = vmatprep.mubr.f32.mxu1 %v12357_v7 }
  0x3a   : > { %10299 = vmatpush3.bf16.msra.mxu1 %v10296_v51 }
  0x3b   : > { %10301 = vmatprep.subr.bf16.mxu1 %v10300_v56 }
  0x3c   : > { %424 = vmatmul.mubr.f32.gmra.mrb[2].mxu0 %v12579_v59  ;;  %556 = vmatmul.mubr.f32.gmra.mrb[2].mxu1 %v12583_v60 }
  0x3d   : > { %429 = vmatprep.mubr.f32.mxu0 %v12357_v7  ;;  %561 = vmatprep.mubr.f32.mxu1 %v12357_v7 }
  0x3e   : > { %10303 = vmatpush3.bf16.msra.mxu1 %v10300_v56 }
  0x3f   : > { %10305 = vmatprep.subr.bf16.mxu1 %v10304_v61 }
  0x40   : > { %430 = vmatmul.mubr.f32.gmra.mrb[4].mxu0 %v12595_v0  ;;  %562 = vmatmul.mubr.f32.gmra.mrb[4].mxu1 %v12599_v1 }
  0x41   : > { %435 = vmatprep.mubr.f32.mxu0 %v12357_v7  ;;  %567 = vmatprep.mubr.f32.mxu1 %v12357_v7 }
  0x42   : > { %10307 = vmatpush3.bf16.msra.mxu1 %v10304_v61 }
  0x43   : > { %10309 = vmatprep.subr.bf16.mxu1 %v10308_v2 }
  0x44   : > { %436 = vmatmul.mubr.f32.gmra.mrb[6].mxu0 %v12611_v5  ;;  %568 = vmatmul.mubr.f32.gmra.mrb[6].mxu1 %v12615_v6 }
  0x45   : > { %441 = vmatprep.mubr.f32.mxu0 %v12357_v7  ;;  %573 = vmatprep.mubr.f32.mxu1 %v12357_v7 }
  0x46   : > { %10311 = vmatpush3.bf16.msra.mxu1 %v10308_v2 }
  0x47   : > { %10313 = vmatprep.subr.bf16.mxu1 %v10312_v8 }
  0x48   : > { %442 = vmatmul.mubr.f32.gmra.mrb[8].mxu0 %v260_v11  ;;  %574 = vmatmul.mubr.f32.gmra.mrb[8].mxu1 %v12629_v12 }
  0x49   : > { %447 = vmatprep.mubr.f32.mxu0 %v12357_v7  ;;  %579 = vmatprep.mubr.f32.mxu1 %v12357_v7 }
  0x4a   : > { %10315 = vmatpush3.bf16.msra.mxu1 %v10312_v8 }
  0x4b   : > { %10317 = vmatprep.subr.bf16.mxu1 %v10316_v13 }
  0x4c   : > { %448 = vmatmul.mubr.f32.gmra.mrb[10].mxu0 %v261_v16  ;;  %580 = vmatmul.mubr.f32.gmra.mrb[10].mxu1 %v12642_v17 }
  0x4d   : > { %453 = vmatprep.mubr.f32.mxu0 %v12357_v7  ;;  %585 = vmatprep.mubr.f32.mxu1 %v12357_v7 }
  0x4e   : > { %10319 = vmatpush3.bf16.msra.mxu1 %v10316_v13 }
  0x4f   : > { %10321 = vmatprep.subr.bf16.mxu1 %v10320_v18 }
  0x50   : > { %454 = vmatmul.mubr.f32.gmra.mrb[12].mxu0 %v262_v21  ;;  %586 = vmatmul.mubr.f32.gmra.mrb[12].mxu1 %v12655_v22 }
  0x51   : > { %459 = vmatprep.mubr.f32.mxu0 %v12357_v7  ;;  %591 = vmatprep.mubr.f32.mxu1 %v12357_v7 }
  0x52   : > { %10323 = vmatpush3.bf16.msra.mxu1 %v10320_v18 }
  0x53   : > { %10325 = vmatprep.subr.bf16.mxu1 %v10324_v23 }
  0x54   : > { %460 = vmatmul.mubr.f32.gmra.mrb[14].mxu0 %v263_v24  ;;  %592 = vmatmul.mubr.f32.gmra.mrb[14].mxu1 %v12662_v25 }
  0x55   : > { %465 = vmatprep.mubr.f32.mxu0 %v12357_v7  ;;  %597 = vmatprep.mubr.f32.mxu1 %v12357_v7 }
  0x56   : > { %10327 = vmatpush3.bf16.msra.mxu1 %v10324_v23 }
  0x58   : > { %466 = vmatmul.mubr.f32.gmra.mrb[16].mxu0 %v264_v26  ;;  %598 = vmatmul.mubr.f32.gmra.mrb[16].mxu1 %v12669_v27 }
  0x59   : > { %471 = vmatprep.mubr.f32.mxu0 %v12357_v7  ;;  %603 = vmatprep.mubr.f32.mxu1 %v12357_v7 }
  0x5c   : > { %472 = vmatmul.mubr.f32.gmra.mrb[18].mxu0 %v265_v28  ;;  %604 = vmatmul.mubr.f32.gmra.mrb[18].mxu1 %v12676_v29 }
  0x5d   : > { %477 = vmatprep.mubr.f32.mxu0 %v12357_v7  ;;  %9240 = vmatprep.mubr.f32.mxu1 %v12564_v54 }
  0x60   : > { %478 = vmatmul.mubr.f32.gmra.mrb[20].mxu0 %v266_v30  ;;  %9241 = vmatmul.mubr.f32.vlgmr.msra.gmra.mrb[20].mxu1 %v12579_v59 }
  0x61   : > { %483 = vmatprep.mubr.f32.mxu0 %v12357_v7  ;;  %9243 = vmatprep.mubr.f32.mxu1 %v12595_v0  ;;  %v17047_v0 = vmov 0 }
  0x62   : > { %v17048_v0 = vsel %vm12752_vm1, 4294967295, %v17047_v0 }
  0x63   : > { %17049 = vst [vmem:[#allocation7_spill] sm:$0xff] %v17048_v0 }
  0x64   : > { %484 = vmatmul.mubr.f32.gmra.mrb[22].mxu0 %v267_v31  ;;  %9244 = vmatmul.mubr.f32.gmra.mrb[22].mxu1 %v12611_v5 }
  0x65   : > { %489 = vmatprep.mubr.f32.mxu0 %v12357_v7  ;;  %9246 = vmatprep.mubr.f32.mxu1 %v260_v11 }
  0x68   : > { %490 = vmatmul.mubr.f32.gmra.mrb[24].mxu0 %v268_v32  ;;  %9247 = vmatmul.mubr.f32.gmra.mrb[24].mxu1 %v261_v16 }
  0x69   : > { %495 = vmatprep.mubr.f32.mxu0 %v12357_v7  ;;  %9249 = vmatprep.mubr.f32.mxu1 %v262_v21 }
  0x6c   : > { %496 = vmatmul.mubr.f32.gmra.mrb[26].mxu0 %v269_v33  ;;  %9250 = vmatmul.mubr.f32.gmra.mrb[26].mxu1 %v263_v24 }
  0x6d   : > { %501 = vmatprep.mubr.f32.mxu0 %v12357_v7  ;;  %9252 = vmatprep.mubr.f32.mxu1 %v264_v26 }
  0x70   : > { %502 = vmatmul.mubr.f32.gmra.mrb[28].mxu0 %v270_v34  ;;  %9253 = vmatmul.mubr.f32.gmra.mrb[28].mxu1 %v265_v28 }
  0x71   : > { %507 = vmatprep.mubr.f32.mxu0 %v12357_v7  ;;  %9255 = vmatprep.mubr.f32.mxu1 %v266_v30 }
  0x74   : > { %508 = vmatmul.mubr.f32.gmra.mrb[30].mxu0 %v271_v35  ;;  %9256 = vmatmul.mubr.f32.gmra.mrb[30].mxu1 %v267_v31 }
  0x75   : > { %513 = vmatprep.mubr.f32.mxu0 %v12357_v7  ;;  %9258 = vmatprep.mubr.f32.mxu1 %v268_v32 }
  0x78   : > { %514 = vmatmul.mubr.f32.gmra.mrb[32].mxu0 %v272_v36  ;;  %9259 = vmatmul.mubr.f32.gmra.mrb[32].mxu1 %v269_v33 }
  0x79   : > { %519 = vmatprep.mubr.f32.mxu0 %v12357_v7  ;;  %9261 = vmatprep.mubr.f32.mxu1 %v270_v34 }
  0x7c   : > { %520 = vmatmul.mubr.f32.gmra.mrb[34].mxu0 %v273_v37  ;;  %9262 = vmatmul.mubr.f32.gmra.mrb[34].mxu1 %v271_v35 }
  0x7d   : > { %525 = vmatprep.mubr.f32.mxu0 %v12357_v7  ;;  %9264 = vmatprep.mubr.f32.mxu1 %v272_v36 }
  0x80   : > { %526 = vmatmul.mubr.f32.gmra.mrb[36].mxu0 %v274_v38  ;;  %9265 = vmatmul.mubr.f32.gmra.mrb[36].mxu1 %v273_v37 }
  0x81   : > { %531 = vmatprep.mubr.f32.mxu0 %v12357_v7  ;;  %9267 = vmatprep.mubr.f32.mxu1 %v274_v38 }
  0x84   : > { %532 = vmatmul.mubr.f32.gmra.mrb[38].mxu0 %v275_v39  ;;  %9268 = vmatmul.mubr.f32.gmra.mrb[38].mxu1 %v275_v39 }
  0x85   : > { %537 = vmatprep.mubr.f32.mxu0 %v12357_v7  ;;  %9270 = vmatprep.mubr.f32.mxu1 %v276_v40 }
  0x88   : > { %538 = vmatmul.mubr.f32.gmra.mrb[40].mxu0 %v276_v40  ;;  %9271 = vmatmul.mubr.f32.gmra.mrb[40].mxu1 %v277_v41 }
  0x89   : > { %543 = vmatprep.mubr.f32.mxu0 %v12357_v7  ;;  %9273 = vmatprep.mubr.f32.mxu1 %v12567_v55  ;;  %v338_v7 = vlaneseq }
  0x8b   : > { %v12717_v42 = vshrl.u32 %v338_v7, 7 }
  0x8c   : > { %544 = vmatmul.mubr.f32.gmra.mrb[42].mxu0 %v277_v41  ;;  %9274 = vmatmul.mubr.f32.gmra.mrb[42].mxu1 %v12583_v60 }
  0x8d   : > { %9276 = vmatprep.mubr.f32.mxu1 %v12599_v1  ;;  %v340_v43 = vsub.s32 0, %v12717_v42  ;;  %v344_v46 = vsub.s32 1, %v12717_v42 }
  0x8f   : > { %v12726_v45 = vrot.slane %v12723_v44, %v340_v43  ;;  %v12733_v52 = vrot.slane %v12723_v44, %v344_v46 }
  0x90   : > { %9277 = vmatmul.mubr.f32.gmra.mrb[44].mxu1 %v12615_v6 }
  0x91   : > { %9279 = vmatprep.mubr.f32.mxu1 %v12629_v12 }
  0x94   : > { %9280 = vmatmul.mubr.f32.gmra.mrb[46].mxu1 %v12642_v17 }
  0x95   : > { %9282 = vmatprep.mubr.f32.mxu1 %v12655_v22 }
  0x98   : > { %9283 = vmatmul.mubr.f32.gmra.mrb[48].mxu1 %v12662_v25 }
  0x99   : > { %9285 = vmatprep.mubr.f32.mxu1 %v12669_v27 }
  0x9c   : > { %9286 = vmatmul.mubr.f32.gmra.mrb[50].mxu1 %v12676_v29 }
 0x10b   : > { %v419_v47 = vpop.f32.mrb[0].mxu0  ;;  %v12729_v48 = vpop.f32.mrb[0].mxu1 }
 0x10c   : > { %v420_v49 = vadd.f32 %v419_v47, %v12726_v45  ;;  %v421_v50 = vpop.f32.mrb[1].mxu0  ;;  %v553_v51 = vpop.f32.mrb[1].mxu1 }
 0x10d   : > { %v554_v55 = vadd.f32 %v553_v51, %v12733_v52  ;;  %v422_v60 = vadd.f32 %v421_v50, %v12733_v52 }
 0x10e   : > { %v12735_v53 = vmul.f32 0.17677669, %v420_v49 }
 0x10f   : > { %v425_v54 = vpop.f32.mrb[2].mxu0  ;;  %v12738_v56 = vpop.f32.mrb[2].mxu1 }
 0x110   : > { %17045 = vst [vmem:[#allocation5_spill] sm:$0xff] %v12735_v53  ;;  %v426_v57 = vadd.f32 %v425_v54, %v12726_v45  ;;  %v427_v58 = vpop.f32.mrb[3].mxu0  ;;  %2366 = vrot.lane.b32.xlu0 %v12735_v53, %s12358_s9  ;;  %9304 = vmatprep.mubr.msk.f32.mxu1 %vm875_vm0, %v12735_v53  ;;  %v559_v59 = vpop.f32.mrb[3].mxu1 }
 0x111   : > { %v428_v61 = vadd.f32 %v427_v58, %v12733_v52  ;;  %v560_v62 = vadd.f32 %v559_v59, %v12733_v52 }
 0x112   : > { %v12748_v63 = vmul.f32 0.17677669, %v426_v57 }
 0x113   : > { %v12756_v1 = vpop.f32.mrb[4].mxu0  ;;  %v10328_v2 = vpack.c.bf16 %v428_v61, %v422_v60  ;;  %v12758_v3 = vpack.i.bf16 %v428_v61, %v422_v60  ;;  %v12760_v4 = vpop.f32.mrb[4].mxu1  ;;  %v12762_v5 = vpack.c.bf16 %v560_v62, %v554_v55  ;;  %v12764_v6 = vpack.i.bf16 %v560_v62, %v554_v55 }
 0x114   : > { %17046 = vst [vmem:[#allocation6_spill] sm:$0xff] %v12748_v63  ;;  %v433_v8 = vpop.f32.mrb[5].mxu0  ;;  %2368 = vrot.lane.b32.xlu1 %v12748_v63, %s12358_s9  ;;  %v565_v9 = vpop.f32.mrb[5].mxu1 }
 0x115   : > { %17050 = vst [vmem:[#allocation8_spill] sm:$0xff] %v12758_v3  ;;  %17051 = vst [vmem:[#allocation9_spill] sm:$0xff] %v12764_v6  ;;  %10330 = vmatprep.subr.msk.bf16.mxu1 %vm12752_vm1, %v10328_v2  ;;  %11062 = vrot.lane.b32.xlu0 %v12758_v3, %s12358_s9  ;;  %v566_v11 = vadd.f32 %v565_v9, %v12733_v52  ;;  %v434_v15 = vadd.f32 %v433_v8, %v12733_v52 }
 0x116   : > { %10333 = vmatpush3.bf16.xpose.msk.msra.mxu1 %vm12752_vm1, %v10328_v2  ;;  %v432_v9 = vadd.f32 %v12756_v1, %v12726_v45 }
 0x117   : > { %v12774_v10 = vpop.f32.mrb[6].mxu0  ;;  %v12777_v12 = vpop.f32.mrb[6].mxu1 }
 0x118   : > { %v439_v13 = vpop.f32.mrb[7].mxu0  ;;  %v571_v14 = vpop.f32.mrb[7].mxu1 }
 0x119   : > { %v440_v16 = vadd.f32 %v439_v13, %v12733_v52  ;;  %v572_v17 = vadd.f32 %v571_v14, %v12733_v52 }
 0x11b   : > { %v12782_v18 = vpop.f32.mrb[8].mxu0  ;;  %v12784_v19 = vpack.i.bf16 %v440_v16, %v434_v15  ;;  %v10334_v20 = vpack.c.bf16 %v440_v16, %v434_v15  ;;  %v12786_v21 = vpack.i.bf16 %v572_v17, %v566_v11  ;;  %v12788_v22 = vpop.f32.mrb[8].mxu1  ;;  %v12790_v23 = vpack.c.bf16 %v572_v17, %v566_v11 }
 0x11c   : > { %v445_v24 = vpop.f32.mrb[9].mxu0  ;;  %v577_v25 = vpop.f32.mrb[9].mxu1 }
 0x11d   : > { %17052 = vst [vmem:[#allocation10_spill] sm:$0xff] %v12784_v19  ;;  %17053 = vst [vmem:[#allocation11_spill] sm:$0xff] %v12786_v21  ;;  %11067 = vrot.lane.b32.xlu1 %v12784_v19, %s12358_s9  ;;  %10336 = vmatprep.subr.msk.bf16.mxu1 %vm12752_vm1, %v10334_v20  ;;  %v578_v27 = vadd.f32 %v577_v25, %v12733_v52  ;;  %v446_v31 = vadd.f32 %v445_v24, %v12733_v52  ;;  %v12855_v25 = vmul.f32 0.17677669, %v432_v9 }
 0x11e   : > { %10339 = vmatpush3.bf16.xpose.msk.msra.mxu1 %vm12752_vm1, %v10334_v20 }
 0x11f   : > { %v12798_v26 = vpop.f32.mrb[10].mxu0  ;;  %v12801_v28 = vpop.f32.mrb[10].mxu1 }
 0x120   : > { %v451_v29 = vpop.f32.mrb[11].mxu0  ;;  %v583_v30 = vpop.f32.mrb[11].mxu1 }
 0x121   : > { %v452_v32 = vadd.f32 %v451_v29, %v12733_v52  ;;  %11072 = vrot.lane.b32.xlu1 %v12786_v21, %s12358_s9  ;;  %v584_v33 = vadd.f32 %v583_v30, %v12733_v52 }
 0x123   : > { %v455_v34 = vpop.f32.mrb[12].mxu0  ;;  %v10340_v35 = vpack.c.bf16 %v452_v32, %v446_v31  ;;  %v12808_v36 = vpack.i.bf16 %v452_v32, %v446_v31  ;;  %v12810_v37 = vpop.f32.mrb[12].mxu1  ;;  %v12812_v38 = vpack.c.bf16 %v584_v33, %v578_v27  ;;  %v12814_v39 = vpack.i.bf16 %v584_v33, %v578_v27 }
 0x124   : > { %v457_v40 = vpop.f32.mrb[13].mxu0  ;;  %v589_v41 = vpop.f32.mrb[13].mxu1  ;;  %v438_v27 = vadd.f32 %v12774_v10, %v12726_v45  ;;  %v450_v10 = vadd.f32 %v12798_v26, %v12726_v45 }
 0x125   : > { %17054 = vst [vmem:[#allocation12_spill] sm:$0xff] %v12808_v36  ;;  %17055 = vst [vmem:[#allocation13_spill] sm:$0xff] %v12814_v39  ;;  %10342 = vmatprep.subr.msk.bf16.mxu1 %vm12752_vm1, %v10340_v35  ;;  %11077 = vrot.lane.b32.xlu0 %v12808_v36, %s12358_s9  ;;  %v590_v43 = vadd.f32 %v589_v41, %v12733_v52  ;;  %v458_v50 = vadd.f32 %v457_v40, %v12733_v52 }
 0x126   : > { %10345 = vmatpush3.bf16.xpose.msk.msra.mxu1 %vm12752_vm1, %v10340_v35  ;;  %v444_v40 = vadd.f32 %v12782_v18, %v12726_v45 }
 0x127   : > { %v461_v7 = vpop.f32.mrb[14].mxu0  ;;  %v12823_v46 = vpop.f32.mrb[14].mxu1 }
 0x128   : > { %v463_v47 = vpop.f32.mrb[15].mxu0  ;;  %v595_v49 = vpop.f32.mrb[15].mxu1 }
 0x129   : > { %v464_v51 = vadd.f32 %v463_v47, %v12733_v52  ;;  %v596_v54 = vadd.f32 %v595_v49, %v12733_v52  ;;  %v12888_v49 = vmul.f32 0.17677669, %v444_v40 }
 0x12b   : > { %v467_v55 = vpop.f32.mrb[16].mxu0  ;;  %v10346_v57 = vpack.c.bf16 %v464_v51, %v458_v50  ;;  %v12828_v58 = vpack.i.bf16 %v464_v51, %v458_v50  ;;  %v12830_v59 = vpop.f32.mrb[16].mxu1  ;;  %v12832_v60 = vpack.c.bf16 %v596_v54, %v590_v43  ;;  %v12834_v61 = vpack.i.bf16 %v596_v54, %v590_v43 }
 0x12c   : > { %v468_v62 = vadd.f32 %v467_v55, %v12726_v45  ;;  %v469_v2 = vpop.f32.mrb[17].mxu0  ;;  %v601_v8 = vpop.f32.mrb[17].mxu1  ;;  %v12880_v43 = vmul.f32 0.17677669, %v438_v27  ;;  %v456_v50 = vadd.f32 %v455_v34, %v12726_v45  ;;  %v12897_v55 = vmul.f32 0.17677669, %v450_v10 }
 0x12d   : > { %17056 = vst [vmem:[#allocation14_spill] sm:$0xff] %v12828_v58  ;;  %17057 = vst [vmem:[#allocation15_spill] sm:$0xff] %v12834_v61  ;;  %10348 = vmatprep.subr.msk.bf16.mxu1 %vm12752_vm1, %v10346_v57  ;;  %11082 = vrot.lane.b32.xlu0 %v12828_v58, %s12358_s9  ;;  %v602_v14 = vadd.f32 %v601_v8, %v12733_v52  ;;  %v470_v20 = vadd.f32 %v469_v2, %v12733_v52  ;;  %v348_v10 = vsub.s32 2, %v12717_v42 }
 0x12e   : > { %v12843_v11 = vmul.f32 0.17677669, %v468_v62  ;;  %10351 = vmatpush3.bf16.xpose.msk.msra.mxu1 %vm12752_vm1, %v10346_v57  ;;  %17062 = vst [vmem:[#allocation20_spill] sm:$0xff] %v12897_v55  ;;  %v462_v57 = vadd.f32 %v461_v7, %v12726_v45  ;;  %v12904_v8 = vmul.f32 0.17677669, %v456_v50 }
 0x12f   : > { %v473_v13 = vpop.f32.mrb[18].mxu0  ;;  %v12848_v15 = vpop.f32.mrb[18].mxu1 }
 0x130   : > { %17058 = vst [vmem:[#allocation16_spill] sm:$0xff] %v12843_v11  ;;  %v475_v16 = vpop.f32.mrb[19].mxu0  ;;  %v607_v17 = vpop.f32.mrb[19].mxu1  ;;  %v474_v29 = vadd.f32 %v473_v13, %v12726_v45  ;;  %v12914_v7 = vmul.f32 0.17677669, %v462_v57 }
 0x131   : > { %v476_v24 = vadd.f32 %v475_v16, %v12733_v52  ;;  %2535 = vrot.lane.b32.xlu0 %v12843_v11, %s12358_s9  ;;  %v608_v1 = vadd.f32 %v607_v17, %v12733_v52 }
 0x132   : > { %v12882_v47 = vmul.f32 0.17677669, %v474_v29  ;;  %17064 = vst [vmem:[#allocation22_spill] sm:$0xff] %v12914_v7 }
 0x133   : > { %v12860_v30 = vpop.f32.mrb[20].mxu0  ;;  %v12862_v31 = vpack.i.bf16 %v476_v24, %v470_v20  ;;  %v10352_v32 = vpack.c.bf16 %v476_v24, %v470_v20  ;;  %v12864_v33 = vpack.c.bf16 %v608_v1, %v602_v14  ;;  %v12866_v35 = vpack.i.bf16 %v608_v1, %v602_v14 }
 0x134   : > { %v481_v41 = vpop.f32.mrb[21].mxu0  ;;  %17061 = vst [vmem:[#allocation19_spill] sm:$0xff] %v12882_v47 }
 0x135   : > { %17059 = vst [vmem:[#allocation17_spill] sm:$0xff] %v12862_v31  ;;  %17060 = vst [vmem:[#allocation18_spill] sm:$0xff] %v12866_v35  ;;  %11087 = vrot.lane.b32.xlu1 %v12862_v31, %s12358_s9  ;;  %9305 = vmatmul.mubr.msk.f32.vlgmr.msra.gmra.mrb[52].mxu1 %vm875_vm0, %v12748_v63  ;;  %v482_v51 = vadd.f32 %v481_v41, %v12733_v52 }
 0x136   : > { %10354 = vmatprep.subr.msk.bf16.mxu1 %vm12752_vm1, %v10352_v32  ;;  %9307 = vmatprep.mubr.msk.f32.mxu1 %vm875_vm0, %v12855_v25 }
 0x137   : > { %10357 = vmatpush3.bf16.xpose.msk.msra.mxu1 %vm12752_vm1, %v10352_v32  ;;  %v12886_v18 = vpop.f32.mrb[22].mxu0 }
 0x138   : > { %v487_v26 = vpop.f32.mrb[23].mxu0 }
 0x139   : > { %v488_v54 = vadd.f32 %v487_v26, %v12733_v52  ;;  %2537 = vrot.lane.b32.xlu1 %v12882_v47, %s12358_s9  ;;  %9308 = vmatmul.mubr.msk.f32.gmra.mrb[54].mxu1 %vm875_vm0, %v12880_v43 }
 0x13a   : > { %9310 = vmatprep.mubr.msk.f32.mxu1 %vm875_vm0, %v12888_v49 }
 0x13b   : > { %v491_v62 = vpop.f32.mrb[24].mxu0  ;;  %v12902_v34 = vpack.i.bf16 %v488_v54, %v482_v51  ;;  %v10358_v2 = vpack.c.bf16 %v488_v54, %v482_v51 }
 0x13c   : > { %v493_v9 = vpop.f32.mrb[25].mxu0 }
 0x13d   : > { %17063 = vst [vmem:[#allocation21_spill] sm:$0xff] %v12902_v34  ;;  %11092 = vrot.lane.b32.xlu1 %v12902_v34, %s12358_s9  ;;  %9311 = vmatmul.mubr.msk.f32.gmra.mrb[56].mxu1 %vm875_vm0, %v12897_v55  ;;  %v494_v16 = vadd.f32 %v493_v9, %v12733_v52  ;;  %v9242_v9 = vpop.f32.mrb[20].mxu1 }
 0x13e   : > { %10360 = vmatprep.subr.msk.bf16.mxu1 %vm12752_vm1, %v10358_v2  ;;  %9313 = vmatprep.mubr.msk.f32.mxu1 %vm875_vm0, %v12904_v8 }
 0x13f   : > { %10363 = vmatpush3.bf16.xpose.msk.msra.mxu1 %vm12752_vm1, %v10358_v2  ;;  %v497_v13 = vpop.f32.mrb[26].mxu0  ;;  %v12943_v2 = vrot.slane %v12723_v44, %v348_v10 }
 0x140   : > { %v499_v14 = vpop.f32.mrb[27].mxu0 }
 0x141   : > { %v500_v17 = vadd.f32 %v499_v14, %v12733_v52  ;;  %9314 = vmatmul.mubr.msk.f32.gmra.mrb[58].mxu1 %vm875_vm0, %v12914_v7  ;;  %v676_v14 = vpop.f32.mrb[21].mxu1  ;;  %v682_v42 = vadd.f32 %v9242_v9, %v12943_v2 }
 0x142   : > { %9332 = vmatprep.mubr.msk.f32.mxu1 %vm875_vm0, %v12843_v11  ;;  %v492_v11 = vadd.f32 %v491_v62, %v12726_v45  ;;  %v498_v62 = vadd.f32 %v497_v13, %v12726_v45 }
 0x143   : > { %v12924_v20 = vpop.f32.mrb[28].mxu0  ;;  %v12926_v24 = vpack.i.bf16 %v500_v17, %v494_v16  ;;  %v10364_v1 = vpack.c.bf16 %v500_v17, %v494_v16  ;;  %v677_v17 = vadd.f32 %v676_v14, %v12943_v2 }
 0x144   : > { %v505_v27 = vpop.f32.mrb[29].mxu0  ;;  %v13005_v13 = vmul.f32 0.17677669, %v492_v11 }
 0x145   : > { %17065 = vst [vmem:[#allocation23_spill] sm:$0xff] %v12926_v24  ;;  %11097 = vrot.lane.b32.xlu1 %v12926_v24, %s12358_s9  ;;  %10366 = vmatprep.subr.msk.bf16.mxu1 %vm12752_vm1, %v10364_v1  ;;  %v506_v40 = vadd.f32 %v505_v27, %v12733_v52  ;;  %v9245_v27 = vpop.f32.mrb[22].mxu1 }
 0x146   : > { %17073 = vst [vmem:[#allocation31_spill] sm:$0xff] %v13005_v13 }
 0x147   : > { %10369 = vmatpush3.bf16.xpose.msk.msra.mxu1 %vm12752_vm1, %v10364_v1  ;;  %v12934_v29 = vpop.f32.mrb[30].mxu0 }
 0x148   : > { %v511_v32 = vpop.f32.mrb[31].mxu0 }
 0x149   : > { %v512_v41 = vadd.f32 %v511_v32, %v12733_v52  ;;  %v12962_v32 = vpack.c.bf16 %v682_v42, %v677_v17 }
 0x14b   : > { %v515_v50 = vpop.f32.mrb[32].mxu0  ;;  %v12939_v26 = vpack.i.bf16 %v512_v41, %v506_v40  ;;  %v10370_v51 = vpack.c.bf16 %v512_v41, %v506_v40  ;;  %v480_v40 = vadd.f32 %v12860_v30, %v12726_v45 }
 0x14c   : > { %v516_v54 = vadd.f32 %v515_v50, %v12726_v45  ;;  %v517_v57 = vpop.f32.mrb[33].mxu0  ;;  %v686_v50 = vpop.f32.mrb[23].mxu1 }
 0x14d   : > { %17066 = vst [vmem:[#allocation24_spill] sm:$0xff] %v12939_v26  ;;  %11102 = vrot.lane.b32.xlu0 %v12939_v26, %s12358_s9  ;;  %10372 = vmatprep.subr.msk.bf16.mxu1 %vm12752_vm1, %v10370_v51  ;;  %v518_v41 = vadd.f32 %v517_v57, %v12733_v52  ;;  %v687_v9 = vadd.f32 %v686_v50, %v12943_v2  ;;  %v9248_v14 = vpop.f32.mrb[24].mxu1  ;;  %v12983_v50 = vmul.f32 0.17677669, %v480_v40 }
 0x14e   : > { %v12949_v16 = vmul.f32 0.17677669, %v516_v54  ;;  %v692_v54 = vadd.f32 %v9245_v27, %v12943_v2  ;;  %v696_v30 = vpop.f32.mrb[25].mxu1  ;;  %v12977_v57 = vpack.i.bf16 %v682_v42, %v677_v17  ;;  %v702_v34 = vadd.f32 %v9248_v14, %v12943_v2 }
 0x14f   : > { %10375 = vmatpush3.bf16.xpose.msk.msra.mxu1 %vm12752_vm1, %v10370_v51  ;;  %v12955_v1 = vpop.f32.mrb[34].mxu0  ;;  %v486_v51 = vadd.f32 %v12886_v18, %v12726_v45  ;;  %v697_v18 = vadd.f32 %v696_v30, %v12943_v2  ;;  %v9251_v53 = vpop.f32.mrb[26].mxu1  ;;  %17070 = vst [vmem:[#allocation28_spill] sm:$0xff] %v12983_v50  ;;  %v504_v14 = vadd.f32 %v12924_v20, %v12726_v45 }
 0x150   : > { %17067 = vst [vmem:[#allocation25_spill] sm:$0xff] %v12949_v16  ;;  %v523_v44 = vpop.f32.mrb[35].mxu0  ;;  %9360 = vmatprep.mubr.msk.f32.mxu0 %vm875_vm0, %v12949_v16  ;;  %10402 = vmatprep.subr.msk.bf16.mxu1 %vm12752_vm1, %v12790_v23  ;;  %17069 = vst [vmem:[#allocation27_spill] sm:$0xff] %v12977_v57  ;;  %v12981_v27 = vpack.c.bf16 %v692_v54, %v687_v9  ;;  %v13001_v17 = vpack.i.bf16 %v692_v54, %v687_v9  ;;  %v13017_v9 = vmul.f32 0.17677669, %v498_v62 }
 0x151   : > { %v524_v10 = vadd.f32 %v523_v44, %v12733_v52  ;;  %v13003_v40 = vmul.f32 0.17677669, %v486_v51  ;;  %v706_v51 = vpop.f32.mrb[27].mxu1  ;;  %v13030_v62 = vpack.i.bf16 %v702_v34, %v697_v18  ;;  %v13038_v3 = vmul.f32 0.17677669, %v504_v14 }
 0x152   : > { %17071 = vst [vmem:[#allocation29_spill] sm:$0xff] %v13001_v17  ;;  %17074 = vst [vmem:[#allocation32_spill] sm:$0xff] %v13017_v9  ;;  %v707_v11 = vadd.f32 %v706_v51, %v12943_v2  ;;  %v9254_v30 = vpop.f32.mrb[28].mxu1 }
 0x153   : > { %v12973_v26 = vpop.f32.mrb[36].mxu0  ;;  %v10376_v21 = vpack.c.bf16 %v524_v10, %v518_v41  ;;  %v12975_v63 = vpack.i.bf16 %v524_v10, %v518_v41  ;;  %17072 = vst [vmem:[#allocation30_spill] sm:$0xff] %v13003_v40  ;;  %v13011_v10 = vpack.c.bf16 %v702_v34, %v697_v18  ;;  %17076 = vst [vmem:[#allocation34_spill] sm:$0xff] %v13030_v62 }
 0x154   : > { %v529_v44 = vpop.f32.mrb[37].mxu0  ;;  %v722_v24 = vadd.f32 %v9254_v30, %v12943_v2  ;;  %17077 = vst [vmem:[#allocation35_spill] sm:$0xff] %v13038_v3 }
 0x155   : > { %17068 = vst [vmem:[#allocation26_spill] sm:$0xff] %v12975_v63  ;;  %10378 = vmatprep.subr.msk.bf16.mxu0 %vm12752_vm1, %v10376_v21  ;;  %11107 = vrot.lane.b32.xlu1 %v12975_v63, %s12358_s9 }
 0x156   : > { %9333 = vmatmul.mubr.msk.f32.vlgmr.msra.gmra.mrb[60].mxu1 %vm875_vm0, %v12882_v47  ;;  %10381 = vmatpush3.bf16.xpose.msk.msra.mxu0 %vm12752_vm1, %v10376_v21  ;;  %v712_v21 = vadd.f32 %v9251_v53, %v12943_v2  ;;  %v510_v53 = vadd.f32 %v12934_v29, %v12726_v45  ;;  %v564_v29 = vadd.f32 %v12760_v4, %v12726_v45 }
 0x157   : > { %9335 = vmatprep.mubr.msk.f32.mxu1 %vm875_vm0, %v12983_v50  ;;  %v12996_v42 = vpop.f32.mrb[38].mxu0  ;;  %10405 = vmatpush3.bf16.xpose.msk.msra.mxu1 %vm12752_vm1, %v12790_v23  ;;  %v530_v23 = vadd.f32 %v529_v44, %v12733_v52 }
 0x158   : > { %v535_v41 = vpop.f32.mrb[39].mxu0  ;;  %10408 = vmatprep.subr.msk.bf16.mxu1 %vm12752_vm1, %v12812_v38  ;;  %v13034_v36 = vpack.c.bf16 %v712_v21, %v707_v11  ;;  %v13066_v57 = vmul.f32 0.17677669, %v564_v29 }
 0x159   : > { %v536_v54 = vadd.f32 %v535_v41, %v12733_v52  ;;  %v716_v41 = vpop.f32.mrb[29].mxu1 }
 0x15a   : > { %9336 = vmatmul.mubr.msk.f32.gmra.mrb[62].mxu1 %vm875_vm0, %v13003_v40  ;;  %v717_v51 = vadd.f32 %v716_v41, %v12943_v2  ;;  %v9257_v58 = vpop.f32.mrb[30].mxu1  ;;  %17080 = vst [vmem:[#allocation38_spill] sm:$0xff] %v13066_v57 }
 0x15b   : > { %9338 = vmatprep.mubr.msk.f32.mxu1 %vm875_vm0, %v13005_v13  ;;  %v13026_v20 = vpop.f32.mrb[40].mxu0  ;;  %v10382_v44 = vpack.c.bf16 %v536_v54, %v530_v23  ;;  %v13028_v47 = vpack.i.bf16 %v536_v54, %v530_v23  ;;  %v726_v34 = vpop.f32.mrb[31].mxu1  ;;  %v13055_v23 = vpack.i.bf16 %v712_v21, %v707_v11  ;;  %v13057_v54 = vmul.f32 0.17677669, %v510_v53 }
 0x15c   : > { %v541_v63 = vpop.f32.mrb[41].mxu0  ;;  %v9260_v18 = vpop.f32.mrb[32].mxu1  ;;  %v727_v41 = vadd.f32 %v726_v34, %v12943_v2  ;;  %v13064_v62 = vpack.c.bf16 %v722_v24, %v717_v51  ;;  %v13077_v29 = vpack.i.bf16 %v722_v24, %v717_v51 }
 0x15d   : > { %17075 = vst [vmem:[#allocation33_spill] sm:$0xff] %v13028_v47  ;;  %10384 = vmatprep.subr.msk.bf16.mxu0 %vm12752_vm1, %v10382_v44  ;;  %11112 = vrot.lane.b32.xlu1 %v13028_v47, %s12358_s9  ;;  %v736_v14 = vpop.f32.mrb[33].mxu1  ;;  %17078 = vst [vmem:[#allocation36_spill] sm:$0xff] %v13055_v23  ;;  %v742_v34 = vadd.f32 %v9260_v18, %v12943_v2 }
 0x15e   : > { %9339 = vmatmul.mubr.msk.f32.gmra.mrb[64].mxu1 %vm875_vm0, %v13017_v9  ;;  %10387 = vmatpush3.bf16.xpose.msk.msra.mxu0 %vm12752_vm1, %v10382_v44  ;;  %17079 = vst [vmem:[#allocation37_spill] sm:$0xff] %v13057_v54  ;;  %v732_v44 = vadd.f32 %v9257_v58, %v12943_v2  ;;  %v9263_v47 = vpop.f32.mrb[34].mxu1  ;;  %17082 = vst [vmem:[#allocation40_spill] sm:$0xff] %v13077_v29 }
 0x15f   : > { %9341 = vmatprep.mubr.msk.f32.mxu1 %vm875_vm0, %v13038_v3  ;;  %v13050_v4 = vpop.f32.mrb[42].mxu0  ;;  %10411 = vmatpush3.bf16.xpose.msk.msra.mxu1 %vm12752_vm1, %v12812_v38  ;;  %v542_v38 = vadd.f32 %v541_v63, %v12733_v52  ;;  %v746_v11 = vpop.f32.mrb[35].mxu1  ;;  %v737_v63 = vadd.f32 %v736_v14, %v12943_v2 }
 0x160   : > { %v547_v30 = vpop.f32.mrb[43].mxu0  ;;  %10414 = vmatprep.subr.msk.bf16.mxu1 %vm12752_vm1, %v12832_v60  ;;  %v9266_v53 = vpop.f32.mrb[36].mxu1 }
 0x161   : > { %v548_v21 = vadd.f32 %v547_v30, %v12733_v52  ;;  %v756_v19 = vpop.f32.mrb[37].mxu1  ;;  %v13080_v52 = vpack.c.bf16 %v732_v44, %v727_v41 }
 0x162   : > { %9342 = vmatmul.mubr.msk.f32.gmra.mrb[66].mxu1 %vm875_vm0, %v13057_v54  ;;  %v9269_v23 = vpop.f32.mrb[38].mxu1  ;;  %v757_v9 = vadd.f32 %v756_v19, %v12943_v2 }
 0x163   : > { %v10388_v31 = vpack.c.bf16 %v548_v21, %v542_v38  ;;  %9388 = vmatprep.mubr.msk.f32.mxu1 %vm875_vm0, %v13066_v57  ;;  %v13074_v58 = vpack.i.bf16 %v548_v21, %v542_v38  ;;  %v13087_v30 = vadd.f32 %v9269_v23, %v12943_v2  ;;  %v766_v38 = vpop.f32.mrb[39].mxu1  ;;  %v13101_v23 = vpack.i.bf16 %v732_v44, %v727_v41 }
 0x164   : > { %v767_v24 = vadd.f32 %v766_v38, %v12943_v2  ;;  %v9272_v51 = vpop.f32.mrb[40].mxu1  ;;  %v747_v21 = vadd.f32 %v746_v11, %v12943_v2 }
 0x165   : > { %17081 = vst [vmem:[#allocation39_spill] sm:$0xff] %v13074_v58  ;;  %10390 = vmatprep.subr.msk.bf16.mxu0 %vm12752_vm1, %v10388_v31  ;;  %11117 = vrot.lane.b32.xlu0 %v13074_v58, %s12358_s9  ;;  %v13099_v18 = vadd.f32 %v9272_v51, %v12943_v2  ;;  %v776_v14 = vpop.f32.mrb[41].mxu1  ;;  %17083 = vst [vmem:[#allocation41_spill] sm:$0xff] %v13101_v23  ;;  %v13111_v58 = vpack.c.bf16 %v742_v34, %v737_v63 }
 0x166   : > { %10393 = vmatpush3.bf16.xpose.msk.msra.mxu0 %vm12752_vm1, %v10388_v31  ;;  %v752_v31 = vadd.f32 %v9263_v47, %v12943_v2  ;;  %v9275_v38 = vpop.f32.mrb[42].mxu1  ;;  %v13123_v47 = vpack.i.bf16 %v742_v34, %v737_v63 }
 0x167   : > { %10417 = vmatpush3.bf16.xpose.msk.msra.mxu1 %vm12752_vm1, %v12832_v60  ;;  %10396 = vmatprep.subr.msk.bf16.mxu0 %vm12752_vm1, %v12762_v5  ;;  %v13109_v60 = vadd.f32 %v776_v14, %v12943_v2  ;;  %v13114_v51 = vadd.f32 %v9275_v38, %v12943_v2  ;;  %v786_v29 = vpop.f32.mrb[43].mxu1  ;;  %v762_v14 = vadd.f32 %v9266_v53, %v12943_v2 }
 0x168   : > { %10420 = vmatprep.subr.msk.bf16.mxu1 %vm12752_vm1, %v12864_v33  ;;  %v13117_v44 = vadd.f32 %v786_v29, %v12943_v2  ;;  %v13119_v41 = vpop.f32.mrb[44].mxu1  ;;  %17084 = vst [vmem:[#allocation42_spill] sm:$0xff] %v13123_v47  ;;  %v13125_v54 = vpack.c.bf16 %v752_v31, %v747_v21  ;;  %v522_v29 = vadd.f32 %v12955_v1, %v12726_v45 }
 0x169   : > { %v13121_v23 = vpop.f32.mrb[45].mxu1  ;;  %v570_v1 = vadd.f32 %v12777_v12, %v12726_v45 }
 0x16a   : > { %v9281_v11 = vpop.f32.mrb[46].mxu1 }
 0x16b   : > { %v13130_v38 = vadd.f32 %v9281_v11, %v12943_v2  ;;  %v806_v17 = vpop.f32.mrb[47].mxu1  ;;  %v13147_v11 = vpack.i.bf16 %v752_v31, %v747_v21  ;;  %v13162_v21 = vpack.c.bf16 %v762_v14, %v757_v9  ;;  %v13173_v35 = vmul.f32 0.17677669, %v570_v1 }
 0x16c   : > { %v13138_v34 = vadd.f32 %v806_v17, %v12943_v2  ;;  %v9284_v63 = vpop.f32.mrb[48].mxu1 }
 0x16d   : > { %v13144_v19 = vadd.f32 %v9284_v63, %v12943_v2  ;;  %v816_v53 = vpop.f32.mrb[49].mxu1  ;;  %17085 = vst [vmem:[#allocation43_spill] sm:$0xff] %v13147_v11  ;;  %v13167_v11 = vmul.f32 0.17677669, %v522_v29  ;;  %17088 = vst [vmem:[#allocation46_spill] sm:$0xff] %v13173_v35  ;;  %v588_v29 = vadd.f32 %v12810_v37, %v12726_v45  ;;  %v13202_v37 = vpack.i.bf16 %v13087_v30, %v767_v24 }
 0x16e   : > { %10399 = vmatpush3.bf16.xpose.msk.msra.mxu0 %vm12752_vm1, %v12762_v5  ;;  %v528_v5 = vadd.f32 %v12973_v26, %v12726_v45  ;;  %v13154_v17 = vadd.f32 %v816_v53, %v12943_v2  ;;  %v534_v26 = vadd.f32 %v12996_v42, %v12726_v45  ;;  %v13171_v53 = vpack.i.bf16 %v762_v14, %v757_v9 }
 0x16f   : > { %10423 = vmatpush3.bf16.xpose.msk.msra.mxu1 %vm12752_vm1, %v12864_v33  ;;  %10425 = vmatprep.subr.bf16.mxu0 %v12962_v32  ;;  %v9287_v47 = vpop.f32.mrb[50].mxu1  ;;  %v576_v33 = vadd.f32 %v12788_v22, %v12726_v45  ;;  %17086 = vst [vmem:[#allocation44_spill] sm:$0xff] %v13167_v11  ;;  %v582_v22 = vadd.f32 %v12801_v28, %v12726_v45  ;;  %17092 = vst [vmem:[#allocation50_spill] sm:$0xff] %v13202_v37 }
 0x170   : > { %10441 = vmatprep.subr.bf16.mxu1 %v13064_v62  ;;  %v13160_v63 = vadd.f32 %v9287_v47, %v12943_v2  ;;  %v826_v31 = vpop.f32.mrb[51].mxu1  ;;  %17087 = vst [vmem:[#allocation45_spill] sm:$0xff] %v13171_v53  ;;  %v13175_v50 = vmul.f32 0.17677669, %v528_v5  ;;  %v540_v47 = vadd.f32 %v13026_v20, %v12726_v45  ;;  %v13192_v42 = vpack.c.bf16 %v13087_v30, %v767_v24 }
 0x171   : > { %v13165_v12 = vadd.f32 %v826_v31, %v12943_v2  ;;  %v13181_v16 = vmul.f32 0.17677669, %v576_v33  ;;  %v13194_v28 = vmul.f32 0.17677669, %v534_v26  ;;  %v546_v9 = vadd.f32 %v13050_v4, %v12726_v45 }
 0x172   : > { %17089 = vst [vmem:[#allocation47_spill] sm:$0xff] %v13175_v50  ;;  %v552_v20 = vadd.f32 %v12729_v48, %v12726_v45  ;;  %v13206_v14 = vmul.f32 0.17677669, %v582_v22  ;;  %v13208_v1 = vmul.f32 0.17677669, %v540_v47  ;;  %v594_v5 = vadd.f32 %v12823_v46, %v12726_v45  ;;  %v13341_v22 = vld [vmem:[%s16845_s3 + $0x10] sm:$0xff] }
 0x173   : > { %17090 = vst [vmem:[#allocation48_spill] sm:$0xff] %v13181_v16  ;;  %17091 = vst [vmem:[#allocation49_spill] sm:$0xff] %v13194_v28  ;;  %v13214_v4 = vmul.f32 0.17677669, %v588_v29  ;;  %v13227_v48 = vpack.c.bf16 %v13099_v18, %v13109_v60  ;;  %v558_v46 = vadd.f32 %v12738_v56, %v12726_v45  ;;  %v606_v33 = vadd.f32 %v12848_v15, %v12726_v45 }
 0x174   : > { %17093 = vst [vmem:[#allocation51_spill] sm:$0xff] %v13206_v14  ;;  %17094 = vst [vmem:[#allocation52_spill] sm:$0xff] %v13208_v1  ;;  %v13240_v30 = vmul.f32 0.17677669, %v552_v20  ;;  %v13242_v24 = vmul.f32 0.17677669, %v594_v5 }
 0x175   : > { %9361 = vmatmul.mubr.msk.f32.vlgmr.msra.gmra.mrb[44].mxu0 %vm875_vm0, %v13167_v11  ;;  %17095 = vst [vmem:[#allocation53_spill] sm:$0xff] %v13214_v4  ;;  %v13265_v15 = vmul.f32 0.17677669, %v558_v46  ;;  %v13361_v46 = vld [vmem:[%s16845_s3 + $0x28] sm:$0xff] }
 0x176   : > { %9363 = vmatprep.mubr.msk.f32.mxu0 %vm875_vm0, %v13175_v50  ;;  %9389 = vmatmul.mubr.msk.f32.vlgmr.msra.gmra.mrb[68].mxu1 %vm875_vm0, %v13173_v35  ;;  %17098 = vst [vmem:[#allocation56_spill] sm:$0xff] %v13240_v30  ;;  %17099 = vst [vmem:[#allocation57_spill] sm:$0xff] %v13242_v24 }
 0x177   : > { %9391 = vmatprep.mubr.msk.f32.mxu1 %vm875_vm0, %v13181_v16  ;;  %10427 = vmatpush3.bf16.msra.mxu0 %v12962_v32  ;;  %v600_v32 = vadd.f32 %v12830_v59, %v12726_v45  ;;  %v13238_v59 = vpack.i.bf16 %v13099_v18, %v13109_v60  ;;  %v797_v18 = vadd.f32 %v13121_v23, %v12943_v2 }
 0x178   : > { %10429 = vmatprep.subr.bf16.mxu0 %v12981_v27  ;;  %10443 = vmatpush3.bf16.msra.mxu1 %v13064_v62  ;;  %v13231_v62 = vmul.f32 0.17677669, %v546_v9  ;;  %v13263_v45 = vpack.c.bf16 %v13114_v51, %v13117_v44  ;;  %17101 = vst [vmem:[#allocation59_spill] sm:$0xff] %v13265_v15  ;;  %v13297_v60 = vpack.i.bf16 %v13130_v38, %v13138_v34 }
 0x179   : > { %9364 = vmatmul.mubr.msk.f32.gmra.mrb[46].mxu0 %vm875_vm0, %v13194_v28  ;;  %10445 = vmatprep.subr.bf16.mxu1 %v13080_v52  ;;  %17097 = vst [vmem:[#allocation55_spill] sm:$0xff] %v13238_v59  ;;  %v13248_v56 = vmul.f32 0.17677669, %v600_v32  ;;  %v13356_v32 = vld [vmem:[%s16845_s3 + $0x20] sm:$0xff] }
 0x17a   : > { %9366 = vmatprep.mubr.msk.f32.mxu0 %vm875_vm0, %v13208_v1  ;;  %9392 = vmatmul.mubr.msk.f32.gmra.mrb[70].mxu1 %vm875_vm0, %v13206_v14  ;;  %17096 = vst [vmem:[#allocation54_spill] sm:$0xff] %v13231_v62  ;;  %17106 = vst [vmem:[#allocation64_spill] sm:$0xff] %v13297_v60 }
 0x17b   : > { %9394 = vmatprep.mubr.msk.f32.mxu1 %vm875_vm0, %v13214_v4  ;;  %10431 = vmatpush3.bf16.msra.mxu0 %v12981_v27  ;;  %17100 = vst [vmem:[#allocation58_spill] sm:$0xff] %v13248_v56  ;;  %v802_v27 = vadd.f32 %v13119_v41, %v12943_v2  ;;  %v13272_v2 = vpack.i.bf16 %v13114_v51, %v13117_v44  ;;  %v13318_v41 = vld [vmem:[%s16845_s3 + $0x8] sm:$0xff] }
 0x17c   : > { %10433 = vmatprep.subr.bf16.mxu0 %v13011_v10  ;;  %10447 = vmatpush3.bf16.msra.mxu1 %v13080_v52  ;;  %v13274_v52 = vmul.f32 0.17677669, %v606_v33  ;;  %v13301_v51 = vpack.c.bf16 %v13144_v19, %v13154_v17  ;;  %v13313_v44 = vpack.i.bf16 %v13160_v63, %v13165_v12 }
 0x17d   : > { %9367 = vmatmul.mubr.msk.f32.gmra.mrb[48].mxu0 %vm875_vm0, %v13231_v62  ;;  %10449 = vmatprep.subr.bf16.mxu1 %v13111_v58  ;;  %17102 = vst [vmem:[#allocation60_spill] sm:$0xff] %v13272_v2  ;;  %v13281_v23 = vpack.c.bf16 %v802_v27, %v797_v18 }
 0x17e   : > { %9369 = vmatprep.mubr.msk.f32.mxu0 %vm875_vm0, %v13240_v30  ;;  %9395 = vmatmul.mubr.msk.f32.gmra.mrb[72].mxu1 %vm875_vm0, %v13242_v24  ;;  %17103 = vst [vmem:[#allocation61_spill] sm:$0xff] %v13274_v52  ;;  %17107 = vst [vmem:[#allocation65_spill] sm:$0xff] %v13301_v51 }
 0x17f   : > { %9397 = vmatprep.mubr.msk.f32.mxu1 %vm875_vm0, %v13248_v56  ;;  %10435 = vmatpush3.bf16.msra.mxu0 %v13011_v10  ;;  %v13286_v10 = vpack.i.bf16 %v802_v27, %v797_v18  ;;  %17110 = vst [vmem:[#allocation68_spill] sm:$0xff] %v13313_v44 }
 0x180   : > { %10437 = vmatprep.subr.bf16.mxu0 %v13034_v36  ;;  %10451 = vmatpush3.bf16.msra.mxu1 %v13111_v58  ;;  %v13293_v58 = vpack.c.bf16 %v13130_v38, %v13138_v34  ;;  %v13323_v34 = vld [vmem:[%s16845_s3] sm:$0xff] }
 0x181   : > { %9370 = vmatmul.mubr.msk.f32.gmra.mrb[50].mxu0 %vm875_vm0, %v13265_v15  ;;  %10453 = vmatprep.subr.bf16.mxu1 %v13125_v54  ;;  %17104 = vst [vmem:[#allocation62_spill] sm:$0xff] %v13286_v10 }
 0x182   : > { %9398 = vmatmul.mubr.msk.f32.gmra.mrb[74].mxu1 %vm875_vm0, %v13274_v52  ;;  %17105 = vst [vmem:[#allocation63_spill] sm:$0xff] %v13293_v58 }
 0x183   : > { %10439 = vmatpush3.bf16.msra.mxu0 %v13034_v36  ;;  %v13305_v36 = vpack.i.bf16 %v13144_v19, %v13154_v17 }
 0x184   : > { %10455 = vmatpush3.bf16.msra.mxu1 %v13125_v54  ;;  %10457 = vmatprep.subr.bf16.mxu0 %v13162_v21  ;;  %v13309_v54 = vpack.c.bf16 %v13160_v63, %v13165_v12  ;;  %v13331_v63 = vld [vmem:[%s16845_s3 + $0x18] sm:$0xff] }
 0x185   : > { %10473 = vmatprep.subr.bf16.mxu1 %v13281_v23  ;;  %17108 = vst [vmem:[#allocation66_spill] sm:$0xff] %v13305_v36 }
 0x186   : > { %17109 = vst [vmem:[#allocation67_spill] sm:$0xff] %v13309_v54 }
 0x208   : > { %v9306_v38 = vpop.f32.mrb[52].mxu1 }
 0x209   : > { %v13326_v19 = vadd.f32 %v9306_v38, %v13318_v41  ;;  %v990_v17 = vpop.f32.mrb[53].mxu1 }
 0x20a   : > { %v13334_v31 = vadd.f32 %v990_v17, %v13323_v34 }
 0x20b   : > { %v1492_v12 = vsel %vm1488_vm2, %v13326_v19, -inf }
 0x20c   : > { %1493 = vmax.xlane.f32.xlu0 %v1492_v12  ;;  %v9309_v26 = vpop.f32.mrb[54].mxu1  ;;  %v1489_v5 = vsel %vm1488_vm2, %v13334_v31, -inf  ;;  %v13374_v12 = vld [vmem:[%s16845_s3 + $0x38] sm:$0xff] }
 0x20d   : > { %v13344_v47 = vadd.f32 %v9309_v26, %v13331_v63  ;;  %v1000_v29 = vpop.f32.mrb[55].mxu1 }
 0x20e   : > { %v13347_v9 = vadd.f32 %v1000_v29, %v13341_v22 }
 0x20f   : > { %v1498_v20 = vsel %vm1488_vm2, %v13344_v47, -inf }
 0x210   : > { %1499 = vmax.xlane.f32.xlu1 %v1498_v20  ;;  %v9312_v33 = vpop.f32.mrb[56].mxu1  ;;  %1490 = vmax.xlane.f32.xlu0 %v1489_v5  ;;  %v1495_v17 = vsel %vm1488_vm2, %v13347_v9, -inf }
 0x211   : > { %v1010_v27 = vpop.f32.mrb[57].mxu1  ;;  %v13367_v38 = vadd.f32 %v9312_v33, %v13361_v46 }
 0x212   : > { %v13364_v18 = vadd.f32 %v1010_v27, %v13356_v32  ;;  %v13386_v27 = vld [vmem:[%s16845_s3 + $0x30] sm:$0xff] }
 0x213   : > { %v1504_v33 = vsel %vm1488_vm2, %v13367_v38, -inf }
 0x214   : > { %v9315_v26 = vpop.f32.mrb[58].mxu1  ;;  %1496 = vmax.xlane.f32.xlu1 %v1495_v17  ;;  %v1501_v29 = vsel %vm1488_vm2, %v13364_v18, -inf }
 0x215   : > { %v1020_v20 = vpop.f32.mrb[59].mxu1  ;;  %1502 = vmax.xlane.f32.xlu0 %v1501_v29  ;;  %v13379_v5 = vadd.f32 %v9315_v26, %v13374_v12 }
 0x216   : > { %v13389_v44 = vadd.f32 %v1020_v20, %v13386_v27 }
 0x217   : > { %v1510_v17 = vsel %vm1488_vm2, %v13379_v5, -inf }
 0x218   : > { %1505 = vmax.xlane.f32.xlu1 %v1504_v33  ;;  %v1507_v26 = vsel %vm1488_vm2, %v13389_v44, -inf }
 0x21c   : > { %1511 = vmax.xlane.f32.xlu1 %v1510_v17 }
 0x220   : > { %1508 = vmax.xlane.f32.xlu1 %v1507_v26 }
 0x229   : > { %v9334_v29 = vpop.f32.mrb[60].mxu1 }
 0x22a   : > { %v13396_v36 = vadd.f32 %v9334_v29, %v13318_v41  ;;  %v1143_v60 = vpop.f32.mrb[61].mxu1 }
 0x22b   : > { %v13399_v10 = vadd.f32 %v1143_v60, %v13323_v34 }
 0x22c   : > { %v1516_v20 = vsel %vm1488_vm2, %v13396_v36, -inf }
 0x22d   : > { %v9337_v33 = vpop.f32.mrb[62].mxu1  ;;  %1517 = vmax.xlane.f32.xlu0 %v1516_v20  ;;  %v1513_v29 = vsel %vm1488_vm2, %v13399_v10, -inf }
 0x22e   : > { %v13404_v52 = vadd.f32 %v9337_v33, %v13331_v63  ;;  %v1153_v17 = vpop.f32.mrb[63].mxu1 }
 0x22f   : > { %v13407_v24 = vadd.f32 %v1153_v17, %v13341_v22 }
 0x230   : > { %v1522_v26 = vsel %vm1488_vm2, %v13404_v52, -inf }
 0x231   : > { %v9340_v60 = vpop.f32.mrb[64].mxu1  ;;  %1523 = vmax.xlane.f32.xlu1 %v1522_v26  ;;  %1514 = vmax.xlane.f32.xlu0 %v1513_v29  ;;  %v1519_v15 = vsel %vm1488_vm2, %v13407_v24, -inf }
 0x232   : > { %v13414_v14 = vadd.f32 %v9340_v60, %v13361_v46  ;;  %v1163_v20 = vpop.f32.mrb[65].mxu1 }
 0x233   : > { %v13417_v33 = vadd.f32 %v1163_v20, %v13356_v32 }
 0x234   : > { %v1528_v17 = vsel %vm1488_vm2, %v13414_v14, -inf }
 0x235   : > { %v9343_v2 = vpop.f32.mrb[66].mxu1  ;;  %1529 = vmax.xlane.f32.xlu1 %v1528_v17  ;;  %1520 = vmax.xlane.f32.xlu0 %v1519_v15  ;;  %v1525_v20 = vsel %vm1488_vm2, %v13417_v33, -inf }
 0x236   : > { %v13424_v62 = vadd.f32 %v9343_v2, %v13374_v12  ;;  %v1173_v26 = vpop.f32.mrb[67].mxu1 }
 0x237   : > { %v13427_v29 = vadd.f32 %v1173_v26, %v13386_v27 }
 0x238   : > { %v1534_v60 = vsel %vm1488_vm2, %v13424_v62, -inf }
 0x239   : > { %1535 = vmax.xlane.f32.xlu1 %v1534_v60  ;;  %1526 = vmax.xlane.f32.xlu0 %v1525_v20  ;;  %v1531_v59 = vsel %vm1488_vm2, %v13427_v29, -inf }
 0x23d   : > { %1532 = vmax.xlane.f32.xlu0 %v1531_v59 }
 0x248   : > { %v9362_v15 = vpop.f32.mrb[44].mxu0 }
 0x249   : > { %v13436_v2 = vadd.f32 %v9362_v15, %v13318_v41  ;;  %v1296_v17 = vpop.f32.mrb[45].mxu0  ;;  %v9390_v28 = vpop.f32.mrb[68].mxu1 }
 0x24a   : > { %v13439_v26 = vadd.f32 %v1296_v17, %v13323_v34  ;;  %v1449_v37 = vpop.f32.mrb[69].mxu1  ;;  %v13442_v35 = vadd.f32 %v9390_v28, %v13318_v41 }
 0x24b   : > { %v1540_v60 = vsel %vm1488_vm2, %v13436_v2, -inf  ;;  %v13447_v59 = vadd.f32 %v1449_v37, %v13323_v34 }
 0x24c   : > { %v9365_v20 = vpop.f32.mrb[46].mxu0  ;;  %1541 = vmax.xlane.f32.xlu1 %v1540_v60  ;;  %v1537_v15 = vsel %vm1488_vm2, %v13439_v26, -inf  ;;  %v1564_v28 = vsel %vm1488_vm2, %v13442_v35, -inf }
 0x24d   : > { %v1306_v53 = vpop.f32.mrb[47].mxu0  ;;  %1538 = vmax.xlane.f32.xlu0 %v1537_v15  ;;  %v9393_v56 = vpop.f32.mrb[70].mxu1  ;;  %v13452_v4 = vadd.f32 %v9365_v20, %v13331_v63  ;;  %v1561_v37 = vsel %vm1488_vm2, %v13447_v59, -inf }
 0x24e   : > { %v1459_v17 = vpop.f32.mrb[71].mxu1  ;;  %v13457_v41 = vadd.f32 %v1306_v53, %v13341_v22  ;;  %v13462_v7 = vadd.f32 %v9393_v56, %v13331_v63 }
 0x24f   : > { %v1546_v20 = vsel %vm1488_vm2, %v13452_v4, -inf  ;;  %v13467_v30 = vadd.f32 %v1459_v17, %v13341_v22 }
 0x250   : > { %1565 = vmax.xlane.f32.xlu1 %v1564_v28  ;;  %v9368_v34 = vpop.f32.mrb[48].mxu0  ;;  %v1543_v53 = vsel %vm1488_vm2, %v13457_v41, -inf  ;;  %v1570_v56 = vsel %vm1488_vm2, %v13462_v7, -inf }
 0x251   : > { %1562 = vmax.xlane.f32.xlu0 %v1561_v37  ;;  %v1316_v60 = vpop.f32.mrb[49].mxu0  ;;  %v9396_v16 = vpop.f32.mrb[72].mxu1  ;;  %v13472_v54 = vadd.f32 %v9368_v34, %v13361_v46  ;;  %v1567_v22 = vsel %vm1488_vm2, %v13467_v30, -inf }
 0x252   : > { %v1469_v15 = vpop.f32.mrb[73].mxu1  ;;  %v13477_v63 = vadd.f32 %v1316_v60, %v13356_v32  ;;  %v13482_v17 = vadd.f32 %v9396_v16, %v13361_v46 }
 0x253   : > { %v13487_v34 = vadd.f32 %v1469_v15, %v13356_v32 }
 0x254   : > { %1547 = vmax.xlane.f32.xlu1 %v1546_v20  ;;  %v9371_v28 = vpop.f32.mrb[50].mxu0  ;;  %v1552_v20 = vsel %vm1488_vm2, %v13472_v54, -inf }
 0x255   : > { %1544 = vmax.xlane.f32.xlu0 %v1543_v53  ;;  %v1326_v55 = vpop.f32.mrb[51].mxu0  ;;  %v9399_v37 = vpop.f32.mrb[74].mxu1  ;;  %v1549_v53 = vsel %vm1488_vm2, %v13477_v63, -inf  ;;  %v13492_v60 = vadd.f32 %v9371_v28, %v13374_v12  ;;  %v1573_v46 = vsel %vm1488_vm2, %v13487_v34, -inf }
 0x256   : > { %v1479_v1 = vpop.f32.mrb[75].mxu1  ;;  %v13497_v16 = vadd.f32 %v1326_v55, %v13386_v27  ;;  %v13502_v32 = vadd.f32 %v9399_v37, %v13374_v12  ;;  %v13515_v12 = vpop.permute.xlu1 %2368 }
 0x257   : > { %v1558_v15 = vsel %vm1488_vm2, %v13492_v60, -inf  ;;  %v13507_v28 = vadd.f32 %v1479_v1, %v13386_v27  ;;  %17111 = vst [vmem:[#allocation69_spill] sm:$0xff] %v13515_v12 }
 0x258   : > { %1571 = vmax.xlane.f32.xlu1 %v1570_v56  ;;  %v1576_v56 = vsel %vm1488_vm2, %v13482_v17, -inf  ;;  %v1582_v55 = vsel %vm1488_vm2, %v13502_v32, -inf }
 0x259   : > { %1568 = vmax.xlane.f32.xlu0 %v1567_v22  ;;  %v1555_v22 = vsel %vm1488_vm2, %v13497_v16, -inf }
 0x25a   : > { %v13517_v37 = vpop.permute.xlu1 %11067 }
 0x25b   : > { %17112 = vst [vmem:[#allocation70_spill] sm:$0xff] %v13517_v37 }
 0x25c   : > { %1553 = vmax.xlane.f32.xlu1 %v1552_v20  ;;  %v1579_v20 = vsel %vm1488_vm2, %v13507_v28, -inf }
 0x25d   : > { %1550 = vmax.xlane.f32.xlu0 %v1549_v53  ;;  %v13519_v53 = vpop.permute.xlu0 %2366 }
 0x25e   : > { %17113 = vst [vmem:[#allocation71_spill] sm:$0xff] %v13519_v53  ;;  %v13521_v1 = vpop.permute.xlu1 %11072 }
 0x25f   : > { %17114 = vst [vmem:[#allocation72_spill] sm:$0xff] %v13521_v1 }
 0x260   : > { %1577 = vmax.xlane.f32.xlu1 %v1576_v56 }
 0x261   : > { %1574 = vmax.xlane.f32.xlu0 %v1573_v46  ;;  %v13523_v27 = vpop.permute.xlu0 %11062 }
 0x262   : > { %v13525_v56 = vpop.permute.xlu1 %11087 }
 0x263   : > { %17115 = vst [vmem:[#allocation73_spill] sm:$0xff] %v13525_v56 }
 0x264   : > { %1559 = vmax.xlane.f32.xlu1 %v1558_v15 }
 0x265   : > { %1556 = vmax.xlane.f32.xlu0 %v1555_v22  ;;  %v13527_v46 = vpop.permute.xlu0 %11077 }
 0x266   : > { %17116 = vst [vmem:[#allocation74_spill] sm:$0xff] %v13527_v46  ;;  %v13531_v22 = vpop.permute.xlu1 %2537 }
 0x267   : > { %17118 = vst [vmem:[#allocation76_spill] sm:$0xff] %v13531_v22 }
 0x268   : > { %1583 = vmax.xlane.f32.xlu1 %v1582_v55 }
 0x269   : > { %1580 = vmax.xlane.f32.xlu0 %v1579_v20  ;;  %v13529_v15 = vpop.permute.xlu0 %11082 }
 0x26a   : > { %17117 = vst [vmem:[#allocation75_spill] sm:$0xff] %v13529_v15  ;;  %v13535_v20 = vpop.permute.xlu1 %11092 }
 0x26b   : > { %17120 = vst [vmem:[#allocation78_spill] sm:$0xff] %v13535_v20 }
 0x26d   : > { %v13533_v55 = vpop.permute.xlu0 %2535 }
 0x26e   : > { %17119 = vst [vmem:[#allocation77_spill] sm:$0xff] %v13533_v55  ;;  %v13537_v12 = vpop.permute.xlu1 %11097 }
 0x26f   : > { %17121 = vst [vmem:[#allocation79_spill] sm:$0xff] %v13537_v12 }
 0x271   : > { %v13539_v37 = vpop.permute.xlu0 %11102 }
 0x272   : > { %17122 = vst [vmem:[#allocation80_spill] sm:$0xff] %v13539_v37  ;;  %v13541_v53 = vpop.permute.xlu1 %11107 }
 0x273   : > { %17123 = vst [vmem:[#allocation81_spill] sm:$0xff] %v13541_v53 }
 0x275   : > { %v13543_v1 = vpop.permute.xlu0 %11117 }
 0x276   : > { %17124 = vst [vmem:[#allocation82_spill] sm:$0xff] %v13543_v1  ;;  %v13545_v50 = vpop.permute.xlu1 %11112 }
 0x277   : > { %17125 = vst [vmem:[#allocation83_spill] sm:$0xff] %v13545_v50 }
 0x299   : > { %v1494_v56 = vpop.xlane.xlu0 %1493 }
 0x29a   : > { %v1586_v46 = vsub.f32 %v13326_v19, %v1494_v56 }
 0x29c   : > { %v1619_v15 = vmul.f32 1.442695, %v1586_v46 }
 0x29d   : > { %v1500_v51 = vpop.xlane.xlu1 %1499  ;;  %v1491_v22 = vpop.xlane.xlu0 %1490 }
 0x29e   : > { %11781 = vpow2.f32 %v1619_v15  ;;  %v1588_v55 = vsub.f32 %v13344_v47, %v1500_v51  ;;  %v1585_v20 = vsub.f32 %v13334_v31, %v1491_v22 }
 0x2a0   : > { %v1623_v12 = vmul.f32 1.442695, %v1588_v55  ;;  %v1617_v57 = vmul.f32 1.442695, %v1585_v20 }
 0x2a1   : > { %v1497_v37 = vpop.xlane.xlu1 %1496 }
 0x2a2   : > { %11783 = vpow2.f32 %v1623_v12  ;;  %v1587_v53 = vsub.f32 %v13347_v9, %v1497_v37  ;;  %v1503_v1 = vpop.xlane.xlu0 %1502 }
 0x2a3   : > { %11785 = vpow2.f32 %v1617_v57  ;;  %v1589_v50 = vsub.f32 %v13364_v18, %v1503_v1 }
 0x2a4   : > { %v1621_v58 = vmul.f32 1.442695, %v1587_v53 }
 0x2a5   : > { %v1625_v19 = vmul.f32 1.442695, %v1589_v50  ;;  %v1506_v56 = vpop.xlane.xlu1 %1505 }
 0x2a6   : > { %11787 = vpow2.f32 %v1621_v58  ;;  %v1590_v46 = vsub.f32 %v13367_v38, %v1506_v56 }
 0x2a7   : > { %11789 = vpow2.f32 %v1625_v19 }
 0x2a8   : > { %v13553_v15 = vpop.eup %11781  ;;  %v1627_v51 = vmul.f32 1.442695, %v1590_v46 }
 0x2a9   : > { %v1512_v31 = vpop.xlane.xlu1 %1511  ;;  %v1684_v47 = vsel %vm1488_vm2, %v13553_v15, 0.0 }
 0x2aa   : > { %11791 = vpow2.f32 %v1627_v51  ;;  %v1592_v9 = vsub.f32 %v13379_v5, %v1512_v31  ;;  %1685 = vadd.xlane.f32.xlu1 %v1684_v47 }
 0x2ac   : > { %v13558_v57 = vpop.eup %11783  ;;  %v1631_v18 = vmul.f32 1.442695, %v1592_v9 }
 0x2ad   : > { %v13560_v50 = vpop.eup %11785  ;;  %v1509_v58 = vpop.xlane.xlu1 %1508  ;;  %v1690_v38 = vsel %vm1488_vm2, %v13558_v57, 0.0 }
 0x2ae   : > { %11793 = vpow2.f32 %v1631_v18  ;;  %v1591_v12 = vsub.f32 %v13389_v44, %v1509_v58  ;;  %1691 = vadd.xlane.f32.xlu1 %v1690_v38  ;;  %v1681_v37 = vsel %vm1488_vm2, %v13560_v50, 0.0 }
 0x2af   : > { %1682 = vadd.xlane.f32.xlu0 %v1681_v37 }
 0x2b0   : > { %v13567_v53 = vpop.eup %11787  ;;  %v1629_v5 = vmul.f32 1.442695, %v1591_v12 }
 0x2b1   : > { %v1687_v1 = vsel %vm1488_vm2, %v13567_v53, 0.0  ;;  %v13571_v22 = vpop.eup %11789 }
 0x2b2   : > { %11795 = vpow2.f32 %v1629_v5  ;;  %v1693_v20 = vsel %vm1488_vm2, %v13571_v22, 0.0 }
 0x2b3   : > { %1688 = vadd.xlane.f32.xlu0 %v1687_v1 }
 0x2b4   : > { %v13573_v55 = vpop.eup %11791 }
 0x2b5   : > { %v1696_v44 = vsel %vm1488_vm2, %v13573_v55, 0.0 }
 0x2b6   : > { %1697 = vadd.xlane.f32.xlu1 %v1696_v44 }
 0x2b7   : > { %1694 = vadd.xlane.f32.xlu0 %v1693_v20 }
 0x2b8   : > { %v13579_v19 = vpop.eup %11793 }
 0x2b9   : > { %v1702_v56 = vsel %vm1488_vm2, %v13579_v19, 0.0 }
 0x2ba   : > { %v1518_v46 = vpop.xlane.xlu0 %1517  ;;  %1703 = vadd.xlane.f32.xlu1 %v1702_v56 }
 0x2bb   : > { %v1594_v51 = vsub.f32 %v13396_v36, %v1518_v46 }
 0x2bc   : > { %v13584_v31 = vpop.eup %11795 }
 0x2bd   : > { %v1635_v47 = vmul.f32 1.442695, %v1594_v51  ;;  %v1699_v9 = vsel %vm1488_vm2, %v13584_v31, 0.0 }
 0x2be   : > { %v1524_v18 = vpop.xlane.xlu1 %1523  ;;  %v1515_v58 = vpop.xlane.xlu0 %1514  ;;  %1700 = vadd.xlane.f32.xlu1 %v1699_v9 }
 0x2bf   : > { %11797 = vpow2.f32 %v1635_v47  ;;  %v1596_v38 = vsub.f32 %v13404_v52, %v1524_v18  ;;  %v1593_v12 = vsub.f32 %v13399_v10, %v1515_v58 }
 0x2c1   : > { %v1639_v37 = vmul.f32 1.442695, %v1596_v38  ;;  %v1633_v5 = vmul.f32 1.442695, %v1593_v12 }
 0x2c2   : > { %v1530_v1 = vpop.xlane.xlu1 %1529  ;;  %v1521_v44 = vpop.xlane.xlu0 %1520 }
 0x2c3   : > { %11799 = vpow2.f32 %v1639_v37  ;;  %v1598_v36 = vsub.f32 %v13414_v14, %v1530_v1  ;;  %v1595_v20 = vsub.f32 %v13407_v24, %v1521_v44 }
 0x2c4   : > { %11801 = vpow2.f32 %v1633_v5 }
 0x2c5   : > { %v1643_v56 = vmul.f32 1.442695, %v1598_v36  ;;  %v1637_v46 = vmul.f32 1.442695, %v1595_v20 }
 0x2c6   : > { %v1536_v51 = vpop.xlane.xlu1 %1535  ;;  %v1527_v3 = vpop.xlane.xlu0 %1526 }
 0x2c7   : > { %11803 = vpow2.f32 %v1643_v56  ;;  %v1600_v47 = vsub.f32 %v13424_v62, %v1536_v51  ;;  %v1597_v52 = vsub.f32 %v13417_v33, %v1527_v3 }
 0x2c8   : > { %11805 = vpow2.f32 %v1637_v46 }
 0x2c9   : > { %v13594_v10 = vpop.eup %11797  ;;  %v1647_v9 = vmul.f32 1.442695, %v1600_v47  ;;  %v1641_v18 = vmul.f32 1.442695, %v1597_v52 }
 0x2ca   : > { %v1533_v58 = vpop.xlane.xlu0 %1532  ;;  %v1708_v14 = vsel %vm1488_vm2, %v13594_v10, 0.0 }
 0x2cb   : > { %11807 = vpow2.f32 %v1647_v9  ;;  %v1599_v24 = vsub.f32 %v13427_v29, %v1533_v58  ;;  %1709 = vadd.xlane.f32.xlu0 %v1708_v14 }
 0x2cc   : > { %11809 = vpow2.f32 %v1641_v18 }
 0x2cd   : > { %v13599_v38 = vpop.eup %11799  ;;  %v1645_v12 = vmul.f32 1.442695, %v1599_v24 }
 0x2ce   : > { %v13601_v62 = vpop.eup %11801  ;;  %v1714_v3 = vsel %vm1488_vm2, %v13599_v38, 0.0 }
 0x2cf   : > { %11811 = vpow2.f32 %v1645_v12  ;;  %1715 = vadd.xlane.f32.xlu1 %v1714_v3  ;;  %v1705_v33 = vsel %vm1488_vm2, %v13601_v62, 0.0 }
 0x2d0   : > { %1706 = vadd.xlane.f32.xlu0 %v1705_v33 }
 0x2d1   : > { %v13607_v37 = vpop.eup %11803 }
 0x2d2   : > { %v13609_v5 = vpop.eup %11805  ;;  %v1720_v29 = vsel %vm1488_vm2, %v13607_v37, 0.0 }
 0x2d3   : > { %1721 = vadd.xlane.f32.xlu1 %v1720_v29  ;;  %v1711_v1 = vsel %vm1488_vm2, %v13609_v5, 0.0 }
 0x2d4   : > { %1712 = vadd.xlane.f32.xlu0 %v1711_v1 }
 0x2d5   : > { %v13615_v44 = vpop.eup %11807 }
 0x2d6   : > { %v13617_v36 = vpop.eup %11809  ;;  %v1726_v20 = vsel %vm1488_vm2, %v13615_v44, 0.0 }
 0x2d7   : > { %1727 = vadd.xlane.f32.xlu1 %v1726_v20  ;;  %v1717_v56 = vsel %vm1488_vm2, %v13617_v36, 0.0 }
 0x2d8   : > { %1718 = vadd.xlane.f32.xlu0 %v1717_v56 }
 0x2d9   : > { %v13623_v46 = vpop.eup %11811  ;;  %v1542_v51 = vpop.xlane.xlu1 %1541 }
 0x2da   : > { %v1602_v47 = vsub.f32 %v13436_v2, %v1542_v51  ;;  %v1723_v52 = vsel %vm1488_vm2, %v13623_v46, 0.0  ;;  %v1539_v9 = vpop.xlane.xlu0 %1538 }
 0x2db   : > { %v1601_v18 = vsub.f32 %v13439_v26, %v1539_v9 }
 0x2dc   : > { %v1651_v58 = vmul.f32 1.442695, %v1602_v47  ;;  %1724 = vadd.xlane.f32.xlu0 %v1723_v52 }
 0x2dd   : > { %v1649_v14 = vmul.f32 1.442695, %v1601_v18  ;;  %v1566_v24 = vpop.xlane.xlu1 %1565 }
 0x2de   : > { %11813 = vpow2.f32 %v1651_v58  ;;  %v1610_v12 = vsub.f32 %v13442_v35, %v1566_v24  ;;  %v1563_v3 = vpop.xlane.xlu0 %1562 }
 0x2df   : > { %11815 = vpow2.f32 %v1649_v14  ;;  %v1609_v33 = vsub.f32 %v13447_v59, %v1563_v3 }
 0x2e0   : > { %v1667_v29 = vmul.f32 1.442695, %v1610_v12 }
 0x2e1   : > { %v1665_v1 = vmul.f32 1.442695, %v1609_v33  ;;  %v1548_v2 = vpop.xlane.xlu1 %1547 }
 0x2e2   : > { %11817 = vpow2.f32 %v1667_v29  ;;  %v1604_v20 = vsub.f32 %v13452_v4, %v1548_v2  ;;  %v1545_v56 = vpop.xlane.xlu0 %1544 }
 0x2e3   : > { %11819 = vpow2.f32 %v1665_v1  ;;  %v1603_v26 = vsub.f32 %v13457_v41, %v1545_v56 }
 0x2e4   : > { %v1655_v51 = vmul.f32 1.442695, %v1604_v20 }
 0x2e5   : > { %v1653_v47 = vmul.f32 1.442695, %v1603_v26  ;;  %v1572_v52 = vpop.xlane.xlu1 %1571 }
 0x2e6   : > { %11821 = vpow2.f32 %v1655_v51  ;;  %v1612_v35 = vsub.f32 %v13462_v7, %v1572_v52  ;;  %v1569_v9 = vpop.xlane.xlu0 %1568 }
 0x2e7   : > { %11823 = vpow2.f32 %v1653_v47  ;;  %v1611_v59 = vsub.f32 %v13467_v30, %v1569_v9 }
 0x2e8   : > { %v13635_v18 = vpop.eup %11813  ;;  %v1671_v58 = vmul.f32 1.442695, %v1612_v35 }
 0x2e9   : > { %v13637_v14 = vpop.eup %11815  ;;  %v1669_v4 = vmul.f32 1.442695, %v1611_v59  ;;  %v1554_v24 = vpop.xlane.xlu1 %1553  ;;  %v1732_v41 = vsel %vm1488_vm2, %v13635_v18, 0.0 }
 0x2ea   : > { %11825 = vpow2.f32 %v1671_v58  ;;  %v1606_v12 = vsub.f32 %v13472_v54, %v1554_v24  ;;  %1733 = vadd.xlane.f32.xlu1 %v1732_v41  ;;  %v1551_v3 = vpop.xlane.xlu0 %1550  ;;  %v1729_v7 = vsel %vm1488_vm2, %v13637_v14, 0.0 }
 0x2eb   : > { %11827 = vpow2.f32 %v1669_v4  ;;  %1730 = vadd.xlane.f32.xlu0 %v1729_v7  ;;  %v1605_v29 = vsub.f32 %v13477_v63, %v1551_v3 }
 0x2ec   : > { %v13644_v30 = vpop.eup %11817  ;;  %v1659_v33 = vmul.f32 1.442695, %v1606_v12 }
 0x2ed   : > { %v13647_v1 = vpop.eup %11819  ;;  %v1578_v2 = vpop.xlane.xlu1 %1577  ;;  %v1756_v20 = vsel %vm1488_vm2, %v13644_v30, 0.0  ;;  %v1657_v51 = vmul.f32 1.442695, %v1605_v29 }
 0x2ee   : > { %11829 = vpow2.f32 %v1659_v33  ;;  %v1614_v54 = vsub.f32 %v13482_v17, %v1578_v2  ;;  %1757 = vadd.xlane.f32.xlu1 %v1756_v20  ;;  %v1753_v56 = vsel %vm1488_vm2, %v13647_v1, 0.0  ;;  %v1575_v33 = vpop.xlane.xlu0 %1574 }
 0x2ef   : > { %1754 = vadd.xlane.f32.xlu0 %v1753_v56 }
 0x2f0   : > { %v13654_v26 = vpop.eup %11821  ;;  %v1675_v47 = vmul.f32 1.442695, %v1614_v54 }
 0x2f1   : > { %v13656_v52 = vpop.eup %11823  ;;  %v1738_v63 = vsel %vm1488_vm2, %v13654_v26, 0.0  ;;  %v1560_v29 = vpop.xlane.xlu1 %1559 }
 0x2f2   : > { %11831 = vpow2.f32 %v1675_v47  ;;  %1739 = vadd.xlane.f32.xlu1 %v1738_v63  ;;  %v1735_v35 = vsel %vm1488_vm2, %v13656_v52, 0.0  ;;  %v1608_v2 = vsub.f32 %v13492_v60, %v1560_v29  ;;  %v1557_v20 = vpop.xlane.xlu0 %1556 }
 0x2f3   : > { %1736 = vadd.xlane.f32.xlu0 %v1735_v35  ;;  %11833 = vpow2.f32 %v1657_v51  ;;  %v1607_v56 = vsub.f32 %v13497_v16, %v1557_v20  ;;  %v1613_v51 = vsub.f32 %v13487_v34, %v1575_v33 }
 0x2f4   : > { %v13662_v17 = vpop.eup %11825  ;;  %v1663_v54 = vmul.f32 1.442695, %v1608_v2 }
 0x2f5   : > { %v13664_v9 = vpop.eup %11827  ;;  %v1762_v59 = vsel %vm1488_vm2, %v13662_v17, 0.0  ;;  %v1661_v47 = vmul.f32 1.442695, %v1607_v56  ;;  %v1584_v63 = vpop.xlane.xlu1 %1583  ;;  %v1673_v35 = vmul.f32 1.442695, %v1613_v51 }
 0x2f6   : > { %1763 = vadd.xlane.f32.xlu1 %v1762_v59  ;;  %v1759_v58 = vsel %vm1488_vm2, %v13664_v9, 0.0  ;;  %11835 = vpow2.f32 %v1663_v54  ;;  %v1616_v59 = vsub.f32 %v13502_v32, %v1584_v63  ;;  %v1581_v29 = vpop.xlane.xlu0 %1580 }
 0x2f7   : > { %1760 = vadd.xlane.f32.xlu0 %v1759_v58  ;;  %11837 = vpow2.f32 %v1661_v47 }
 0x2f8   : > { %v13670_v4 = vpop.eup %11829  ;;  %11839 = vpow2.f32 %v1673_v35  ;;  %v1679_v58 = vmul.f32 1.442695, %v1616_v59 }
 0x2f9   : > { %v1744_v24 = vsel %vm1488_vm2, %v13670_v4, 0.0 }
 0x2fa   : > { %1745 = vadd.xlane.f32.xlu1 %v1744_v24  ;;  %11841 = vpow2.f32 %v1679_v58 }
 0x2fc   : > { %v13674_v41 = vpop.eup %11831 }
 0x2fd   : > { %v1768_v12 = vsel %vm1488_vm2, %v13674_v41, 0.0  ;;  %v13678_v3 = vpop.eup %11833 }
 0x2fe   : > { %1769 = vadd.xlane.f32.xlu0 %v1768_v12  ;;  %v1741_v7 = vsel %vm1488_vm2, %v13678_v3, 0.0 }
 0x300   : > { %v13690_v24 = vpop.eup %11835 }
 0x301   : > { %v1750_v60 = vsel %vm1488_vm2, %v13690_v24, 0.0  ;;  %v13694_v12 = vpop.eup %11837 }
 0x302   : > { %1742 = vadd.xlane.f32.xlu0 %v1741_v7  ;;  %v1747_v34 = vsel %vm1488_vm2, %v13694_v12, 0.0  ;;  %v13698_v16 = vpop.eup %11839 }
 0x303   : > { %v1765_v32 = vsel %vm1488_vm2, %v13698_v16, 0.0 }
 0x304   : > { %v13702_v7 = vpop.eup %11841 }
 0x305   : > { %v1774_v2 = vsel %vm1488_vm2, %v13702_v7, 0.0 }
 0x30b   : > { %2372 = vrot.lane.b32.xlu1 %v12880_v43, %s12358_s9 }
 0x318   : > { %2370 = vrot.lane.b32.xlu0 %v12855_v25, %s12358_s9 }
 0x32f   : > { %1751 = vadd.xlane.f32.xlu1 %v1750_v60 }
 0x333   : > { %1748 = vadd.xlane.f32.xlu1 %v1747_v34 }
 0x337   : > { %v1686_v33 = vpop.xlane.xlu1 %1685  ;;  %1766 = vadd.xlane.f32.xlu0 %v1765_v32 }
 0x338   : > { %11843 = vrcp.f32 %v1686_v33 }
 0x33b   : > { %1775 = vadd.xlane.f32.xlu0 %v1774_v2  ;;  %v1692_v54 = vpop.xlane.xlu1 %1691 }
 0x33c   : > { %v1683_v20 = vpop.xlane.xlu0 %1682 }
 0x33d   : > { %11845 = vrcp.f32 %v1683_v20 }
 0x33e   : > { %11847 = vrcp.f32 %v1692_v54 }
 0x340   : > { %v1689_v56 = vpop.xlane.xlu0 %1688 }
 0x341   : > { %11849 = vrcp.f32 %v1689_v56 }
 0x342   : > { %v11844_v63 = vpop.eup %11843 }
 0x343   : > { %v1698_v51 = vpop.xlane.xlu1 %1697  ;;  %v1780_v60 = vmul.f32 %v11844_v63, %v13553_v15 }
 0x344   : > { %11851 = vrcp.f32 %v1698_v51  ;;  %v1695_v47 = vpop.xlane.xlu0 %1694  ;;  %11127 = vrot.lane.b32.xlu1 %v12814_v39, %s12358_s9 }
 0x345   : > { %11853 = vrcp.f32 %v1695_v47 }
 0x347   : > { %v11846_v35 = vpop.eup %11845  ;;  %v1704_v59 = vpop.xlane.xlu1 %1703 }
 0x348   : > { %v1778_v58 = vmul.f32 %v11846_v35, %v13560_v50  ;;  %v11848_v34 = vpop.eup %11847  ;;  %11855 = vrcp.f32 %v1704_v59 }
 0x349   : > { %v1784_v20 = vmul.f32 %v11848_v34, %v13558_v57  ;;  %v11065_v57 = vunpack.i.h.bf16 %v13523_v27 }
 0x34a   : > { %9416 = vmatprep.mubr.msk.f32.mxu0 %vm1488_vm2, %v1778_v58 }
 0x34b   : > { %v11850_v32 = vpop.eup %11849  ;;  %9417 = vmatmul.mubr.msk.f32.vlgmr.msra.gmra.mrb[52].mxu0 %vm1488_vm2, %v1780_v60  ;;  %v1701_v33 = vpop.xlane.xlu1 %1700 }
 0x34c   : > { %10459 = vmatpush3.bf16.msra.mxu0 %v13162_v21  ;;  %11857 = vrcp.f32 %v1701_v33  ;;  %v1782_v2 = vmul.f32 %v11850_v32, %v13567_v53  ;;  %v1615_v21 = vsub.f32 %v13507_v28, %v1581_v29  ;;  %v11064_v53 = vunpack.i.l.bf16 %v13523_v27 }
 0x34d   : > { %10461 = vmatprep.subr.bf16.mxu0 %v13192_v42 }
 0x34e   : > { %v11852_v50 = vpop.eup %11851  ;;  %9419 = vmatprep.mubr.msk.f32.mxu0 %vm1488_vm2, %v1782_v2  ;;  %v13733_v51 = vpack.c.bf16 %v11065_v57, %v11064_v53  ;;  %v17129_v57 = vld [vmem:[#allocation65_spill] sm:$0xff] }
 0x34f   : > { %v11854_v15 = vpop.eup %11853  ;;  %9420 = vmatmul.mubr.msk.f32.gmra.mrb[54].mxu0 %vm1488_vm2, %v1784_v20  ;;  %v1788_v54 = vmul.f32 %v11852_v50, %v13573_v55  ;;  %v1677_v55 = vmul.f32 1.442695, %v1615_v21  ;;  %v17126_v50 = vld [vmem:[#allocation35_spill] sm:$0xff]  ;;  %v17128_v21 = vld [vmem:[#allocation38_spill] sm:$0xff] }
 0x350   : > { %10463 = vmatpush3.bf16.msra.mxu0 %v13192_v42  ;;  %v1786_v56 = vmul.f32 %v11854_v15, %v13571_v22 }
 0x351   : > { %10465 = vmatprep.subr.bf16.mxu0 %v13227_v48  ;;  %11122 = vrot.lane.b32.xlu0 %v12764_v6, %s12358_s9  ;;  %11859 = vpow2.f32 %v1677_v55 }
 0x352   : > { %9422 = vmatprep.mubr.msk.f32.mxu0 %vm1488_vm2, %v1786_v56  ;;  %v11856_v42 = vpop.eup %11855 }
 0x353   : > { %9423 = vmatmul.mubr.msk.f32.gmra.mrb[56].mxu0 %vm1488_vm2, %v1788_v54  ;;  %v17127_v54 = vld [vmem:[#allocation63_spill] sm:$0xff] }
 0x354   : > { %10467 = vmatpush3.bf16.msra.mxu0 %v13227_v48  ;;  %v1792_v48 = vmul.f32 %v11856_v42, %v13579_v19  ;;  %v17130_v42 = vld [vmem:[#allocation73_spill] sm:$0xff] }
 0x355   : > { %10469 = vmatprep.subr.bf16.mxu0 %v13263_v45  ;;  %2374 = vrot.lane.b32.xlu0 %v12888_v49, %s12358_s9  ;;  %v11089_v55 = vunpack.i.l.bf16 %v17130_v42 }
 0x356   : > { %v11858_v22 = vpop.eup %11857 }
 0x357   : > { %v1790_v28 = vmul.f32 %v11858_v22, %v13584_v31  ;;  %v11090_v22 = vunpack.i.h.bf16 %v17130_v42  ;;  %v17142_v42 = vld [vmem:[#allocation78_spill] sm:$0xff] }
 0x358   : > { %10471 = vmatpush3.bf16.msra.mxu0 %v13263_v45  ;;  %v1710_v29 = vpop.xlane.xlu0 %1709 }
 0x359   : > { %10490 = vmatprep.subr.msk.bf16.mxu0 %vm12752_vm1, %v13733_v51  ;;  %2378 = vrot.lane.b32.xlu0 %v12904_v8, %s12358_s9  ;;  %11861 = vrcp.f32 %v1710_v29  ;;  %v17132_v29 = vld [vmem:[#allocation67_spill] sm:$0xff] }
 0x35a   : > { %9425 = vmatprep.mubr.msk.f32.mxu0 %vm1488_vm2, %v1790_v28  ;;  %v17131_v28 = vld [vmem:[#allocation47_spill] sm:$0xff] }
 0x35b   : > { %9426 = vmatmul.mubr.msk.f32.gmra.mrb[58].mxu0 %vm1488_vm2, %v1792_v48  ;;  %v13749_v19 = vpop.eup %11859 }
 0x35c   : > { %v1716_v27 = vpop.xlane.xlu1 %1715  ;;  %v1771_v58 = vsel %vm1488_vm2, %v13749_v19, 0.0 }
 0x35d   : > { %v1707_v31 = vpop.xlane.xlu0 %1706  ;;  %11132 = vrot.lane.b32.xlu0 %v12834_v61, %s12358_s9 }
 0x35e   : > { %11863 = vrcp.f32 %v1707_v31 }
 0x35f   : > { %11865 = vrcp.f32 %v1716_v27  ;;  %v10512_v27 = vpack.c.bf16 %v11090_v22, %v11089_v55  ;;  %v11095_v22 = vunpack.i.h.bf16 %v17142_v42  ;;  %v11094_v55 = vunpack.i.l.bf16 %v17142_v42 }
 0x360   : > { %v1722_v45 = vpop.xlane.xlu1 %1721 }
 0x361   : > { %v1713_v47 = vpop.xlane.xlu0 %1712  ;;  %2706 = vrot.lane.b32.xlu0 %v13167_v11, %s12358_s9 }
 0x362   : > { %11867 = vrcp.f32 %v1713_v47 }
 0x363   : > { %11869 = vrcp.f32 %v1722_v45  ;;  %v11862_v59 = vpop.eup %11861  ;;  %v17133_v45 = vld [vmem:[#allocation52_spill] sm:$0xff] }
 0x364   : > { %v1728_v35 = vpop.xlane.xlu1 %1727  ;;  %v1796_v33 = vmul.f32 %v11862_v59, %v13594_v10 }
 0x365   : > { %v1719_v63 = vpop.xlane.xlu0 %1718  ;;  %2541 = vrot.lane.b32.xlu0 %v13003_v40, %s12358_s9 }
 0x366   : > { %11871 = vrcp.f32 %v1719_v63  ;;  %v17135_v63 = vld [vmem:[#allocation56_spill] sm:$0xff] }
 0x367   : > { %11873 = vrcp.f32 %v1728_v35  ;;  %v17136_v35 = vld [vmem:[#allocation22_spill] sm:$0xff] }
 0x368   : > { %v11864_v60 = vpop.eup %11863  ;;  %1772 = vadd.xlane.f32.xlu1 %v1771_v58 }
 0x369   : > { %v1725_v34 = vpop.xlane.xlu0 %1724  ;;  %2543 = vrot.lane.b32.xlu0 %v13005_v13, %s12358_s9  ;;  %v1794_v32 = vmul.f32 %v11864_v60, %v13601_v62  ;;  %v11866_v2 = vpop.eup %11865  ;;  %v17137_v60 = vld [vmem:[#allocation48_spill] sm:$0xff] }
 0x36a   : > { %11875 = vrcp.f32 %v1725_v34  ;;  %v1800_v62 = vmul.f32 %v11866_v2, %v13599_v38  ;;  %v17139_v2 = vld [vmem:[#allocation70_spill] sm:$0xff] }
 0x36b   : > { %9444 = vmatprep.mubr.msk.f32.mxu1 %vm1488_vm2, %v1794_v32  ;;  %v17138_v32 = vld [vmem:[#allocation25_spill] sm:$0xff] }
 0x36c   : > { %v11868_v20 = vpop.eup %11867  ;;  %9445 = vmatmul.mubr.msk.f32.vlgmr.msra.gmra.mrb[76].mxu1 %vm1488_vm2, %v1796_v33 }
 0x36d   : > { %10475 = vmatpush3.bf16.msra.mxu1 %v13281_v23  ;;  %2547 = vrot.lane.b32.xlu0 %v17126_v50, %s12358_s9  ;;  %v1798_v15 = vmul.f32 %v11868_v20, %v13609_v5  ;;  %v11870_v56 = vpop.eup %11869  ;;  %v11070_v20 = vunpack.i.h.bf16 %v17139_v2 }
 0x36e   : > { %10477 = vmatprep.subr.bf16.mxu1 %v17127_v54  ;;  %v1804_v5 = vmul.f32 %v11870_v56, %v13607_v37 }
 0x36f   : > { %9447 = vmatprep.mubr.msk.f32.mxu1 %vm1488_vm2, %v1798_v15  ;;  %v11069_v15 = vunpack.i.l.bf16 %v17139_v2  ;;  %v17147_v2 = vld [vmem:[#allocation32_spill] sm:$0xff] }
 0x370   : > { %v11872_v10 = vpop.eup %11871  ;;  %9448 = vmatmul.mubr.msk.f32.gmra.mrb[78].mxu1 %vm1488_vm2, %v1800_v62 }
 0x371   : > { %10479 = vmatpush3.bf16.msra.mxu1 %v17127_v54  ;;  %2873 = vrot.lane.b32.xlu0 %v17128_v21, %s12358_s9  ;;  %v1802_v23 = vmul.f32 %v11872_v10, %v13617_v36  ;;  %v11874_v53 = vpop.eup %11873 }
 0x372   : > { %10481 = vmatprep.subr.bf16.mxu1 %v17129_v57  ;;  %v1808_v37 = vmul.f32 %v11874_v53, %v13615_v44 }
 0x373   : > { %9450 = vmatprep.mubr.msk.f32.mxu1 %vm1488_vm2, %v1802_v23  ;;  %v17140_v23 = vld [vmem:[#allocation53_spill] sm:$0xff] }
 0x374   : > { %v11876_v38 = vpop.eup %11875  ;;  %9451 = vmatmul.mubr.msk.f32.gmra.mrb[80].mxu1 %vm1488_vm2, %v1804_v5  ;;  %v17141_v5 = vld [vmem:[#allocation28_spill] sm:$0xff] }
 0x375   : > { %10483 = vmatpush3.bf16.msra.mxu1 %v17129_v57  ;;  %2708 = vrot.lane.b32.xlu0 %v17131_v28, %s12358_s9  ;;  %v1806_v36 = vmul.f32 %v11876_v38, %v13623_v46  ;;  %v17134_v46 = vld [vmem:[#allocation20_spill] sm:$0xff]  ;;  %v10494_v38 = vpack.c.bf16 %v11070_v20, %v11069_v15 }
 0x376   : > { %10485 = vmatprep.subr.bf16.mxu1 %v17132_v29 }
 0x377   : > { %9453 = vmatprep.mubr.msk.f32.mxu1 %vm1488_vm2, %v1806_v36  ;;  %v1734_v48 = vpop.xlane.xlu1 %1733  ;;  %v17143_v36 = vld [vmem:[#allocation58_spill] sm:$0xff] }
 0x378   : > { %9454 = vmatmul.mubr.msk.f32.gmra.mrb[82].mxu1 %vm1488_vm2, %v1808_v37  ;;  %11877 = vrcp.f32 %v1734_v48  ;;  %v1731_v31 = vpop.xlane.xlu0 %1730  ;;  %v17144_v37 = vld [vmem:[#allocation18_spill] sm:$0xff] }
 0x379   : > { %10487 = vmatpush3.bf16.msra.mxu1 %v17132_v29  ;;  %11879 = vrcp.f32 %v1731_v31  ;;  %2712 = vrot.lane.b32.xlu0 %v17133_v45, %s12358_s9  ;;  %v17145_v31 = vld [vmem:[#allocation74_spill] sm:$0xff] }
 0x37a   : > { %10514 = vmatprep.subr.msk.bf16.mxu1 %vm12752_vm1, %v10512_v27  ;;  %2376 = vrot.lane.b32.xlu1 %v17134_v46, %s12358_s9 }
 0x37b   : > { %v1758_v44 = vpop.xlane.xlu1 %1757 }
 0x37c   : > { %11881 = vrcp.f32 %v1758_v44  ;;  %v1755_v47 = vpop.xlane.xlu0 %1754  ;;  %v11080_v44 = vunpack.i.h.bf16 %v17145_v31 }
 0x37d   : > { %11883 = vrcp.f32 %v1755_v47  ;;  %2716 = vrot.lane.b32.xlu0 %v17135_v63, %s12358_s9 }
 0x37e   : > { %2380 = vrot.lane.b32.xlu1 %v17136_v35, %s12358_s9 }
 0x37f   : > { %v1740_v59 = vpop.xlane.xlu1 %1739 }
 0x380   : > { %11885 = vrcp.f32 %v1740_v59  ;;  %v1737_v58 = vpop.xlane.xlu0 %1736 }
 0x381   : > { %11887 = vrcp.f32 %v1737_v58  ;;  %2877 = vrot.lane.b32.xlu0 %v17137_v60, %s12358_s9  ;;  %v17146_v58 = vld [vmem:[#allocation29_spill] sm:$0xff] }
 0x382   : > { %v11878_v34 = vpop.eup %11877  ;;  %2704 = vrot.lane.b32.xlu1 %v17138_v32, %s12358_s9 }
 0x383   : > { %v11880_v33 = vpop.eup %11879  ;;  %v1764_v54 = vpop.xlane.xlu1 %1763  ;;  %v1812_v10 = vmul.f32 %v11878_v34, %v13635_v18 }
 0x384   : > { %11889 = vrcp.f32 %v1764_v54  ;;  %v1761_v62 = vpop.xlane.xlu0 %1760  ;;  %v1810_v56 = vmul.f32 %v11880_v33, %v13637_v14  ;;  %v17148_v54 = vld [vmem:[#allocation79_spill] sm:$0xff] }
 0x385   : > { %11891 = vrcp.f32 %v1761_v62  ;;  %2881 = vrot.lane.b32.xlu0 %v17140_v23, %s12358_s9 }
 0x386   : > { %v11882_v57 = vpop.eup %11881  ;;  %2539 = vrot.lane.b32.xlu1 %v17141_v5, %s12358_s9  ;;  %9472 = vmatprep.mubr.msk.f32.mxu0 %vm1488_vm2, %v1810_v56  ;;  %v17149_v56 = vld [vmem:[#allocation36_spill] sm:$0xff] }
 0x387   : > { %v11884_v53 = vpop.eup %11883  ;;  %9473 = vmatmul.mubr.msk.f32.vlgmr.msra.gmra.mrb[60].mxu0 %vm1488_vm2, %v1812_v10  ;;  %v1828_v14 = vmul.f32 %v11882_v57, %v13644_v30  ;;  %v1746_v47 = vpop.xlane.xlu1 %1745  ;;  %v17150_v57 = vld [vmem:[#allocation37_spill] sm:$0xff] }
 0x388   : > { %10493 = vmatpush3.bf16.xpose.msk.msra.mxu0 %vm12752_vm1, %v13733_v51  ;;  %v1826_v18 = vmul.f32 %v11884_v53, %v13647_v1  ;;  %v11079_v51 = vunpack.i.l.bf16 %v17145_v31  ;;  %v10518_v1 = vpack.c.bf16 %v11095_v22, %v11094_v55  ;;  %11893 = vrcp.f32 %v1746_v47  ;;  %v17151_v53 = vld [vmem:[#allocation75_spill] sm:$0xff]  ;;  %v17155_v31 = vld [vmem:[#allocation50_spill] sm:$0xff]  ;;  %v17157_v47 = vld [vmem:[#allocation81_spill] sm:$0xff] }
 0x389   : > { %10496 = vmatprep.subr.msk.bf16.mxu0 %vm12752_vm1, %v10494_v38  ;;  %2885 = vrot.lane.b32.xlu0 %v17143_v36, %s12358_s9  ;;  %v11085_v42 = vunpack.i.h.bf16 %v17151_v53 }
 0x38a   : > { %v11886_v29 = vpop.eup %11885  ;;  %11137 = vrot.lane.b32.xlu1 %v17144_v37, %s12358_s9  ;;  %9500 = vmatprep.mubr.msk.f32.mxu1 %vm1488_vm2, %v1826_v18  ;;  %v10500_v15 = vpack.c.bf16 %v11080_v44, %v11079_v51  ;;  %v17154_v18 = vld [vmem:[#allocation80_spill] sm:$0xff]  ;;  %v17156_v51 = vld [vmem:[#allocation49_spill] sm:$0xff] }
 0x38b   : > { %v11888_v48 = vpop.eup %11887  ;;  %9501 = vmatmul.mubr.msk.f32.vlgmr.msra.gmra.mrb[84].mxu1 %vm1488_vm2, %v1828_v14  ;;  %v13829_v30 = vpop.xlane.xlu0 %1769  ;;  %v1816_v34 = vmul.f32 %v11886_v29, %v13654_v26  ;;  %v11105_v14 = vunpack.i.h.bf16 %v17154_v18  ;;  %v11104_v29 = vunpack.i.l.bf16 %v17154_v18  ;;  %v17168_v18 = vld [vmem:[#allocation27_spill] sm:$0xff] }
 0x38c   : > { %10517 = vmatpush3.bf16.xpose.msk.msra.mxu1 %vm12752_vm1, %v10512_v27  ;;  %v1814_v59 = vmul.f32 %v11888_v48, %v13656_v52  ;;  %v11100_v27 = vunpack.i.h.bf16 %v17148_v54  ;;  %v11099_v52 = vunpack.i.l.bf16 %v17148_v54  ;;  %v17159_v54 = vld [vmem:[#allocation54_spill] sm:$0xff] }
 0x38d   : > { %10520 = vmatprep.subr.msk.bf16.mxu1 %vm12752_vm1, %v10518_v1  ;;  %11147 = vrot.lane.b32.xlu0 %v17146_v58, %s12358_s9 }
 0x38e   : > { %v11890_v33 = vpop.eup %11889  ;;  %2545 = vrot.lane.b32.xlu1 %v17147_v2, %s12358_s9  ;;  %9475 = vmatprep.mubr.msk.f32.mxu0 %vm1488_vm2, %v1814_v59  ;;  %v10524_v22 = vpack.c.bf16 %v11100_v27, %v11099_v52  ;;  %v11110_v59 = vunpack.i.h.bf16 %v17157_v47  ;;  %v17160_v27 = vld [vmem:[#allocation72_spill] sm:$0xff] }
 0x38f   : > { %v11892_v20 = vpop.eup %11891  ;;  %9476 = vmatmul.mubr.msk.f32.gmra.mrb[62].mxu0 %vm1488_vm2, %v1816_v34  ;;  %v1743_v62 = vpop.xlane.xlu0 %1742  ;;  %v1832_v10 = vmul.f32 %v11890_v33, %v13662_v17  ;;  %v17152_v17 = vld [vmem:[#allocation45_spill] sm:$0xff]  ;;  %v11109_v34 = vunpack.i.l.bf16 %v17157_v47  ;;  %v11075_v52 = vunpack.i.h.bf16 %v17160_v27 }
 0x390   : > { %10499 = vmatpush3.bf16.xpose.msk.msra.mxu0 %vm12752_vm1, %v10494_v38  ;;  %11895 = vrcp.f32 %v1743_v62  ;;  %v1830_v26 = vmul.f32 %v11892_v20, %v13664_v9  ;;  %v11084_v38 = vunpack.i.l.bf16 %v17151_v53  ;;  %v17153_v9 = vld [vmem:[#allocation46_spill] sm:$0xff]  ;;  %v17158_v20 = vld [vmem:[#allocation55_spill] sm:$0xff] }
 0x391   : > { %10502 = vmatprep.subr.msk.bf16.mxu0 %vm12752_vm1, %v10500_v15  ;;  %11157 = vrot.lane.b32.xlu0 %v17149_v56, %s12358_s9  ;;  %v10536_v62 = vpack.c.bf16 %v11110_v59, %v11109_v34  ;;  %v17163_v53 = vld [vmem:[#allocation10_spill] sm:$0xff]  ;;  %v14187_v56 = vld [vmem:[%s16845_s3 + $0x60] sm:$0xff] }
 0x392   : > { %2549 = vrot.lane.b32.xlu1 %v17150_v57, %s12358_s9  ;;  %9503 = vmatprep.mubr.msk.f32.mxu1 %vm1488_vm2, %v1830_v26  ;;  %v10506_v55 = vpack.c.bf16 %v11085_v42, %v11084_v38  ;;  %v11894_v48 = vpop.eup %11893  ;;  %v17162_v26 = vld [vmem:[#allocation59_spill] sm:$0xff]  ;;  %v17165_v38 = vld [vmem:[#allocation17_spill] sm:$0xff]  ;;  %v17172_v34 = vld [vmem:[#allocation42_spill] sm:$0xff] }
 0x393   : > { %9504 = vmatmul.mubr.msk.f32.gmra.mrb[86].mxu1 %vm1488_vm2, %v1832_v10  ;;  %v17164_v42 = vld [vmem:[#allocation51_spill] sm:$0xff]  ;;  %v2371_v47 = vpop.permute.xlu0 %2370 }
 0x394   : > { %10523 = vmatpush3.bf16.xpose.msk.msra.mxu1 %vm12752_vm1, %v10518_v1  ;;  %v10530_v1 = vpack.c.bf16 %v11105_v14, %v11104_v29  ;;  %v17169_v14 = vld [vmem:[#allocation34_spill] sm:$0xff]  ;;  %v2373_v29 = vpop.permute.xlu1 %2372 }
 0x395   : > { %10526 = vmatprep.subr.msk.bf16.mxu1 %vm12752_vm1, %v10524_v22  ;;  %11167 = vrot.lane.b32.xlu0 %v17152_v17, %s12358_s9 }
 0x396   : > { %2875 = vrot.lane.b32.xlu1 %v17153_v9, %s12358_s9 }
 0x398   : > { %10505 = vmatpush3.bf16.xpose.msk.msra.mxu0 %vm12752_vm1, %v10500_v15  ;;  %v1820_v15 = vmul.f32 %v11894_v48, %v13670_v4  ;;  %v17161_v4 = vld [vmem:[#allocation60_spill] sm:$0xff] }
 0x399   : > { %10508 = vmatprep.subr.msk.bf16.mxu0 %vm12752_vm1, %v10506_v55  ;;  %11177 = vrot.lane.b32.xlu0 %v17155_v31, %s12358_s9  ;;  %v17170_v48 = vld [vmem:[#allocation40_spill] sm:$0xff] }
 0x39a   : > { %v11896_v44 = vpop.eup %11895  ;;  %2710 = vrot.lane.b32.xlu1 %v17156_v51, %s12358_s9 }
 0x39b   : > { %v1818_v33 = vmul.f32 %v11896_v44, %v13678_v3  ;;  %v11074_v3 = vunpack.i.l.bf16 %v17160_v27 }
 0x39c   : > { %10529 = vmatpush3.bf16.xpose.msk.msra.mxu1 %vm12752_vm1, %v10524_v22  ;;  %v17166_v22 = vld [vmem:[#allocation57_spill] sm:$0xff] }
 0x39d   : > { %10532 = vmatprep.subr.msk.bf16.mxu1 %vm12752_vm1, %v10530_v1  ;;  %11187 = vrot.lane.b32.xlu0 %v17158_v20, %s12358_s9  ;;  %v13901_v10 = vpack.c.bf16 %v11075_v52, %v11074_v3  ;;  %v17174_v3 = vld [vmem:[#allocation62_spill] sm:$0xff]  ;;  %v14157_v20 = vld [vmem:[%s16845_s3 + $0x50] sm:$0xff] }
 0x39e   : > { %2714 = vrot.lane.b32.xlu1 %v17159_v54, %s12358_s9  ;;  %9478 = vmatprep.mubr.msk.f32.mxu0 %vm1488_vm2, %v1818_v33 }
 0x39f   : > { %9479 = vmatmul.mubr.msk.f32.gmra.mrb[64].mxu0 %vm1488_vm2, %v1820_v15  ;;  %v17173_v15 = vld [vmem:[#allocation43_spill] sm:$0xff] }
 0x3a0   : > { %10511 = vmatpush3.bf16.xpose.msk.msra.mxu0 %vm12752_vm1, %v10506_v55  ;;  %v17167_v55 = vld [vmem:[#allocation61_spill] sm:$0xff] }
 0x3a1   : > { %10538 = vmatprep.subr.msk.bf16.mxu0 %vm12752_vm1, %v10536_v62  ;;  %11197 = vrot.lane.b32.xlu0 %v17161_v4, %s12358_s9 }
 0x3a2   : > { %2718 = vrot.lane.b32.xlu1 %v17162_v26, %s12358_s9 }
 0x3a4   : > { %10535 = vmatpush3.bf16.xpose.msk.msra.mxu1 %vm12752_vm1, %v10530_v1  ;;  %v17171_v1 = vld [vmem:[#allocation41_spill] sm:$0xff] }
 0x3a5   : > { %10562 = vmatprep.subr.msk.bf16.mxu1 %vm12752_vm1, %v13901_v10  ;;  %11227 = vrot.lane.b32.xlu0 %v17163_v53, %s12359_s12 }
 0x3a6   : > { %2879 = vrot.lane.b32.xlu1 %v17164_v42, %s12358_s9 }
 0x3a9   : > { %11237 = vrot.lane.b32.xlu0 %v17165_v38, %s12359_s12 }
 0x3aa   : > { %2883 = vrot.lane.b32.xlu1 %v17166_v22, %s12358_s9 }
 0x3ae   : > { %2887 = vrot.lane.b32.xlu1 %v17167_v55, %s12358_s9 }
 0x3b2   : > { %11142 = vrot.lane.b32.xlu1 %v17168_v18, %s12358_s9 }
 0x3b6   : > { %11152 = vrot.lane.b32.xlu1 %v17169_v14, %s12358_s9  ;;  %v17179_v14 = vld [vmem:[#allocation69_spill] sm:$0xff] }
 0x3ba   : > { %11162 = vrot.lane.b32.xlu1 %v17170_v48, %s12358_s9 }
 0x3bc   : > { %v1752_v44 = vpop.xlane.xlu1 %1751 }
 0x3bd   : > { %11897 = vrcp.f32 %v1752_v44 }
 0x3be   : > { %11172 = vrot.lane.b32.xlu1 %v17171_v1, %s12358_s9 }
 0x3c0   : > { %v1749_v59 = vpop.xlane.xlu1 %1748 }
 0x3c1   : > { %11899 = vrcp.f32 %v1749_v59 }
 0x3c2   : > { %11182 = vrot.lane.b32.xlu1 %v17172_v34, %s12358_s9  ;;  %11901 = vrcp.f32 %v13829_v30  ;;  %v17175_v34 = vld [vmem:[#allocation64_spill] sm:$0xff] }
 0x3c4   : > { %v1767_v33 = vpop.xlane.xlu0 %1766 }
 0x3c5   : > { %11903 = vrcp.f32 %v1767_v33  ;;  %v17176_v33 = vld [vmem:[#allocation83_spill] sm:$0xff] }
 0x3c6   : > { %11192 = vrot.lane.b32.xlu1 %v17173_v15, %s12358_s9  ;;  %v11115_v15 = vunpack.i.h.bf16 %v17176_v33  ;;  %v11114_v48 = vunpack.i.l.bf16 %v17176_v33 }
 0x3c7   : > { %v11898_v52 = vpop.eup %11897 }
 0x3c8   : > { %v1776_v27 = vpop.xlane.xlu0 %1775  ;;  %v1824_v59 = vmul.f32 %v11898_v52, %v13690_v24  ;;  %v10542_v52 = vpack.c.bf16 %v11115_v15, %v11114_v48  ;;  %v17182_v15 = vld [vmem:[#allocation68_spill] sm:$0xff] }
 0x3c9   : > { %11905 = vrcp.f32 %v1776_v27 }
 0x3ca   : > { %11202 = vrot.lane.b32.xlu1 %v17174_v3, %s12358_s9  ;;  %v17177_v3 = vld [vmem:[#allocation71_spill] sm:$0xff] }
 0x3cb   : > { %v11900_v38 = vpop.eup %11899 }
 0x3cc   : > { %v1822_v44 = vmul.f32 %v11900_v38, %v13694_v12  ;;  %v11123_v53 = vpop.permute.xlu0 %11122  ;;  %v11902_v1 = vpop.eup %11901  ;;  %v17178_v38 = vld [vmem:[#allocation8_spill] sm:$0xff] }
 0x3cd   : > { %v1836_v24 = vmul.f32 %v11902_v1, %v13674_v41  ;;  %v17180_v41 = vld [vmem:[#allocation66_spill] sm:$0xff] }
 0x3ce   : > { %11207 = vrot.lane.b32.xlu1 %v17175_v34, %s12358_s9  ;;  %9481 = vmatprep.mubr.msk.f32.mxu0 %vm1488_vm2, %v1822_v44 }
 0x3cf   : > { %v11904_v30 = vpop.eup %11903  ;;  %9482 = vmatmul.mubr.msk.f32.gmra.mrb[66].mxu0 %vm1488_vm2, %v1824_v59  ;;  %v11124_v59 = vunpack.i.l.bf16 %v11123_v53 }
 0x3d0   : > { %9528 = vmatprep.mubr.msk.f32.mxu0 %vm875_vm0, %v17177_v3  ;;  %v1834_v12 = vmul.f32 %v11904_v30, %v13698_v16  ;;  %v2375_v44 = vpop.permute.xlu0 %2374  ;;  %v17181_v16 = vld [vmem:[#allocation82_spill] sm:$0xff]  ;;  %v11125_v3 = vunpack.i.h.bf16 %v11123_v53 }
 0x3d1   : > { %v11120_v1 = vunpack.i.h.bf16 %v17181_v16  ;;  %v11119_v48 = vunpack.i.l.bf16 %v17181_v16 }
 0x3d2   : > { %11212 = vrot.lane.b32.xlu1 %v17178_v38, %s12359_s12  ;;  %9506 = vmatprep.mubr.msk.f32.mxu1 %vm1488_vm2, %v1834_v12  ;;  %v10554_v33 = vpack.c.bf16 %v11125_v3, %v11124_v59  ;;  %v17185_v38 = vld [vmem:[#allocation77_spill] sm:$0xff] }
 0x3d3   : > { %9507 = vmatmul.mubr.msk.f32.gmra.mrb[88].mxu1 %vm1488_vm2, %v1836_v24  ;;  %9529 = vmatmul.mubr.msk.f32.vlgmr.msra.gmra.mrb[68].mxu0 %vm875_vm0, %v17179_v14  ;;  %v11906_v3 = vpop.eup %11905 }
 0x3d4   : > { %10541 = vmatpush3.bf16.xpose.msk.msra.mxu0 %vm12752_vm1, %v10536_v62  ;;  %9531 = vmatprep.mubr.msk.f32.mxu0 %vm875_vm0, %v2371_v47  ;;  %v2379_v14 = vpop.permute.xlu0 %2378  ;;  %v10548_v62 = vpack.c.bf16 %v11120_v1, %v11119_v48  ;;  %v17183_v47 = vld [vmem:[#allocation12_spill] sm:$0xff]  ;;  %v1840_v27 = vmul.f32 %v11906_v3, %v13702_v7 }
 0x3d5   : > { %10544 = vmatprep.subr.msk.bf16.mxu0 %vm12752_vm1, %v10542_v52 }
 0x3d6   : > { %11217 = vrot.lane.b32.xlu1 %v17180_v41, %s12358_s9 }
 0x3d7   : > { %9532 = vmatmul.mubr.msk.f32.gmra.mrb[70].mxu0 %vm875_vm0, %v2373_v29  ;;  %v17184_v29 = vld [vmem:[#allocation14_spill] sm:$0xff] }
 0x3d8   : > { %9534 = vmatprep.mubr.msk.f32.mxu0 %vm875_vm0, %v2375_v44  ;;  %v11133_v30 = vpop.permute.xlu0 %11132 }
 0x3da   : > { %11222 = vrot.lane.b32.xlu1 %v17182_v15, %s12358_s9 }
 0x3dc   : > { %10547 = vmatpush3.bf16.xpose.msk.msra.mxu0 %vm12752_vm1, %v10542_v52  ;;  %v2707_v12 = vpop.permute.xlu0 %2706  ;;  %v11128_v52 = vpop.permute.xlu1 %11127 }
 0x3dd   : > { %10550 = vmatprep.subr.msk.bf16.mxu0 %vm12752_vm1, %v10548_v62 }
 0x3de   : > { %11232 = vrot.lane.b32.xlu1 %v17183_v47, %s12359_s12 }
 0x3e0   : > { %v2542_v24 = vpop.permute.xlu0 %2541 }
 0x3e2   : > { %11242 = vrot.lane.b32.xlu1 %v17184_v29, %s12359_s12 }
 0x3e4   : > { %10553 = vmatpush3.bf16.xpose.msk.msra.mxu0 %vm12752_vm1, %v10548_v62  ;;  %v2544_v44 = vpop.permute.xlu0 %2543 }
 0x3e5   : > { %10556 = vmatprep.subr.msk.bf16.mxu0 %vm12752_vm1, %v10554_v33 }
 0x3e8   : > { %v2548_v16 = vpop.permute.xlu0 %2547 }
 0x3ec   : > { %10559 = vmatpush3.bf16.xpose.msk.msra.mxu0 %vm12752_vm1, %v10554_v33  ;;  %v2874_v48 = vpop.permute.xlu0 %2873 }
 0x3f5   : > { %v1773_v53 = vpop.xlane.xlu1 %1772 }
 0x3f6   : > { %11907 = vrcp.f32 %v1773_v53  ;;  %v2709_v53 = vpop.permute.xlu0 %2708 }
 0x3f9   : > { %v2377_v1 = vpop.permute.xlu1 %2376 }
 0x3fa   : > { %9535 = vmatmul.mubr.msk.f32.gmra.mrb[72].mxu0 %vm875_vm0, %v2377_v1  ;;  %v11130_v1 = vunpack.i.h.bf16 %v11128_v52  ;;  %v2713_v3 = vpop.permute.xlu0 %2712 }
 0x3fb   : > { %9537 = vmatprep.mubr.msk.f32.mxu0 %vm875_vm0, %v2379_v14  ;;  %v11129_v14 = vunpack.i.l.bf16 %v11128_v52 }
 0x3fd   : > { %v2381_v62 = vpop.permute.xlu1 %2380 }
 0x3fe   : > { %9538 = vmatmul.mubr.msk.f32.gmra.mrb[74].mxu0 %vm875_vm0, %v2381_v62 }
 0x400   : > { %v11908_v59 = vpop.eup %11907 }
 0x401   : > { %v2705_v41 = vpop.permute.xlu1 %2704  ;;  %v1838_v33 = vmul.f32 %v11908_v59, %v13749_v19  ;;  %v10566_v19 = vpack.c.bf16 %v11130_v1, %v11129_v14  ;;  %v17186_v59 = vld [vmem:[#allocation76_spill] sm:$0xff] }
 0x402   : > { %9584 = vmatprep.mubr.msk.f32.mxu0 %vm875_vm0, %v2705_v41  ;;  %v11135_v41 = vunpack.i.h.bf16 %v11133_v30 }
 0x403   : > { %9509 = vmatprep.mubr.msk.f32.mxu1 %vm1488_vm2, %v1838_v33  ;;  %9585 = vmatmul.mubr.msk.f32.vlgmr.msra.gmra.mrb[76].mxu0 %vm875_vm0, %v2707_v12  ;;  %v11134_v12 = vunpack.i.l.bf16 %v11133_v30 }
 0x404   : > { %9510 = vmatmul.mubr.msk.f32.gmra.mrb[90].mxu1 %vm1488_vm2, %v1840_v27  ;;  %9587 = vmatprep.mubr.msk.f32.mxu0 %vm875_vm0, %v2709_v53 }
 0x405   : > { %v2540_v62 = vpop.permute.xlu1 %2539  ;;  %9556 = vmatprep.mubr.msk.f32.mxu1 %vm875_vm0, %v17185_v38  ;;  %v10572_v38 = vpack.c.bf16 %v11135_v41, %v11134_v12 }
 0x408   : > { %9557 = vmatmul.mubr.msk.f32.vlgmr.msra.gmra.mrb[92].mxu1 %vm875_vm0, %v17186_v59 }
 0x409   : > { %10565 = vmatpush3.bf16.xpose.msk.msra.mxu1 %vm12752_vm1, %v13901_v10  ;;  %v11138_v7 = vpop.permute.xlu1 %11137  ;;  %9559 = vmatprep.mubr.msk.f32.mxu1 %vm875_vm0, %v2540_v62 }
 0x40a   : > { %10568 = vmatprep.subr.msk.bf16.mxu1 %vm12752_vm1, %v10566_v19  ;;  %v11140_v33 = vunpack.i.h.bf16 %v11138_v7  ;;  %v11139_v30 = vunpack.i.l.bf16 %v11138_v7 }
 0x40c   : > { %9560 = vmatmul.mubr.msk.f32.gmra.mrb[94].mxu1 %vm875_vm0, %v2542_v24  ;;  %v10578_v27 = vpack.c.bf16 %v11140_v33, %v11139_v30 }
 0x40d   : > { %v2546_v52 = vpop.permute.xlu1 %2545  ;;  %9562 = vmatprep.mubr.msk.f32.mxu1 %vm875_vm0, %v2544_v44  ;;  %v2717_v44 = vpop.permute.xlu0 %2716 }
 0x410   : > { %9563 = vmatmul.mubr.msk.f32.gmra.mrb[96].mxu1 %vm875_vm0, %v2546_v52 }
 0x411   : > { %10571 = vmatpush3.bf16.xpose.msk.msra.mxu1 %vm12752_vm1, %v10566_v19  ;;  %v2550_v10 = vpop.permute.xlu1 %2549  ;;  %9565 = vmatprep.mubr.msk.f32.mxu1 %vm875_vm0, %v2548_v16  ;;  %v2878_v16 = vpop.permute.xlu0 %2877 }
 0x412   : > { %10574 = vmatprep.subr.msk.bf16.mxu1 %vm12752_vm1, %v10572_v38 }
 0x414   : > { %9566 = vmatmul.mubr.msk.f32.gmra.mrb[98].mxu1 %vm875_vm0, %v2550_v10 }
 0x415   : > { %v2876_v24 = vpop.permute.xlu1 %2875  ;;  %9612 = vmatprep.mubr.msk.f32.mxu1 %vm875_vm0, %v2874_v48  ;;  %v2882_v59 = vpop.permute.xlu0 %2881 }
 0x419   : > { %10577 = vmatpush3.bf16.xpose.msk.msra.mxu1 %vm12752_vm1, %v10572_v38  ;;  %v2711_v53 = vpop.permute.xlu1 %2710  ;;  %v2886_v38 = vpop.permute.xlu0 %2885 }
 0x41a   : > { %10580 = vmatprep.subr.msk.bf16.mxu1 %vm12752_vm1, %v10578_v27  ;;  %9588 = vmatmul.mubr.msk.f32.gmra.mrb[78].mxu0 %vm875_vm0, %v2711_v53 }
 0x41b   : > { %9590 = vmatprep.mubr.msk.f32.mxu0 %vm875_vm0, %v2713_v3 }
 0x41d   : > { %v2715_v1 = vpop.permute.xlu1 %2714  ;;  %v11148_v30 = vpop.permute.xlu0 %11147 }
 0x41e   : > { %v14014_v14 = vpop.f32.mrb[52].mxu0  ;;  %9591 = vmatmul.mubr.msk.f32.gmra.mrb[80].mxu0 %vm875_vm0, %v2715_v1  ;;  %v11149_v53 = vunpack.i.l.bf16 %v11148_v30 }
 0x41f   : > { %17187 = vst [vmem:[#allocation63_spill] sm:$0xff] %v14014_v14  ;;  %v14017_v48 = vpop.f32.mrb[53].mxu0  ;;  %9593 = vmatprep.mubr.msk.f32.mxu0 %vm875_vm0, %v2717_v44 }
 0x420   : > { %17188 = vst [vmem:[#allocation65_spill] sm:$0xff] %v14017_v48 }
 0x421   : > { %10583 = vmatpush3.bf16.xpose.msk.msra.mxu1 %vm12752_vm1, %v10578_v27  ;;  %v2719_v62 = vpop.permute.xlu1 %2718 }
 0x422   : > { %v14022_v19 = vpop.f32.mrb[54].mxu0  ;;  %9594 = vmatmul.mubr.msk.f32.gmra.mrb[82].mxu0 %vm875_vm0, %v2719_v62 }
 0x423   : > { %17189 = vst [vmem:[#allocation73_spill] sm:$0xff] %v14022_v19  ;;  %v14025_v7 = vpop.f32.mrb[55].mxu0 }
 0x424   : > { %17190 = vst [vmem:[#allocation67_spill] sm:$0xff] %v14025_v7 }
 0x425   : > { %v2880_v41 = vpop.permute.xlu1 %2879 }
 0x426   : > { %v14027_v12 = vpop.f32.mrb[56].mxu0 }
 0x427   : > { %17191 = vst [vmem:[#allocation20_spill] sm:$0xff] %v14027_v12  ;;  %v14029_v52 = vpop.f32.mrb[57].mxu0 }
 0x428   : > { %17192 = vst [vmem:[#allocation22_spill] sm:$0xff] %v14029_v52  ;;  %9613 = vmatmul.mubr.msk.f32.vlgmr.msra.gmra.mrb[100].mxu1 %vm875_vm0, %v2876_v24  ;;  %v11150_v24 = vunpack.i.h.bf16 %v11148_v30 }
 0x429   : > { %9615 = vmatprep.mubr.msk.f32.mxu1 %vm875_vm0, %v2878_v16  ;;  %v2884_v3 = vpop.permute.xlu1 %2883 }
 0x42c   : > { %9616 = vmatmul.mubr.msk.f32.gmra.mrb[102].mxu1 %vm875_vm0, %v2880_v41  ;;  %v11158_v41 = vpop.permute.xlu0 %11157 }
 0x42d   : > { %9618 = vmatprep.mubr.msk.f32.mxu1 %vm875_vm0, %v2882_v59  ;;  %v2888_v10 = vpop.permute.xlu1 %2887 }
 0x42e   : > { %v14035_v33 = vpop.f32.mrb[58].mxu0 }
 0x42f   : > { %17193 = vst [vmem:[#allocation70_spill] sm:$0xff] %v14035_v33  ;;  %v14037_v44 = vpop.f32.mrb[59].mxu0  ;;  %v10588_v33 = vpack.c.bf16 %v11150_v24, %v11149_v53 }
 0x430   : > { %17194 = vst [vmem:[#allocation78_spill] sm:$0xff] %v14037_v44  ;;  %9619 = vmatmul.mubr.msk.f32.gmra.mrb[104].mxu1 %vm875_vm0, %v2884_v3  ;;  %v11160_v44 = vunpack.i.h.bf16 %v11158_v41  ;;  %v11159_v3 = vunpack.i.l.bf16 %v11158_v41  ;;  %v11168_v30 = vpop.permute.xlu0 %11167 }
 0x431   : > { %9621 = vmatprep.mubr.msk.f32.mxu1 %vm875_vm0, %v2886_v38  ;;  %v11143_v27 = vpop.permute.xlu1 %11142  ;;  %v11169_v52 = vunpack.i.l.bf16 %v11168_v30 }
 0x432   : > { %v11145_v1 = vunpack.i.h.bf16 %v11143_v27  ;;  %v11144_v16 = vunpack.i.l.bf16 %v11143_v27 }
 0x434   : > { %9622 = vmatmul.mubr.msk.f32.gmra.mrb[106].mxu1 %vm875_vm0, %v2888_v10  ;;  %v10584_v62 = vpack.c.bf16 %v11145_v1, %v11144_v16  ;;  %v10596_v1 = vpack.c.bf16 %v11160_v44, %v11159_v3  ;;  %v11170_v16 = vunpack.i.h.bf16 %v11168_v30 }
 0x435   : > { %v11153_v59 = vpop.permute.xlu1 %11152 }
 0x436   : > { %v11155_v48 = vunpack.i.h.bf16 %v11153_v59  ;;  %v11154_v14 = vunpack.i.l.bf16 %v11153_v59  ;;  %10585 = vmatprep.subr.bf16.mxu0 %v10584_v62 }
 0x437   : > { %10587 = vmatpush3.bf16.msra.mxu0 %v10584_v62 }
 0x438   : > { %10589 = vmatprep.subr.bf16.mxu0 %v10588_v33  ;;  %v10592_v12 = vpack.c.bf16 %v11155_v48, %v11154_v14 }
 0x439   : > { %v11163_v19 = vpop.permute.xlu1 %11162 }
 0x43a   : > { %v11165_v38 = vunpack.i.h.bf16 %v11163_v19  ;;  %v11164_v7 = vunpack.i.l.bf16 %v11163_v19 }
 0x43b   : > { %10591 = vmatpush3.bf16.msra.mxu0 %v10588_v33 }
 0x43c   : > { %10593 = vmatprep.subr.bf16.mxu0 %v10592_v12  ;;  %v10600_v27 = vpack.c.bf16 %v11165_v38, %v11164_v7  ;;  %v14046_v7 = vpack.c.bf16 %v11170_v16, %v11169_v52 }
 0x43d   : > { %v11173_v10 = vpop.permute.xlu1 %11172 }
 0x43e   : > { %v11175_v29 = vunpack.i.h.bf16 %v11173_v10  ;;  %v11174_v59 = vunpack.i.l.bf16 %v11173_v10  ;;  %10601 = vmatprep.subr.bf16.mxu1 %v10600_v27  ;;  %17197 = vst [vmem:[#allocation75_spill] sm:$0xff] %v14046_v7 }
 0x43f   : > { %v14042_v24 = vpop.f32.mrb[76].mxu1  ;;  %10595 = vmatpush3.bf16.msra.mxu0 %v10592_v12  ;;  %10603 = vmatpush3.bf16.msra.mxu1 %v10600_v27 }
 0x440   : > { %17195 = vst [vmem:[#allocation74_spill] sm:$0xff] %v14042_v24  ;;  %v14044_v53 = vpop.f32.mrb[77].mxu1  ;;  %10597 = vmatprep.subr.bf16.mxu0 %v10596_v1  ;;  %v10604_v19 = vpack.c.bf16 %v11175_v29, %v11174_v59 }
 0x441   : > { %17196 = vst [vmem:[#allocation79_spill] sm:$0xff] %v14044_v53  ;;  %v11183_v14 = vpop.permute.xlu1 %11182  ;;  %v14129_v53 = vld [vmem:[%s16845_s3 + $0x68] sm:$0xff] }
 0x442   : > { %v11185_v48 = vunpack.i.h.bf16 %v11183_v14  ;;  %v11184_v33 = vunpack.i.l.bf16 %v11183_v14  ;;  %10605 = vmatprep.subr.bf16.mxu1 %v10604_v19 }
 0x443   : > { %v14048_v44 = vpop.f32.mrb[78].mxu1  ;;  %10599 = vmatpush3.bf16.msra.mxu0 %v10596_v1  ;;  %10607 = vmatpush3.bf16.msra.mxu1 %v10604_v19 }
 0x444   : > { %17198 = vst [vmem:[#allocation80_spill] sm:$0xff] %v14048_v44  ;;  %v14050_v62 = vpop.f32.mrb[79].mxu1  ;;  %10617 = vmatprep.subr.bf16.mxu0 %v14046_v7  ;;  %v10608_v12 = vpack.c.bf16 %v11185_v48, %v11184_v33 }
 0x445   : > { %17199 = vst [vmem:[#allocation81_spill] sm:$0xff] %v14050_v62  ;;  %v11193_v41 = vpop.permute.xlu1 %11192 }
 0x446   : > { %v11195_v3 = vunpack.i.h.bf16 %v11193_v41  ;;  %v11194_v38 = vunpack.i.l.bf16 %v11193_v41  ;;  %10609 = vmatprep.subr.bf16.mxu1 %v10608_v12 }
 0x447   : > { %v14053_v29 = vpop.f32.mrb[80].mxu1  ;;  %10611 = vmatpush3.bf16.msra.mxu1 %v10608_v12 }
 0x448   : > { %17200 = vst [vmem:[#allocation72_spill] sm:$0xff] %v14053_v29  ;;  %v14055_v30 = vpop.f32.mrb[81].mxu1  ;;  %v10612_v52 = vpack.c.bf16 %v11195_v3, %v11194_v38 }
 0x449   : > { %17201 = vst [vmem:[#allocation83_spill] sm:$0xff] %v14055_v30  ;;  %v11203_v27 = vpop.permute.xlu1 %11202 }
 0x44a   : > { %v11205_v10 = vunpack.i.h.bf16 %v11203_v27  ;;  %v11204_v16 = vunpack.i.l.bf16 %v11203_v27  ;;  %10613 = vmatprep.subr.bf16.mxu1 %v10612_v52 }
 0x44b   : > { %v14057_v1 = vpop.f32.mrb[82].mxu1  ;;  %10615 = vmatpush3.bf16.msra.mxu1 %v10612_v52 }
 0x44c   : > { %17202 = vst [vmem:[#allocation71_spill] sm:$0xff] %v14057_v1  ;;  %v14059_v59 = vpop.f32.mrb[83].mxu1  ;;  %v14061_v19 = vpack.c.bf16 %v11205_v10, %v11204_v16 }
 0x44d   : > { %17203 = vst [vmem:[#allocation69_spill] sm:$0xff] %v14059_v59 }
 0x44e   : > { %17204 = vst [vmem:[#allocation82_spill] sm:$0xff] %v14061_v19  ;;  %10633 = vmatprep.subr.bf16.mxu1 %v14061_v19 }
 0x45a   : > { %v14064_v14 = vpop.f32.mrb[60].mxu0 }
 0x45b   : > { %17205 = vst [vmem:[#allocation77_spill] sm:$0xff] %v14064_v14  ;;  %v14066_v48 = vpop.f32.mrb[61].mxu0 }
 0x45c   : > { %17206 = vst [vmem:[#allocation76_spill] sm:$0xff] %v14066_v48 }
 0x45e   : > { %v14068_v33 = vpop.f32.mrb[84].mxu1 }
 0x45f   : > { %17207 = vst [vmem:[#allocation84_spill] sm:$0xff] %v14068_v33  ;;  %v14070_v12 = vpop.f32.mrb[85].mxu1  ;;  %v14091_v33 = vld [vmem:[%s16845_s3 + $0x48] sm:$0xff] }
 0x460   : > { %17208 = vst [vmem:[#allocation85_spill] sm:$0xff] %v14070_v12 }
 0x462   : > { %v14072_v41 = vpop.f32.mrb[62].mxu0 }
 0x463   : > { %17209 = vst [vmem:[#allocation86_spill] sm:$0xff] %v14072_v41  ;;  %v14074_v3 = vpop.f32.mrb[63].mxu0 }
 0x464   : > { %17210 = vst [vmem:[#allocation87_spill] sm:$0xff] %v14074_v3 }
 0x466   : > { %v14076_v38 = vpop.f32.mrb[86].mxu1 }
 0x467   : > { %17211 = vst [vmem:[#allocation88_spill] sm:$0xff] %v14076_v38  ;;  %v14078_v52 = vpop.f32.mrb[87].mxu1 }
 0x468   : > { %17212 = vst [vmem:[#allocation89_spill] sm:$0xff] %v14078_v52 }
 0x472   : > { %v14080_v27 = vpop.f32.mrb[64].mxu0 }
 0x473   : > { %17213 = vst [vmem:[#allocation90_spill] sm:$0xff] %v14080_v27  ;;  %v14082_v10 = vpop.f32.mrb[65].mxu0 }
 0x474   : > { %17214 = vst [vmem:[#allocation91_spill] sm:$0xff] %v14082_v10 }
 0x4a2   : > { %v14084_v16 = vpop.f32.mrb[66].mxu0 }
 0x4a3   : > { %17215 = vst [vmem:[#allocation92_spill] sm:$0xff] %v14084_v16  ;;  %v14086_v14 = vpop.f32.mrb[67].mxu0 }
 0x4a4   : > { %17216 = vst [vmem:[#allocation93_spill] sm:$0xff] %v14086_v14 }
 0x4a6   : > { %v14093_v12 = vpop.f32.mrb[88].mxu1  ;;  %v9530_v41 = vpop.f32.mrb[68].mxu0 }
 0x4a7   : > { %17217 = vst [vmem:[#allocation94_spill] sm:$0xff] %v14093_v12  ;;  %v14096_v38 = vadd.f32 %v9530_v41, %v14091_v33  ;;  %v14098_v52 = vpop.f32.mrb[89].mxu1  ;;  %v2496_v27 = vpop.f32.mrb[69].mxu0 }
 0x4a8   : > { %17218 = vst [vmem:[#allocation95_spill] sm:$0xff] %v14098_v52  ;;  %v14111_v52 = vld [vmem:[%s16845_s3 + $0x40] sm:$0xff] }
 0x4a9   : > { %v3045_v10 = vsel %vm1488_vm2, %v14096_v38, -inf  ;;  %v14117_v24 = vadd.f32 %v14111_v52, %v2496_v27 }
 0x4aa   : > { %3046 = vmax.xlane.f32.xlu1 %v3045_v10  ;;  %v9533_v16 = vpop.f32.mrb[70].mxu0 }
 0x4ab   : > { %v2506_v14 = vpop.f32.mrb[71].mxu0  ;;  %v3042_v34 = vsel %vm1488_vm2, %v14117_v24, -inf }
 0x4cd   : > { %v9536_v3 = vpop.f32.mrb[72].mxu0 }
 0x4ce   : > { %v2516_v48 = vpop.f32.mrb[73].mxu0  ;;  %v14135_v15 = vadd.f32 %v9536_v3, %v14129_v53 }
 0x4d0   : > { %v3057_v3 = vsel %vm1488_vm2, %v14135_v15, -inf }
 0x4d1   : > { %v9539_v1 = vpop.f32.mrb[74].mxu0 }
 0x4d2   : > { %v2526_v59 = vpop.f32.mrb[75].mxu0 }
 0x4d6   : > { %v9586_v44 = vpop.f32.mrb[76].mxu0 }
 0x4d7   : > { %v14102_v62 = vpop.f32.mrb[90].mxu1  ;;  %v14104_v12 = vpop.f32.mrb[77].mxu0 }
 0x4d8   : > { %17219 = vst [vmem:[#allocation96_spill] sm:$0xff] %v14102_v62  ;;  %v14106_v41 = vpop.f32.mrb[91].mxu1 }
 0x4d9   : > { %17220 = vst [vmem:[#allocation97_spill] sm:$0xff] %v14106_v41  ;;  %v14124_v41 = vld [vmem:[%s16845_s3 + $0x58] sm:$0xff] }
 0x4db   : > { %v9558_v29 = vpop.f32.mrb[92].mxu1 }
 0x4dc   : > { %v14114_v10 = vadd.f32 %v9558_v29, %v14091_v33  ;;  %v2665_v30 = vpop.f32.mrb[93].mxu1 }
 0x4dd   : > { %v14138_v18 = vadd.f32 %v14111_v52, %v2665_v30 }
 0x4de   : > { %v3069_v62 = vsel %vm1488_vm2, %v14114_v10, -inf }
 0x4df   : > { %3070 = vmax.xlane.f32.xlu0 %v3069_v62  ;;  %v9561_v29 = vpop.f32.mrb[94].mxu1  ;;  %v3066_v30 = vsel %vm1488_vm2, %v14138_v18, -inf }
 0x4e0   : > { %v14132_v47 = vadd.f32 %v9561_v29, %v14124_v41  ;;  %v2675_v27 = vpop.f32.mrb[95].mxu1  ;;  %v14145_v29 = vadd.f32 %v9533_v16, %v14124_v41 }
 0x4e2   : > { %v3075_v55 = vsel %vm1488_vm2, %v14132_v47, -inf  ;;  %v3051_v31 = vsel %vm1488_vm2, %v14145_v29, -inf }
 0x4e3   : > { %3043 = vmax.xlane.f32.xlu0 %v3042_v34  ;;  %3076 = vmax.xlane.f32.xlu1 %v3075_v55  ;;  %v9564_v62 = vpop.f32.mrb[96].mxu1  ;;  %v14162_v55 = vld [vmem:[%s16845_s3 + $0x78] sm:$0xff] }
 0x4e4   : > { %v2685_v4 = vpop.f32.mrb[97].mxu1  ;;  %v14148_v22 = vadd.f32 %v9564_v62, %v14129_v53  ;;  %v14165_v62 = vadd.f32 %v14157_v20, %v2506_v14  ;;  %v14168_v42 = vadd.f32 %v9539_v1, %v14162_v55 }
 0x4e6   : > { %v3081_v26 = vsel %vm1488_vm2, %v14148_v22, -inf  ;;  %v3048_v1 = vsel %vm1488_vm2, %v14165_v62, -inf  ;;  %v3063_v54 = vsel %vm1488_vm2, %v14168_v42, -inf }
 0x4e7   : > { %3067 = vmax.xlane.f32.xlu0 %v3066_v30  ;;  %3058 = vmax.xlane.f32.xlu1 %v3057_v3  ;;  %v9567_v34 = vpop.f32.mrb[98].mxu1  ;;  %v14175_v30 = vadd.f32 %v14157_v20, %v2675_v27  ;;  %v14195_v27 = vadd.f32 %v14187_v56, %v2516_v48 }
 0x4e8   : > { %v2695_v16 = vpop.f32.mrb[99].mxu1  ;;  %v14178_v3 = vadd.f32 %v9567_v34, %v14162_v55 }
 0x4e9   : > { %v3072_v58 = vsel %vm1488_vm2, %v14175_v30, -inf }
 0x4ea   : > { %v3087_v0 = vsel %vm1488_vm2, %v14178_v3, -inf }
 0x4eb   : > { %3052 = vmax.xlane.f32.xlu0 %v3051_v31  ;;  %3082 = vmax.xlane.f32.xlu1 %v3081_v26  ;;  %v14192_v31 = vld [vmem:[%s16845_s3 + $0x70] sm:$0xff] }
 0x4ec   : > { %v14198_v34 = vadd.f32 %v14192_v31, %v2526_v59  ;;  %v3054_v59 = vsel %vm1488_vm2, %v14195_v27, -inf  ;;  %v14215_v57 = vadd.f32 %v14192_v31, %v2695_v16 }
 0x4ed   : > { %v9589_v17 = vpop.f32.mrb[78].mxu0 }
 0x4ee   : > { %v2844_v14 = vpop.f32.mrb[79].mxu0  ;;  %v3060_v36 = vsel %vm1488_vm2, %v14198_v34, -inf  ;;  %v3084_v16 = vsel %vm1488_vm2, %v14215_v57, -inf }
 0x4ef   : > { %3049 = vmax.xlane.f32.xlu0 %v3048_v1  ;;  %3064 = vmax.xlane.f32.xlu1 %v3063_v54  ;;  %v14205_v1 = vadd.f32 %v9586_v44, %v14091_v33  ;;  %v14208_v54 = vadd.f32 %v14187_v56, %v2685_v4 }
 0x4f1   : > { %v9592_v26 = vpop.f32.mrb[80].mxu0 }
 0x4f2   : > { %v2854_v51 = vpop.f32.mrb[81].mxu0 }
 0x4f3   : > { %3073 = vmax.xlane.f32.xlu0 %v3072_v58  ;;  %3088 = vmax.xlane.f32.xlu1 %v3087_v0  ;;  %v3078_v0 = vsel %vm1488_vm2, %v14208_v54, -inf  ;;  %v3093_v58 = vsel %vm1488_vm2, %v14205_v1, -inf }
 0x4f5   : > { %v9595_v9 = vpop.f32.mrb[82].mxu0 }
 0x4f6   : > { %v2864_v48 = vpop.f32.mrb[83].mxu0 }
 0x4f7   : > { %3055 = vmax.xlane.f32.xlu0 %v3054_v59  ;;  %3061 = vmax.xlane.f32.xlu1 %v3060_v36  ;;  %v14226_v59 = vadd.f32 %v14111_v52, %v14104_v12  ;;  %v14229_v36 = vadd.f32 %v9589_v17, %v14124_v41 }
 0x4f9   : > { %v3099_v17 = vsel %vm1488_vm2, %v14229_v36, -inf  ;;  %v3090_v12 = vsel %vm1488_vm2, %v14226_v59, -inf }
 0x4fb   : > { %v9614_v4 = vpop.f32.mrb[100].mxu1  ;;  %3079 = vmax.xlane.f32.xlu0 %v3078_v0  ;;  %3094 = vmax.xlane.f32.xlu1 %v3093_v58 }
 0x4fc   : > { %v14222_v44 = vadd.f32 %v9614_v4, %v14091_v33  ;;  %v3003_v23 = vpop.f32.mrb[101].mxu1 }
 0x4fd   : > { %v14236_v33 = vadd.f32 %v14111_v52, %v3003_v23 }
 0x4fe   : > { %v3117_v19 = vsel %vm1488_vm2, %v14222_v44, -inf }
 0x4ff   : > { %v9617_v2 = vpop.f32.mrb[102].mxu1  ;;  %3085 = vmax.xlane.f32.xlu0 %v3084_v16  ;;  %3118 = vmax.xlane.f32.xlu1 %v3117_v19  ;;  %v14246_v16 = vadd.f32 %v14157_v20, %v2844_v14  ;;  %v14249_v19 = vadd.f32 %v9592_v26, %v14129_v53 }
 0x500   : > { %v3013_v0 = vpop.f32.mrb[103].mxu1  ;;  %v14239_v58 = vadd.f32 %v9617_v2, %v14124_v41  ;;  %v3114_v2 = vsel %vm1488_vm2, %v14236_v33, -inf }
 0x501   : > { %v3105_v26 = vsel %vm1488_vm2, %v14249_v19, -inf  ;;  %v3096_v7 = vsel %vm1488_vm2, %v14246_v16, -inf }
 0x502   : > { %v3123_v23 = vsel %vm1488_vm2, %v14239_v58, -inf }
 0x503   : > { %v9620_v4 = vpop.f32.mrb[104].mxu1  ;;  %3100 = vmax.xlane.f32.xlu1 %v3099_v17  ;;  %3091 = vmax.xlane.f32.xlu0 %v3090_v12  ;;  %v14259_v12 = vadd.f32 %v14157_v20, %v3013_v0 }
 0x504   : > { %v3023_v60 = vpop.f32.mrb[105].mxu1  ;;  %v14262_v14 = vadd.f32 %v9620_v4, %v14129_v53 }
 0x505   : > { %v3120_v53 = vsel %vm1488_vm2, %v14259_v12, -inf  ;;  %v14279_v0 = vadd.f32 %v14187_v56, %v3023_v60 }
 0x506   : > { %v3129_v20 = vsel %vm1488_vm2, %v14262_v14, -inf }
 0x507   : > { %v9623_v52 = vpop.f32.mrb[106].mxu1  ;;  %3124 = vmax.xlane.f32.xlu1 %v3123_v23  ;;  %3115 = vmax.xlane.f32.xlu0 %v3114_v2  ;;  %v14269_v23 = vadd.f32 %v14187_v56, %v2854_v51  ;;  %v14272_v2 = vadd.f32 %v9595_v9, %v14162_v55  ;;  %v3126_v60 = vsel %vm1488_vm2, %v14279_v0, -inf }
 0x508   : > { %v3033_v41 = vpop.f32.mrb[107].mxu1  ;;  %v14282_v4 = vadd.f32 %v9623_v52, %v14162_v55  ;;  %v14297_v55 = vpop.permute.xlu1 %11207 }
 0x509   : > { %v14256_v17 = vadd.f32 %v14192_v31, %v3033_v41  ;;  %v3111_v51 = vsel %vm1488_vm2, %v14272_v2, -inf  ;;  %v3102_v9 = vsel %vm1488_vm2, %v14269_v23, -inf  ;;  %17221 = vst [vmem:[#allocation98_spill] sm:$0xff] %v14297_v55 }
 0x50a   : > { %v3135_v41 = vsel %vm1488_vm2, %v14282_v4, -inf }
 0x50b   : > { %3106 = vmax.xlane.f32.xlu1 %v3105_v26  ;;  %3097 = vmax.xlane.f32.xlu0 %v3096_v7  ;;  %v14289_v7 = vadd.f32 %v14192_v31, %v2864_v48  ;;  %v17223_v26 = vld [vmem:[#allocation23_spill] sm:$0xff]  ;;  %v17225_v48 = vld [vmem:[#allocation26_spill] sm:$0xff] }
 0x50c   : > { %v14299_v52 = vpop.permute.xlu1 %11212 }
 0x50d   : > { %v3108_v56 = vsel %vm1488_vm2, %v14289_v7, -inf  ;;  %17222 = vst [vmem:[#allocation99_spill] sm:$0xff] %v14299_v52 }
 0x50f   : > { %3130 = vmax.xlane.f32.xlu1 %v3129_v20  ;;  %3121 = vmax.xlane.f32.xlu0 %v3120_v53  ;;  %v17227_v53 = vld [vmem:[#allocation5_spill] sm:$0xff] }
 0x510   : > { %v14303_v31 = vpop.permute.xlu1 %11217 }
 0x511   : > { %17224 = vst [vmem:[#allocation100_spill] sm:$0xff] %v14303_v31 }
 0x513   : > { %3112 = vmax.xlane.f32.xlu1 %v3111_v51  ;;  %3103 = vmax.xlane.f32.xlu0 %v3102_v9  ;;  %v17228_v51 = vld [vmem:[#allocation21_spill] sm:$0xff]  ;;  %v17229_v9 = vld [vmem:[#allocation6_spill] sm:$0xff] }
 0x514   : > { %v14307_v20 = vpop.permute.xlu1 %11222 }
 0x515   : > { %17226 = vst [vmem:[#allocation101_spill] sm:$0xff] %v14307_v20  ;;  %v14322_v20 = vpop.permute.xlu0 %11177 }
 0x517   : > { %3136 = vmax.xlane.f32.xlu1 %v3135_v41  ;;  %3127 = vmax.xlane.f32.xlu0 %v3126_v60 }
 0x518   : > { %v14315_v41 = vpop.permute.xlu1 %11232 }
 0x519   : > { %17230 = vst [vmem:[#allocation102_spill] sm:$0xff] %v14315_v41 }
 0x51b   : > { %3109 = vmax.xlane.f32.xlu0 %v3108_v56 }
 0x51c   : > { %v14317_v60 = vpop.permute.xlu1 %11242 }
 0x51d   : > { %17231 = vst [vmem:[#allocation103_spill] sm:$0xff] %v14317_v60 }
 0x528   : > { %11252 = vrot.lane.b32.xlu1 %v17223_v26, %s12359_s12 }
 0x52c   : > { %11257 = vrot.lane.b32.xlu1 %v17225_v48, %s12359_s12  ;;  %v3132_v48 = vsel %vm1488_vm2, %v14256_v17, -inf }
 0x530   : > { %4047 = vrot.lane.b32.xlu1 %v17227_v53, %s12359_s12 }
 0x531   : > { %11247 = vrot.lane.b32.xlu0 %v17228_v51, %s12359_s12  ;;  %v14326_v51 = vpop.permute.xlu0 %11187 }
 0x532   : > { %17233 = vst [vmem:[#allocation105_spill] sm:$0xff] %v14326_v51 }
 0x534   : > { %4049 = vrot.lane.b32.xlu1 %v17229_v9, %s12359_s12 }
 0x535   : > { %v14330_v60 = vpop.permute.xlu0 %11197 }
 0x536   : > { %17234 = vst [vmem:[#allocation106_spill] sm:$0xff] %v14330_v60 }
 0x537   : > { %v3047_v56 = vpop.xlane.xlu1 %3046 }
 0x538   : > { %v3139_v26 = vsub.f32 %v14096_v38, %v3047_v56 }
 0x539   : > { %v14332_v41 = vpop.permute.xlu0 %11227 }
 0x53a   : > { %v3172_v52 = vmul.f32 1.442695, %v3139_v26  ;;  %17235 = vst [vmem:[#allocation107_spill] sm:$0xff] %v14332_v41 }
 0x53c   : > { %11909 = vpow2.f32 %v3172_v52 }
 0x53d   : > { %v14334_v38 = vpop.permute.xlu0 %11237 }
 0x53e   : > { %17236 = vst [vmem:[#allocation108_spill] sm:$0xff] %v14334_v38 }
 0x546   : > { %v14324_v53 = vpop.eup %11909 }
 0x547   : > { %17232 = vst [vmem:[#allocation104_spill] sm:$0xff] %v14324_v53  ;;  %v3237_v9 = vsel %vm1488_vm2, %v14324_v53, 0.0 }
 0x550   : > { %3133 = vmax.xlane.f32.xlu0 %v3132_v48 }
 0x558   : > { %3238 = vadd.xlane.f32.xlu1 %v3237_v9 }
 0x56c   : > { %v3071_v52 = vpop.xlane.xlu0 %3070 }
 0x56d   : > { %v3147_v26 = vsub.f32 %v14114_v10, %v3071_v52 }
 0x56f   : > { %v3188_v56 = vmul.f32 1.442695, %v3147_v26 }
 0x570   : > { %v3077_v31 = vpop.xlane.xlu1 %3076  ;;  %v3044_v48 = vpop.xlane.xlu0 %3043 }
 0x571   : > { %11911 = vpow2.f32 %v3188_v56  ;;  %v3149_v55 = vsub.f32 %v14132_v47, %v3077_v31  ;;  %v3138_v37 = vsub.f32 %v14117_v24, %v3044_v48 }
 0x573   : > { %v3192_v51 = vmul.f32 1.442695, %v3149_v55  ;;  %v3170_v63 = vmul.f32 1.442695, %v3138_v37 }
 0x574   : > { %v3059_v9 = vpop.xlane.xlu1 %3058  ;;  %v3068_v53 = vpop.xlane.xlu0 %3067 }
 0x575   : > { %11913 = vpow2.f32 %v3192_v51  ;;  %v3143_v41 = vsub.f32 %v14135_v15, %v3059_v9  ;;  %v3146_v38 = vsub.f32 %v14138_v18, %v3068_v53 }
 0x576   : > { %11915 = vpow2.f32 %v3170_v63 }
 0x577   : > { %v3180_v60 = vmul.f32 1.442695, %v3143_v41  ;;  %v3186_v10 = vmul.f32 1.442695, %v3146_v38 }
 0x578   : > { %v3083_v52 = vpop.xlane.xlu1 %3082  ;;  %v3053_v26 = vpop.xlane.xlu0 %3052 }
 0x579   : > { %11917 = vpow2.f32 %v3180_v60  ;;  %v3151_v56 = vsub.f32 %v14148_v22, %v3083_v52  ;;  %v3141_v47 = vsub.f32 %v14145_v29, %v3053_v26 }
 0x57a   : > { %11919 = vpow2.f32 %v3186_v10 }
 0x57b   : > { %v14343_v24 = vpop.eup %11911  ;;  %v3196_v37 = vmul.f32 1.442695, %v3151_v56  ;;  %v3176_v55 = vmul.f32 1.442695, %v3141_v47 }
 0x57c   : > { %v3065_v31 = vpop.xlane.xlu1 %3064  ;;  %v3050_v51 = vpop.xlane.xlu0 %3049  ;;  %v3261_v18 = vsel %vm1488_vm2, %v14343_v24, 0.0 }
 0x57d   : > { %11921 = vpow2.f32 %v3196_v37  ;;  %v3140_v63 = vsub.f32 %v14165_v62, %v3050_v51  ;;  %3262 = vadd.xlane.f32.xlu1 %v3261_v18 }
 0x57e   : > { %11923 = vpow2.f32 %v3176_v55 }
 0x57f   : > { %v14348_v15 = vpop.eup %11913  ;;  %v3174_v22 = vmul.f32 1.442695, %v3140_v63 }
 0x580   : > { %v14350_v53 = vpop.eup %11915  ;;  %v3089_v29 = vpop.xlane.xlu1 %3088  ;;  %v3267_v60 = vsel %vm1488_vm2, %v14348_v15, 0.0 }
 0x581   : > { %v3074_v41 = vpop.xlane.xlu0 %3073  ;;  %v3153_v38 = vsub.f32 %v14178_v3, %v3089_v29  ;;  %3268 = vadd.xlane.f32.xlu1 %v3267_v60  ;;  %v3234_v62 = vsel %vm1488_vm2, %v14350_v53, 0.0  ;;  %11925 = vpow2.f32 %v3174_v22  ;;  %v3145_v29 = vsub.f32 %v14168_v42, %v3065_v31 }
 0x582   : > { %v3148_v48 = vsub.f32 %v14175_v30, %v3074_v41  ;;  %3235 = vadd.xlane.f32.xlu0 %v3234_v62 }
 0x583   : > { %v14358_v9 = vpop.eup %11917  ;;  %v3200_v10 = vmul.f32 1.442695, %v3153_v38  ;;  %v3184_v42 = vmul.f32 1.442695, %v3145_v29 }
 0x584   : > { %v3190_v52 = vmul.f32 1.442695, %v3148_v48  ;;  %v14360_v26 = vpop.eup %11919  ;;  %v3062_v56 = vpop.xlane.xlu1 %3061  ;;  %v3249_v37 = vsel %vm1488_vm2, %v14358_v9, 0.0 }
 0x585   : > { %v3056_v47 = vpop.xlane.xlu0 %3055  ;;  %11927 = vpow2.f32 %v3200_v10  ;;  %v3144_v30 = vsub.f32 %v14198_v34, %v3062_v56  ;;  %3250 = vadd.xlane.f32.xlu1 %v3249_v37  ;;  %v3258_v55 = vsel %vm1488_vm2, %v14360_v26, 0.0 }
 0x586   : > { %v3142_v3 = vsub.f32 %v14195_v27, %v3056_v47  ;;  %11929 = vpow2.f32 %v3190_v52  ;;  %3259 = vadd.xlane.f32.xlu0 %v3258_v55 }
 0x587   : > { %v14368_v51 = vpop.eup %11921  ;;  %v3182_v18 = vmul.f32 1.442695, %v3144_v30 }
 0x588   : > { %v3178_v63 = vmul.f32 1.442695, %v3142_v3  ;;  %v14370_v22 = vpop.eup %11923  ;;  %v3095_v60 = vpop.xlane.xlu1 %3094  ;;  %v3273_v34 = vsel %vm1488_vm2, %v14368_v51, 0.0 }
 0x589   : > { %v3080_v41 = vpop.xlane.xlu0 %3079  ;;  %11931 = vpow2.f32 %v3182_v18  ;;  %v3155_v38 = vsub.f32 %v14205_v1, %v3095_v60  ;;  %3274 = vadd.xlane.f32.xlu1 %v3273_v34  ;;  %v3243_v48 = vsel %vm1488_vm2, %v14370_v22, 0.0 }
 0x58a   : > { %v3150_v27 = vsub.f32 %v14208_v54, %v3080_v41  ;;  %11933 = vpow2.f32 %v3178_v63  ;;  %3244 = vadd.xlane.f32.xlu0 %v3243_v48 }
 0x58b   : > { %v3204_v10 = vmul.f32 1.442695, %v3155_v38  ;;  %v14379_v52 = vpop.eup %11925 }
 0x58c   : > { %v3194_v62 = vmul.f32 1.442695, %v3150_v27  ;;  %v3119_v56 = vpop.xlane.xlu1 %3118  ;;  %v3240_v1 = vsel %vm1488_vm2, %v14379_v52, 0.0 }
 0x58d   : > { %v3086_v31 = vpop.xlane.xlu0 %3085  ;;  %v3163_v54 = vsub.f32 %v14222_v44, %v3119_v56 }
 0x58e   : > { %11935 = vpow2.f32 %v3194_v62  ;;  %v3152_v47 = vsub.f32 %v14215_v57, %v3086_v31  ;;  %3241 = vadd.xlane.f32.xlu0 %v3240_v1 }
 0x58f   : > { %11937 = vpow2.f32 %v3204_v10  ;;  %v14385_v37 = vpop.eup %11927  ;;  %v3220_v30 = vmul.f32 1.442695, %v3163_v54 }
 0x590   : > { %v14387_v3 = vpop.eup %11929  ;;  %11939 = vpow2.f32 %v3184_v42  ;;  %v3198_v55 = vmul.f32 1.442695, %v3152_v47  ;;  %v3101_v18 = vpop.xlane.xlu1 %3100  ;;  %v3279_v29 = vsel %vm1488_vm2, %v14385_v37, 0.0 }
 0x591   : > { %v3092_v63 = vpop.xlane.xlu0 %3091  ;;  %3280 = vadd.xlane.f32.xlu1 %v3279_v29  ;;  %v3264_v44 = vsel %vm1488_vm2, %v14387_v3, 0.0  ;;  %11941 = vpow2.f32 %v3220_v30  ;;  %v3157_v31 = vsub.f32 %v14229_v36, %v3101_v18 }
 0x592   : > { %v3154_v57 = vsub.f32 %v14226_v59, %v3092_v63  ;;  %3265 = vadd.xlane.f32.xlu0 %v3264_v44  ;;  %11943 = vpow2.f32 %v3198_v55 }
 0x593   : > { %v14394_v41 = vpop.eup %11931  ;;  %v3208_v63 = vmul.f32 1.442695, %v3157_v31 }
 0x594   : > { %v14396_v60 = vpop.eup %11933  ;;  %v3202_v34 = vmul.f32 1.442695, %v3154_v57  ;;  %v3125_v27 = vpop.xlane.xlu1 %3124  ;;  %v3252_v48 = vsel %vm1488_vm2, %v14394_v41, 0.0 }
 0x595   : > { %v3116_v38 = vpop.xlane.xlu0 %3115  ;;  %3253 = vadd.xlane.f32.xlu1 %v3252_v48  ;;  %v3246_v59 = vsel %vm1488_vm2, %v14396_v60, 0.0  ;;  %v3165_v29 = vsub.f32 %v14239_v58, %v3125_v27 }
 0x596   : > { %v3162_v62 = vsub.f32 %v14236_v33, %v3116_v38  ;;  %3247 = vadd.xlane.f32.xlu0 %v3246_v59  ;;  %11945 = vpow2.f32 %v3202_v34 }
 0x597   : > { %v3224_v58 = vmul.f32 1.442695, %v3165_v29 }
 0x598   : > { %v14403_v10 = vpop.eup %11935  ;;  %v3218_v56 = vmul.f32 1.442695, %v3162_v62  ;;  %v3107_v47 = vpop.xlane.xlu1 %3106 }
 0x599   : > { %v14405_v42 = vpop.eup %11937  ;;  %v3098_v54 = vpop.xlane.xlu0 %3097  ;;  %v3270_v1 = vsel %vm1488_vm2, %v14403_v10, 0.0 }
 0x59a   : > { %v3285_v33 = vsel %vm1488_vm2, %v14405_v42, 0.0  ;;  %v14412_v30 = vpop.eup %11939  ;;  %3271 = vadd.xlane.f32.xlu0 %v3270_v1  ;;  %11947 = vpow2.f32 %v3218_v56  ;;  %v3156_v27 = vsub.f32 %v14246_v16, %v3098_v54  ;;  %v3159_v56 = vsub.f32 %v14249_v19, %v3107_v47 }
 0x59b   : > { %3286 = vadd.xlane.f32.xlu1 %v3285_v33  ;;  %v14414_v55 = vpop.eup %11941  ;;  %v3255_v38 = vsel %vm1488_vm2, %v14412_v30, 0.0  ;;  %11949 = vpow2.f32 %v3208_v63 }
 0x59c   : > { %v3131_v36 = vpop.xlane.xlu1 %3130  ;;  %v3309_v34 = vsel %vm1488_vm2, %v14414_v55, 0.0  ;;  %v14423_v48 = vpop.eup %11943  ;;  %v3206_v1 = vmul.f32 1.442695, %v3156_v27 }
 0x59d   : > { %v3122_v18 = vpop.xlane.xlu0 %3121  ;;  %v3167_v57 = vsub.f32 %v14262_v14, %v3131_v36 }
 0x59e   : > { %v3164_v44 = vsub.f32 %v14259_v12, %v3122_v18  ;;  %3256 = vadd.xlane.f32.xlu0 %v3255_v38  ;;  %v3276_v12 = vsel %vm1488_vm2, %v14423_v48, 0.0  ;;  %v3212_v18 = vmul.f32 1.442695, %v3159_v56 }
 0x59f   : > { %3310 = vadd.xlane.f32.xlu1 %v3309_v34  ;;  %v3228_v31 = vmul.f32 1.442695, %v3167_v57 }
 0x5a0   : > { %v3222_v62 = vmul.f32 1.442695, %v3164_v44  ;;  %v14428_v14 = vpop.eup %11945  ;;  %v3113_v29 = vpop.xlane.xlu1 %3112 }
 0x5a1   : > { %v3104_v59 = vpop.xlane.xlu0 %3103  ;;  %v3282_v16 = vsel %vm1488_vm2, %v14428_v14, 0.0  ;;  %v3161_v44 = vsub.f32 %v14272_v2, %v3113_v29 }
 0x5a2   : > { %11951 = vpow2.f32 %v3222_v62  ;;  %3277 = vadd.xlane.f32.xlu0 %v3276_v12  ;;  %v3158_v57 = vsub.f32 %v14269_v23, %v3104_v59 }
 0x5a3   : > { %11953 = vpow2.f32 %v3224_v58  ;;  %v3216_v59 = vmul.f32 1.442695, %v3161_v44 }
 0x5a4   : > { %11955 = vpow2.f32 %v3228_v31  ;;  %v14434_v54 = vpop.eup %11947  ;;  %v3210_v34 = vmul.f32 1.442695, %v3158_v57  ;;  %v3137_v38 = vpop.xlane.xlu1 %3136 }
 0x5a5   : > { %v3128_v33 = vpop.xlane.xlu0 %3127  ;;  %11957 = vpow2.f32 %v3206_v1  ;;  %v3306_v19 = vsel %vm1488_vm2, %v14434_v54, 0.0  ;;  %v14439_v47 = vpop.eup %11949  ;;  %v3169_v31 = vsub.f32 %v14282_v4, %v3137_v38 }
 0x5a6   : > { %v3166_v63 = vsub.f32 %v14279_v0, %v3128_v33  ;;  %3283 = vadd.xlane.f32.xlu0 %v3282_v16  ;;  %v3291_v62 = vsel %vm1488_vm2, %v14439_v47, 0.0 }
 0x5a8   : > { %v3226_v36 = vmul.f32 1.442695, %v3166_v63  ;;  %v3232_v63 = vmul.f32 1.442695, %v3169_v31 }
 0x5a9   : > { %v3110_v12 = vpop.xlane.xlu0 %3109 }
 0x5aa   : > { %11959 = vpow2.f32 %v3226_v36  ;;  %3307 = vadd.xlane.f32.xlu0 %v3306_v19  ;;  %v3160_v16 = vsub.f32 %v14289_v7, %v3110_v12  ;;  %v17239_v12 = vld [vmem:[#allocation11_spill] sm:$0xff] }
 0x5ab   : > { %11961 = vpow2.f32 %v3212_v18 }
 0x5ac   : > { %v14441_v0 = vpop.eup %11951  ;;  %11963 = vpow2.f32 %v3210_v34  ;;  %v3214_v18 = vmul.f32 1.442695, %v3160_v16 }
 0x5ad   : > { %v14446_v58 = vpop.eup %11953  ;;  %v3312_v23 = vsel %vm1488_vm2, %v14441_v0, 0.0  ;;  %11965 = vpow2.f32 %v3216_v59  ;;  %v17238_v59 = vld [vmem:[#allocation33_spill] sm:$0xff] }
 0x5ae   : > { %3292 = vadd.xlane.f32.xlu0 %v3291_v62  ;;  %v14450_v27 = vpop.eup %11955  ;;  %3313 = vadd.xlane.f32.xlu1 %v3312_v23  ;;  %v3315_v2 = vsel %vm1488_vm2, %v14446_v58, 0.0  ;;  %11967 = vpow2.f32 %v3232_v63  ;;  %v17241_v63 = vld [vmem:[#allocation24_spill] sm:$0xff] }
 0x5af   : > { %v14455_v56 = vpop.eup %11957  ;;  %v3321_v1 = vsel %vm1488_vm2, %v14450_v27, 0.0  ;;  %11969 = vpow2.f32 %v3214_v18  ;;  %v17243_v18 = vld [vmem:[#allocation16_spill] sm:$0xff] }
 0x5b0   : > { %v3288_v4 = vsel %vm1488_vm2, %v14455_v56, 0.0 }
 0x5b2   : > { %3316 = vadd.xlane.f32.xlu0 %v3315_v2  ;;  %3322 = vadd.xlane.f32.xlu1 %v3321_v1  ;;  %v17240_v2 = vld [vmem:[#allocation19_spill] sm:$0xff]  ;;  %v14496_v1 = vpop.permute.xlu0 %11247 }
 0x5b4   : > { %v14459_v33 = vpop.eup %11959 }
 0x5b5   : > { %v3318_v29 = vsel %vm1488_vm2, %v14459_v33, 0.0  ;;  %v14466_v36 = vpop.eup %11961 }
 0x5b6   : > { %3289 = vadd.xlane.f32.xlu0 %v3288_v4  ;;  %3319 = vadd.xlane.f32.xlu1 %v3318_v29  ;;  %v3297_v57 = vsel %vm1488_vm2, %v14466_v36, 0.0  ;;  %v14470_v19 = vpop.eup %11963  ;;  %v17242_v4 = vld [vmem:[#allocation39_spill] sm:$0xff] }
 0x5b7   : > { %v3294_v7 = vsel %vm1488_vm2, %v14470_v19, 0.0  ;;  %v14474_v44 = vpop.eup %11965 }
 0x5b8   : > { %v3303_v34 = vsel %vm1488_vm2, %v14474_v44, 0.0  ;;  %v14478_v38 = vpop.eup %11967 }
 0x5b9   : > { %17237 = vst [vmem:[#allocation109_spill] sm:$0xff] %v14478_v38  ;;  %v3327_v62 = vsel %vm1488_vm2, %v14478_v38, 0.0  ;;  %v14482_v23 = vpop.eup %11969  ;;  %v17247_v38 = vld [vmem:[#allocation105_spill] sm:$0xff] }
 0x5ba   : > { %3298 = vadd.xlane.f32.xlu0 %v3297_v57  ;;  %v3300_v31 = vsel %vm1488_vm2, %v14482_v23, 0.0 }
 0x5be   : > { %3295 = vadd.xlane.f32.xlu0 %v3294_v7  ;;  %v14507_v7 = vpop.permute.xlu1 %11252 }
 0x5c2   : > { %3304 = vadd.xlane.f32.xlu0 %v3303_v34  ;;  %v14513_v34 = vpop.permute.xlu1 %11257 }
 0x5c6   : > { %3328 = vadd.xlane.f32.xlu0 %v3327_v62 }
 0x5c7   : > { %11267 = vrot.lane.b32.xlu1 %v17238_v59, %s12359_s12 }
 0x5ca   : > { %3301 = vadd.xlane.f32.xlu0 %v3300_v31  ;;  %v14521_v31 = vpop.permute.xlu1 %4047 }
 0x5cb   : > { %11277 = vrot.lane.b32.xlu1 %v17239_v12, %s12359_s12 }
 0x5cf   : > { %4218 = vrot.lane.b32.xlu1 %v17240_v2, %s12359_s12  ;;  %v11190_v2 = vunpack.i.h.bf16 %v17247_v38 }
 0x5d3   : > { %4053 = vrot.lane.b32.xlu1 %v12880_v43, %s12359_s12 }
 0x5d7   : > { %11287 = vrot.lane.b32.xlu1 %v12814_v39, %s12359_s12  ;;  %v17245_v39 = vld [vmem:[#allocation104_spill] sm:$0xff] }
 0x5dd   : > { %v3134_v16 = vpop.xlane.xlu0 %3133 }
 0x5de   : > { %v3168_v29 = vsub.f32 %v14256_v17, %v3134_v16  ;;  %v14527_v16 = vpop.permute.xlu1 %4049 }
 0x5e0   : > { %11262 = vrot.lane.b32.xlu0 %v17241_v63, %s12359_s12  ;;  %v3230_v57 = vmul.f32 1.442695, %v3168_v29 }
 0x5e2   : > { %11971 = vpow2.f32 %v3230_v57 }
 0x5e4   : > { %11272 = vrot.lane.b32.xlu0 %v17242_v4, %s12359_s12 }
 0x5e5   : > { %v3239_v29 = vpop.xlane.xlu1 %3238 }
 0x5e6   : > { %11973 = vrcp.f32 %v3239_v29 }
 0x5e8   : > { %4216 = vrot.lane.b32.xlu0 %v17243_v18, %s12359_s12 }
 0x5ec   : > { %4051 = vrot.lane.b32.xlu0 %v12855_v25, %s12359_s12  ;;  %v14515_v62 = vpop.eup %11971 }
 0x5ed   : > { %17244 = vst [vmem:[#allocation33_spill] sm:$0xff] %v14515_v62  ;;  %v3324_v17 = vsel %vm1488_vm2, %v14515_v62, 0.0  ;;  %v17248_v62 = vld [vmem:[#allocation18_spill] sm:$0xff] }
 0x5f0   : > { %11282 = vrot.lane.b32.xlu0 %v12764_v6, %s12359_s12 }
 0x5f4   : > { %4055 = vrot.lane.b32.xlu0 %v12888_v49, %s12359_s12 }
 0x5f8   : > { %4059 = vrot.lane.b32.xlu0 %v12904_v8, %s12359_s12 }
 0x5fb   : > { %3325 = vadd.xlane.f32.xlu1 %v3324_v17 }
 0x5fc   : > { %11292 = vrot.lane.b32.xlu0 %v12834_v61, %s12359_s12 }
 0x600   : > { %4387 = vrot.lane.b32.xlu0 %v13167_v11, %s12359_s12 }
 0x604   : > { %4222 = vrot.lane.b32.xlu0 %v13003_v40, %s12359_s12  ;;  %v17246_v40 = vld [vmem:[#allocation56_spill] sm:$0xff] }
 0x608   : > { %4224 = vrot.lane.b32.xlu0 %v13005_v13, %s12359_s12 }
 0x60a   : > { %v3263_v57 = vpop.xlane.xlu1 %3262 }
 0x60c   : > { %4228 = vrot.lane.b32.xlu0 %v17126_v50, %s12359_s12  ;;  %4057 = vrot.lane.b32.xlu1 %v17134_v46, %s12359_s12 }
 0x60e   : > { %v3269_v17 = vpop.xlane.xlu1 %3268 }
 0x60f   : > { %v3236_v61 = vpop.xlane.xlu0 %3235 }
 0x610   : > { %11975 = vrcp.f32 %v3236_v61  ;;  %4554 = vrot.lane.b32.xlu0 %v17128_v21, %s12359_s12  ;;  %4061 = vrot.lane.b32.xlu1 %v17136_v35, %s12359_s12  ;;  %v11974_v61 = vpop.eup %11973  ;;  %v11179_v21 = vunpack.i.l.bf16 %v14322_v20 }
 0x611   : > { %11977 = vrcp.f32 %v3263_v57  ;;  %v11180_v57 = vunpack.i.h.bf16 %v14322_v20  ;;  %v17249_v20 = vld [vmem:[#allocation98_spill] sm:$0xff] }
 0x612   : > { %v3251_v13 = vpop.xlane.xlu1 %3250  ;;  %v11210_v12 = vunpack.i.h.bf16 %v17249_v20 }
 0x613   : > { %v3260_v11 = vpop.xlane.xlu0 %3259 }
 0x614   : > { %11979 = vrcp.f32 %v3260_v11  ;;  %4389 = vrot.lane.b32.xlu0 %v17131_v28, %s12359_s12  ;;  %4385 = vrot.lane.b32.xlu1 %v17138_v32, %s12359_s12  ;;  %v3333_v32 = vmul.f32 %v11974_v61, %v17245_v39  ;;  %v10620_v39 = vpack.c.bf16 %v11180_v57, %v11179_v21  ;;  %v17250_v61 = vld [vmem:[#allocation75_spill] sm:$0xff]  ;;  %v17254_v57 = vld [vmem:[#allocation100_spill] sm:$0xff] }
 0x616   : > { %v3275_v11 = vpop.xlane.xlu1 %3274 }
 0x617   : > { %v3245_v50 = vpop.xlane.xlu0 %3244 }
 0x618   : > { %4393 = vrot.lane.b32.xlu0 %v17133_v45, %s12359_s12  ;;  %4220 = vrot.lane.b32.xlu1 %v17141_v5, %s12359_s12  ;;  %11981 = vrcp.f32 %v3245_v50  ;;  %v11189_v5 = vunpack.i.l.bf16 %v17247_v38 }
 0x61a   : > { %v11976_v29 = vpop.eup %11975  ;;  %v10624_v21 = vpack.c.bf16 %v11190_v2, %v11189_v5  ;;  %v17257_v5 = vld [vmem:[#allocation37_spill] sm:$0xff] }
 0x61b   : > { %v3242_v6 = vpop.xlane.xlu0 %3241  ;;  %v3331_v28 = vmul.f32 %v11976_v29, %v14350_v53  ;;  %v11978_v45 = vpop.eup %11977  ;;  %v11209_v53 = vunpack.i.l.bf16 %v17249_v20 }
 0x61c   : > { %11983 = vrcp.f32 %v3242_v6  ;;  %4397 = vrot.lane.b32.xlu0 %v17246_v40, %s12359_s12  ;;  %11297 = vrot.lane.b32.xlu1 %v17248_v62, %s12359_s12  ;;  %v3349_v62 = vmul.f32 %v11978_v45, %v14343_v24  ;;  %v17252_v40 = vld [vmem:[#allocation106_spill] sm:$0xff] }
 0x61d   : > { %9640 = vmatprep.mubr.msk.f32.mxu0 %vm1488_vm2, %v3331_v28  ;;  %11985 = vrcp.f32 %v3269_v17  ;;  %v17251_v28 = vld [vmem:[#allocation48_spill] sm:$0xff]  ;;  %v11200_v20 = vunpack.i.h.bf16 %v17252_v40  ;;  %v11199_v17 = vunpack.i.l.bf16 %v17252_v40  ;;  %v10636_v24 = vpack.c.bf16 %v11210_v12, %v11209_v53  ;;  %v17256_v40 = vld [vmem:[#allocation53_spill] sm:$0xff] }
 0x61e   : > { %v11980_v50 = vpop.eup %11979  ;;  %9641 = vmatmul.mubr.msk.f32.vlgmr.msra.gmra.mrb[84].mxu0 %vm1488_vm2, %v3333_v32  ;;  %v14563_v6 = vpop.xlane.xlu1 %3280  ;;  %v17253_v32 = vld [vmem:[#allocation32_spill] sm:$0xff] }
 0x61f   : > { %10619 = vmatpush3.bf16.msra.mxu0 %v17250_v61  ;;  %v3266_v29 = vpop.xlane.xlu0 %3265  ;;  %v3347_v38 = vmul.f32 %v11980_v50, %v14360_v26  ;;  %v11220_v61 = vunpack.i.h.bf16 %v17254_v57  ;;  %v11219_v26 = vunpack.i.l.bf16 %v17254_v57  ;;  %v17255_v50 = vld [vmem:[#allocation82_spill] sm:$0xff]  ;;  %v10628_v12 = vpack.c.bf16 %v11200_v20, %v11199_v17 }
 0x620   : > { %10621 = vmatprep.subr.bf16.mxu0 %v10620_v39  ;;  %11987 = vrcp.f32 %v3266_v29  ;;  %4558 = vrot.lane.b32.xlu0 %v17251_v28, %s12359_s12  ;;  %v17261_v20 = vld [vmem:[#allocation46_spill] sm:$0xff] }
 0x621   : > { %4226 = vrot.lane.b32.xlu1 %v17253_v32, %s12359_s12  ;;  %9668 = vmatprep.mubr.msk.f32.mxu1 %vm1488_vm2, %v3347_v38  ;;  %11989 = vrcp.f32 %v3251_v13  ;;  %v10640_v53 = vpack.c.bf16 %v11220_v61, %v11219_v26  ;;  %v17262_v26 = vld [vmem:[#allocation108_spill] sm:$0xff] }
 0x622   : > { %9669 = vmatmul.mubr.msk.f32.vlgmr.msra.gmra.mrb[108].mxu1 %vm1488_vm2, %v3349_v62  ;;  %v3254_v45 = vpop.xlane.xlu1 %3253  ;;  %v11982_v38 = vpop.eup %11981  ;;  %v17258_v62 = vld [vmem:[#allocation101_spill] sm:$0xff] }
 0x623   : > { %10623 = vmatpush3.bf16.msra.mxu0 %v10620_v39  ;;  %10635 = vmatpush3.bf16.msra.mxu1 %v17255_v50  ;;  %v3248_v29 = vpop.xlane.xlu0 %3247  ;;  %v11225_v57 = vunpack.i.h.bf16 %v17258_v62  ;;  %v11224_v13 = vunpack.i.l.bf16 %v17258_v62  ;;  %v17259_v39 = vld [vmem:[#allocation99_spill] sm:$0xff]  ;;  %v3337_v17 = vmul.f32 %v11982_v38, %v14370_v22  ;;  %v17264_v38 = vld [vmem:[#allocation29_spill] sm:$0xff] }
 0x624   : > { %10625 = vmatprep.subr.bf16.mxu0 %v10624_v21  ;;  %10637 = vmatprep.subr.bf16.mxu1 %v10636_v24  ;;  %11991 = vrcp.f32 %v3248_v29  ;;  %v11215_v50 = vunpack.i.h.bf16 %v17259_v39  ;;  %v11214_v32 = vunpack.i.l.bf16 %v17259_v39 }
 0x625   : > { %11993 = vrcp.f32 %v3254_v45  ;;  %4562 = vrot.lane.b32.xlu0 %v17256_v40, %s12359_s12  ;;  %4230 = vrot.lane.b32.xlu1 %v17257_v5, %s12359_s12  ;;  %v17260_v40 = vld [vmem:[#allocation58_spill] sm:$0xff] }
 0x626   : > { %v11984_v2 = vpop.eup %11983  ;;  %11995 = vrcp.f32 %v3275_v11  ;;  %v14596_v11 = vpack.c.bf16 %v11215_v50, %v11214_v32 }
 0x627   : > { %10627 = vmatpush3.bf16.msra.mxu0 %v10624_v21  ;;  %10639 = vmatpush3.bf16.msra.mxu1 %v10636_v24  ;;  %v3272_v45 = vpop.xlane.xlu0 %3271  ;;  %v3335_v29 = vmul.f32 %v11984_v2, %v14379_v52  ;;  %v11986_v5 = vpop.eup %11985  ;;  %v10644_v21 = vpack.c.bf16 %v11225_v57, %v11224_v13  ;;  %v11240_v24 = vunpack.i.h.bf16 %v17262_v26  ;;  %v11239_v52 = vunpack.i.l.bf16 %v17262_v26 }
 0x628   : > { %10629 = vmatprep.subr.bf16.mxu0 %v10628_v12  ;;  %10641 = vmatprep.subr.bf16.mxu1 %v10640_v53  ;;  %11997 = vrcp.f32 %v3272_v45  ;;  %v3353_v32 = vmul.f32 %v11986_v5, %v14348_v15  ;;  %v3287_v13 = vpop.xlane.xlu1 %3286  ;;  %v17266_v15 = vld [vmem:[#allocation36_spill] sm:$0xff] }
 0x629   : > { %4566 = vrot.lane.b32.xlu0 %v17260_v40, %s12359_s12  ;;  %4556 = vrot.lane.b32.xlu1 %v17261_v20, %s12359_s12 }
 0x62a   : > { %v11988_v61 = vpop.eup %11987  ;;  %9643 = vmatprep.mubr.msk.f32.mxu0 %vm1488_vm2, %v3335_v29 }
 0x62b   : > { %9644 = vmatmul.mubr.msk.f32.gmra.mrb[86].mxu0 %vm1488_vm2, %v3337_v17  ;;  %10643 = vmatpush3.bf16.msra.mxu1 %v10640_v53  ;;  %v3257_v2 = vpop.xlane.xlu0 %3256  ;;  %v3351_v62 = vmul.f32 %v11988_v61, %v14387_v3  ;;  %v11990_v39 = vpop.eup %11989  ;;  %v17265_v53 = vld [vmem:[#allocation49_spill] sm:$0xff]  ;;  %v17267_v17 = vld [vmem:[#allocation54_spill] sm:$0xff] }
 0x62c   : > { %10631 = vmatpush3.bf16.msra.mxu0 %v10628_v12  ;;  %10645 = vmatprep.subr.bf16.mxu1 %v10644_v21  ;;  %11999 = vrcp.f32 %v3257_v2  ;;  %v14609_v12 = vpack.c.bf16 %v11240_v24, %v11239_v52  ;;  %v3341_v5 = vmul.f32 %v11990_v39, %v14358_v9  ;;  %v17268_v9 = vld [vmem:[#allocation45_spill] sm:$0xff]  ;;  %v17269_v52 = vld [vmem:[#allocation59_spill] sm:$0xff] }
 0x62d   : > { %10650 = vmatprep.subr.msk.bf16.mxu0 %vm12752_vm1, %v14596_v11  ;;  %11307 = vrot.lane.b32.xlu0 %v17264_v38, %s12359_s12  ;;  %12001 = vrcp.f32 %v14563_v6 }
 0x62e   : > { %v11992_v57 = vpop.eup %11991  ;;  %4391 = vrot.lane.b32.xlu1 %v17265_v53, %s12359_s12  ;;  %9671 = vmatprep.mubr.msk.f32.mxu1 %vm1488_vm2, %v3351_v62 }
 0x62f   : > { %v11994_v3 = vpop.eup %11993  ;;  %9672 = vmatmul.mubr.msk.f32.gmra.mrb[110].mxu1 %vm1488_vm2, %v3353_v32  ;;  %v3278_v50 = vpop.xlane.xlu0 %3277  ;;  %v3339_v45 = vmul.f32 %v11992_v57, %v14396_v60 }
 0x630   : > { %10647 = vmatpush3.bf16.msra.mxu1 %v10644_v21  ;;  %12003 = vrcp.f32 %v3278_v50  ;;  %v11996_v29 = vpop.eup %11995  ;;  %v3343_v6 = vmul.f32 %v11994_v3, %v14394_v41  ;;  %v3311_v21 = vpop.xlane.xlu1 %3310 }
 0x631   : > { %10674 = vmatprep.subr.msk.bf16.mxu1 %vm12752_vm1, %v14609_v12  ;;  %11317 = vrot.lane.b32.xlu0 %v17266_v15, %s12359_s12  ;;  %12005 = vrcp.f32 %v3287_v13  ;;  %v3357_v24 = vmul.f32 %v11996_v29, %v14368_v51  ;;  %v17271_v51 = vld [vmem:[#allocation51_spill] sm:$0xff] }
 0x632   : > { %4395 = vrot.lane.b32.xlu1 %v17267_v17, %s12359_s12  ;;  %9646 = vmatprep.mubr.msk.f32.mxu0 %vm1488_vm2, %v3339_v45  ;;  %v11998_v60 = vpop.eup %11997  ;;  %v17273_v29 = vld [vmem:[#allocation107_spill] sm:$0xff] }
 0x633   : > { %9647 = vmatmul.mubr.msk.f32.gmra.mrb[88].mxu0 %vm1488_vm2, %v3341_v5  ;;  %v3284_v61 = vpop.xlane.xlu0 %3283  ;;  %v3355_v26 = vmul.f32 %v11998_v60, %v14403_v10  ;;  %v17270_v10 = vld [vmem:[#allocation50_spill] sm:$0xff]  ;;  %v11229_v60 = vunpack.i.l.bf16 %v17273_v29 }
 0x634   : > { %9649 = vmatprep.mubr.msk.f32.mxu0 %vm1488_vm2, %v3343_v6  ;;  %12007 = vrcp.f32 %v3284_v61  ;;  %v11230_v6 = vunpack.i.h.bf16 %v17273_v29  ;;  %v17274_v61 = vld [vmem:[#allocation57_spill] sm:$0xff] }
 0x635   : > { %11327 = vrot.lane.b32.xlu0 %v17268_v9, %s12359_s12  ;;  %9674 = vmatprep.mubr.msk.f32.mxu1 %vm1488_vm2, %v3355_v26  ;;  %12009 = vrcp.f32 %v3311_v21 }
 0x636   : > { %4399 = vrot.lane.b32.xlu1 %v17269_v52, %s12359_s12  ;;  %v12000_v41 = vpop.eup %11999  ;;  %9675 = vmatmul.mubr.msk.f32.gmra.mrb[112].mxu1 %vm1488_vm2, %v3357_v24 }
 0x637   : > { %v3308_v2 = vpop.xlane.xlu0 %3307  ;;  %v3345_v62 = vmul.f32 %v12000_v41, %v14412_v30  ;;  %v12002_v39 = vpop.eup %12001  ;;  %v17272_v30 = vld [vmem:[#allocation55_spill] sm:$0xff]  ;;  %v17275_v41 = vld [vmem:[#allocation60_spill] sm:$0xff] }
 0x638   : > { %12011 = vrcp.f32 %v3308_v2  ;;  %v3361_v50 = vmul.f32 %v12002_v39, %v14385_v37  ;;  %v11250_v39 = vunpack.i.h.bf16 %v14496_v1 }
 0x639   : > { %11337 = vrot.lane.b32.xlu0 %v17270_v10, %s12359_s12  ;;  %9650 = vmatmul.mubr.msk.f32.gmra.mrb[90].mxu0 %vm1488_vm2, %v3345_v62  ;;  %v10654_v62 = vpack.c.bf16 %v11230_v6, %v11229_v60  ;;  %v17280_v60 = vld [vmem:[#allocation68_spill] sm:$0xff] }
 0x63a   : > { %v12004_v32 = vpop.eup %12003  ;;  %4560 = vrot.lane.b32.xlu1 %v17271_v51, %s12359_s12 }
 0x63b   : > { %v3293_v57 = vpop.xlane.xlu0 %3292  ;;  %v3359_v13 = vmul.f32 %v12004_v32, %v14423_v48  ;;  %v3314_v3 = vpop.xlane.xlu1 %3313  ;;  %v11249_v32 = vunpack.i.l.bf16 %v14496_v1  ;;  %v17277_v1 = vld [vmem:[#allocation64_spill] sm:$0xff] }
 0x63c   : > { %v12006_v45 = vpop.eup %12005  ;;  %12013 = vrcp.f32 %v3314_v3 }
 0x63d   : > { %11347 = vrot.lane.b32.xlu0 %v17272_v30, %s12359_s12  ;;  %9677 = vmatprep.mubr.msk.f32.mxu1 %vm1488_vm2, %v3359_v13  ;;  %v3365_v21 = vmul.f32 %v12006_v45, %v14405_v42  ;;  %v17276_v13 = vld [vmem:[#allocation61_spill] sm:$0xff] }
 0x63e   : > { %v12008_v5 = vpop.eup %12007  ;;  %4564 = vrot.lane.b32.xlu1 %v17274_v61, %s12359_s12  ;;  %9678 = vmatmul.mubr.msk.f32.gmra.mrb[114].mxu1 %vm1488_vm2, %v3361_v50 }
 0x63f   : > { %v3317_v48 = vpop.xlane.xlu0 %3316  ;;  %v3363_v37 = vmul.f32 %v12008_v5, %v14428_v14  ;;  %v3323_v26 = vpop.xlane.xlu1 %3322  ;;  %v10678_v5 = vpack.c.bf16 %v11250_v39, %v11249_v32 }
 0x640   : > { %12015 = vrcp.f32 %v3317_v48  ;;  %v12010_v24 = vpop.eup %12009 }
 0x641   : > { %11357 = vrot.lane.b32.xlu0 %v17275_v41, %s12359_s12  ;;  %9696 = vmatprep.mubr.msk.f32.mxu0 %vm1488_vm2, %v3363_v37  ;;  %12017 = vrcp.f32 %v3293_v57  ;;  %v3381_v3 = vmul.f32 %v12010_v24, %v14414_v55  ;;  %v17278_v57 = vld [vmem:[#allocation102_spill] sm:$0xff] }
 0x642   : > { %v12012_v2 = vpop.eup %12011  ;;  %4568 = vrot.lane.b32.xlu1 %v17276_v13, %s12359_s12  ;;  %9697 = vmatmul.mubr.msk.f32.vlgmr.msra.gmra.mrb[92].mxu0 %vm1488_vm2, %v3365_v21  ;;  %12019 = vrcp.f32 %v3323_v26  ;;  %v11235_v45 = vunpack.i.h.bf16 %v17278_v57  ;;  %v11255_v21 = vunpack.i.h.bf16 %v14507_v7  ;;  %v11254_v26 = vunpack.i.l.bf16 %v14507_v7  ;;  %v17281_v24 = vld [vmem:[#allocation34_spill] sm:$0xff]  ;;  %v17282_v7 = vld [vmem:[#allocation12_spill] sm:$0xff] }
 0x643   : > { %10653 = vmatpush3.bf16.xpose.msk.msra.mxu0 %vm12752_vm1, %v14596_v11  ;;  %v3290_v42 = vpop.xlane.xlu0 %3289  ;;  %v3379_v14 = vmul.f32 %v12012_v2, %v14434_v54  ;;  %v3320_v50 = vpop.xlane.xlu1 %3319  ;;  %v11234_v11 = vunpack.i.l.bf16 %v17278_v57  ;;  %v17279_v54 = vld [vmem:[#allocation27_spill] sm:$0xff] }
 0x644   : > { %10656 = vmatprep.subr.msk.bf16.mxu0 %vm12752_vm1, %v10654_v62  ;;  %12021 = vrcp.f32 %v3290_v42  ;;  %v10684_v42 = vpack.c.bf16 %v11255_v21, %v11254_v26  ;;  %v17288_v26 = vld [vmem:[#allocation42_spill] sm:$0xff] }
 0x645   : > { %12023 = vrcp.f32 %v3320_v50  ;;  %11367 = vrot.lane.b32.xlu0 %v17277_v1, %s12359_s12  ;;  %9724 = vmatprep.mubr.msk.f32.mxu1 %vm1488_vm2, %v3379_v14  ;;  %v10660_v37 = vpack.c.bf16 %v11235_v45, %v11234_v11  ;;  %v17283_v14 = vld [vmem:[#allocation40_spill] sm:$0xff] }
 0x646   : > { %11302 = vrot.lane.b32.xlu1 %v17279_v54, %s12359_s12  ;;  %9725 = vmatmul.mubr.msk.f32.vlgmr.msra.gmra.mrb[116].mxu1 %vm1488_vm2, %v3381_v3  ;;  %v12014_v55 = vpop.eup %12013  ;;  %v17284_v3 = vld [vmem:[#allocation103_spill] sm:$0xff] }
 0x647   : > { %10677 = vmatpush3.bf16.xpose.msk.msra.mxu1 %vm12752_vm1, %v14609_v12  ;;  %v3299_v29 = vpop.xlane.xlu0 %3298  ;;  %v3383_v6 = vmul.f32 %v12014_v55, %v14441_v0  ;;  %v11244_v50 = vunpack.i.l.bf16 %v17284_v3  ;;  %v17285_v55 = vld [vmem:[#allocation14_spill] sm:$0xff] }
 0x648   : > { %10680 = vmatprep.subr.msk.bf16.mxu1 %vm12752_vm1, %v10678_v5  ;;  %12025 = vrcp.f32 %v3299_v29 }
 0x649   : > { %11382 = vrot.lane.b32.xlu0 %v17280_v60, %s12359_s12  ;;  %9727 = vmatprep.mubr.msk.f32.mxu1 %vm1488_vm2, %v3383_v6 }
 0x64a   : > { %v12016_v48 = vpop.eup %12015  ;;  %11312 = vrot.lane.b32.xlu1 %v17281_v24, %s12359_s12 }
 0x64b   : > { %10659 = vmatpush3.bf16.xpose.msk.msra.mxu0 %vm12752_vm1, %v10654_v62  ;;  %v3296_v12 = vpop.xlane.xlu0 %3295  ;;  %v3385_v0 = vmul.f32 %v12016_v48, %v14446_v58  ;;  %v12018_v2 = vpop.eup %12017  ;;  %v11245_v58 = vunpack.i.h.bf16 %v17284_v3  ;;  %v17286_v48 = vld [vmem:[#allocation41_spill] sm:$0xff] }
 0x64c   : > { %10662 = vmatprep.subr.msk.bf16.mxu0 %vm12752_vm1, %v10660_v37  ;;  %12027 = vrcp.f32 %v3296_v12  ;;  %v12020_v39 = vpop.eup %12019  ;;  %v3369_v29 = vmul.f32 %v12018_v2, %v14439_v47  ;;  %v17287_v47 = vld [vmem:[#allocation5_spill] sm:$0xff]  ;;  %v11260_v12 = vunpack.i.h.bf16 %v14513_v34 }
 0x64d   : > { %11392 = vrot.lane.b32.xlu0 %v17282_v7, %s12360_s16  ;;  %9728 = vmatmul.mubr.msk.f32.gmra.mrb[118].mxu1 %vm1488_vm2, %v3385_v0  ;;  %v3389_v6 = vmul.f32 %v12020_v39, %v14450_v27  ;;  %v11259_v0 = vunpack.i.l.bf16 %v14513_v34 }
 0x64e   : > { %v12022_v32 = vpop.eup %12021  ;;  %11322 = vrot.lane.b32.xlu1 %v17283_v14, %s12359_s12 }
 0x64f   : > { %v12024_v62 = vpop.eup %12023  ;;  %10683 = vmatpush3.bf16.xpose.msk.msra.mxu1 %vm12752_vm1, %v10678_v5  ;;  %v3305_v57 = vpop.xlane.xlu0 %3304  ;;  %v3367_v45 = vmul.f32 %v12022_v32, %v14455_v56  ;;  %v10666_v56 = vpack.c.bf16 %v11245_v58, %v11244_v50  ;;  %v17289_v32 = vld [vmem:[#allocation43_spill] sm:$0xff]  ;;  %v10696_v34 = vpack.c.bf16 %v11260_v12, %v11259_v0  ;;  %v17290_v58 = vld [vmem:[#allocation62_spill] sm:$0xff]  ;;  %v17294_v12 = vld [vmem:[#allocation17_spill] sm:$0xff] }
 0x650   : > { %10686 = vmatprep.subr.msk.bf16.mxu1 %vm12752_vm1, %v10684_v42  ;;  %v3387_v11 = vmul.f32 %v12024_v62, %v14459_v33  ;;  %v11268_v5 = vpop.permute.xlu1 %11267  ;;  %12029 = vrcp.f32 %v3305_v57 }
 0x651   : > { %11402 = vrot.lane.b32.xlu0 %v17285_v55, %s12360_s16  ;;  %9699 = vmatprep.mubr.msk.f32.mxu0 %vm1488_vm2, %v3367_v45 }
 0x652   : > { %11332 = vrot.lane.b32.xlu1 %v17286_v48, %s12359_s12  ;;  %9730 = vmatprep.mubr.msk.f32.mxu1 %vm1488_vm2, %v3387_v11  ;;  %v12026_v21 = vpop.eup %12025 }
 0x653   : > { %9700 = vmatmul.mubr.msk.f32.gmra.mrb[94].mxu0 %vm1488_vm2, %v3369_v29  ;;  %9731 = vmatmul.mubr.msk.f32.gmra.mrb[120].mxu1 %vm1488_vm2, %v3389_v6  ;;  %v14716_v33 = vpop.xlane.xlu0 %3328  ;;  %v3373_v39 = vmul.f32 %v12026_v21, %v14466_v36  ;;  %v17292_v21 = vld [vmem:[#allocation66_spill] sm:$0xff] }
 0x654   : > { %10665 = vmatpush3.bf16.xpose.msk.msra.mxu0 %vm12752_vm1, %v10660_v37  ;;  %v11278_v7 = vpop.permute.xlu1 %11277 }
 0x655   : > { %10668 = vmatprep.subr.msk.bf16.mxu0 %vm12752_vm1, %v10666_v56  ;;  %5696 = vrot.lane.b32.xlu0 %v17287_v47, %s12360_s16  ;;  %v11279_v3 = vunpack.i.l.bf16 %v11278_v7 }
 0x656   : > { %v12028_v27 = vpop.eup %12027  ;;  %11342 = vrot.lane.b32.xlu1 %v17288_v26, %s12359_s12 }
 0x657   : > { %10689 = vmatpush3.bf16.xpose.msk.msra.mxu1 %vm12752_vm1, %v10684_v42  ;;  %v3302_v37 = vpop.xlane.xlu0 %3301  ;;  %v3371_v2 = vmul.f32 %v12028_v27, %v14470_v19  ;;  %v11280_v42 = vunpack.i.h.bf16 %v11278_v7  ;;  %v17296_v7 = vld [vmem:[#allocation23_spill] sm:$0xff] }
 0x658   : > { %12031 = vrcp.f32 %v3302_v37  ;;  %v14769_v47 = vpop.permute.xlu1 %4218  ;;  %v17295_v37 = vld [vmem:[#allocation21_spill] sm:$0xff] }
 0x659   : > { %5700 = vrot.lane.b32.xlu0 %v12855_v25, %s12360_s16  ;;  %9702 = vmatprep.mubr.msk.f32.mxu0 %vm1488_vm2, %v3371_v2  ;;  %v14746_v57 = vpack.c.bf16 %v11280_v42, %v11279_v3  ;;  %v17297_v42 = vld [vmem:[#allocation26_spill] sm:$0xff]  ;;  %12033 = vrcp.f32 %v14716_v33 }
 0x65a   : > { %11352 = vrot.lane.b32.xlu1 %v17289_v32, %s12359_s12  ;;  %9703 = vmatmul.mubr.msk.f32.gmra.mrb[96].mxu0 %vm1488_vm2, %v3373_v39  ;;  %v12030_v45 = vpop.eup %12029 }
 0x65b   : > { %v11263_v62 = vpop.permute.xlu0 %11262  ;;  %v3377_v6 = vmul.f32 %v12030_v45, %v14474_v44 }
 0x65c   : > { %10671 = vmatpush3.bf16.xpose.msk.msra.mxu0 %vm12752_vm1, %v10666_v56  ;;  %v11265_v19 = vunpack.i.h.bf16 %v11263_v62  ;;  %v11264_v36 = vunpack.i.l.bf16 %v11263_v62  ;;  %v11269_v56 = vunpack.i.l.bf16 %v11268_v5 }
 0x65d   : > { %10698 = vmatprep.subr.msk.bf16.mxu0 %vm12752_vm1, %v10696_v34  ;;  %11422 = vrot.lane.b32.xlu0 %v17241_v63, %s12360_s16  ;;  %v17291_v63 = vld [vmem:[#allocation8_spill] sm:$0xff] }
 0x65e   : > { %v10690_v25 = vpack.c.bf16 %v11265_v19, %v11264_v36  ;;  %11362 = vrot.lane.b32.xlu1 %v17290_v58, %s12359_s12  ;;  %v17298_v19 = vld [vmem:[#allocation6_spill] sm:$0xff] }
 0x65f   : > { %v11273_v50 = vpop.permute.xlu0 %11272 }
 0x660   : > { %10692 = vmatprep.subr.msk.bf16.mxu1 %vm12752_vm1, %v10690_v25  ;;  %v11274_v27 = vunpack.i.l.bf16 %v11273_v50 }
 0x661   : > { %5704 = vrot.lane.b32.xlu0 %v12888_v49, %s12360_s16  ;;  %10695 = vmatpush3.bf16.xpose.msk.msra.mxu1 %vm12752_vm1, %v10690_v25  ;;  %v11270_v49 = vunpack.i.h.bf16 %v11268_v5 }
 0x662   : > { %v12032_v11 = vpop.eup %12031  ;;  %11372 = vrot.lane.b32.xlu1 %v17291_v63, %s12360_s16  ;;  %10722 = vmatprep.subr.msk.bf16.mxu1 %vm12752_vm1, %v14746_v57 }
 0x663   : > { %v14759_v55 = vpop.permute.xlu0 %4216  ;;  %v3375_v29 = vmul.f32 %v12032_v11, %v14482_v23  ;;  %v10702_v44 = vpack.c.bf16 %v11270_v49, %v11269_v56  ;;  %v12034_v33 = vpop.eup %12033  ;;  %v17300_v49 = vld [vmem:[#allocation33_spill] sm:$0xff] }
 0x665   : > { %5708 = vrot.lane.b32.xlu0 %v12904_v8, %s12360_s16  ;;  %9705 = vmatprep.mubr.msk.f32.mxu0 %vm1488_vm2, %v3375_v29  ;;  %v17293_v8 = vld [vmem:[#allocation10_spill] sm:$0xff] }
 0x666   : > { %11377 = vrot.lane.b32.xlu1 %v17292_v21, %s12359_s12  ;;  %9706 = vmatmul.mubr.msk.f32.gmra.mrb[98].mxu0 %vm1488_vm2, %v3377_v6 }
 0x667   : > { %9752 = vmatprep.mubr.msk.f32.mxu0 %vm875_vm0, %v14521_v31  ;;  %v4052_v23 = vpop.permute.xlu0 %4051  ;;  %v4054_v31 = vpop.permute.xlu1 %4053 }
 0x669   : > { %11432 = vrot.lane.b32.xlu0 %v17242_v4, %s12360_s16  ;;  %v11275_v4 = vunpack.i.h.bf16 %v11273_v50 }
 0x66a   : > { %11387 = vrot.lane.b32.xlu1 %v17293_v8, %s12360_s16  ;;  %9753 = vmatmul.mubr.msk.f32.vlgmr.msra.gmra.mrb[100].mxu0 %vm875_vm0, %v14527_v16 }
 0x66b   : > { %10701 = vmatpush3.bf16.xpose.msk.msra.mxu0 %vm12752_vm1, %v10696_v34  ;;  %9755 = vmatprep.mubr.msk.f32.mxu0 %vm875_vm0, %v4052_v23  ;;  %v11283_v5 = vpop.permute.xlu0 %11282  ;;  %v10708_v0 = vpack.c.bf16 %v11275_v4, %v11274_v27  ;;  %v11288_v25 = vpop.permute.xlu1 %11287  ;;  %v17301_v23 = vld [vmem:[#allocation19_spill] sm:$0xff] }
 0x66c   : > { %10704 = vmatprep.subr.msk.bf16.mxu0 %vm12752_vm1, %v10702_v44  ;;  %v11284_v39 = vunpack.i.l.bf16 %v11283_v5 }
 0x66d   : > { %5865 = vrot.lane.b32.xlu0 %v17243_v18, %s12360_s16  ;;  %v11285_v18 = vunpack.i.h.bf16 %v11283_v5  ;;  %v11290_v5 = vunpack.i.h.bf16 %v11288_v25 }
 0x66e   : > { %11397 = vrot.lane.b32.xlu1 %v17294_v12, %s12360_s16  ;;  %9756 = vmatmul.mubr.msk.f32.gmra.mrb[102].mxu0 %vm875_vm0, %v4054_v31  ;;  %v11289_v31 = vunpack.i.l.bf16 %v11288_v25 }
 0x66f   : > { %v4056_v16 = vpop.permute.xlu0 %4055  ;;  %v10714_v62 = vpack.c.bf16 %v11285_v18, %v11284_v39 }
 0x670   : > { %9758 = vmatprep.mubr.msk.f32.mxu0 %vm875_vm0, %v4056_v16  ;;  %v10726_v27 = vpack.c.bf16 %v11290_v5, %v11289_v31 }
 0x672   : > { %11407 = vrot.lane.b32.xlu1 %v17295_v37, %s12360_s16 }
 0x673   : > { %10707 = vmatpush3.bf16.xpose.msk.msra.mxu0 %vm12752_vm1, %v10702_v44  ;;  %v4060_v2 = vpop.permute.xlu0 %4059 }
 0x674   : > { %10710 = vmatprep.subr.msk.bf16.mxu0 %vm12752_vm1, %v10708_v0 }
 0x676   : > { %11412 = vrot.lane.b32.xlu1 %v17296_v7, %s12360_s16 }
 0x677   : > { %v11293_v34 = vpop.permute.xlu0 %11292 }
 0x678   : > { %v11295_v16 = vunpack.i.h.bf16 %v11293_v34 }
 0x67a   : > { %11417 = vrot.lane.b32.xlu1 %v17297_v42, %s12360_s16 }
 0x67b   : > { %10713 = vmatpush3.bf16.xpose.msk.msra.mxu0 %vm12752_vm1, %v10708_v0  ;;  %v4388_v3 = vpop.permute.xlu0 %4387  ;;  %v11294_v0 = vunpack.i.l.bf16 %v11293_v34 }
 0x67c   : > { %10716 = vmatprep.subr.msk.bf16.mxu0 %vm12752_vm1, %v10714_v62 }
 0x67e   : > { %5698 = vrot.lane.b32.xlu1 %v17298_v19, %s12360_s16 }
 0x67f   : > { %v4223_v36 = vpop.permute.xlu0 %4222 }
 0x682   : > { %5702 = vrot.lane.b32.xlu1 %v12880_v43, %s12360_s16 }
 0x683   : > { %10719 = vmatpush3.bf16.xpose.msk.msra.mxu0 %vm12752_vm1, %v10714_v62  ;;  %v4225_v50 = vpop.permute.xlu0 %4224 }
 0x686   : > { %11427 = vrot.lane.b32.xlu1 %v17238_v59, %s12360_s16  ;;  %v17299_v59 = vld [vmem:[#allocation11_spill] sm:$0xff] }
 0x687   : > { %v4229_v11 = vpop.permute.xlu0 %4228 }
 0x688   : > { %v3326_v45 = vpop.xlane.xlu1 %3325 }
 0x689   : > { %12035 = vrcp.f32 %v3326_v45 }
 0x68a   : > { %5706 = vrot.lane.b32.xlu1 %v17134_v46, %s12360_s16 }
 0x68b   : > { %v4555_v43 = vpop.permute.xlu0 %4554 }
 0x68c   : > { %v4058_v63 = vpop.permute.xlu1 %4057 }
 0x68d   : > { %9759 = vmatmul.mubr.msk.f32.gmra.mrb[104].mxu0 %vm875_vm0, %v4058_v63 }
 0x68e   : > { %5710 = vrot.lane.b32.xlu1 %v17136_v35, %s12360_s16  ;;  %9761 = vmatprep.mubr.msk.f32.mxu0 %vm875_vm0, %v4060_v2  ;;  %v17302_v35 = vld [vmem:[#allocation109_spill] sm:$0xff] }
 0x68f   : > { %v3393_v44 = vmul.f32 %v12034_v33, %v17302_v35  ;;  %v4390_v8 = vpop.permute.xlu0 %4389 }
 0x690   : > { %v4062_v29 = vpop.permute.xlu1 %4061 }
 0x691   : > { %9762 = vmatmul.mubr.msk.f32.gmra.mrb[106].mxu0 %vm875_vm0, %v4062_v29 }
 0x692   : > { %11437 = vrot.lane.b32.xlu1 %v17299_v59, %s12360_s16 }
 0x693   : > { %v12036_v6 = vpop.eup %12035 }
 0x694   : > { %v4386_v46 = vpop.permute.xlu1 %4385  ;;  %v3391_v56 = vmul.f32 %v12036_v6, %v17300_v49 }
 0x695   : > { %9808 = vmatprep.mubr.msk.f32.mxu0 %vm875_vm0, %v4386_v46 }
 0x696   : > { %5867 = vrot.lane.b32.xlu1 %v17301_v23, %s12360_s16  ;;  %9733 = vmatprep.mubr.msk.f32.mxu1 %vm1488_vm2, %v3391_v56 }
 0x697   : > { %9809 = vmatmul.mubr.msk.f32.vlgmr.msra.gmra.mrb[108].mxu0 %vm875_vm0, %v4388_v3  ;;  %9734 = vmatmul.mubr.msk.f32.gmra.mrb[122].mxu1 %vm1488_vm2, %v3393_v44 }
 0x698   : > { %9811 = vmatprep.mubr.msk.f32.mxu0 %vm875_vm0, %v4390_v8  ;;  %v4221_v4 = vpop.permute.xlu1 %4220  ;;  %9780 = vmatprep.mubr.msk.f32.mxu1 %vm875_vm0, %v14759_v55  ;;  %v10732_v55 = vpack.c.bf16 %v11295_v16, %v11294_v0 }
 0x69b   : > { %9781 = vmatmul.mubr.msk.f32.vlgmr.msra.gmra.mrb[124].mxu1 %vm875_vm0, %v14769_v47  ;;  %v4394_v47 = vpop.permute.xlu0 %4393 }
 0x69c   : > { %10725 = vmatpush3.bf16.xpose.msk.msra.mxu1 %vm12752_vm1, %v14746_v57  ;;  %v11298_v12 = vpop.permute.xlu1 %11297  ;;  %9783 = vmatprep.mubr.msk.f32.mxu1 %vm875_vm0, %v4221_v4 }
 0x69d   : > { %10728 = vmatprep.subr.msk.bf16.mxu1 %vm12752_vm1, %v10726_v27  ;;  %v11300_v2 = vunpack.i.h.bf16 %v11298_v12  ;;  %v11299_v18 = vunpack.i.l.bf16 %v11298_v12 }
 0x69f   : > { %9784 = vmatmul.mubr.msk.f32.gmra.mrb[126].mxu1 %vm875_vm0, %v4223_v36  ;;  %v4398_v7 = vpop.permute.xlu0 %4397  ;;  %v10738_v34 = vpack.c.bf16 %v11300_v2, %v11299_v18 }
 0x6a0   : > { %v4227_v37 = vpop.permute.xlu1 %4226  ;;  %9786 = vmatprep.mubr.msk.f32.mxu1 %vm875_vm0, %v4225_v50 }
 0x6a3   : > { %9787 = vmatmul.mubr.msk.f32.gmra.mrb[128].mxu1 %vm875_vm0, %v4227_v37  ;;  %v4559_v42 = vpop.permute.xlu0 %4558 }
 0x6a4   : > { %10731 = vmatpush3.bf16.xpose.msk.msra.mxu1 %vm12752_vm1, %v10726_v27  ;;  %v4231_v57 = vpop.permute.xlu1 %4230  ;;  %9789 = vmatprep.mubr.msk.f32.mxu1 %vm875_vm0, %v4229_v11 }
 0x6a5   : > { %10734 = vmatprep.subr.msk.bf16.mxu1 %vm12752_vm1, %v10732_v55 }
 0x6a7   : > { %9790 = vmatmul.mubr.msk.f32.gmra.mrb[130].mxu1 %vm875_vm0, %v4231_v57  ;;  %v4563_v36 = vpop.permute.xlu0 %4562 }
 0x6a8   : > { %v4557_v39 = vpop.permute.xlu1 %4556  ;;  %9836 = vmatprep.mubr.msk.f32.mxu1 %vm875_vm0, %v4555_v43 }
 0x6ab   : > { %v4567_v50 = vpop.permute.xlu0 %4566 }
 0x6ac   : > { %10737 = vmatpush3.bf16.xpose.msk.msra.mxu1 %vm12752_vm1, %v10732_v55  ;;  %v4392_v62 = vpop.permute.xlu1 %4391 }
 0x6ad   : > { %10740 = vmatprep.subr.msk.bf16.mxu1 %vm12752_vm1, %v10738_v34  ;;  %9812 = vmatmul.mubr.msk.f32.gmra.mrb[110].mxu0 %vm875_vm0, %v4392_v62 }
 0x6ae   : > { %9814 = vmatprep.mubr.msk.f32.mxu0 %vm875_vm0, %v4394_v47 }
 0x6af   : > { %v11308_v63 = vpop.permute.xlu0 %11307 }
 0x6b0   : > { %v4396_v3 = vpop.permute.xlu1 %4395  ;;  %v11310_v29 = vunpack.i.h.bf16 %v11308_v63  ;;  %v11309_v59 = vunpack.i.l.bf16 %v11308_v63 }
 0x6b1   : > { %9815 = vmatmul.mubr.msk.f32.gmra.mrb[112].mxu0 %vm875_vm0, %v4396_v3 }
 0x6b2   : > { %9817 = vmatprep.mubr.msk.f32.mxu0 %vm875_vm0, %v4398_v7  ;;  %v10748_v44 = vpack.c.bf16 %v11310_v29, %v11309_v59 }
 0x6b3   : > { %v11318_v49 = vpop.permute.xlu0 %11317 }
 0x6b4   : > { %10743 = vmatpush3.bf16.xpose.msk.msra.mxu1 %vm12752_vm1, %v10738_v34  ;;  %v4400_v19 = vpop.permute.xlu1 %4399  ;;  %v11320_v8 = vunpack.i.h.bf16 %v11318_v49  ;;  %v11319_v5 = vunpack.i.l.bf16 %v11318_v49 }
 0x6b5   : > { %9818 = vmatmul.mubr.msk.f32.gmra.mrb[114].mxu0 %vm875_vm0, %v4400_v19 }
 0x6b6   : > { %v10756_v55 = vpack.c.bf16 %v11320_v8, %v11319_v5 }
 0x6b7   : > { %v11328_v16 = vpop.permute.xlu0 %11327 }
 0x6b8   : > { %v4561_v25 = vpop.permute.xlu1 %4560  ;;  %v11330_v47 = vunpack.i.h.bf16 %v11328_v16  ;;  %v11329_v57 = vunpack.i.l.bf16 %v11328_v16 }
 0x6bb   : > { %9837 = vmatmul.mubr.msk.f32.vlgmr.msra.gmra.mrb[132].mxu1 %vm875_vm0, %v4557_v39 }
 0x6bc   : > { %9839 = vmatprep.mubr.msk.f32.mxu1 %vm875_vm0, %v4559_v42  ;;  %v4565_v45 = vpop.permute.xlu1 %4564  ;;  %v14869_v42 = vpack.c.bf16 %v11330_v47, %v11329_v57 }
 0x6bf   : > { %9840 = vmatmul.mubr.msk.f32.gmra.mrb[134].mxu1 %vm875_vm0, %v4561_v25 }
 0x6c0   : > { %9842 = vmatprep.mubr.msk.f32.mxu1 %vm875_vm0, %v4563_v36  ;;  %v4569_v11 = vpop.permute.xlu1 %4568 }
 0x6c3   : > { %9843 = vmatmul.mubr.msk.f32.gmra.mrb[136].mxu1 %vm875_vm0, %v4565_v45 }
 0x6c4   : > { %9845 = vmatprep.mubr.msk.f32.mxu1 %vm875_vm0, %v4567_v50  ;;  %v11303_v43 = vpop.permute.xlu1 %11302 }
 0x6c5   : > { %v11305_v33 = vunpack.i.h.bf16 %v11303_v43  ;;  %v11304_v6 = vunpack.i.l.bf16 %v11303_v43 }
 0x6c7   : > { %9846 = vmatmul.mubr.msk.f32.gmra.mrb[138].mxu1 %vm875_vm0, %v4569_v11  ;;  %v10744_v46 = vpack.c.bf16 %v11305_v33, %v11304_v6 }
 0x6c8   : > { %v11313_v56 = vpop.permute.xlu1 %11312 }
 0x6c9   : > { %v11315_v23 = vunpack.i.h.bf16 %v11313_v56  ;;  %v11314_v35 = vunpack.i.l.bf16 %v11313_v56  ;;  %10745 = vmatprep.subr.bf16.mxu0 %v10744_v46 }
 0x6ca   : > { %10747 = vmatpush3.bf16.msra.mxu0 %v10744_v46 }
 0x6cb   : > { %10749 = vmatprep.subr.bf16.mxu0 %v10748_v44  ;;  %v10752_v12 = vpack.c.bf16 %v11315_v23, %v11314_v35 }
 0x6cc   : > { %v11323_v31 = vpop.permute.xlu1 %11322 }
 0x6cd   : > { %v11325_v4 = vunpack.i.h.bf16 %v11323_v31  ;;  %v11324_v27 = vunpack.i.l.bf16 %v11323_v31 }
 0x6ce   : > { %10751 = vmatpush3.bf16.msra.mxu0 %v10748_v44 }
 0x6cf   : > { %10753 = vmatprep.subr.bf16.mxu0 %v10752_v12  ;;  %v10760_v0 = vpack.c.bf16 %v11325_v4, %v11324_v27 }
 0x6d0   : > { %v11333_v37 = vpop.permute.xlu1 %11332 }
 0x6d1   : > { %v11335_v2 = vunpack.i.h.bf16 %v11333_v37  ;;  %v11334_v18 = vunpack.i.l.bf16 %v11333_v37  ;;  %10761 = vmatprep.subr.bf16.mxu1 %v10760_v0 }
 0x6d2   : > { %10755 = vmatpush3.bf16.msra.mxu0 %v10752_v12  ;;  %10763 = vmatpush3.bf16.msra.mxu1 %v10760_v0 }
 0x6d3   : > { %10757 = vmatprep.subr.bf16.mxu0 %v10756_v55  ;;  %v10764_v39 = vpack.c.bf16 %v11335_v2, %v11334_v18  ;;  %v14968_v18 = vld [vmem:[%s16845_s3 + $0x88] sm:$0xff] }
 0x6d4   : > { %v11343_v7 = vpop.permute.xlu1 %11342 }
 0x6d5   : > { %v11345_v34 = vunpack.i.h.bf16 %v11343_v7  ;;  %v11344_v62 = vunpack.i.l.bf16 %v11343_v7  ;;  %10765 = vmatprep.subr.bf16.mxu1 %v10764_v39 }
 0x6d6   : > { %10759 = vmatpush3.bf16.msra.mxu0 %v10756_v55  ;;  %10767 = vmatpush3.bf16.msra.mxu1 %v10764_v39 }
 0x6d7   : > { %10777 = vmatprep.subr.bf16.mxu0 %v14869_v42  ;;  %v10768_v3 = vpack.c.bf16 %v11345_v34, %v11344_v62 }
 0x6d8   : > { %v11353_v19 = vpop.permute.xlu1 %11352 }
 0x6d9   : > { %v11355_v36 = vunpack.i.h.bf16 %v11353_v19  ;;  %v11354_v25 = vunpack.i.l.bf16 %v11353_v19  ;;  %10769 = vmatprep.subr.bf16.mxu1 %v10768_v3 }
 0x6da   : > { %10771 = vmatpush3.bf16.msra.mxu1 %v10768_v3 }
 0x6db   : > { %v10772_v50 = vpack.c.bf16 %v11355_v36, %v11354_v25 }
 0x6dc   : > { %v11363_v45 = vpop.permute.xlu1 %11362 }
 0x6dd   : > { %v11365_v11 = vunpack.i.h.bf16 %v11363_v45  ;;  %v11364_v63 = vunpack.i.l.bf16 %v11363_v45  ;;  %10773 = vmatprep.subr.bf16.mxu1 %v10772_v50 }
 0x6de   : > { %10775 = vmatpush3.bf16.msra.mxu1 %v10772_v50 }
 0x6df   : > { %v14872_v43 = vpack.c.bf16 %v11365_v11, %v11364_v63 }
 0x6e1   : > { %10793 = vmatprep.subr.bf16.mxu1 %v14872_v43 }
 0x6f1   : > { %v14875_v29 = vpop.f32.mrb[84].mxu0 }
 0x6f2   : > { %17303 = vst [vmem:[#allocation24_spill] sm:$0xff] %v14875_v29  ;;  %v14877_v59 = vpop.f32.mrb[85].mxu0 }
 0x6f3   : > { %17304 = vst [vmem:[#allocation39_spill] sm:$0xff] %v14877_v59 }
 0x6f5   : > { %v14881_v6 = vpop.f32.mrb[108].mxu1 }
 0x6f6   : > { %17305 = vst [vmem:[#allocation16_spill] sm:$0xff] %v14881_v6  ;;  %v14883_v46 = vpop.f32.mrb[109].mxu1 }
 0x6f7   : > { %17306 = vst [vmem:[#allocation104_spill] sm:$0xff] %v14883_v46  ;;  %v15034_v46 = vld [vmem:[%s16845_s3 + $0x90] sm:$0xff] }
 0x6fe   : > { %v14887_v56 = vpop.f32.mrb[86].mxu0 }
 0x6ff   : > { %17307 = vst [vmem:[#allocation105_spill] sm:$0xff] %v14887_v56  ;;  %v14889_v23 = vpop.f32.mrb[87].mxu0 }
 0x700   : > { %17308 = vst [vmem:[#allocation98_spill] sm:$0xff] %v14889_v23 }
 0x702   : > { %v14893_v44 = vpop.f32.mrb[110].mxu1 }
 0x703   : > { %17309 = vst [vmem:[#allocation75_spill] sm:$0xff] %v14893_v44  ;;  %v14895_v8 = vpop.f32.mrb[111].mxu1 }
 0x704   : > { %17310 = vst [vmem:[#allocation48_spill] sm:$0xff] %v14895_v8 }
 0x706   : > { %v14899_v31 = vpop.f32.mrb[88].mxu0 }
 0x707   : > { %17311 = vst [vmem:[#allocation106_spill] sm:$0xff] %v14899_v31  ;;  %v14901_v4 = vpop.f32.mrb[89].mxu0 }
 0x708   : > { %17312 = vst [vmem:[#allocation100_spill] sm:$0xff] %v14901_v4 }
 0x709   : > { %v14905_v12 = vpop.f32.mrb[112].mxu1 }
 0x70a   : > { %17313 = vst [vmem:[#allocation82_spill] sm:$0xff] %v14905_v12  ;;  %v14907_v16 = vpop.f32.mrb[113].mxu1 }
 0x70b   : > { %17314 = vst [vmem:[#allocation101_spill] sm:$0xff] %v14907_v16 }
 0x70c   : > { %v14911_v37 = vpop.f32.mrb[90].mxu0 }
 0x70d   : > { %17315 = vst [vmem:[#allocation99_spill] sm:$0xff] %v14911_v37  ;;  %v14913_v55 = vpop.f32.mrb[91].mxu0 }
 0x70e   : > { %17316 = vst [vmem:[#allocation58_spill] sm:$0xff] %v14913_v55 }
 0x711   : > { %v14917_v57 = vpop.f32.mrb[114].mxu1 }
 0x712   : > { %17317 = vst [vmem:[#allocation108_spill] sm:$0xff] %v14917_v57  ;;  %v14919_v2 = vpop.f32.mrb[115].mxu1 }
 0x713   : > { %17318 = vst [vmem:[#allocation7_spill] sm:$0xff] %v14919_v2 }
 0x715   : > { %v14923_v39 = vpop.f32.mrb[92].mxu0 }
 0x716   : > { %17319 = vst [vmem:[#allocation49_spill] sm:$0xff] %v14923_v39  ;;  %v14925_v7 = vpop.f32.mrb[93].mxu0 }
 0x717   : > { %17320 = vst [vmem:[#allocation107_spill] sm:$0xff] %v14925_v7 }
 0x719   : > { %v14929_v62 = vpop.f32.mrb[116].mxu1 }
 0x71a   : > { %17321 = vst [vmem:[#allocation102_spill] sm:$0xff] %v14929_v62  ;;  %v14931_v3 = vpop.f32.mrb[117].mxu1 }
 0x71b   : > { %17322 = vst [vmem:[#allocation27_spill] sm:$0xff] %v14931_v3 }
 0x720   : > { %v14935_v36 = vpop.f32.mrb[118].mxu1 }
 0x721   : > { %17323 = vst [vmem:[#allocation34_spill] sm:$0xff] %v14935_v36  ;;  %v14937_v25 = vpop.f32.mrb[119].mxu1 }
 0x722   : > { %17324 = vst [vmem:[#allocation12_spill] sm:$0xff] %v14937_v25 }
 0x726   : > { %v14941_v45 = vpop.f32.mrb[94].mxu0  ;;  %v14943_v11 = vpop.f32.mrb[120].mxu1 }
 0x727   : > { %17325 = vst [vmem:[#allocation40_spill] sm:$0xff] %v14941_v45  ;;  %17326 = vst [vmem:[#allocation103_spill] sm:$0xff] %v14943_v11  ;;  %v14945_v63 = vpop.f32.mrb[95].mxu0  ;;  %v14947_v34 = vpop.f32.mrb[121].mxu1 }
 0x728   : > { %17327 = vst [vmem:[#allocation14_spill] sm:$0xff] %v14945_v63  ;;  %17328 = vst [vmem:[#allocation5_spill] sm:$0xff] %v14947_v34 }
 0x72d   : > { %v14953_v0 = vpop.f32.mrb[96].mxu0 }
 0x72e   : > { %17329 = vst [vmem:[#allocation8_spill] sm:$0xff] %v14953_v0  ;;  %v14955_v5 = vpop.f32.mrb[97].mxu0 }
 0x72f   : > { %17330 = vst [vmem:[#allocation10_spill] sm:$0xff] %v14955_v5 }
 0x739   : > { %v14959_v49 = vpop.f32.mrb[98].mxu0 }
 0x73a   : > { %17331 = vst [vmem:[#allocation17_spill] sm:$0xff] %v14959_v49  ;;  %v14961_v47 = vpop.f32.mrb[99].mxu0 }
 0x73b   : > { %17332 = vst [vmem:[#allocation21_spill] sm:$0xff] %v14961_v47 }
 0x73d   : > { %v9754_v19 = vpop.f32.mrb[100].mxu0 }
 0x73e   : > { %v14971_v35 = vadd.f32 %v9754_v19, %v14968_v18  ;;  %v4177_v33 = vpop.f32.mrb[101].mxu0  ;;  %v15001_v19 = vld [vmem:[%s16845_s3 + $0x98] sm:$0xff] }
 0x740   : > { %v4726_v50 = vsel %vm1488_vm2, %v14971_v35, -inf }
 0x741   : > { %4727 = vmax.xlane.f32.xlu1 %v4726_v50  ;;  %v9757_v34 = vpop.f32.mrb[102].mxu0  ;;  %v14988_v50 = vld [vmem:[%s16845_s3 + $0x80] sm:$0xff] }
 0x742   : > { %v4187_v11 = vpop.f32.mrb[103].mxu0  ;;  %v14994_v7 = vadd.f32 %v14988_v50, %v4177_v33 }
 0x743   : > { %v15044_v6 = vadd.f32 %v15034_v46, %v4187_v11 }
 0x744   : > { %v4723_v16 = vsel %vm1488_vm2, %v14994_v7, -inf }
 0x745   : > { %v4729_v56 = vsel %vm1488_vm2, %v15044_v6, -inf }
 0x760   : > { %v9760_v25 = vpop.f32.mrb[104].mxu0 }
 0x761   : > { %v4197_v36 = vpop.f32.mrb[105].mxu0 }
 0x764   : > { %v9763_v3 = vpop.f32.mrb[106].mxu0 }
 0x765   : > { %v4207_v27 = vpop.f32.mrb[107].mxu0 }
 0x76a   : > { %v14975_v62 = vpop.f32.mrb[108].mxu0  ;;  %v14977_v47 = vpop.f32.mrb[122].mxu1 }
 0x76b   : > { %17333 = vst [vmem:[#allocation23_spill] sm:$0xff] %v14977_v47  ;;  %v14979_v49 = vpop.f32.mrb[109].mxu0  ;;  %v14981_v63 = vpop.f32.mrb[123].mxu1 }
 0x76c   : > { %17334 = vst [vmem:[#allocation26_spill] sm:$0xff] %v14981_v63  ;;  %v15006_v63 = vld [vmem:[%s16845_s3 + $0xa8] sm:$0xff] }
 0x76d   : > { %v15012_v2 = vadd.f32 %v9760_v25, %v15006_v63 }
 0x76e   : > { %v9782_v45 = vpop.f32.mrb[124].mxu1 }
 0x76f   : > { %v14991_v5 = vadd.f32 %v9782_v45, %v14968_v18  ;;  %v4346_v0 = vpop.f32.mrb[125].mxu1 }
 0x770   : > { %v15015_v57 = vadd.f32 %v14988_v50, %v4346_v0  ;;  %v4738_v0 = vsel %vm1488_vm2, %v15012_v2, -inf }
 0x771   : > { %v4750_v39 = vsel %vm1488_vm2, %v14991_v5, -inf }
 0x772   : > { %4751 = vmax.xlane.f32.xlu0 %v4750_v39  ;;  %v9785_v45 = vpop.f32.mrb[126].mxu1  ;;  %v4747_v25 = vsel %vm1488_vm2, %v15015_v57, -inf }
 0x773   : > { %v15009_v47 = vadd.f32 %v9785_v45, %v15001_v19  ;;  %v4356_v33 = vpop.f32.mrb[127].mxu1  ;;  %v15022_v45 = vadd.f32 %v9757_v34, %v15001_v19  ;;  %v15041_v34 = vpop.permute.xlu1 %11372 }
 0x775   : > { %v4756_v12 = vsel %vm1488_vm2, %v15009_v47, -inf  ;;  %v4732_v4 = vsel %vm1488_vm2, %v15022_v45, -inf }
 0x776   : > { %4724 = vmax.xlane.f32.xlu0 %v4723_v16  ;;  %4757 = vmax.xlane.f32.xlu1 %v4756_v12  ;;  %v9788_v39 = vpop.f32.mrb[128].mxu1  ;;  %v15039_v12 = vld [vmem:[%s16845_s3 + $0xb8] sm:$0xff] }
 0x777   : > { %v4366_v8 = vpop.f32.mrb[129].mxu1  ;;  %v15025_v44 = vadd.f32 %v9788_v39, %v15006_v63  ;;  %v15047_v55 = vadd.f32 %v9763_v3, %v15039_v12  ;;  %v15053_v31 = vpop.permute.xlu1 %11377 }
 0x779   : > { %v4762_v37 = vsel %vm1488_vm2, %v15025_v44, -inf  ;;  %v4744_v3 = vsel %vm1488_vm2, %v15047_v55, -inf }
 0x77a   : > { %4739 = vmax.xlane.f32.xlu1 %v4738_v0  ;;  %v9791_v16 = vpop.f32.mrb[130].mxu1  ;;  %4748 = vmax.xlane.f32.xlu0 %v4747_v25  ;;  %v15056_v25 = vadd.f32 %v15034_v46, %v4356_v33 }
 0x77b   : > { %v4376_v39 = vpop.f32.mrb[131].mxu1  ;;  %v15059_v11 = vadd.f32 %v9791_v16, %v15039_v12  ;;  %v15085_v1 = vpop.permute.xlu1 %11387 }
 0x77c   : > { %v4753_v60 = vsel %vm1488_vm2, %v15056_v25, -inf }
 0x77d   : > { %v4768_v29 = vsel %vm1488_vm2, %v15059_v11, -inf }
 0x77e   : > { %4763 = vmax.xlane.f32.xlu1 %v4762_v37  ;;  %4733 = vmax.xlane.f32.xlu0 %v4732_v4  ;;  %v15068_v4 = vld [vmem:[%s16845_s3 + $0xa0] sm:$0xff]  ;;  %v15073_v37 = vld [vmem:[%s16845_s3 + $0xb0] sm:$0xff] }
 0x77f   : > { %v15076_v16 = vadd.f32 %v15068_v4, %v4197_v36  ;;  %v15079_v21 = vadd.f32 %v15073_v37, %v4207_v27  ;;  %v15092_v36 = vadd.f32 %v15068_v4, %v4366_v8 }
 0x780   : > { %v9813_v0 = vpop.f32.mrb[110].mxu0 }
 0x781   : > { %v4525_v23 = vpop.f32.mrb[111].mxu0  ;;  %v4741_v58 = vsel %vm1488_vm2, %v15079_v21, -inf  ;;  %v4735_v30 = vsel %vm1488_vm2, %v15076_v16, -inf  ;;  %v4759_v8 = vsel %vm1488_vm2, %v15092_v36, -inf }
 0x782   : > { %4745 = vmax.xlane.f32.xlu1 %v4744_v3  ;;  %4730 = vmax.xlane.f32.xlu0 %v4729_v56  ;;  %v15089_v56 = vadd.f32 %v14975_v62, %v14968_v18  ;;  %v15136_v51 = vadd.f32 %v15034_v46, %v4525_v23 }
 0x784   : > { %v9816_v33 = vpop.f32.mrb[112].mxu0  ;;  %v4774_v62 = vsel %vm1488_vm2, %v15089_v56, -inf }
 0x785   : > { %v4535_v59 = vpop.f32.mrb[113].mxu0 }
 0x786   : > { %4769 = vmax.xlane.f32.xlu1 %v4768_v29  ;;  %4754 = vmax.xlane.f32.xlu0 %v4753_v60  ;;  %v15098_v60 = vpop.permute.xlu1 %11397  ;;  %v15101_v29 = vadd.f32 %v15073_v37, %v4376_v39 }
 0x788   : > { %v9819_v3 = vpop.f32.mrb[114].mxu0  ;;  %v4765_v38 = vsel %vm1488_vm2, %v15101_v29, -inf }
 0x789   : > { %v4545_v27 = vpop.f32.mrb[115].mxu0 }
 0x78a   : > { %4742 = vmax.xlane.f32.xlu1 %v4741_v58  ;;  %4736 = vmax.xlane.f32.xlu0 %v4735_v30  ;;  %v15112_v30 = vadd.f32 %v14988_v50, %v14979_v49  ;;  %v15115_v58 = vadd.f32 %v9813_v0, %v15001_v19 }
 0x78c   : > { %v4780_v0 = vsel %vm1488_vm2, %v15115_v58, -inf }
 0x78e   : > { %v9838_v9 = vpop.f32.mrb[132].mxu1  ;;  %4775 = vmax.xlane.f32.xlu1 %v4774_v62  ;;  %4760 = vmax.xlane.f32.xlu0 %v4759_v8  ;;  %v15121_v62 = vpop.permute.xlu1 %11407  ;;  %v4771_v8 = vsel %vm1488_vm2, %v15112_v30, -inf }
 0x78f   : > { %v15108_v26 = vadd.f32 %v9838_v9, %v14968_v18  ;;  %v4684_v15 = vpop.f32.mrb[133].mxu1  ;;  %17335 = vst [vmem:[#allocation6_spill] sm:$0xff] %v15121_v62 }
 0x790   : > { %v15124_v18 = vadd.f32 %v14988_v50, %v4684_v15  ;;  %v15139_v15 = vadd.f32 %v9816_v33, %v15006_v63  ;;  %v4777_v33 = vsel %vm1488_vm2, %v15136_v51, -inf }
 0x791   : > { %v4798_v39 = vsel %vm1488_vm2, %v15108_v26, -inf }
 0x792   : > { %v9841_v13 = vpop.f32.mrb[134].mxu1  ;;  %4799 = vmax.xlane.f32.xlu1 %v4798_v39  ;;  %4766 = vmax.xlane.f32.xlu0 %v4765_v38  ;;  %v15133_v38 = vpop.permute.xlu1 %11412  ;;  %v4786_v23 = vsel %vm1488_vm2, %v15139_v15, -inf }
 0x793   : > { %v4694_v9 = vpop.f32.mrb[135].mxu1  ;;  %v15127_v49 = vadd.f32 %v9841_v13, %v15001_v19  ;;  %17336 = vst [vmem:[#allocation11_spill] sm:$0xff] %v15133_v38  ;;  %v4795_v19 = vsel %vm1488_vm2, %v15124_v18, -inf }
 0x795   : > { %v4804_v13 = vsel %vm1488_vm2, %v15127_v49, -inf }
 0x796   : > { %v9844_v61 = vpop.f32.mrb[136].mxu1  ;;  %4781 = vmax.xlane.f32.xlu1 %v4780_v0  ;;  %4772 = vmax.xlane.f32.xlu0 %v4771_v8  ;;  %v15146_v8 = vadd.f32 %v15034_v46, %v4694_v9  ;;  %v15155_v20 = vpop.permute.xlu1 %11417 }
 0x797   : > { %v4704_v39 = vpop.f32.mrb[137].mxu1  ;;  %v15149_v41 = vadd.f32 %v9844_v61, %v15006_v63  ;;  %17337 = vst [vmem:[#allocation33_spill] sm:$0xff] %v15155_v20 }
 0x798   : > { %v4801_v46 = vsel %vm1488_vm2, %v15146_v8, -inf  ;;  %v15170_v9 = vadd.f32 %v15068_v4, %v4704_v39  ;;  %v15188_v39 = vpop.permute.xlu0 %11337 }
 0x799   : > { %v4810_v61 = vsel %vm1488_vm2, %v15149_v41, -inf }
 0x79a   : > { %v9847_v50 = vpop.f32.mrb[138].mxu1  ;;  %4805 = vmax.xlane.f32.xlu1 %v4804_v13  ;;  %4796 = vmax.xlane.f32.xlu0 %v4795_v19  ;;  %v15158_v13 = vadd.f32 %v15068_v4, %v4535_v59  ;;  %v15161_v19 = vadd.f32 %v9819_v3, %v15039_v12  ;;  %v15167_v63 = vpop.permute.xlu1 %5698  ;;  %v4807_v4 = vsel %vm1488_vm2, %v15170_v9, -inf }
 0x79b   : > { %v4714_v0 = vpop.f32.mrb[139].mxu1  ;;  %17338 = vst [vmem:[#allocation19_spill] sm:$0xff] %v15167_v63 }
 0x79c   : > { %v4792_v59 = vsel %vm1488_vm2, %v15161_v19, -inf  ;;  %v4783_v3 = vsel %vm1488_vm2, %v15158_v13, -inf }
 0x79e   : > { %4787 = vmax.xlane.f32.xlu1 %v4786_v23  ;;  %4778 = vmax.xlane.f32.xlu0 %v4777_v33  ;;  %v15173_v23 = vadd.f32 %v9847_v50, %v15039_v12  ;;  %v15180_v33 = vadd.f32 %v15073_v37, %v4545_v27  ;;  %v15186_v12 = vpop.permute.xlu1 %5702  ;;  %v15191_v50 = vadd.f32 %v15073_v37, %v4714_v0 }
 0x79f   : > { %17339 = vst [vmem:[#allocation109_spill] sm:$0xff] %v15186_v12 }
 0x7a2   : > { %4811 = vmax.xlane.f32.xlu1 %v4810_v61  ;;  %4802 = vmax.xlane.f32.xlu0 %v4801_v46  ;;  %v4816_v61 = vsel %vm1488_vm2, %v15173_v23, -inf  ;;  %v4789_v46 = vsel %vm1488_vm2, %v15180_v33, -inf  ;;  %v15195_v27 = vpop.permute.xlu1 %11427 }
 0x7a3   : > { %17340 = vst [vmem:[#allocation110_spill] sm:$0xff] %v15195_v27 }
 0x7a6   : > { %4793 = vmax.xlane.f32.xlu1 %v4792_v59  ;;  %4784 = vmax.xlane.f32.xlu0 %v4783_v3  ;;  %v4813_v59 = vsel %vm1488_vm2, %v15191_v50, -inf  ;;  %v15199_v3 = vpop.permute.xlu0 %11347 }
 0x7aa   : > { %4817 = vmax.xlane.f32.xlu1 %v4816_v61  ;;  %4808 = vmax.xlane.f32.xlu0 %v4807_v4  ;;  %v15201_v61 = vpop.permute.xlu1 %5706  ;;  %v15203_v4 = vpop.permute.xlu0 %11357 }
 0x7ab   : > { %17341 = vst [vmem:[#allocation111_spill] sm:$0xff] %v15201_v61 }
 0x7ae   : > { %4790 = vmax.xlane.f32.xlu0 %v4789_v46  ;;  %v15205_v12 = vpop.permute.xlu1 %5710  ;;  %v15207_v37 = vpop.permute.xlu0 %11367 }
 0x7af   : > { %17342 = vst [vmem:[#allocation112_spill] sm:$0xff] %v15205_v12 }
 0x7b2   : > { %4814 = vmax.xlane.f32.xlu0 %v4813_v59  ;;  %v15209_v0 = vpop.permute.xlu1 %11437  ;;  %v15211_v63 = vpop.permute.xlu0 %11382 }
 0x7b3   : > { %17343 = vst [vmem:[#allocation113_spill] sm:$0xff] %v15209_v0 }
 0x7b6   : > { %v15213_v46 = vpop.permute.xlu1 %5867  ;;  %v15215_v27 = vpop.permute.xlu0 %11392 }
 0x7b7   : > { %17344 = vst [vmem:[#allocation114_spill] sm:$0xff] %v15213_v46  ;;  %17345 = vst [vmem:[#allocation115_spill] sm:$0xff] %v15215_v27 }
 0x7ba   : > { %v15218_v52 = vpop.permute.xlu0 %11402 }
 0x7bb   : > { %17346 = vst [vmem:[#allocation116_spill] sm:$0xff] %v15218_v52 }
 0x7be   : > { %v15220_v61 = vpop.permute.xlu0 %5696 }
 0x7bf   : > { %17347 = vst [vmem:[#allocation117_spill] sm:$0xff] %v15220_v61 }
 0x7c2   : > { %v15224_v38 = vpop.permute.xlu0 %5700 }
 0x7c3   : > { %17348 = vst [vmem:[#allocation118_spill] sm:$0xff] %v15224_v38 }
 0x7c6   : > { %v15228_v46 = vpop.permute.xlu0 %11422 }
 0x7c7   : > { %17349 = vst [vmem:[#allocation119_spill] sm:$0xff] %v15228_v46 }
 0x7ca   : > { %v15230_v32 = vpop.permute.xlu0 %5704 }
 0x7cb   : > { %17350 = vst [vmem:[#allocation120_spill] sm:$0xff] %v15230_v32 }
 0x7ce   : > { %v4728_v20 = vpop.xlane.xlu1 %4727  ;;  %v15232_v17 = vpop.permute.xlu0 %5708 }
 0x7cf   : > { %v4820_v59 = vsub.f32 %v14971_v35, %v4728_v20  ;;  %17351 = vst [vmem:[#allocation121_spill] sm:$0xff] %v15232_v17 }
 0x7d1   : > { %v4853_v10 = vmul.f32 1.442695, %v4820_v59 }
 0x7d2   : > { %v15234_v20 = vpop.permute.xlu0 %11432 }
 0x7d3   : > { %12037 = vpow2.f32 %v4853_v10  ;;  %17352 = vst [vmem:[#allocation122_spill] sm:$0xff] %v15234_v20 }
 0x7d6   : > { %v15236_v35 = vpop.permute.xlu0 %5865 }
 0x7d7   : > { %17353 = vst [vmem:[#allocation123_spill] sm:$0xff] %v15236_v35 }
 0x7dd   : > { %v15222_v12 = vpop.eup %12037 }
 0x7de   : > { %v4918_v0 = vsel %vm1488_vm2, %v15222_v12, 0.0 }
 0x7df   : > { %4919 = vadd.xlane.f32.xlu1 %v4918_v0 }
 0x7ff   : > { %v4752_v10 = vpop.xlane.xlu0 %4751 }
 0x800   : > { %v4828_v59 = vsub.f32 %v14991_v5, %v4752_v10 }
 0x802   : > { %v4869_v61 = vmul.f32 1.442695, %v4828_v59 }
 0x803   : > { %v4725_v52 = vpop.xlane.xlu0 %4724  ;;  %v4758_v38 = vpop.xlane.xlu1 %4757 }
 0x804   : > { %12039 = vpow2.f32 %v4869_v61  ;;  %v4819_v27 = vsub.f32 %v14994_v7, %v4725_v52  ;;  %v4830_v0 = vsub.f32 %v15009_v47, %v4758_v38 }
 0x806   : > { %v4851_v46 = vmul.f32 1.442695, %v4819_v27  ;;  %v4873_v48 = vmul.f32 1.442695, %v4830_v0 }
 0x807   : > { %v4740_v32 = vpop.xlane.xlu1 %4739  ;;  %v4749_v62 = vpop.xlane.xlu0 %4748 }
 0x808   : > { %12041 = vpow2.f32 %v4851_v46  ;;  %v4824_v17 = vsub.f32 %v15012_v2, %v4740_v32  ;;  %v4827_v35 = vsub.f32 %v15015_v57, %v4749_v62 }
 0x809   : > { %12043 = vpow2.f32 %v4873_v48 }
 0x80a   : > { %v4861_v20 = vmul.f32 1.442695, %v4824_v17  ;;  %v4867_v5 = vmul.f32 1.442695, %v4827_v35 }
 0x80b   : > { %v4764_v10 = vpop.xlane.xlu1 %4763  ;;  %v4734_v59 = vpop.xlane.xlu0 %4733 }
 0x80c   : > { %12045 = vpow2.f32 %v4861_v20  ;;  %v4832_v61 = vsub.f32 %v15025_v44, %v4764_v10  ;;  %v4822_v52 = vsub.f32 %v15022_v45, %v4734_v59 }
 0x80d   : > { %12047 = vpow2.f32 %v4867_v5 }
 0x80e   : > { %v15245_v47 = vpop.eup %12039  ;;  %v4877_v7 = vmul.f32 1.442695, %v4832_v61  ;;  %v4857_v38 = vmul.f32 1.442695, %v4822_v52 }
 0x80f   : > { %v4746_v27 = vpop.xlane.xlu1 %4745  ;;  %v4731_v46 = vpop.xlane.xlu0 %4730  ;;  %v4942_v32 = vsel %vm1488_vm2, %v15245_v47, 0.0 }
 0x810   : > { %12049 = vpow2.f32 %v4877_v7  ;;  %v4821_v17 = vsub.f32 %v15044_v6, %v4731_v46  ;;  %4943 = vadd.xlane.f32.xlu1 %v4942_v32 }
 0x811   : > { %12051 = vpow2.f32 %v4857_v38 }
 0x812   : > { %v15250_v48 = vpop.eup %12041  ;;  %v4855_v44 = vmul.f32 1.442695, %v4821_v17 }
 0x813   : > { %v15252_v57 = vpop.eup %12043  ;;  %v4770_v2 = vpop.xlane.xlu1 %4769  ;;  %v4915_v62 = vsel %vm1488_vm2, %v15250_v48, 0.0 }
 0x814   : > { %v4755_v45 = vpop.xlane.xlu0 %4754  ;;  %v4834_v20 = vsub.f32 %v15059_v11, %v4770_v2  ;;  %v4948_v0 = vsel %vm1488_vm2, %v15252_v57, 0.0  ;;  %4916 = vadd.xlane.f32.xlu0 %v4915_v62  ;;  %12053 = vpow2.f32 %v4855_v44  ;;  %v4826_v2 = vsub.f32 %v15047_v55, %v4746_v27 }
 0x815   : > { %v4829_v35 = vsub.f32 %v15056_v25, %v4755_v45  ;;  %4949 = vadd.xlane.f32.xlu1 %v4948_v0 }
 0x816   : > { %v15260_v6 = vpop.eup %12045  ;;  %v4881_v5 = vmul.f32 1.442695, %v4834_v20  ;;  %v4865_v55 = vmul.f32 1.442695, %v4826_v2 }
 0x817   : > { %v4871_v10 = vmul.f32 1.442695, %v4829_v35  ;;  %v15262_v59 = vpop.eup %12047  ;;  %v4743_v61 = vpop.xlane.xlu1 %4742  ;;  %v4930_v7 = vsel %vm1488_vm2, %v15260_v6, 0.0 }
 0x818   : > { %v4737_v52 = vpop.xlane.xlu0 %4736  ;;  %12055 = vpow2.f32 %v4881_v5  ;;  %v4825_v25 = vsub.f32 %v15079_v21, %v4743_v61  ;;  %v4939_v38 = vsel %vm1488_vm2, %v15262_v59, 0.0 }
 0x819   : > { %v4823_v11 = vsub.f32 %v15076_v16, %v4737_v52  ;;  %12057 = vpow2.f32 %v4871_v10  ;;  %4931 = vadd.xlane.f32.xlu1 %v4930_v7  ;;  %4940 = vadd.xlane.f32.xlu0 %v4939_v38 }
 0x81a   : > { %v15270_v46 = vpop.eup %12049  ;;  %v4863_v32 = vmul.f32 1.442695, %v4825_v25 }
 0x81b   : > { %v4859_v17 = vmul.f32 1.442695, %v4823_v11  ;;  %v15272_v44 = vpop.eup %12051  ;;  %v4776_v45 = vpop.xlane.xlu1 %4775  ;;  %v4954_v21 = vsel %vm1488_vm2, %v15270_v46, 0.0 }
 0x81c   : > { %v4761_v62 = vpop.xlane.xlu0 %4760  ;;  %12059 = vpow2.f32 %v4863_v32  ;;  %v4836_v16 = vsub.f32 %v15089_v56, %v4776_v45  ;;  %v4924_v35 = vsel %vm1488_vm2, %v15272_v44, 0.0 }
 0x81d   : > { %v4831_v20 = vsub.f32 %v15092_v36, %v4761_v62  ;;  %12061 = vpow2.f32 %v4859_v17  ;;  %4955 = vadd.xlane.f32.xlu1 %v4954_v21  ;;  %4925 = vadd.xlane.f32.xlu0 %v4924_v35 }
 0x81e   : > { %v4885_v0 = vmul.f32 1.442695, %v4836_v16  ;;  %v15281_v10 = vpop.eup %12053 }
 0x81f   : > { %v4875_v5 = vmul.f32 1.442695, %v4831_v20  ;;  %v4800_v27 = vpop.xlane.xlu1 %4799  ;;  %v4921_v36 = vsel %vm1488_vm2, %v15281_v10, 0.0 }
 0x820   : > { %v4767_v61 = vpop.xlane.xlu0 %4766  ;;  %12063 = vpow2.f32 %v4885_v0  ;;  %v4844_v52 = vsub.f32 %v15108_v26, %v4800_v27 }
 0x821   : > { %v4833_v56 = vsub.f32 %v15101_v29, %v4767_v61  ;;  %12065 = vpow2.f32 %v4875_v5  ;;  %4922 = vadd.xlane.f32.xlu0 %v4921_v36 }
 0x822   : > { %v15287_v7 = vpop.eup %12055  ;;  %v4901_v25 = vmul.f32 1.442695, %v4844_v52  ;;  %12067 = vpow2.f32 %v4865_v55 }
 0x823   : > { %v15289_v11 = vpop.eup %12057  ;;  %v4879_v38 = vmul.f32 1.442695, %v4833_v56  ;;  %v4782_v32 = vpop.xlane.xlu1 %4781  ;;  %v4960_v2 = vsel %vm1488_vm2, %v15287_v7, 0.0 }
 0x824   : > { %v4773_v17 = vpop.xlane.xlu0 %4772  ;;  %12069 = vpow2.f32 %v4901_v25  ;;  %v4838_v26 = vsub.f32 %v15115_v58, %v4782_v32  ;;  %4961 = vadd.xlane.f32.xlu1 %v4960_v2  ;;  %v4945_v45 = vsel %vm1488_vm2, %v15289_v11, 0.0 }
 0x825   : > { %v4835_v29 = vsub.f32 %v15112_v30, %v4773_v17  ;;  %4946 = vadd.xlane.f32.xlu0 %v4945_v45  ;;  %12071 = vpow2.f32 %v4879_v38 }
 0x826   : > { %v15297_v62 = vpop.eup %12059  ;;  %v4889_v21 = vmul.f32 1.442695, %v4838_v26 }
 0x827   : > { %v15299_v16 = vpop.eup %12061  ;;  %v4883_v20 = vmul.f32 1.442695, %v4835_v29  ;;  %v4806_v35 = vpop.xlane.xlu1 %4805  ;;  %v4933_v5 = vsel %vm1488_vm2, %v15297_v62, 0.0 }
 0x828   : > { %v4797_v0 = vpop.xlane.xlu0 %4796  ;;  %12073 = vpow2.f32 %v4889_v21  ;;  %4934 = vadd.xlane.f32.xlu1 %v4933_v5  ;;  %v4927_v58 = vsel %vm1488_vm2, %v15299_v16, 0.0  ;;  %v4846_v61 = vsub.f32 %v15127_v49, %v4806_v35 }
 0x829   : > { %v4843_v30 = vsub.f32 %v15124_v18, %v4797_v0  ;;  %4928 = vadd.xlane.f32.xlu0 %v4927_v58  ;;  %12075 = vpow2.f32 %v4883_v20 }
 0x82a   : > { %v15306_v55 = vpop.eup %12063  ;;  %v4905_v2 = vmul.f32 1.442695, %v4846_v61 }
 0x82b   : > { %v15308_v27 = vpop.eup %12065  ;;  %v4899_v52 = vmul.f32 1.442695, %v4843_v30  ;;  %v4788_v56 = vpop.xlane.xlu1 %4787  ;;  %v4966_v25 = vsel %vm1488_vm2, %v15306_v55, 0.0 }
 0x82c   : > { %v4779_v36 = vpop.xlane.xlu0 %4778  ;;  %4967 = vadd.xlane.f32.xlu1 %v4966_v25  ;;  %v4951_v18 = vsel %vm1488_vm2, %v15308_v27, 0.0  ;;  %v15315_v38 = vpop.eup %12067  ;;  %v4840_v30 = vsub.f32 %v15139_v15, %v4788_v56 }
 0x82d   : > { %4952 = vadd.xlane.f32.xlu0 %v4951_v18  ;;  %v4837_v17 = vsub.f32 %v15136_v51, %v4779_v36  ;;  %12077 = vpow2.f32 %v4899_v52  ;;  %v4936_v20 = vsel %vm1488_vm2, %v15315_v38, 0.0 }
 0x82e   : > { %v15317_v32 = vpop.eup %12069  ;;  %12079 = vpow2.f32 %v4905_v2  ;;  %v4893_v36 = vmul.f32 1.442695, %v4840_v30 }
 0x82f   : > { %v4812_v49 = vpop.xlane.xlu1 %4811  ;;  %v4990_v29 = vsel %vm1488_vm2, %v15317_v32, 0.0  ;;  %v15326_v35 = vpop.eup %12071  ;;  %v4887_v51 = vmul.f32 1.442695, %v4837_v17 }
 0x830   : > { %v4803_v26 = vpop.xlane.xlu0 %4802  ;;  %v4848_v45 = vsub.f32 %v15149_v41, %v4812_v49  ;;  %4991 = vadd.xlane.f32.xlu1 %v4990_v29 }
 0x831   : > { %v4845_v21 = vsub.f32 %v15146_v8, %v4803_v26  ;;  %4937 = vadd.xlane.f32.xlu0 %v4936_v20  ;;  %v4957_v8 = vsel %vm1488_vm2, %v15326_v35, 0.0 }
 0x832   : > { %v15328_v0 = vpop.eup %12073  ;;  %v4909_v58 = vmul.f32 1.442695, %v4848_v45 }
 0x833   : > { %v4903_v5 = vmul.f32 1.442695, %v4845_v21  ;;  %v4972_v41 = vsel %vm1488_vm2, %v15328_v0, 0.0  ;;  %v15335_v52 = vpop.eup %12075  ;;  %v4794_v15 = vpop.xlane.xlu1 %4793 }
 0x834   : > { %v4785_v61 = vpop.xlane.xlu0 %4784  ;;  %4973 = vadd.xlane.f32.xlu1 %v4972_v41  ;;  %v4963_v17 = vsel %vm1488_vm2, %v15335_v52, 0.0  ;;  %v4842_v26 = vsub.f32 %v15161_v19, %v4794_v15 }
 0x835   : > { %12081 = vpow2.f32 %v4903_v5  ;;  %4958 = vadd.xlane.f32.xlu0 %v4957_v8  ;;  %v4839_v25 = vsub.f32 %v15158_v13, %v4785_v61 }
 0x836   : > { %12083 = vpow2.f32 %v4887_v51 }
 0x837   : > { %12085 = vpow2.f32 %v4909_v58  ;;  %v15341_v2 = vpop.eup %12077  ;;  %v4891_v29 = vmul.f32 1.442695, %v4839_v25 }
 0x838   : > { %v4809_v18 = vpop.xlane.xlu0 %4808  ;;  %12087 = vpow2.f32 %v4893_v36  ;;  %v4987_v45 = vsel %vm1488_vm2, %v15341_v2, 0.0  ;;  %v15346_v21 = vpop.eup %12079 }
 0x839   : > { %v4847_v56 = vsub.f32 %v15170_v9, %v4809_v18  ;;  %4964 = vadd.xlane.f32.xlu0 %v4963_v17  ;;  %v4897_v9 = vmul.f32 1.442695, %v4842_v26  ;;  %v4996_v51 = vsel %vm1488_vm2, %v15346_v21, 0.0  ;;  %v17354_v17 = vld [vmem:[#allocation30_spill] sm:$0xff]  ;;  %v17355_v26 = vld [vmem:[#allocation28_spill] sm:$0xff] }
 0x83b   : > { %v4907_v49 = vmul.f32 1.442695, %v4847_v56 }
 0x83d   : > { %12089 = vpow2.f32 %v4907_v49  ;;  %4988 = vadd.xlane.f32.xlu0 %v4987_v45  ;;  %v4791_v49 = vpop.xlane.xlu0 %4790 }
 0x83e   : > { %12091 = vpow2.f32 %v4891_v29  ;;  %v4841_v29 = vsub.f32 %v15180_v33, %v4791_v49  ;;  %v17356_v33 = vld [vmem:[#allocation13_spill] sm:$0xff] }
 0x83f   : > { %v15348_v13 = vpop.eup %12081  ;;  %12093 = vpow2.f32 %v4897_v9  ;;  %v4818_v9 = vpop.xlane.xlu1 %4817 }
 0x840   : > { %v15350_v20 = vpop.eup %12083  ;;  %v4993_v19 = vsel %vm1488_vm2, %v15348_v13, 0.0  ;;  %v4895_v45 = vmul.f32 1.442695, %v4841_v29 }
 0x841   : > { %v15356_v5 = vpop.eup %12085  ;;  %4997 = vadd.xlane.f32.xlu0 %v4996_v51  ;;  %4994 = vadd.xlane.f32.xlu1 %v4993_v19  ;;  %v4969_v30 = vsel %vm1488_vm2, %v15350_v20, 0.0  ;;  %v4850_v51 = vsub.f32 %v15173_v23, %v4818_v9  ;;  %v4815_v23 = vpop.xlane.xlu0 %4814 }
 0x842   : > { %v5002_v58 = vsel %vm1488_vm2, %v15356_v5, 0.0  ;;  %v15362_v61 = vpop.eup %12087  ;;  %12095 = vpow2.f32 %v4895_v45 }
 0x843   : > { %v4978_v8 = vsel %vm1488_vm2, %v15362_v61, 0.0  ;;  %v4913_v19 = vmul.f32 1.442695, %v4850_v51  ;;  %v17359_v51 = vld [vmem:[#allocation35_spill] sm:$0xff] }
 0x845   : > { %4970 = vadd.xlane.f32.xlu0 %v4969_v30  ;;  %5003 = vadd.xlane.f32.xlu1 %v5002_v58  ;;  %12097 = vpow2.f32 %v4913_v19 }
 0x847   : > { %v15364_v41 = vpop.eup %12089 }
 0x848   : > { %v4999_v36 = vsel %vm1488_vm2, %v15364_v41, 0.0  ;;  %v15370_v25 = vpop.eup %12091 }
 0x849   : > { %4979 = vadd.xlane.f32.xlu0 %v4978_v8  ;;  %5000 = vadd.xlane.f32.xlu1 %v4999_v36  ;;  %v4975_v18 = vsel %vm1488_vm2, %v15370_v25, 0.0  ;;  %v15374_v15 = vpop.eup %12093 }
 0x84a   : > { %v4984_v56 = vsel %vm1488_vm2, %v15374_v15, 0.0 }
 0x84c   : > { %v15384_v30 = vpop.eup %12095 }
 0x84d   : > { %4976 = vadd.xlane.f32.xlu0 %v4975_v18  ;;  %v4981_v58 = vsel %vm1488_vm2, %v15384_v30, 0.0 }
 0x84f   : > { %v15388_v8 = vpop.eup %12097 }
 0x850   : > { %v5008_v36 = vsel %vm1488_vm2, %v15388_v8, 0.0 }
 0x851   : > { %4985 = vadd.xlane.f32.xlu0 %v4984_v56  ;;  %v17357_v56 = vld [vmem:[#allocation9_spill] sm:$0xff] }
 0x85a   : > { %5871 = vrot.lane.b32.xlu1 %v17354_v17, %s12360_s16  ;;  %v4849_v17 = vsub.f32 %v15191_v50, %v4815_v23 }
 0x85c   : > { %v4911_v29 = vmul.f32 1.442695, %v4849_v17  ;;  %v17361_v17 = vld [vmem:[#allocation44_spill] sm:$0xff] }
 0x867   : > { %5869 = vrot.lane.b32.xlu0 %v17355_v26, %s12360_s16  ;;  %v17358_v26 = vld [vmem:[#allocation31_spill] sm:$0xff] }
 0x86c   : > { %v4920_v18 = vpop.xlane.xlu1 %4919 }
 0x86d   : > { %12099 = vrcp.f32 %v4920_v18  ;;  %v11339_v18 = vunpack.i.l.bf16 %v15188_v39 }
 0x87e   : > { %4982 = vadd.xlane.f32.xlu1 %v4981_v58 }
 0x886   : > { %5009 = vadd.xlane.f32.xlu0 %v5008_v36  ;;  %v17360_v36 = vld [vmem:[#allocation15_spill] sm:$0xff] }
 0x88f   : > { %11447 = vrot.lane.b32.xlu1 %v17356_v33, %s12360_s16  ;;  %v12100_v33 = vpop.eup %12099 }
 0x89c   : > { %11442 = vrot.lane.b32.xlu0 %v17357_v56, %s12360_s16  ;;  %v11340_v56 = vunpack.i.h.bf16 %v15188_v39 }
 0x89d   : > { %v4944_v49 = vpop.xlane.xlu1 %4943 }
 0x89e   : > { %v10780_v39 = vpack.c.bf16 %v11340_v56, %v11339_v18  ;;  %v11360_v56 = vunpack.i.h.bf16 %v15203_v4 }
 0x8a0   : > { %5873 = vrot.lane.b32.xlu0 %v17358_v26, %s12360_s16 }
 0x8a1   : > { %v4917_v45 = vpop.xlane.xlu0 %4916 }
 0x8a2   : > { %v4950_v9 = vpop.xlane.xlu1 %4949  ;;  %12101 = vrcp.f32 %v4917_v45 }
 0x8a3   : > { %12103 = vpow2.f32 %v4911_v29 }
 0x8a4   : > { %5877 = vrot.lane.b32.xlu0 %v17359_v51, %s12360_s16  ;;  %12105 = vrcp.f32 %v4944_v49  ;;  %v5014_v49 = vmul.f32 %v12100_v33, %v15222_v12  ;;  %v11370_v33 = vunpack.i.h.bf16 %v15207_v37 }
 0x8a6   : > { %v4941_v19 = vpop.xlane.xlu0 %4940  ;;  %v4932_v58 = vpop.xlane.xlu1 %4931 }
 0x8a7   : > { %12107 = vrcp.f32 %v4941_v19  ;;  %v11350_v19 = vunpack.i.h.bf16 %v15199_v3 }
 0x8a8   : > { %11452 = vrot.lane.b32.xlu0 %v17360_v36, %s12360_s16  ;;  %v11349_v36 = vunpack.i.l.bf16 %v15199_v3 }
 0x8aa   : > { %v4926_v50 = vpop.xlane.xlu0 %4925  ;;  %v4956_v26 = vpop.xlane.xlu1 %4955 }
 0x8ab   : > { %12109 = vrcp.f32 %v4926_v50 }
 0x8ac   : > { %v12102_v23 = vpop.eup %12101  ;;  %6036 = vrot.lane.b32.xlu0 %v17361_v17, %s12360_s16 }
 0x8ad   : > { %v5012_v29 = vmul.f32 %v12102_v23, %v15250_v48  ;;  %v15409_v51 = vpop.eup %12103  ;;  %v11369_v23 = vunpack.i.l.bf16 %v15207_v37  ;;  %v10784_v37 = vpack.c.bf16 %v11350_v19, %v11349_v36  ;;  %v11375_v19 = vunpack.i.h.bf16 %v15041_v34 }
 0x8ae   : > { %v4923_v45 = vpop.xlane.xlu0 %4922  ;;  %v12106_v48 = vpop.eup %12105  ;;  %v5005_v3 = vsel %vm1488_vm2, %v15409_v51, 0.0  ;;  %v11374_v36 = vunpack.i.l.bf16 %v15041_v34 }
 0x8af   : > { %12111 = vrcp.f32 %v4923_v45  ;;  %9864 = vmatprep.mubr.msk.f32.mxu0 %vm1488_vm2, %v5012_v29  ;;  %v5030_v18 = vmul.f32 %v12106_v48, %v15245_v47  ;;  %v17362_v29 = vld [vmem:[#allocation52_spill] sm:$0xff]  ;;  %v11379_v45 = vunpack.i.l.bf16 %v15053_v31  ;;  %v11385_v48 = vunpack.i.h.bf16 %v15211_v63 }
 0x8b0   : > { %6040 = vrot.lane.b32.xlu0 %v17265_v53, %s12360_s16  ;;  %9865 = vmatmul.mubr.msk.f32.vlgmr.msra.gmra.mrb[116].mxu0 %vm1488_vm2, %v5014_v49  ;;  %12113 = vrcp.f32 %v4950_v9  ;;  %v11380_v49 = vunpack.i.h.bf16 %v15053_v31 }
 0x8b1   : > { %10779 = vmatpush3.bf16.msra.mxu0 %v14869_v42  ;;  %v15418_v12 = vpop.xlane.xlu1 %4961  ;;  %v12108_v50 = vpop.eup %12107  ;;  %v11359_v42 = vunpack.i.l.bf16 %v15203_v4 }
 0x8b2   : > { %10781 = vmatprep.subr.bf16.mxu0 %v10780_v39  ;;  %v4947_v17 = vpop.xlane.xlu0 %4946  ;;  %v5028_v53 = vmul.f32 %v12108_v50, %v15262_v59  ;;  %v10796_v59 = vpack.c.bf16 %v11370_v33, %v11369_v23  ;;  %v11384_v50 = vunpack.i.l.bf16 %v15211_v63  ;;  %v11400_v63 = vunpack.i.h.bf16 %v15098_v60 }
 0x8b3   : > { %12115 = vrcp.f32 %v4947_v17  ;;  %5006 = vadd.xlane.f32.xlu1 %v5005_v3  ;;  %v10788_v31 = vpack.c.bf16 %v11360_v56, %v11359_v42  ;;  %v15442_v17 = vpack.c.bf16 %v11375_v19, %v11374_v36  ;;  %v17364_v3 = vld [vmem:[#allocation38_spill] sm:$0xff] }
 0x8b4   : > { %6042 = vrot.lane.b32.xlu0 %v17362_v29, %s12360_s16  ;;  %9892 = vmatprep.mubr.msk.f32.mxu1 %vm1488_vm2, %v5028_v53  ;;  %12117 = vrcp.f32 %v4932_v58  ;;  %v10804_v42 = vpack.c.bf16 %v11385_v48, %v11384_v50 }
 0x8b5   : > { %10783 = vmatpush3.bf16.msra.mxu0 %v10780_v39  ;;  %v4935_v9 = vpop.xlane.xlu1 %4934  ;;  %9893 = vmatmul.mubr.msk.f32.vlgmr.msra.gmra.mrb[140].mxu1 %vm1488_vm2, %v5030_v18  ;;  %v12110_v47 = vpop.eup %12109  ;;  %v17363_v39 = vld [vmem:[#allocation56_spill] sm:$0xff] }
 0x8b6   : > { %10785 = vmatprep.subr.bf16.mxu0 %v10784_v37  ;;  %v4929_v4 = vpop.xlane.xlu0 %4928  ;;  %10795 = vmatpush3.bf16.msra.mxu1 %v14872_v43  ;;  %v10800_v43 = vpack.c.bf16 %v11380_v49, %v11379_v45  ;;  %v5018_v53 = vmul.f32 %v12110_v47, %v15272_v44 }
 0x8b7   : > { %12119 = vrcp.f32 %v4929_v4  ;;  %10797 = vmatprep.subr.bf16.mxu1 %v10796_v59 }
 0x8b8   : > { %12121 = vrcp.f32 %v4935_v9  ;;  %6046 = vrot.lane.b32.xlu0 %v17363_v39, %s12360_s16 }
 0x8b9   : > { %v12112_v58 = vpop.eup %12111  ;;  %10787 = vmatpush3.bf16.msra.mxu0 %v10784_v37  ;;  %12123 = vrcp.f32 %v4956_v26  ;;  %v11399_v26 = vunpack.i.l.bf16 %v15098_v60 }
 0x8ba   : > { %10789 = vmatprep.subr.bf16.mxu0 %v10788_v31  ;;  %v4953_v33 = vpop.xlane.xlu0 %4952  ;;  %v5016_v23 = vmul.f32 %v12112_v58, %v15281_v10  ;;  %10799 = vmatpush3.bf16.msra.mxu1 %v10796_v59  ;;  %v12114_v34 = vpop.eup %12113 }
 0x8bb   : > { %12125 = vrcp.f32 %v4953_v33  ;;  %10801 = vmatprep.subr.bf16.mxu1 %v10800_v43  ;;  %v4968_v10 = vpop.xlane.xlu1 %4967  ;;  %v5034_v60 = vmul.f32 %v12114_v34, %v15252_v57  ;;  %v15459_v49 = vpack.c.bf16 %v11400_v63, %v11399_v26 }
 0x8bc   : > { %6203 = vrot.lane.b32.xlu0 %v17364_v3, %s12360_s16  ;;  %9867 = vmatprep.mubr.msk.f32.mxu0 %vm1488_vm2, %v5016_v23  ;;  %v11389_v3 = vunpack.i.l.bf16 %v15085_v1 }
 0x8bd   : > { %v12116_v56 = vpop.eup %12115  ;;  %10791 = vmatpush3.bf16.msra.mxu0 %v10788_v31  ;;  %v17367_v31 = vld [vmem:[#allocation37_spill] sm:$0xff] }
 0x8be   : > { %9868 = vmatmul.mubr.msk.f32.gmra.mrb[118].mxu0 %vm1488_vm2, %v5018_v53  ;;  %10810 = vmatprep.subr.msk.bf16.mxu0 %vm12752_vm1, %v15442_v17  ;;  %v4938_v18 = vpop.xlane.xlu0 %4937  ;;  %v5032_v29 = vmul.f32 %v12116_v56, %v15289_v11  ;;  %v12118_v44 = vpop.eup %12117  ;;  %v17369_v53 = vld [vmem:[#allocation47_spill] sm:$0xff] }
 0x8bf   : > { %10803 = vmatpush3.bf16.msra.mxu1 %v10800_v43  ;;  %12127 = vrcp.f32 %v4938_v18  ;;  %v4992_v4 = vpop.xlane.xlu1 %4991  ;;  %v5022_v57 = vmul.f32 %v12118_v44, %v15260_v6 }
 0x8c0   : > { %10805 = vmatprep.subr.bf16.mxu1 %v10804_v42  ;;  %6207 = vrot.lane.b32.xlu0 %v17251_v28, %s12360_s16  ;;  %12129 = vrcp.f32 %v15418_v12  ;;  %v17365_v28 = vld [vmem:[#allocation53_spill] sm:$0xff]  ;;  %v17366_v12 = vld [vmem:[#allocation32_spill] sm:$0xff] }
 0x8c1   : > { %v12120_v37 = vpop.eup %12119  ;;  %9895 = vmatprep.mubr.msk.f32.mxu1 %vm1488_vm2, %v5032_v29  ;;  %v17371_v29 = vld [vmem:[#allocation18_spill] sm:$0xff] }
 0x8c2   : > { %v12122_v9 = vpop.eup %12121  ;;  %9896 = vmatmul.mubr.msk.f32.gmra.mrb[142].mxu1 %vm1488_vm2, %v5034_v60  ;;  %v4959_v11 = vpop.xlane.xlu0 %4958  ;;  %v5020_v45 = vmul.f32 %v12120_v37, %v15299_v16  ;;  %v17372_v60 = vld [vmem:[#allocation41_spill] sm:$0xff] }
 0x8c3   : > { %10807 = vmatpush3.bf16.msra.mxu1 %v10804_v42  ;;  %12131 = vrcp.f32 %v4959_v11  ;;  %v12124_v59 = vpop.eup %12123  ;;  %v5024_v16 = vmul.f32 %v12122_v9, %v15297_v62  ;;  %v4974_v62 = vpop.xlane.xlu1 %4973  ;;  %v17373_v9 = vld [vmem:[#allocation115_spill] sm:$0xff] }
 0x8c4   : > { %10834 = vmatprep.subr.msk.bf16.mxu1 %vm12752_vm1, %v15459_v49  ;;  %6211 = vrot.lane.b32.xlu0 %v17365_v28, %s12360_s16  ;;  %12133 = vrcp.f32 %v4968_v10  ;;  %v5038_v39 = vmul.f32 %v12124_v59, %v15270_v46  ;;  %v17368_v46 = vld [vmem:[#allocation25_spill] sm:$0xff]  ;;  %v17370_v10 = vld [vmem:[#allocation6_spill] sm:$0xff]  ;;  %v11395_v11 = vunpack.i.h.bf16 %v17373_v9 }
 0x8c5   : > { %v12126_v47 = vpop.eup %12125  ;;  %5875 = vrot.lane.b32.xlu1 %v17366_v12, %s12360_s16  ;;  %9870 = vmatprep.mubr.msk.f32.mxu0 %vm1488_vm2, %v5020_v45  ;;  %v11410_v42 = vunpack.i.h.bf16 %v17370_v10  ;;  %v11409_v18 = vunpack.i.l.bf16 %v17370_v10  ;;  %v17374_v59 = vld [vmem:[#allocation54_spill] sm:$0xff] }
 0x8c6   : > { %9871 = vmatmul.mubr.msk.f32.gmra.mrb[120].mxu0 %vm1488_vm2, %v5022_v57  ;;  %v4965_v19 = vpop.xlane.xlu0 %4964  ;;  %v5036_v36 = vmul.f32 %v12126_v47, %v15308_v27  ;;  %v17375_v57 = vld [vmem:[#allocation43_spill] sm:$0xff] }
 0x8c7   : > { %9873 = vmatprep.mubr.msk.f32.mxu0 %vm1488_vm2, %v5024_v16  ;;  %12135 = vrcp.f32 %v4965_v19  ;;  %v10838_v45 = vpack.c.bf16 %v11410_v42, %v11409_v18  ;;  %v17376_v16 = vld [vmem:[#allocation11_spill] sm:$0xff]  ;;  %v17388_v42 = vld [vmem:[#allocation29_spill] sm:$0xff]  ;;  %v17389_v18 = vld [vmem:[#allocation36_spill] sm:$0xff] }
 0x8c8   : > { %6215 = vrot.lane.b32.xlu0 %v17260_v40, %s12360_s16  ;;  %9898 = vmatprep.mubr.msk.f32.mxu1 %vm1488_vm2, %v5036_v36  ;;  %12137 = vrcp.f32 %v4992_v4  ;;  %v11415_v19 = vunpack.i.h.bf16 %v17376_v16  ;;  %v17377_v36 = vld [vmem:[#allocation59_spill] sm:$0xff] }
 0x8c9   : > { %v12128_v6 = vpop.eup %12127  ;;  %5879 = vrot.lane.b32.xlu1 %v17367_v31, %s12360_s16  ;;  %9899 = vmatmul.mubr.msk.f32.gmra.mrb[144].mxu1 %vm1488_vm2, %v5038_v39 }
 0x8ca   : > { %v4989_v58 = vpop.xlane.xlu0 %4988  ;;  %v5026_v27 = vmul.f32 %v12128_v6, %v15315_v38  ;;  %v12130_v48 = vpop.eup %12129  ;;  %v11390_v38 = vunpack.i.h.bf16 %v15085_v1  ;;  %v17378_v6 = vld [vmem:[#allocation50_spill] sm:$0xff] }
 0x8cb   : > { %12139 = vrcp.f32 %v4989_v58  ;;  %v5042_v23 = vmul.f32 %v12130_v48, %v15287_v7  ;;  %v17379_v58 = vld [vmem:[#allocation116_spill] sm:$0xff] }
 0x8cc   : > { %11462 = vrot.lane.b32.xlu0 %v17279_v54, %s12360_s16  ;;  %9874 = vmatmul.mubr.msk.f32.gmra.mrb[122].mxu0 %vm1488_vm2, %v5026_v27  ;;  %v10814_v26 = vpack.c.bf16 %v11390_v38, %v11389_v3  ;;  %v11405_v27 = vunpack.i.h.bf16 %v17379_v58  ;;  %v11404_v48 = vunpack.i.l.bf16 %v17379_v58  ;;  %v17383_v3 = vld [vmem:[#allocation51_spill] sm:$0xff]  ;;  %v17402_v58 = vld [vmem:[#allocation121_spill] sm:$0xff] }
 0x8cd   : > { %v12132_v40 = vpop.eup %12131  ;;  %6034 = vrot.lane.b32.xlu1 %v17368_v46, %s12360_s16  ;;  %v17380_v46 = vld [vmem:[#allocation46_spill] sm:$0xff] }
 0x8ce   : > { %v4995_v50 = vpop.xlane.xlu1 %4994  ;;  %v4998_v43 = vpop.xlane.xlu0 %4997  ;;  %v5040_v33 = vmul.f32 %v12132_v40, %v15326_v35 }
 0x8cf   : > { %12141 = vrcp.f32 %v4995_v50  ;;  %v12134_v34 = vpop.eup %12133 }
 0x8d0   : > { %12143 = vrcp.f32 %v4998_v43  ;;  %11472 = vrot.lane.b32.xlu0 %v17281_v24, %s12360_s16  ;;  %9901 = vmatprep.mubr.msk.f32.mxu1 %vm1488_vm2, %v5040_v33  ;;  %v5046_v63 = vmul.f32 %v12134_v34, %v15306_v55  ;;  %v17381_v43 = vld [vmem:[#allocation60_spill] sm:$0xff]  ;;  %v17382_v34 = vld [vmem:[#allocation119_spill] sm:$0xff] }
 0x8d1   : > { %v12136_v54 = vpop.eup %12135  ;;  %6038 = vrot.lane.b32.xlu1 %v17369_v53, %s12360_s16  ;;  %9902 = vmatmul.mubr.msk.f32.gmra.mrb[146].mxu1 %vm1488_vm2, %v5042_v23  ;;  %12145 = vrcp.f32 %v4974_v62  ;;  %v10826_v23 = vpack.c.bf16 %v11405_v27, %v11404_v48  ;;  %v11424_v38 = vunpack.i.l.bf16 %v17382_v34 }
 0x8d2   : > { %v5004_v35 = vpop.xlane.xlu1 %5003  ;;  %v4971_v56 = vpop.xlane.xlu0 %4970  ;;  %v5044_v7 = vmul.f32 %v12136_v54, %v15335_v52  ;;  %v11425_v54 = vunpack.i.h.bf16 %v17382_v34 }
 0x8d3   : > { %v12138_v24 = vpop.eup %12137  ;;  %12147 = vrcp.f32 %v4971_v56 }
 0x8d4   : > { %11482 = vrot.lane.b32.xlu0 %v17283_v14, %s12360_s16  ;;  %9920 = vmatprep.mubr.msk.f32.mxu0 %vm1488_vm2, %v5044_v7  ;;  %12149 = vrcp.f32 %v5004_v35  ;;  %v5062_v44 = vmul.f32 %v12138_v24, %v15317_v32  ;;  %v10850_v53 = vpack.c.bf16 %v11425_v54, %v11424_v38  ;;  %v17384_v35 = vld [vmem:[#allocation33_spill] sm:$0xff] }
 0x8d5   : > { %v12140_v1 = vpop.eup %12139  ;;  %11457 = vrot.lane.b32.xlu1 %v17371_v29, %s12360_s16  ;;  %9921 = vmatmul.mubr.msk.f32.vlgmr.msra.gmra.mrb[124].mxu0 %vm1488_vm2, %v5046_v63  ;;  %v11420_v56 = vunpack.i.h.bf16 %v17384_v35  ;;  %v11419_v7 = vunpack.i.l.bf16 %v17384_v35  ;;  %v17385_v63 = vld [vmem:[#allocation57_spill] sm:$0xff]  ;;  %v17390_v29 = vld [vmem:[#allocation42_spill] sm:$0xff] }
 0x8d6   : > { %10813 = vmatpush3.bf16.xpose.msk.msra.mxu0 %vm12752_vm1, %v15442_v17  ;;  %v5001_v55 = vpop.xlane.xlu1 %5000  ;;  %v4980_v14 = vpop.xlane.xlu0 %4979  ;;  %v5060_v52 = vmul.f32 %v12140_v1, %v15341_v2  ;;  %v11394_v17 = vunpack.i.l.bf16 %v17373_v9 }
 0x8d7   : > { %12151 = vrcp.f32 %v5001_v55  ;;  %10816 = vmatprep.subr.msk.bf16.mxu0 %vm12752_vm1, %v10814_v26  ;;  %v17391_v55 = vld [vmem:[#allocation45_spill] sm:$0xff] }
 0x8d8   : > { %11487 = vrot.lane.b32.xlu0 %v17372_v60, %s12360_s16  ;;  %9948 = vmatprep.mubr.msk.f32.mxu1 %vm1488_vm2, %v5060_v52  ;;  %12153 = vrcp.f32 %v4980_v14  ;;  %v10820_v12 = vpack.c.bf16 %v11395_v11, %v11394_v17  ;;  %v17392_v14 = vld [vmem:[#allocation55_spill] sm:$0xff]  ;;  %v17393_v52 = vld [vmem:[#allocation62_spill] sm:$0xff] }
 0x8d9   : > { %v12142_v37 = vpop.eup %12141  ;;  %6044 = vrot.lane.b32.xlu1 %v17374_v59, %s12360_s16  ;;  %9949 = vmatmul.mubr.msk.f32.vlgmr.msra.gmra.mrb[148].mxu1 %vm1488_vm2, %v5062_v44 }
 0x8da   : > { %v12144_v32 = vpop.eup %12143  ;;  %10837 = vmatpush3.bf16.xpose.msk.msra.mxu1 %vm12752_vm1, %v15459_v49  ;;  %v4977_v2 = vpop.xlane.xlu0 %4976  ;;  %v5064_v4 = vmul.f32 %v12142_v37, %v15348_v13  ;;  %v11414_v49 = vunpack.i.l.bf16 %v17376_v16 }
 0x8db   : > { %10840 = vmatprep.subr.msk.bf16.mxu1 %vm12752_vm1, %v10838_v45  ;;  %12155 = vrcp.f32 %v4977_v2  ;;  %v5066_v28 = vmul.f32 %v12144_v32, %v15346_v21  ;;  %v12146_v47 = vpop.eup %12145  ;;  %v15611_v44 = vpop.permute.xlu1 %5871 }
 0x8dc   : > { %11497 = vrot.lane.b32.xlu0 %v17375_v57, %s12360_s16  ;;  %9951 = vmatprep.mubr.msk.f32.mxu1 %vm1488_vm2, %v5064_v4  ;;  %v5050_v31 = vmul.f32 %v12146_v47, %v15328_v0  ;;  %v10844_v40 = vpack.c.bf16 %v11415_v19, %v11414_v49  ;;  %v17394_v4 = vld [vmem:[#allocation110_spill] sm:$0xff]  ;;  %v17395_v47 = vld [vmem:[#allocation117_spill] sm:$0xff]  ;;  %v17396_v19 = vld [vmem:[#allocation19_spill] sm:$0xff] }
 0x8dd   : > { %6048 = vrot.lane.b32.xlu1 %v17377_v36, %s12360_s16  ;;  %9952 = vmatmul.mubr.msk.f32.gmra.mrb[150].mxu1 %vm1488_vm2, %v5066_v28  ;;  %v12148_v13 = vpop.eup %12147  ;;  %v11430_v28 = vunpack.i.h.bf16 %v17394_v4  ;;  %v11429_v57 = vunpack.i.l.bf16 %v17394_v4  ;;  %v17398_v49 = vld [vmem:[#allocation122_spill] sm:$0xff] }
 0x8de   : > { %10819 = vmatpush3.bf16.xpose.msk.msra.mxu0 %vm12752_vm1, %v10814_v26  ;;  %v5048_v21 = vmul.f32 %v12148_v13, %v15350_v20  ;;  %v12150_v39 = vpop.eup %12149  ;;  %v17387_v26 = vld [vmem:[#allocation61_spill] sm:$0xff]  ;;  %v4986_v60 = vpop.xlane.xlu0 %4985  ;;  %v11435_v36 = vunpack.i.h.bf16 %v17398_v49  ;;  %v11434_v13 = vunpack.i.l.bf16 %v17398_v49 }
 0x8df   : > { %10822 = vmatprep.subr.msk.bf16.mxu0 %vm12752_vm1, %v10820_v12  ;;  %v5070_v0 = vmul.f32 %v12150_v39, %v15356_v5  ;;  %12157 = vrcp.f32 %v4986_v60  ;;  %v10862_v16 = vpack.c.bf16 %v11430_v28, %v11429_v57  ;;  %v17400_v39 = vld [vmem:[#allocation120_spill] sm:$0xff] }
 0x8e0   : > { %11507 = vrot.lane.b32.xlu0 %v17378_v6, %s12360_s16  ;;  %9923 = vmatprep.mubr.msk.f32.mxu0 %vm1488_vm2, %v5048_v21  ;;  %v17399_v21 = vld [vmem:[#allocation109_spill] sm:$0xff] }
 0x8e1   : > { %v12152_v62 = vpop.eup %12151  ;;  %6205 = vrot.lane.b32.xlu1 %v17380_v46, %s12360_s16  ;;  %9924 = vmatmul.mubr.msk.f32.gmra.mrb[126].mxu0 %vm1488_vm2, %v5050_v31  ;;  %v10868_v31 = vpack.c.bf16 %v11435_v36, %v11434_v13  ;;  %v17403_v46 = vld [vmem:[#allocation112_spill] sm:$0xff] }
 0x8e2   : > { %10843 = vmatpush3.bf16.xpose.msk.msra.mxu1 %vm12752_vm1, %v10838_v45  ;;  %v5068_v20 = vmul.f32 %v12152_v62, %v15364_v41  ;;  %v12154_v50 = vpop.eup %12153  ;;  %v15613_v9 = vpop.permute.xlu0 %5869  ;;  %v17401_v62 = vld [vmem:[#allocation111_spill] sm:$0xff] }
 0x8e3   : > { %10846 = vmatprep.subr.msk.bf16.mxu1 %vm12752_vm1, %v10844_v40  ;;  %v5054_v41 = vmul.f32 %v12154_v50, %v15362_v61  ;;  %v17386_v61 = vld [vmem:[#allocation113_spill] sm:$0xff] }
 0x8e4   : > { %11517 = vrot.lane.b32.xlu0 %v17381_v43, %s12360_s16  ;;  %9954 = vmatprep.mubr.msk.f32.mxu1 %vm1488_vm2, %v5068_v20  ;;  %v11440_v24 = vunpack.i.h.bf16 %v17386_v61  ;;  %v11439_v1 = vunpack.i.l.bf16 %v17386_v61 }
 0x8e5   : > { %v12156_v33 = vpop.eup %12155  ;;  %6209 = vrot.lane.b32.xlu1 %v17383_v3, %s12360_s16  ;;  %9955 = vmatmul.mubr.msk.f32.gmra.mrb[152].mxu1 %vm1488_vm2, %v5070_v0 }
 0x8e6   : > { %10825 = vmatpush3.bf16.xpose.msk.msra.mxu0 %vm12752_vm1, %v10820_v12  ;;  %v5052_v5 = vmul.f32 %v12156_v33, %v15370_v25  ;;  %v10856_v25 = vpack.c.bf16 %v11420_v56, %v11419_v7  ;;  %v15592_v10 = vpack.c.bf16 %v11440_v24, %v11439_v1 }
 0x8e7   : > { %10828 = vmatprep.subr.msk.bf16.mxu0 %vm12752_vm1, %v10826_v23 }
 0x8e8   : > { %9926 = vmatprep.mubr.msk.f32.mxu0 %vm1488_vm2, %v5052_v5 }
 0x8e9   : > { %6213 = vrot.lane.b32.xlu1 %v17385_v63, %s12360_s16  ;;  %9927 = vmatmul.mubr.msk.f32.gmra.mrb[128].mxu0 %vm1488_vm2, %v5054_v41  ;;  %v12158_v17 = vpop.eup %12157 }
 0x8ea   : > { %10849 = vmatpush3.bf16.xpose.msk.msra.mxu1 %vm12752_vm1, %v10844_v40  ;;  %v5058_v2 = vmul.f32 %v12158_v17, %v15374_v15  ;;  %v17397_v15 = vld [vmem:[#allocation118_spill] sm:$0xff] }
 0x8eb   : > { %10852 = vmatprep.subr.msk.bf16.mxu1 %vm12752_vm1, %v10850_v53 }
 0x8ed   : > { %6217 = vrot.lane.b32.xlu1 %v17387_v26, %s12360_s16 }
 0x8ee   : > { %10831 = vmatpush3.bf16.xpose.msk.msra.mxu0 %vm12752_vm1, %v10826_v23 }
 0x8ef   : > { %10858 = vmatprep.subr.msk.bf16.mxu0 %vm12752_vm1, %v10856_v25 }
 0x8f1   : > { %11467 = vrot.lane.b32.xlu1 %v17388_v42, %s12360_s16 }
 0x8f2   : > { %10855 = vmatpush3.bf16.xpose.msk.msra.mxu1 %vm12752_vm1, %v10850_v53 }
 0x8f3   : > { %10882 = vmatprep.subr.msk.bf16.mxu1 %vm12752_vm1, %v15592_v10 }
 0x8f5   : > { %11477 = vrot.lane.b32.xlu1 %v17389_v18, %s12360_s16 }
 0x8f9   : > { %11492 = vrot.lane.b32.xlu1 %v17390_v29, %s12360_s16  ;;  %v17404_v29 = vld [vmem:[#allocation123_spill] sm:$0xff] }
 0x8fd   : > { %11502 = vrot.lane.b32.xlu1 %v17391_v55, %s12360_s16  ;;  %v17405_v55 = vld [vmem:[#allocation114_spill] sm:$0xff] }
 0x901   : > { %11512 = vrot.lane.b32.xlu1 %v17392_v14, %s12360_s16 }
 0x905   : > { %11522 = vrot.lane.b32.xlu1 %v17393_v52, %s12360_s16 }
 0x90b   : > { %v4983_v37 = vpop.xlane.xlu1 %4982 }
 0x90c   : > { %12159 = vrcp.f32 %v4983_v37 }
 0x90f   : > { %v11448_v34 = vpop.permute.xlu1 %11447 }
 0x910   : > { %v11450_v26 = vunpack.i.h.bf16 %v11448_v34  ;;  %v11449_v42 = vunpack.i.l.bf16 %v11448_v34 }
 0x913   : > { %v5010_v11 = vpop.xlane.xlu0 %5009 }
 0x914   : > { %12161 = vrcp.f32 %v5010_v11 }
 0x916   : > { %v12160_v45 = vpop.eup %12159 }
 0x917   : > { %v11443_v59 = vpop.permute.xlu0 %11442  ;;  %v5056_v32 = vmul.f32 %v12160_v45, %v15384_v30 }
 0x918   : > { %v11445_v48 = vunpack.i.h.bf16 %v11443_v59  ;;  %v11444_v40 = vunpack.i.l.bf16 %v11443_v59 }
 0x919   : > { %9929 = vmatprep.mubr.msk.f32.mxu0 %vm1488_vm2, %v5056_v32 }
 0x91a   : > { %9930 = vmatmul.mubr.msk.f32.gmra.mrb[130].mxu0 %vm1488_vm2, %v5058_v2  ;;  %v10874_v0 = vpack.c.bf16 %v11445_v48, %v11444_v40 }
 0x91b   : > { %9976 = vmatprep.mubr.msk.f32.mxu0 %vm875_vm0, %v17395_v47  ;;  %v15623_v12 = vpop.permute.xlu0 %5873 }
 0x91e   : > { %9977 = vmatmul.mubr.msk.f32.vlgmr.msra.gmra.mrb[132].mxu0 %vm875_vm0, %v17396_v19  ;;  %v12162_v7 = vpop.eup %12161 }
 0x91f   : > { %10861 = vmatpush3.bf16.xpose.msk.msra.mxu0 %vm12752_vm1, %v10856_v25  ;;  %9979 = vmatprep.mubr.msk.f32.mxu0 %vm875_vm0, %v17397_v15  ;;  %v15631_v30 = vpop.permute.xlu0 %5877  ;;  %v5074_v1 = vmul.f32 %v12162_v7, %v15388_v8 }
 0x920   : > { %10864 = vmatprep.subr.msk.bf16.mxu0 %vm12752_vm1, %v10862_v16 }
 0x922   : > { %9980 = vmatmul.mubr.msk.f32.gmra.mrb[134].mxu0 %vm875_vm0, %v17399_v21 }
 0x923   : > { %9982 = vmatprep.mubr.msk.f32.mxu0 %vm875_vm0, %v17400_v39  ;;  %v15641_v6 = vpop.permute.xlu0 %11452 }
 0x924   : > { %v11455_v14 = vunpack.i.h.bf16 %v15641_v6  ;;  %v11454_v52 = vunpack.i.l.bf16 %v15641_v6 }
 0x926   : > { %9983 = vmatmul.mubr.msk.f32.gmra.mrb[136].mxu0 %vm875_vm0, %v17401_v62 }
 0x927   : > { %10867 = vmatpush3.bf16.xpose.msk.msra.mxu0 %vm12752_vm1, %v10862_v16  ;;  %9985 = vmatprep.mubr.msk.f32.mxu0 %vm875_vm0, %v17402_v58  ;;  %v6037_v27 = vpop.permute.xlu0 %6036 }
 0x928   : > { %10870 = vmatprep.subr.msk.bf16.mxu0 %vm12752_vm1, %v10868_v31 }
 0x92a   : > { %9986 = vmatmul.mubr.msk.f32.gmra.mrb[138].mxu0 %vm875_vm0, %v17403_v46 }
 0x92b   : > { %v6041_v20 = vpop.permute.xlu0 %6040 }
 0x92f   : > { %10873 = vmatpush3.bf16.xpose.msk.msra.mxu0 %vm12752_vm1, %v10868_v31  ;;  %v6043_v50 = vpop.permute.xlu0 %6042 }
 0x930   : > { %10876 = vmatprep.subr.msk.bf16.mxu0 %vm12752_vm1, %v10874_v0 }
 0x933   : > { %v6047_v43 = vpop.permute.xlu0 %6046 }
 0x937   : > { %10879 = vmatpush3.bf16.xpose.msk.msra.mxu0 %vm12752_vm1, %v10874_v0  ;;  %v6204_v33 = vpop.permute.xlu0 %6203 }
 0x93b   : > { %v15659_v23 = vpop.permute.xlu0 %6207 }
 0x93f   : > { %v15661_v54 = vpop.permute.xlu0 %6211 }
 0x940   : > { %v5007_v38 = vpop.xlane.xlu1 %5006 }
 0x941   : > { %12163 = vrcp.f32 %v5007_v38 }
 0x943   : > { %v15663_v3 = vpop.permute.xlu0 %6215 }
 0x944   : > { %v5876_v5 = vpop.permute.xlu1 %5875 }
 0x947   : > { %v11463_v41 = vpop.permute.xlu0 %11462 }
 0x948   : > { %v11465_v53 = vunpack.i.h.bf16 %v11463_v41  ;;  %v11464_v35 = vunpack.i.l.bf16 %v11463_v41  ;;  %v5880_v56 = vpop.permute.xlu1 %5879 }
 0x94a   : > { %v10904_v63 = vpack.c.bf16 %v11465_v53, %v11464_v35 }
 0x94b   : > { %v12164_v25 = vpop.eup %12163 }
 0x94c   : > { %v6035_v61 = vpop.permute.xlu1 %6034  ;;  %10905 = vmatprep.subr.bf16.mxu0 %v10904_v63  ;;  %v5072_v24 = vmul.f32 %v12164_v25, %v15409_v51  ;;  %v10886_v51 = vpack.c.bf16 %v11450_v26, %v11449_v42 }
 0x94d   : > { %10032 = vmatprep.mubr.msk.f32.mxu0 %vm875_vm0, %v6035_v61 }
 0x94e   : > { %9957 = vmatprep.mubr.msk.f32.mxu1 %vm1488_vm2, %v5072_v24  ;;  %10033 = vmatmul.mubr.msk.f32.vlgmr.msra.gmra.mrb[140].mxu0 %vm875_vm0, %v6037_v27 }
 0x94f   : > { %10907 = vmatpush3.bf16.msra.mxu0 %v10904_v63  ;;  %9958 = vmatmul.mubr.msk.f32.gmra.mrb[154].mxu1 %vm1488_vm2, %v5074_v1 }
 0x950   : > { %v6039_v18 = vpop.permute.xlu1 %6038  ;;  %10004 = vmatprep.mubr.msk.f32.mxu1 %vm875_vm0, %v17404_v29 }
 0x951   : > { %10035 = vmatprep.mubr.msk.f32.mxu0 %vm875_vm0, %v6039_v18 }
 0x952   : > { %10036 = vmatmul.mubr.msk.f32.gmra.mrb[142].mxu0 %vm875_vm0, %v6041_v20 }
 0x953   : > { %10005 = vmatmul.mubr.msk.f32.vlgmr.msra.gmra.mrb[156].mxu1 %vm875_vm0, %v17405_v55  ;;  %10038 = vmatprep.mubr.msk.f32.mxu0 %vm875_vm0, %v6043_v50 }
 0x954   : > { %10885 = vmatpush3.bf16.xpose.msk.msra.mxu1 %vm12752_vm1, %v15592_v10  ;;  %v11458_v8 = vpop.permute.xlu1 %11457  ;;  %10007 = vmatprep.mubr.msk.f32.mxu1 %vm875_vm0, %v15613_v9  ;;  %v10892_v10 = vpack.c.bf16 %v11455_v14, %v11454_v52 }
 0x955   : > { %10888 = vmatprep.subr.msk.bf16.mxu1 %vm12752_vm1, %v10886_v51  ;;  %v11460_v9 = vunpack.i.h.bf16 %v11458_v8  ;;  %v11459_v11 = vunpack.i.l.bf16 %v11458_v8 }
 0x957   : > { %10008 = vmatmul.mubr.msk.f32.gmra.mrb[158].mxu1 %vm875_vm0, %v15611_v44  ;;  %v11473_v44 = vpop.permute.xlu0 %11472  ;;  %v10898_v45 = vpack.c.bf16 %v11460_v9, %v11459_v11 }
 0x958   : > { %v6045_v60 = vpop.permute.xlu1 %6044  ;;  %10010 = vmatprep.mubr.msk.f32.mxu1 %vm875_vm0, %v15623_v12  ;;  %v11474_v49 = vunpack.i.l.bf16 %v11473_v44 }
 0x959   : > { %10039 = vmatmul.mubr.msk.f32.gmra.mrb[144].mxu0 %vm875_vm0, %v6045_v60 }
 0x95a   : > { %10041 = vmatprep.mubr.msk.f32.mxu0 %vm875_vm0, %v6047_v43 }
 0x95b   : > { %10011 = vmatmul.mubr.msk.f32.gmra.mrb[160].mxu1 %vm875_vm0, %v5876_v5  ;;  %v11483_v59 = vpop.permute.xlu0 %11482 }
 0x95c   : > { %10891 = vmatpush3.bf16.xpose.msk.msra.mxu1 %vm12752_vm1, %v10886_v51  ;;  %v6049_v37 = vpop.permute.xlu1 %6048  ;;  %10013 = vmatprep.mubr.msk.f32.mxu1 %vm875_vm0, %v15631_v30  ;;  %v11485_v2 = vunpack.i.h.bf16 %v11483_v59  ;;  %v11484_v4 = vunpack.i.l.bf16 %v11483_v59  ;;  %v11475_v30 = vunpack.i.h.bf16 %v11473_v44 }
 0x95d   : > { %10894 = vmatprep.subr.msk.bf16.mxu1 %vm12752_vm1, %v10892_v10  ;;  %10042 = vmatmul.mubr.msk.f32.gmra.mrb[146].mxu0 %vm875_vm0, %v6049_v37 }
 0x95e   : > { %v10920_v57 = vpack.c.bf16 %v11485_v2, %v11484_v4  ;;  %v10912_v58 = vpack.c.bf16 %v11475_v30, %v11474_v49 }
 0x95f   : > { %10014 = vmatmul.mubr.msk.f32.gmra.mrb[162].mxu1 %vm875_vm0, %v5880_v56  ;;  %v11488_v47 = vpop.permute.xlu0 %11487 }
 0x960   : > { %v6206_v17 = vpop.permute.xlu1 %6205  ;;  %10060 = vmatprep.mubr.msk.f32.mxu1 %vm875_vm0, %v6204_v33  ;;  %v11490_v16 = vunpack.i.h.bf16 %v11488_v47  ;;  %v11489_v19 = vunpack.i.l.bf16 %v11488_v47 }
 0x962   : > { %v10924_v21 = vpack.c.bf16 %v11490_v16, %v11489_v19 }
 0x963   : > { %v11498_v22 = vpop.permute.xlu0 %11497 }
 0x964   : > { %10897 = vmatpush3.bf16.xpose.msk.msra.mxu1 %vm12752_vm1, %v10892_v10  ;;  %v6210_v32 = vpop.permute.xlu1 %6209  ;;  %v11500_v27 = vunpack.i.h.bf16 %v11498_v22  ;;  %v11499_v40 = vunpack.i.l.bf16 %v11498_v22 }
 0x965   : > { %10900 = vmatprep.subr.msk.bf16.mxu1 %vm12752_vm1, %v10898_v45 }
 0x966   : > { %v10932_v34 = vpack.c.bf16 %v11500_v27, %v11499_v40 }
 0x968   : > { %v6214_v28 = vpop.permute.xlu1 %6213 }
 0x96c   : > { %10903 = vmatpush3.bf16.xpose.msk.msra.mxu1 %vm12752_vm1, %v10898_v45  ;;  %v6218_v12 = vpop.permute.xlu1 %6217 }
 0x96d   : > { %10921 = vmatprep.subr.bf16.mxu1 %v10920_v57 }
 0x970   : > { %v11468_v15 = vpop.permute.xlu1 %11467 }
 0x971   : > { %v11470_v36 = vunpack.i.h.bf16 %v11468_v15  ;;  %v11469_v13 = vunpack.i.l.bf16 %v11468_v15 }
 0x973   : > { %10061 = vmatmul.mubr.msk.f32.vlgmr.msra.gmra.mrb[164].mxu1 %vm875_vm0, %v6206_v17  ;;  %v10908_v39 = vpack.c.bf16 %v11470_v36, %v11469_v13  ;;  %v15868_v17 = vld [vmem:[%s16845_s3 + $0xe8] sm:$0xff] }
 0x974   : > { %10063 = vmatprep.mubr.msk.f32.mxu1 %vm875_vm0, %v15659_v23  ;;  %10923 = vmatpush3.bf16.msra.mxu1 %v10920_v57  ;;  %v11478_v6 = vpop.permute.xlu1 %11477 }
 0x975   : > { %v11480_v31 = vunpack.i.h.bf16 %v11478_v6  ;;  %v11479_v62 = vunpack.i.l.bf16 %v11478_v6  ;;  %10925 = vmatprep.subr.bf16.mxu1 %v10924_v21  ;;  %10909 = vmatprep.subr.bf16.mxu0 %v10908_v39 }
 0x976   : > { %10911 = vmatpush3.bf16.msra.mxu0 %v10908_v39 }
 0x977   : > { %10064 = vmatmul.mubr.msk.f32.gmra.mrb[166].mxu1 %vm875_vm0, %v6210_v32  ;;  %10913 = vmatprep.subr.bf16.mxu0 %v10912_v58  ;;  %v10916_v0 = vpack.c.bf16 %v11480_v31, %v11479_v62  ;;  %v15820_v62 = vld [vmem:[%s16845_s3 + $0xc8] sm:$0xff] }
 0x978   : > { %10066 = vmatprep.mubr.msk.f32.mxu1 %vm875_vm0, %v15661_v54  ;;  %10927 = vmatpush3.bf16.msra.mxu1 %v10924_v21  ;;  %v11493_v48 = vpop.permute.xlu1 %11492 }
 0x979   : > { %v11495_v46 = vunpack.i.h.bf16 %v11493_v48  ;;  %v11494_v20 = vunpack.i.l.bf16 %v11493_v48 }
 0x97a   : > { %10915 = vmatpush3.bf16.msra.mxu0 %v10912_v58  ;;  %v15825_v58 = vld [vmem:[%s16845_s3 + $0xc0] sm:$0xff] }
 0x97b   : > { %10067 = vmatmul.mubr.msk.f32.gmra.mrb[168].mxu1 %vm875_vm0, %v6214_v28  ;;  %10917 = vmatprep.subr.bf16.mxu0 %v10916_v0  ;;  %v10928_v50 = vpack.c.bf16 %v11495_v46, %v11494_v20 }
 0x97c   : > { %10069 = vmatprep.mubr.msk.f32.mxu1 %vm875_vm0, %v15663_v3  ;;  %v11503_v43 = vpop.permute.xlu1 %11502 }
 0x97d   : > { %v11505_v33 = vunpack.i.h.bf16 %v11503_v43  ;;  %v11504_v23 = vunpack.i.l.bf16 %v11503_v43  ;;  %10929 = vmatprep.subr.bf16.mxu1 %v10928_v50 }
 0x97e   : > { %10919 = vmatpush3.bf16.msra.mxu0 %v10916_v0  ;;  %10931 = vmatpush3.bf16.msra.mxu1 %v10928_v50 }
 0x97f   : > { %10070 = vmatmul.mubr.msk.f32.gmra.mrb[170].mxu1 %vm875_vm0, %v6218_v12  ;;  %10933 = vmatprep.subr.bf16.mxu1 %v10932_v34  ;;  %v15719_v54 = vpack.c.bf16 %v11505_v33, %v11504_v23 }
 0x980   : > { %v15721_v38 = vpop.permute.xlu1 %11512 }
 0x981   : > { %10937 = vmatprep.subr.bf16.mxu0 %v15719_v54 }
 0x982   : > { %10935 = vmatpush3.bf16.msra.mxu1 %v10932_v34 }
 0x983   : > { %v15724_v5 = vpop.f32.mrb[116].mxu0 }
 0x984   : > { %v11523_v3 = vpop.permute.xlu1 %11522  ;;  %v15726_v41 = vpop.f32.mrb[117].mxu0 }
 0x985   : > { %v11525_v53 = vunpack.i.h.bf16 %v11523_v3  ;;  %v11524_v35 = vunpack.i.l.bf16 %v11523_v3 }
 0x987   : > { %v15730_v7 = vpack.c.bf16 %v11525_v53, %v11524_v35 }
 0x988   : > { %v15732_v63 = vpop.f32.mrb[140].mxu1 }
 0x989   : > { %17406 = vst [vmem:[#allocation30_spill] sm:$0xff] %v15730_v7  ;;  %10953 = vmatprep.subr.bf16.mxu1 %v15730_v7  ;;  %v15735_v25 = vpop.f32.mrb[141].mxu1 }
 0x991   : > { %v15739_v24 = vpop.f32.mrb[118].mxu0 }
 0x992   : > { %v15741_v1 = vpop.f32.mrb[119].mxu0 }
 0x995   : > { %v15745_v42 = vpop.f32.mrb[142].mxu1 }
 0x996   : > { %v15747_v18 = vpop.f32.mrb[143].mxu1 }
 0x999   : > { %v15751_v51 = vpop.f32.mrb[120].mxu0 }
 0x99a   : > { %v15753_v55 = vpop.f32.mrb[121].mxu0 }
 0x99c   : > { %v15757_v14 = vpop.f32.mrb[144].mxu1 }
 0x99d   : > { %v15759_v52 = vpop.f32.mrb[145].mxu1 }
 0x99f   : > { %v15763_v10 = vpop.f32.mrb[122].mxu0 }
 0x9a0   : > { %v15765_v37 = vpop.f32.mrb[123].mxu0 }
 0x9a4   : > { %v15769_v9 = vpop.f32.mrb[146].mxu1 }
 0x9a5   : > { %v15771_v11 = vpop.f32.mrb[147].mxu1 }
 0x9a6   : > { %17407 = vst [vmem:[#allocation28_spill] sm:$0xff] %v15771_v11 }
 0x9a8   : > { %v15775_v45 = vpop.f32.mrb[124].mxu0 }
 0x9a9   : > { %17408 = vst [vmem:[#allocation13_spill] sm:$0xff] %v15775_v45  ;;  %v15777_v59 = vpop.f32.mrb[125].mxu0 }
 0x9aa   : > { %17409 = vst [vmem:[#allocation9_spill] sm:$0xff] %v15777_v59 }
 0x9ac   : > { %v15781_v2 = vpop.f32.mrb[148].mxu1 }
 0x9ad   : > { %17410 = vst [vmem:[#allocation31_spill] sm:$0xff] %v15781_v2  ;;  %v15783_v4 = vpop.f32.mrb[149].mxu1 }
 0x9ae   : > { %17411 = vst [vmem:[#allocation35_spill] sm:$0xff] %v15783_v4 }
 0x9b0   : > { %v15787_v57 = vpop.f32.mrb[150].mxu1 }
 0x9b1   : > { %17412 = vst [vmem:[#allocation15_spill] sm:$0xff] %v15787_v57  ;;  %v15789_v47 = vpop.f32.mrb[151].mxu1 }
 0x9b2   : > { %17413 = vst [vmem:[#allocation44_spill] sm:$0xff] %v15789_v47 }
 0x9b4   : > { %v15793_v16 = vpop.f32.mrb[126].mxu0 }
 0x9b5   : > { %17414 = vst [vmem:[#allocation52_spill] sm:$0xff] %v15793_v16  ;;  %v15795_v19 = vpop.f32.mrb[127].mxu0 }
 0x9b6   : > { %17415 = vst [vmem:[#allocation56_spill] sm:$0xff] %v15795_v19 }
 0x9b8   : > { %v15799_v30 = vpop.f32.mrb[152].mxu1 }
 0x9b9   : > { %17416 = vst [vmem:[#allocation38_spill] sm:$0xff] %v15799_v30  ;;  %v15801_v49 = vpop.f32.mrb[153].mxu1 }
 0x9ba   : > { %17417 = vst [vmem:[#allocation53_spill] sm:$0xff] %v15801_v49 }
 0x9bc   : > { %v15805_v13 = vpop.f32.mrb[128].mxu0 }
 0x9bd   : > { %17418 = vst [vmem:[#allocation32_spill] sm:$0xff] %v15805_v13  ;;  %v15807_v21 = vpop.f32.mrb[129].mxu0 }
 0x9be   : > { %17419 = vst [vmem:[#allocation37_spill] sm:$0xff] %v15807_v21 }
 0x9ed   : > { %v15811_v6 = vpop.f32.mrb[130].mxu0 }
 0x9ee   : > { %17420 = vst [vmem:[#allocation25_spill] sm:$0xff] %v15811_v6  ;;  %v15813_v22 = vpop.f32.mrb[131].mxu0 }
 0x9ef   : > { %17421 = vst [vmem:[#allocation47_spill] sm:$0xff] %v15813_v22 }
 0x9f1   : > { %v9978_v27 = vpop.f32.mrb[132].mxu0 }
 0x9f2   : > { %v15828_v48 = vadd.f32 %v9978_v27, %v15820_v62  ;;  %v5826_v40 = vpop.f32.mrb[133].mxu0 }
 0x9f3   : > { %v15831_v46 = vadd.f32 %v15825_v58, %v5826_v40 }
 0x9f4   : > { %v6375_v20 = vsel %vm1488_vm2, %v15828_v48, -inf }
 0x9f5   : > { %6376 = vmax.xlane.f32.xlu1 %v6375_v20  ;;  %v9981_v0 = vpop.f32.mrb[134].mxu0  ;;  %v6372_v50 = vsel %vm1488_vm2, %v15831_v46, -inf }
 0x9f6   : > { %v5836_v43 = vpop.f32.mrb[135].mxu0  ;;  %6373 = vmax.xlane.f32.xlu0 %v6372_v50  ;;  %v15852_v50 = vld [vmem:[%s16845_s3 + $0xd8] sm:$0xff] }
 0x9f7   : > { %v15863_v32 = vadd.f32 %v9981_v0, %v15852_v50 }
 0x9f9   : > { %v9984_v33 = vpop.f32.mrb[136].mxu0 }
 0x9fa   : > { %v5846_v23 = vpop.f32.mrb[137].mxu0  ;;  %v15883_v44 = vadd.f32 %v9984_v33, %v15868_v17 }
 0x9fc   : > { %v6387_v49 = vsel %vm1488_vm2, %v15883_v44, -inf }
 0x9fd   : > { %v9987_v34 = vpop.f32.mrb[138].mxu0 }
 0x9fe   : > { %v5856_v3 = vpop.f32.mrb[139].mxu0 }
 0xa21   : > { %v10034_v53 = vpop.f32.mrb[140].mxu0 }
 0xa22   : > { %v15837_v35 = vpop.f32.mrb[154].mxu1  ;;  %v15839_v27 = vpop.f32.mrb[141].mxu0 }
 0xa23   : > { %17422 = vst [vmem:[#allocation6_spill] sm:$0xff] %v15837_v35  ;;  %v15841_v40 = vpop.f32.mrb[155].mxu1 }
 0xa24   : > { %17423 = vst [vmem:[#allocation18_spill] sm:$0xff] %v15841_v40 }
 0xa25   : > { %v15845_v36 = vpop.f32.mrb[142].mxu0 }
 0xa26   : > { %v10006_v12 = vpop.f32.mrb[156].mxu1  ;;  %v15847_v28 = vpop.f32.mrb[143].mxu0 }
 0xa27   : > { %v15855_v39 = vadd.f32 %v10006_v12, %v15820_v62  ;;  %v5995_v31 = vpop.f32.mrb[157].mxu1 }
 0xa28   : > { %v15858_v15 = vadd.f32 %v15825_v58, %v5995_v31  ;;  %v15875_v31 = vld [vmem:[%s16845_s3 + $0xd0] sm:$0xff] }
 0xa29   : > { %v6399_v20 = vsel %vm1488_vm2, %v15855_v39, -inf  ;;  %v15890_v26 = vadd.f32 %v15875_v31, %v5836_v43 }
 0xa2a   : > { %6400 = vmax.xlane.f32.xlu1 %v6399_v20  ;;  %v10009_v60 = vpop.f32.mrb[158].mxu1  ;;  %v6396_v12 = vsel %vm1488_vm2, %v15858_v15, -inf }
 0xa2b   : > { %v15878_v29 = vadd.f32 %v10009_v60, %v15852_v50  ;;  %v6005_v0 = vpop.f32.mrb[159].mxu1  ;;  %6397 = vmax.xlane.f32.xlu0 %v6396_v12  ;;  %v6381_v60 = vsel %vm1488_vm2, %v15863_v32, -inf  ;;  %v6378_v30 = vsel %vm1488_vm2, %v15890_v26, -inf }
 0xa2c   : > { %v15880_v61 = vpop.f32.mrb[144].mxu0  ;;  %v15909_v43 = vadd.f32 %v15875_v31, %v6005_v0 }
 0xa2d   : > { %v15885_v20 = vpop.f32.mrb[145].mxu0  ;;  %v6405_v8 = vsel %vm1488_vm2, %v15878_v29, -inf }
 0xa2e   : > { %6406 = vmax.xlane.f32.xlu1 %v6405_v8  ;;  %v10012_v56 = vpop.f32.mrb[160].mxu1  ;;  %v15906_v8 = vld [vmem:[%s16845_s3 + $0xf8] sm:$0xff] }
 0xa2f   : > { %6382 = vmax.xlane.f32.xlu0 %v6381_v60  ;;  %v6015_v12 = vpop.f32.mrb[161].mxu1  ;;  %v15897_v33 = vadd.f32 %v10012_v56, %v15868_v17  ;;  %v15916_v56 = vld [vmem:[%s16845_s3 + $0xe0] sm:$0xff]  ;;  %v15919_v57 = vadd.f32 %v9987_v34, %v15906_v8 }
 0xa30   : > { %v15894_v40 = vpop.f32.mrb[146].mxu0  ;;  %v15924_v0 = vadd.f32 %v15916_v56, %v5846_v23  ;;  %v15934_v34 = vadd.f32 %v15916_v56, %v6015_v12  ;;  %v15942_v23 = vadd.f32 %v10034_v53, %v15820_v62  ;;  %v15958_v53 = vadd.f32 %v15825_v58, %v15839_v27 }
 0xa31   : > { %v15899_v35 = vpop.f32.mrb[147].mxu0  ;;  %v6411_v4 = vsel %vm1488_vm2, %v15897_v33, -inf }
 0xa32   : > { %6388 = vmax.xlane.f32.xlu1 %v6387_v49  ;;  %v10015_v60 = vpop.f32.mrb[162].mxu1  ;;  %v6402_v49 = vsel %vm1488_vm2, %v15909_v43, -inf  ;;  %v6384_v21 = vsel %vm1488_vm2, %v15924_v0, -inf  ;;  %v6408_v12 = vsel %vm1488_vm2, %v15934_v34, -inf  ;;  %v6420_v6 = vsel %vm1488_vm2, %v15958_v53, -inf }
 0xa33   : > { %6379 = vmax.xlane.f32.xlu0 %v6378_v30  ;;  %v6025_v47 = vpop.f32.mrb[163].mxu1  ;;  %v15929_v2 = vadd.f32 %v10015_v60, %v15906_v8  ;;  %v6393_v30 = vsel %vm1488_vm2, %v15919_v57, -inf }
 0xa35   : > { %v6417_v60 = vsel %vm1488_vm2, %v15929_v2, -inf }
 0xa36   : > { %6412 = vmax.xlane.f32.xlu1 %v6411_v4  ;;  %v8492_v4 = vld [vmem:[%s16845_s3 + $0xf0] sm:$0xff] }
 0xa37   : > { %6403 = vmax.xlane.f32.xlu0 %v6402_v49  ;;  %v15946_v49 = vadd.f32 %v8492_v4, %v5856_v3  ;;  %v15952_v13 = vadd.f32 %v8492_v4, %v6025_v47  ;;  %v15967_v47 = vadd.f32 %v15845_v36, %v15852_v50 }
 0xa39   : > { %v6429_v36 = vsel %vm1488_vm2, %v15967_v47, -inf }
 0xa3a   : > { %6394 = vmax.xlane.f32.xlu1 %v6393_v30  ;;  %v6423_v30 = vsel %vm1488_vm2, %v15942_v23, -inf }
 0xa3b   : > { %6385 = vmax.xlane.f32.xlu0 %v6384_v21  ;;  %v6390_v21 = vsel %vm1488_vm2, %v15946_v49, -inf }
 0xa3e   : > { %6418 = vmax.xlane.f32.xlu1 %v6417_v60  ;;  %v6414_v60 = vsel %vm1488_vm2, %v15952_v13, -inf }
 0xa3f   : > { %6409 = vmax.xlane.f32.xlu0 %v6408_v12 }
 0xa42   : > { %6424 = vmax.xlane.f32.xlu1 %v6423_v30 }
 0xa43   : > { %6391 = vmax.xlane.f32.xlu0 %v6390_v21 }
 0xa46   : > { %v10062_v3 = vpop.f32.mrb[164].mxu1 }
 0xa47   : > { %v15963_v12 = vadd.f32 %v10062_v3, %v15820_v62  ;;  %v6333_v22 = vpop.f32.mrb[165].mxu1  ;;  %6415 = vmax.xlane.f32.xlu0 %v6414_v60  ;;  %v15983_v3 = vadd.f32 %v15875_v31, %v15847_v28 }
 0xa48   : > { %v15972_v21 = vadd.f32 %v15825_v58, %v6333_v22 }
 0xa49   : > { %v6447_v30 = vsel %vm1488_vm2, %v15963_v12, -inf  ;;  %v6426_v28 = vsel %vm1488_vm2, %v15983_v3, -inf }
 0xa4a   : > { %v10065_v27 = vpop.f32.mrb[166].mxu1  ;;  %6448 = vmax.xlane.f32.xlu1 %v6447_v30  ;;  %v6444_v22 = vsel %vm1488_vm2, %v15972_v21, -inf }
 0xa4b   : > { %v6343_v19 = vpop.f32.mrb[167].mxu1  ;;  %6421 = vmax.xlane.f32.xlu0 %v6420_v6  ;;  %v15977_v62 = vadd.f32 %v10065_v27, %v15852_v50  ;;  %v15989_v6 = vadd.f32 %v15880_v61, %v15868_v17 }
 0xa4c   : > { %v15994_v30 = vadd.f32 %v15875_v31, %v6343_v19  ;;  %v16011_v31 = vadd.f32 %v15894_v40, %v15906_v8  ;;  %v16026_v40 = vadd.f32 %v8492_v4, %v15899_v35  ;;  %v16038_v35 = vpop.permute.xlu0 %11507 }
 0xa4d   : > { %v6453_v50 = vsel %vm1488_vm2, %v15977_v62, -inf  ;;  %v6435_v61 = vsel %vm1488_vm2, %v15989_v6, -inf }
 0xa4e   : > { %v10068_v60 = vpop.f32.mrb[168].mxu1  ;;  %6430 = vmax.xlane.f32.xlu1 %v6429_v36  ;;  %v6450_v19 = vsel %vm1488_vm2, %v15994_v30, -inf }
 0xa4f   : > { %v6353_v58 = vpop.f32.mrb[169].mxu1  ;;  %6445 = vmax.xlane.f32.xlu0 %v6444_v22  ;;  %v15999_v16 = vadd.f32 %v10068_v60, %v15868_v17  ;;  %v16005_v22 = vadd.f32 %v15916_v56, %v15885_v20 }
 0xa50   : > { %v16016_v60 = vadd.f32 %v15916_v56, %v6353_v58 }
 0xa51   : > { %v6459_v17 = vsel %vm1488_vm2, %v15999_v16, -inf  ;;  %v6432_v20 = vsel %vm1488_vm2, %v16005_v22, -inf }
 0xa52   : > { %v10071_v27 = vpop.f32.mrb[170].mxu1  ;;  %6454 = vmax.xlane.f32.xlu1 %v6453_v50 }
 0xa53   : > { %v6363_v36 = vpop.f32.mrb[171].mxu1  ;;  %6427 = vmax.xlane.f32.xlu0 %v6426_v28  ;;  %v16021_v50 = vadd.f32 %v10071_v27, %v15906_v8  ;;  %v6441_v28 = vsel %vm1488_vm2, %v16011_v31, -inf  ;;  %v6438_v8 = vsel %vm1488_vm2, %v16026_v40, -inf }
 0xa54   : > { %v16032_v58 = vadd.f32 %v8492_v4, %v6363_v36 }
 0xa55   : > { %v6465_v56 = vsel %vm1488_vm2, %v16021_v50, -inf }
 0xa56   : > { %6436 = vmax.xlane.f32.xlu1 %v6435_v61  ;;  %v6456_v61 = vsel %vm1488_vm2, %v16016_v60, -inf  ;;  %v6462_v27 = vsel %vm1488_vm2, %v16032_v58, -inf }
 0xa57   : > { %6451 = vmax.xlane.f32.xlu0 %v6450_v19  ;;  %v17424_v19 = vld [vmem:[#allocation64_spill] sm:$0xff] }
 0xa5a   : > { %6460 = vmax.xlane.f32.xlu1 %v6459_v17  ;;  %v16042_v17 = vpop.permute.xlu0 %11517 }
 0xa5b   : > { %6433 = vmax.xlane.f32.xlu0 %v6432_v20  ;;  %17425 = vst [vmem:[#allocation41_spill] sm:$0xff] %v16042_v17 }
 0xa5e   : > { %6442 = vmax.xlane.f32.xlu1 %v6441_v28 }
 0xa5f   : > { %6457 = vmax.xlane.f32.xlu0 %v6456_v61 }
 0xa62   : > { %6466 = vmax.xlane.f32.xlu1 %v6465_v56 }
 0xa63   : > { %6439 = vmax.xlane.f32.xlu0 %v6438_v8 }
 0xa67   : > { %6463 = vmax.xlane.f32.xlu0 %v6462_v27 }
 0xa7d   : > { %11527 = vrot.lane.b32.xlu0 %v17424_v19, %s12360_s16 }
 0xa82   : > { %v6377_v20 = vpop.xlane.xlu1 %6376 }
 0xa83   : > { %v6469_v4 = vsub.f32 %v15828_v48, %v6377_v20  ;;  %v6374_v36 = vpop.xlane.xlu0 %6373 }
 0xa84   : > { %v6468_v61 = vsub.f32 %v15831_v46, %v6374_v36 }
 0xa85   : > { %v6502_v28 = vmul.f32 1.442695, %v6469_v4 }
 0xa86   : > { %v6500_v56 = vmul.f32 1.442695, %v6468_v61 }
 0xa87   : > { %12165 = vpow2.f32 %v6502_v28 }
 0xa88   : > { %12167 = vpow2.f32 %v6500_v56 }
 0xa91   : > { %v16046_v8 = vpop.eup %12165 }
 0xa92   : > { %v6567_v27 = vsel %vm1488_vm2, %v16046_v8, 0.0  ;;  %v16050_v59 = vpop.eup %12167 }
 0xa93   : > { %6568 = vadd.xlane.f32.xlu1 %v6567_v27  ;;  %v6564_v19 = vsel %vm1488_vm2, %v16050_v59, 0.0 }
 0xa9c   : > { %6565 = vadd.xlane.f32.xlu0 %v6564_v19 }
 0xab7   : > { %v6401_v48 = vpop.xlane.xlu1 %6400 }
 0xab8   : > { %v6477_v20 = vsub.f32 %v15855_v39, %v6401_v48  ;;  %v6398_v4 = vpop.xlane.xlu0 %6397 }
 0xab9   : > { %v6476_v46 = vsub.f32 %v15858_v15, %v6398_v4 }
 0xaba   : > { %v6518_v36 = vmul.f32 1.442695, %v6477_v20 }
 0xabb   : > { %v6516_v28 = vmul.f32 1.442695, %v6476_v46  ;;  %v6407_v61 = vpop.xlane.xlu1 %6406 }
 0xabc   : > { %12169 = vpow2.f32 %v6518_v36  ;;  %v6479_v56 = vsub.f32 %v15878_v29, %v6407_v61  ;;  %v6383_v45 = vpop.xlane.xlu0 %6382 }
 0xabd   : > { %12171 = vpow2.f32 %v6516_v28  ;;  %v6471_v27 = vsub.f32 %v15863_v32, %v6383_v45 }
 0xabe   : > { %v6522_v7 = vmul.f32 1.442695, %v6479_v56 }
 0xabf   : > { %v6506_v17 = vmul.f32 1.442695, %v6471_v27  ;;  %v6389_v11 = vpop.xlane.xlu1 %6388 }
 0xac0   : > { %v6380_v19 = vpop.xlane.xlu0 %6379  ;;  %v6473_v15 = vsub.f32 %v15883_v44, %v6389_v11 }
 0xac1   : > { %12173 = vpow2.f32 %v6506_v17  ;;  %v6470_v39 = vsub.f32 %v15890_v26, %v6380_v19 }
 0xac2   : > { %12175 = vpow2.f32 %v6522_v7  ;;  %v6510_v45 = vmul.f32 1.442695, %v6473_v15 }
 0xac3   : > { %v6504_v48 = vmul.f32 1.442695, %v6470_v39  ;;  %v6413_v20 = vpop.xlane.xlu1 %6412 }
 0xac4   : > { %v6404_v4 = vpop.xlane.xlu0 %6403  ;;  %v6481_v32 = vsub.f32 %v15897_v33, %v6413_v20 }
 0xac5   : > { %12177 = vpow2.f32 %v6504_v48  ;;  %v6478_v29 = vsub.f32 %v15909_v43, %v6404_v4 }
 0xac6   : > { %v16061_v46 = vpop.eup %12169  ;;  %v6526_v61 = vmul.f32 1.442695, %v6481_v32 }
 0xac7   : > { %v16063_v36 = vpop.eup %12171  ;;  %v6520_v28 = vmul.f32 1.442695, %v6478_v29  ;;  %v6395_v17 = vpop.xlane.xlu1 %6394  ;;  %v6591_v7 = vsel %vm1488_vm2, %v16061_v46, 0.0 }
 0xac8   : > { %v6386_v26 = vpop.xlane.xlu0 %6385  ;;  %6592 = vadd.xlane.f32.xlu1 %v6591_v7  ;;  %v6588_v44 = vsel %vm1488_vm2, %v16063_v36, 0.0  ;;  %v6475_v33 = vsub.f32 %v15919_v57, %v6395_v17 }
 0xac9   : > { %12179 = vpow2.f32 %v6520_v28  ;;  %v6472_v11 = vsub.f32 %v15924_v0, %v6386_v26  ;;  %6589 = vadd.xlane.f32.xlu0 %v6588_v44 }
 0xaca   : > { %12181 = vpow2.f32 %v6510_v45  ;;  %v6514_v20 = vmul.f32 1.442695, %v6475_v33 }
 0xacb   : > { %v16071_v43 = vpop.eup %12173  ;;  %v6508_v56 = vmul.f32 1.442695, %v6472_v11  ;;  %v6419_v27 = vpop.xlane.xlu1 %6418 }
 0xacc   : > { %v6410_v19 = vpop.xlane.xlu0 %6409  ;;  %v6573_v39 = vsel %vm1488_vm2, %v16071_v43, 0.0  ;;  %v16076_v15 = vpop.eup %12175  ;;  %v6483_v4 = vsub.f32 %v15929_v2, %v6419_v27 }
 0xacd   : > { %12183 = vpow2.f32 %v6508_v56  ;;  %v6480_v48 = vsub.f32 %v15934_v34, %v6410_v19  ;;  %6574 = vadd.xlane.f32.xlu1 %v6573_v39  ;;  %v6597_v28 = vsel %vm1488_vm2, %v16076_v15, 0.0 }
 0xace   : > { %12185 = vpow2.f32 %v6526_v61  ;;  %v6530_v26 = vmul.f32 1.442695, %v6483_v4 }
 0xacf   : > { %v16079_v0 = vpop.eup %12177  ;;  %v6524_v29 = vmul.f32 1.442695, %v6480_v48  ;;  %v6425_v57 = vpop.xlane.xlu1 %6424 }
 0xad0   : > { %v6485_v45 = vsub.f32 %v15942_v23, %v6425_v57  ;;  %v6392_v32 = vpop.xlane.xlu0 %6391  ;;  %v6570_v17 = vsel %vm1488_vm2, %v16079_v0, 0.0 }
 0xad1   : > { %12187 = vpow2.f32 %v6524_v29  ;;  %6598 = vadd.xlane.f32.xlu1 %v6597_v28  ;;  %6571 = vadd.xlane.f32.xlu0 %v6570_v17  ;;  %v6474_v2 = vsub.f32 %v15946_v49, %v6392_v32 }
 0xad2   : > { %v6534_v34 = vmul.f32 1.442695, %v6485_v45  ;;  %12189 = vpow2.f32 %v6514_v20 }
 0xad3   : > { %v16087_v7 = vpop.eup %12179  ;;  %v6512_v33 = vmul.f32 1.442695, %v6474_v2 }
 0xad4   : > { %12191 = vpow2.f32 %v6534_v34  ;;  %v6416_v44 = vpop.xlane.xlu0 %6415  ;;  %v6594_v23 = vsel %vm1488_vm2, %v16087_v7, 0.0  ;;  %v16092_v11 = vpop.eup %12181 }
 0xad5   : > { %6595 = vadd.xlane.f32.xlu1 %v6594_v23  ;;  %12193 = vpow2.f32 %v6530_v26  ;;  %v6482_v56 = vsub.f32 %v15952_v13, %v6416_v44  ;;  %v6579_v49 = vsel %vm1488_vm2, %v16092_v11, 0.0 }
 0xad6   : > { %12195 = vpow2.f32 %v6512_v33 }
 0xad7   : > { %v16094_v61 = vpop.eup %12183  ;;  %v6449_v27 = vpop.xlane.xlu1 %6448  ;;  %v6528_v57 = vmul.f32 1.442695, %v6482_v56 }
 0xad8   : > { %v6493_v19 = vsub.f32 %v15963_v12, %v6449_v27  ;;  %v6422_v39 = vpop.xlane.xlu0 %6421  ;;  %v6576_v48 = vsel %vm1488_vm2, %v16094_v61, 0.0  ;;  %v16102_v20 = vpop.eup %12185 }
 0xad9   : > { %6580 = vadd.xlane.f32.xlu1 %v6579_v49  ;;  %6577 = vadd.xlane.f32.xlu0 %v6576_v48  ;;  %v6484_v13 = vsub.f32 %v15958_v53, %v6422_v39  ;;  %v6603_v28 = vsel %vm1488_vm2, %v16102_v20, 0.0 }
 0xada   : > { %v6550_v4 = vmul.f32 1.442695, %v6493_v19 }
 0xadb   : > { %v16104_v29 = vpop.eup %12187  ;;  %v6431_v45 = vpop.xlane.xlu1 %6430  ;;  %v6532_v53 = vmul.f32 1.442695, %v6484_v13 }
 0xadc   : > { %12197 = vpow2.f32 %v6550_v4  ;;  %v6487_v12 = vsub.f32 %v15967_v47, %v6431_v45  ;;  %v6446_v32 = vpop.xlane.xlu0 %6445  ;;  %v6600_v17 = vsel %vm1488_vm2, %v16104_v29, 0.0  ;;  %v16112_v34 = vpop.eup %12189 }
 0xadd   : > { %6604 = vadd.xlane.f32.xlu1 %v6603_v28  ;;  %6601 = vadd.xlane.f32.xlu0 %v6600_v17  ;;  %12199 = vpow2.f32 %v6528_v57  ;;  %v6492_v44 = vsub.f32 %v15972_v21, %v6446_v32  ;;  %v6585_v27 = vsel %vm1488_vm2, %v16112_v34, 0.0 }
 0xade   : > { %v16114_v26 = vpop.eup %12191  ;;  %v6538_v2 = vmul.f32 1.442695, %v6487_v12 }
 0xadf   : > { %v6455_v23 = vpop.xlane.xlu1 %6454  ;;  %v6615_v47 = vsel %vm1488_vm2, %v16114_v26, 0.0  ;;  %v16122_v19 = vpop.eup %12193  ;;  %v6548_v49 = vmul.f32 1.442695, %v6492_v44 }
 0xae0   : > { %12201 = vpow2.f32 %v6538_v2  ;;  %v6495_v33 = vsub.f32 %v15977_v62, %v6455_v23  ;;  %v6428_v56 = vpop.xlane.xlu0 %6427  ;;  %v6609_v62 = vsel %vm1488_vm2, %v16122_v19, 0.0  ;;  %v16128_v13 = vpop.eup %12195 }
 0xae1   : > { %6586 = vadd.xlane.f32.xlu1 %v6585_v27  ;;  %6616 = vadd.xlane.f32.xlu0 %v6615_v47  ;;  %12203 = vpow2.f32 %v6532_v53  ;;  %v6486_v21 = vsub.f32 %v15983_v3, %v6428_v56  ;;  %v6582_v53 = vsel %vm1488_vm2, %v16128_v13, 0.0 }
 0xae2   : > { %v6554_v39 = vmul.f32 1.442695, %v6495_v33 }
 0xae3   : > { %v6437_v48 = vpop.xlane.xlu1 %6436  ;;  %v6536_v32 = vmul.f32 1.442695, %v6486_v21 }
 0xae4   : > { %12205 = vpow2.f32 %v6554_v39  ;;  %v6489_v4 = vsub.f32 %v15989_v6, %v6437_v48  ;;  %v6452_v57 = vpop.xlane.xlu0 %6451 }
 0xae5   : > { %6610 = vadd.xlane.f32.xlu1 %v6609_v62  ;;  %12207 = vpow2.f32 %v6548_v49  ;;  %v6494_v28 = vsub.f32 %v15994_v30, %v6452_v57 }
 0xae6   : > { %v16130_v45 = vpop.eup %12197  ;;  %v6542_v12 = vmul.f32 1.442695, %v6489_v4 }
 0xae7   : > { %v6461_v17 = vpop.xlane.xlu1 %6460  ;;  %v6639_v3 = vsel %vm1488_vm2, %v16130_v45, 0.0  ;;  %v16138_v44 = vpop.eup %12199  ;;  %v6552_v30 = vmul.f32 1.442695, %v6494_v28 }
 0xae8   : > { %12209 = vpow2.f32 %v6542_v12  ;;  %v6497_v6 = vsub.f32 %v15999_v16, %v6461_v17  ;;  %6640 = vadd.xlane.f32.xlu0 %v6639_v3  ;;  %v6434_v2 = vpop.xlane.xlu0 %6433  ;;  %v6606_v49 = vsel %vm1488_vm2, %v16138_v44, 0.0 }
 0xae9   : > { %6583 = vadd.xlane.f32.xlu1 %v6582_v53  ;;  %12211 = vpow2.f32 %v6536_v32  ;;  %v6488_v33 = vsub.f32 %v16005_v22, %v6434_v2 }
 0xaea   : > { %v16140_v23 = vpop.eup %12201  ;;  %v6558_v47 = vmul.f32 1.442695, %v6497_v6 }
 0xaeb   : > { %v6443_v56 = vpop.xlane.xlu1 %6442  ;;  %v6621_v27 = vsel %vm1488_vm2, %v16140_v23, 0.0  ;;  %v16148_v21 = vpop.eup %12203  ;;  %v6540_v22 = vmul.f32 1.442695, %v6488_v33 }
 0xaec   : > { %12213 = vpow2.f32 %v6558_v47  ;;  %v6491_v16 = vsub.f32 %v16011_v31, %v6443_v56  ;;  %6622 = vadd.xlane.f32.xlu0 %v6621_v27  ;;  %v6458_v39 = vpop.xlane.xlu0 %6457  ;;  %v6612_v28 = vsel %vm1488_vm2, %v16148_v21, 0.0 }
 0xaed   : > { %6607 = vadd.xlane.f32.xlu1 %v6606_v49  ;;  %12215 = vpow2.f32 %v6552_v30  ;;  %v6496_v57 = vsub.f32 %v16016_v60, %v6458_v39 }
 0xaee   : > { %v16150_v48 = vpop.eup %12205  ;;  %v6546_v4 = vmul.f32 1.442695, %v6491_v16 }
 0xaef   : > { %v6467_v62 = vpop.xlane.xlu1 %6466  ;;  %v6645_v12 = vsel %vm1488_vm2, %v16150_v48, 0.0  ;;  %v16158_v17 = vpop.eup %12207  ;;  %v6556_v60 = vmul.f32 1.442695, %v6496_v57 }
 0xaf0   : > { %12217 = vpow2.f32 %v6546_v4  ;;  %v6499_v31 = vsub.f32 %v16021_v50, %v6467_v62  ;;  %6646 = vadd.xlane.f32.xlu0 %v6645_v12  ;;  %v6440_v32 = vpop.xlane.xlu0 %6439  ;;  %v6636_v47 = vsel %vm1488_vm2, %v16158_v17, 0.0 }
 0xaf1   : > { %6613 = vadd.xlane.f32.xlu1 %v6612_v28  ;;  %12219 = vpow2.f32 %v6540_v22  ;;  %v6490_v2 = vsub.f32 %v16026_v40, %v6440_v32 }
 0xaf2   : > { %v16160_v3 = vpop.eup %12209  ;;  %v6562_v6 = vmul.f32 1.442695, %v6499_v31 }
 0xaf3   : > { %v6627_v53 = vsel %vm1488_vm2, %v16160_v3, 0.0  ;;  %v16167_v30 = vpop.eup %12211  ;;  %v6544_v56 = vmul.f32 1.442695, %v6490_v2 }
 0xaf4   : > { %12221 = vpow2.f32 %v6562_v6  ;;  %6628 = vadd.xlane.f32.xlu0 %v6627_v53  ;;  %v6464_v50 = vpop.xlane.xlu0 %6463  ;;  %v6618_v16 = vsel %vm1488_vm2, %v16167_v30, 0.0 }
 0xaf5   : > { %6637 = vadd.xlane.f32.xlu1 %v6636_v47  ;;  %12223 = vpow2.f32 %v6556_v60  ;;  %v6498_v27 = vsub.f32 %v16032_v58, %v6464_v50  ;;  %v17426_v50 = vld [vmem:[#allocation68_spill] sm:$0xff] }
 0xaf6   : > { %v16169_v33 = vpop.eup %12213  ;;  %12225 = vpow2.f32 %v6544_v56  ;;  %v17427_v47 = vld [vmem:[#allocation24_spill] sm:$0xff]  ;;  %v17428_v56 = vld [vmem:[#allocation39_spill] sm:$0xff] }
 0xaf7   : > { %v6651_v40 = vsel %vm1488_vm2, %v16169_v33, 0.0  ;;  %v16176_v39 = vpop.eup %12215  ;;  %v6560_v4 = vmul.f32 1.442695, %v6498_v27  ;;  %v17429_v27 = vpack.i.bf16 %v17427_v47, %v17428_v56  ;;  %v17442_v47 = vld [vmem:[#allocation58_spill] sm:$0xff] }
 0xaf8   : > { %6652 = vadd.xlane.f32.xlu0 %v6651_v40  ;;  %v6642_v58 = vsel %vm1488_vm2, %v16176_v39, 0.0  ;;  %v17430_v40 = vpack.i.bf16 %v15724_v5, %v15726_v41  ;;  %v17439_v41 = vpack.i.bf16 %v15751_v51, %v15753_v55  ;;  %v17447_v51 = vpack.i.bf16 %v15732_v63, %v15735_v25  ;;  %v17452_v25 = vld [vmem:[#allocation82_spill] sm:$0xff] }
 0xaf9   : > { %6619 = vadd.xlane.f32.xlu1 %v6618_v16  ;;  %12227 = vpow2.f32 %v6560_v4  ;;  %v17431_v16 = vld [vmem:[#allocation66_spill] sm:$0xff]  ;;  %v17432_v4 = vpack.i.bf16 %v15739_v24, %v15741_v1  ;;  %v17440_v1 = vpack.i.bf16 %v15763_v10, %v15765_v37  ;;  %v17448_v55 = vpack.i.bf16 %v15745_v42, %v15747_v18  ;;  %v17449_v10 = vld [vmem:[#allocation75_spill] sm:$0xff]  ;;  %v17450_v37 = vld [vmem:[#allocation48_spill] sm:$0xff] }
 0xafa   : > { %v16178_v49 = vpop.eup %12217  ;;  %v17455_v18 = vpack.i.bf16 %v15757_v14, %v15759_v52  ;;  %v17458_v14 = vld [vmem:[#allocation108_spill] sm:$0xff]  ;;  %v17459_v52 = vld [vmem:[#allocation7_spill] sm:$0xff] }
 0xafb   : > { %v6633_v22 = vsel %vm1488_vm2, %v16178_v49, 0.0  ;;  %v16184_v57 = vpop.eup %12219 }
 0xafc   : > { %6634 = vadd.xlane.f32.xlu0 %v6633_v22  ;;  %v6624_v31 = vsel %vm1488_vm2, %v16184_v57, 0.0  ;;  %v17433_v22 = vld [vmem:[#allocation105_spill] sm:$0xff] }
 0xafd   : > { %6643 = vadd.xlane.f32.xlu1 %v6642_v58  ;;  %v17434_v58 = vld [vmem:[#allocation98_spill] sm:$0xff] }
 0xafe   : > { %v16186_v62 = vpop.eup %12221 }
 0xaff   : > { %v6657_v12 = vsel %vm1488_vm2, %v16186_v62, 0.0  ;;  %v16192_v32 = vpop.eup %12223 }
 0xb00   : > { %6658 = vadd.xlane.f32.xlu0 %v6657_v12  ;;  %v6648_v28 = vsel %vm1488_vm2, %v16192_v32, 0.0  ;;  %v16196_v6 = vpop.eup %12225  ;;  %v17435_v12 = vpack.i.bf16 %v17433_v22, %v17434_v58 }
 0xb01   : > { %6625 = vadd.xlane.f32.xlu1 %v6624_v31  ;;  %v6630_v60 = vsel %vm1488_vm2, %v16196_v6, 0.0  ;;  %v11528_v31 = vpop.permute.xlu0 %11527 }
 0xb03   : > { %v16200_v2 = vpop.eup %12227 }
 0xb04   : > { %v6654_v53 = vsel %vm1488_vm2, %v16200_v2, 0.0 }
 0xb05   : > { %6649 = vadd.xlane.f32.xlu1 %v6648_v28 }
 0xb09   : > { %6631 = vadd.xlane.f32.xlu1 %v6630_v60  ;;  %v17436_v60 = vld [vmem:[#allocation106_spill] sm:$0xff] }
 0xb0d   : > { %6655 = vadd.xlane.f32.xlu1 %v6654_v53  ;;  %v17437_v53 = vld [vmem:[#allocation100_spill] sm:$0xff] }
 0xb0e   : > { %v17438_v5 = vpack.i.bf16 %v17436_v60, %v17437_v53  ;;  %v17453_v53 = vld [vmem:[#allocation101_spill] sm:$0xff] }
 0xb0f   : > { %v17454_v42 = vpack.i.bf16 %v17452_v25, %v17453_v53 }
 0xb16   : > { %11537 = vrot.lane.b32.xlu0 %v17426_v50, %s12360_s16  ;;  %v17441_v50 = vld [vmem:[#allocation99_spill] sm:$0xff] }
 0xb17   : > { %v17443_v56 = vpack.i.bf16 %v17441_v50, %v17442_v47 }
 0xb1a   : > { %11542 = vrot.lane.b32.xlu0 %v17429_v27, %s12360_s16  ;;  %v17444_v27 = vld [vmem:[#allocation16_spill] sm:$0xff] }
 0xb1e   : > { %11547 = vrot.lane.b32.xlu0 %v17430_v40, %s12359_s12  ;;  %11532 = vrot.lane.b32.xlu1 %v17431_v16, %s12360_s16  ;;  %v17445_v40 = vld [vmem:[#allocation104_spill] sm:$0xff] }
 0xb1f   : > { %v17446_v16 = vpack.i.bf16 %v17444_v27, %v17445_v40 }
 0xb20   : > { %v6569_v28 = vpop.xlane.xlu1 %6568 }
 0xb21   : > { %12229 = vrcp.f32 %v6569_v28  ;;  %v11509_v28 = vunpack.i.l.bf16 %v16038_v35 }
 0xb22   : > { %11557 = vrot.lane.b32.xlu0 %v17432_v4, %s12359_s12  ;;  %11552 = vrot.lane.b32.xlu1 %v17435_v12, %s12360_s16  ;;  %v17451_v4 = vpack.i.bf16 %v17449_v10, %v17450_v37  ;;  %v11510_v12 = vunpack.i.h.bf16 %v16038_v35  ;;  %v11514_v35 = vunpack.i.l.bf16 %v15721_v38  ;;  %v11530_v10 = vunpack.i.h.bf16 %v11528_v31 }
 0xb23   : > { %v11529_v37 = vunpack.i.l.bf16 %v11528_v31 }
 0xb26   : > { %11562 = vrot.lane.b32.xlu0 %v17438_v5, %s12360_s16  ;;  %11567 = vrot.lane.b32.xlu1 %v17439_v41, %s12359_s12  ;;  %v11515_v5 = vunpack.i.h.bf16 %v15721_v38 }
 0xb28   : > { %v10944_v47 = vpack.c.bf16 %v11515_v5, %v11514_v35 }
 0xb29   : > { %v6566_v24 = vpop.xlane.xlu0 %6565 }
 0xb2a   : > { %11577 = vrot.lane.b32.xlu0 %v17440_v1, %s12359_s12  ;;  %12231 = vrcp.f32 %v6566_v24  ;;  %11572 = vrot.lane.b32.xlu1 %v17443_v56, %s12360_s16  ;;  %v17460_v24 = vpack.i.bf16 %v17458_v14, %v17459_v52  ;;  %v17461_v1 = vld [vmem:[#allocation41_spill] sm:$0xff] }
 0xb2b   : > { %v12230_v22 = vpop.eup %12229  ;;  %v11520_v50 = vunpack.i.h.bf16 %v17461_v1  ;;  %v11519_v38 = vunpack.i.l.bf16 %v17461_v1 }
 0xb2c   : > { %v6663_v63 = vmul.f32 %v12230_v22, %v16046_v8  ;;  %v17456_v8 = vld [vmem:[#allocation28_spill] sm:$0xff] }
 0xb2d   : > { %v17457_v41 = vpack.i.bf16 %v15769_v9, %v17456_v8  ;;  %v10948_v56 = vpack.c.bf16 %v11520_v50, %v11519_v38 }
 0xb2e   : > { %11582 = vrot.lane.b32.xlu0 %v17446_v16, %s12360_s16  ;;  %11587 = vrot.lane.b32.xlu1 %v17447_v51, %s12359_s12 }
 0xb32   : > { %11597 = vrot.lane.b32.xlu0 %v17448_v55, %s12359_s12  ;;  %11592 = vrot.lane.b32.xlu1 %v17451_v4, %s12360_s16 }
 0xb34   : > { %v12232_v58 = vpop.eup %12231 }
 0xb35   : > { %v6661_v60 = vmul.f32 %v12232_v58, %v16050_v59  ;;  %v10940_v59 = vpack.c.bf16 %v11510_v12, %v11509_v28  ;;  %v10956_v12 = vpack.c.bf16 %v11530_v10, %v11529_v37  ;;  %v17462_v28 = vld [vmem:[#allocation30_spill] sm:$0xff] }
 0xb36   : > { %11602 = vrot.lane.b32.xlu0 %v17454_v42, %s12360_s16  ;;  %11607 = vrot.lane.b32.xlu1 %v17455_v18, %s12359_s12 }
 0xb37   : > { %10088 = vmatprep.mubr.msk.f32.mxu0 %vm1488_vm2, %v6661_v60 }
 0xb38   : > { %10089 = vmatmul.mubr.msk.f32.vlgmr.msra.gmra.mrb[148].mxu0 %vm1488_vm2, %v6663_v63 }
 0xb39   : > { %10939 = vmatpush3.bf16.msra.mxu0 %v15719_v54 }
 0xb3a   : > { %11617 = vrot.lane.b32.xlu0 %v17457_v41, %s12359_s12  ;;  %10941 = vmatprep.subr.bf16.mxu0 %v10940_v59 }
 0xb3b   : > { %11612 = vrot.lane.b32.xlu1 %v17460_v24, %s12360_s16 }
 0xb3d   : > { %10943 = vmatpush3.bf16.msra.mxu0 %v10940_v59 }
 0xb3e   : > { %10945 = vmatprep.subr.bf16.mxu0 %v10944_v47 }
 0xb41   : > { %10947 = vmatpush3.bf16.msra.mxu0 %v10944_v47 }
 0xb42   : > { %10949 = vmatprep.subr.bf16.mxu0 %v10948_v56 }
 0xb45   : > { %10951 = vmatpush3.bf16.msra.mxu0 %v10948_v56 }
 0xb55   : > { %v6593_v54 = vpop.xlane.xlu1 %6592 }
 0xb56   : > { %12233 = vrcp.f32 %v6593_v54  ;;  %v6590_v9 = vpop.xlane.xlu0 %6589 }
 0xb57   : > { %12235 = vrcp.f32 %v6590_v9 }
 0xb5a   : > { %v6575_v27 = vpop.xlane.xlu1 %6574 }
 0xb5b   : > { %12237 = vrcp.f32 %v6575_v27 }
 0xb5e   : > { %v6599_v40 = vpop.xlane.xlu1 %6598  ;;  %v6572_v16 = vpop.xlane.xlu0 %6571 }
 0xb5f   : > { %12239 = vrcp.f32 %v6572_v16 }
 0xb60   : > { %v12234_v51 = vpop.eup %12233  ;;  %12241 = vrcp.f32 %v6599_v40 }
 0xb61   : > { %v12236_v55 = vpop.eup %12235  ;;  %v6679_v58 = vmul.f32 %v12234_v51, %v16061_v46 }
 0xb62   : > { %v6596_v4 = vpop.xlane.xlu1 %6595  ;;  %v6677_v22 = vmul.f32 %v12236_v55, %v16063_v36 }
 0xb63   : > { %12243 = vrcp.f32 %v6596_v4 }
 0xb64   : > { %10116 = vmatprep.mubr.msk.f32.mxu1 %vm1488_vm2, %v6677_v22 }
 0xb65   : > { %10117 = vmatmul.mubr.msk.f32.vlgmr.msra.gmra.mrb[172].mxu1 %vm1488_vm2, %v6679_v58  ;;  %v12238_v31 = vpop.eup %12237 }
 0xb66   : > { %10955 = vmatpush3.bf16.msra.mxu1 %v17462_v28  ;;  %v6581_v60 = vpop.xlane.xlu1 %6580  ;;  %v6578_v63 = vpop.xlane.xlu0 %6577  ;;  %v6667_v18 = vmul.f32 %v12238_v31, %v16071_v43 }
 0xb67   : > { %12245 = vrcp.f32 %v6581_v60  ;;  %10957 = vmatprep.subr.bf16.mxu1 %v10956_v12 }
 0xb68   : > { %12247 = vrcp.f32 %v6578_v63 }
 0xb69   : > { %v12240_v25 = vpop.eup %12239 }
 0xb6a   : > { %10959 = vmatpush3.bf16.msra.mxu1 %v10956_v12  ;;  %v6605_v53 = vpop.xlane.xlu1 %6604  ;;  %v6602_v36 = vpop.xlane.xlu0 %6601  ;;  %v6665_v46 = vmul.f32 %v12240_v25, %v16079_v0 }
 0xb6b   : > { %12249 = vrcp.f32 %v6605_v53  ;;  %v12242_v42 = vpop.eup %12241 }
 0xb6c   : > { %12251 = vrcp.f32 %v6602_v36  ;;  %10091 = vmatprep.mubr.msk.f32.mxu0 %vm1488_vm2, %v6665_v46  ;;  %v6683_v8 = vmul.f32 %v12242_v42, %v16076_v15 }
 0xb6d   : > { %v12244_v5 = vpop.eup %12243  ;;  %10092 = vmatmul.mubr.msk.f32.gmra.mrb[150].mxu0 %vm1488_vm2, %v6667_v18 }
 0xb6e   : > { %v6587_v35 = vpop.xlane.xlu1 %6586  ;;  %v6681_v59 = vmul.f32 %v12244_v5, %v16087_v7  ;;  %v6617_v14 = vpop.xlane.xlu0 %6616 }
 0xb6f   : > { %12253 = vrcp.f32 %v6587_v35 }
 0xb70   : > { %10119 = vmatprep.mubr.msk.f32.mxu1 %vm1488_vm2, %v6681_v59 }
 0xb71   : > { %v12246_v41 = vpop.eup %12245  ;;  %10120 = vmatmul.mubr.msk.f32.gmra.mrb[174].mxu1 %vm1488_vm2, %v6683_v8 }
 0xb72   : > { %v12248_v0 = vpop.eup %12247  ;;  %v6611_v52 = vpop.xlane.xlu1 %6610  ;;  %v6671_v43 = vmul.f32 %v12246_v41, %v16092_v11 }
 0xb73   : > { %v6669_v24 = vmul.f32 %v12248_v0, %v16094_v61 }
 0xb75   : > { %v12250_v1 = vpop.eup %12249  ;;  %10094 = vmatprep.mubr.msk.f32.mxu0 %vm1488_vm2, %v6669_v24  ;;  %v16299_v50 = vpop.xlane.xlu0 %6640 }
 0xb76   : > { %v12252_v7 = vpop.eup %12251  ;;  %10095 = vmatmul.mubr.msk.f32.gmra.mrb[152].mxu0 %vm1488_vm2, %v6671_v43  ;;  %v6584_v15 = vpop.xlane.xlu1 %6583  ;;  %v6687_v38 = vmul.f32 %v12250_v1, %v16102_v20 }
 0xb77   : > { %12255 = vrcp.f32 %v6584_v15  ;;  %v6685_v47 = vmul.f32 %v12252_v7, %v16104_v29 }
 0xb78   : > { %12257 = vrcp.f32 %v6611_v52 }
 0xb79   : > { %10122 = vmatprep.mubr.msk.f32.mxu1 %vm1488_vm2, %v6685_v47  ;;  %v6623_v11 = vpop.xlane.xlu0 %6622  ;;  %v12254_v9 = vpop.eup %12253 }
 0xb7a   : > { %10123 = vmatmul.mubr.msk.f32.gmra.mrb[176].mxu1 %vm1488_vm2, %v6687_v38  ;;  %v6608_v61 = vpop.xlane.xlu1 %6607  ;;  %v6675_v29 = vmul.f32 %v12254_v9, %v16112_v34 }
 0xb7b   : > { %12259 = vrcp.f32 %v6608_v61 }
 0xb7c   : > { %12261 = vrcp.f32 %v6617_v14 }
 0xb7d   : > { %v16306_v56 = vpop.xlane.xlu0 %6646 }
 0xb7e   : > { %v6614_v54 = vpop.xlane.xlu1 %6613 }
 0xb7f   : > { %12263 = vrcp.f32 %v6614_v54 }
 0xb81   : > { %v12256_v27 = vpop.eup %12255  ;;  %v6629_v40 = vpop.xlane.xlu0 %6628 }
 0xb82   : > { %v6638_v20 = vpop.xlane.xlu1 %6637  ;;  %v6673_v16 = vmul.f32 %v12256_v27, %v16128_v13  ;;  %v12258_v51 = vpop.eup %12257 }
 0xb83   : > { %12265 = vrcp.f32 %v6638_v20  ;;  %v6691_v22 = vmul.f32 %v12258_v51, %v16122_v19  ;;  %v17466_v51 = vld [vmem:[#allocation73_spill] sm:$0xff] }
 0xb84   : > { %10097 = vmatprep.mubr.msk.f32.mxu0 %vm1488_vm2, %v6673_v16  ;;  %12267 = vrcp.f32 %v6623_v11 }
 0xb85   : > { %v12260_v55 = vpop.eup %12259  ;;  %v16311_v10 = vpop.xlane.xlu0 %6652  ;;  %10098 = vmatmul.mubr.msk.f32.gmra.mrb[154].mxu0 %vm1488_vm2, %v6675_v29 }
 0xb86   : > { %v6620_v37 = vpop.xlane.xlu1 %6619  ;;  %v6689_v4 = vmul.f32 %v12260_v55, %v16138_v44  ;;  %v12262_v58 = vpop.eup %12261 }
 0xb87   : > { %12269 = vrcp.f32 %v6620_v37  ;;  %v6695_v60 = vmul.f32 %v12262_v58, %v16114_v26 }
 0xb88   : > { %10125 = vmatprep.mubr.msk.f32.mxu1 %vm1488_vm2, %v6689_v4  ;;  %12271 = vrcp.f32 %v6629_v40  ;;  %v17464_v40 = vld [vmem:[#allocation20_spill] sm:$0xff] }
 0xb89   : > { %v12264_v13 = vpop.eup %12263  ;;  %v6635_v34 = vpop.xlane.xlu0 %6634  ;;  %10126 = vmatmul.mubr.msk.f32.gmra.mrb[178].mxu1 %vm1488_vm2, %v6691_v22 }
 0xb8a   : > { %v6644_v12 = vpop.xlane.xlu1 %6643  ;;  %v6693_v28 = vmul.f32 %v12264_v13, %v16148_v21 }
 0xb8c   : > { %10144 = vmatprep.mubr.msk.f32.mxu0 %vm1488_vm2, %v6693_v28 }
 0xb8d   : > { %v12266_v63 = vpop.eup %12265  ;;  %v16321_v31 = vpop.xlane.xlu0 %6658  ;;  %10145 = vmatmul.mubr.msk.f32.vlgmr.msra.gmra.mrb[156].mxu0 %vm1488_vm2, %v6695_v60 }
 0xb8e   : > { %v6626_v19 = vpop.xlane.xlu1 %6625  ;;  %v6709_v44 = vmul.f32 %v12266_v63, %v16158_v17  ;;  %v12268_v25 = vpop.eup %12267 }
 0xb8f   : > { %12273 = vrcp.f32 %v6626_v19  ;;  %v6699_v46 = vmul.f32 %v12268_v25, %v16140_v23 }
 0xb90   : > { %10172 = vmatprep.mubr.msk.f32.mxu1 %vm1488_vm2, %v6709_v44  ;;  %12275 = vrcp.f32 %v6635_v34 }
 0xb91   : > { %v12270_v53 = vpop.eup %12269  ;;  %v11538_v36 = vpop.permute.xlu0 %11537 }
 0xb92   : > { %v6650_v21 = vpop.xlane.xlu1 %6649  ;;  %v6697_v26 = vmul.f32 %v12270_v53, %v16167_v30  ;;  %v12272_v17 = vpop.eup %12271  ;;  %v11540_v14 = vunpack.i.h.bf16 %v11538_v36  ;;  %v11539_v0 = vunpack.i.l.bf16 %v11538_v36 }
 0xb93   : > { %v6703_v30 = vmul.f32 %v12272_v17, %v16160_v3  ;;  %v17469_v17 = vld [vmem:[#allocation78_spill] sm:$0xff] }
 0xb94   : > { %10147 = vmatprep.mubr.msk.f32.mxu0 %vm1488_vm2, %v6697_v26  ;;  %v10964_v47 = vpack.c.bf16 %v11540_v14, %v11539_v0 }
 0xb95   : > { %v16329_v42 = vpop.permute.xlu0 %11542  ;;  %10148 = vmatmul.mubr.msk.f32.gmra.mrb[158].mxu0 %vm1488_vm2, %v6699_v46 }
 0xb96   : > { %v6632_v18 = vpop.xlane.xlu1 %6631 }
 0xb97   : > { %12277 = vrcp.f32 %v6632_v18 }
 0xb98   : > { %12279 = vrcp.f32 %v16299_v50 }
 0xb99   : > { %v12274_v5 = vpop.eup %12273  ;;  %v16332_v35 = vpop.permute.xlu0 %11547  ;;  %12281 = vrcp.f32 %v6644_v12 }
 0xb9a   : > { %v6656_v59 = vpop.xlane.xlu1 %6655  ;;  %v6701_v8 = vmul.f32 %v12274_v5, %v16184_v57  ;;  %v12276_v24 = vpop.eup %12275  ;;  %12283 = vrcp.f32 %v16306_v56  ;;  %v17463_v56 = vld [vmem:[#allocation22_spill] sm:$0xff] }
 0xb9b   : > { %12285 = vrcp.f32 %v6650_v21  ;;  %v6707_v54 = vmul.f32 %v12276_v24, %v16178_v49  ;;  %v17465_v49 = vld [vmem:[#allocation67_spill] sm:$0xff] }
 0xb9c   : > { %10150 = vmatprep.mubr.msk.f32.mxu0 %vm1488_vm2, %v6701_v8  ;;  %12287 = vrcp.f32 %v16311_v10 }
 0xb9d   : > { %v11558_v23 = vpop.permute.xlu0 %11557  ;;  %10151 = vmatmul.mubr.msk.f32.gmra.mrb[160].mxu0 %vm1488_vm2, %v6703_v30  ;;  %12289 = vrcp.f32 %v6656_v59  ;;  %v17470_v59 = vld [vmem:[#allocation70_spill] sm:$0xff] }
 0xb9e   : > { %v11533_v41 = vpop.permute.xlu1 %11532  ;;  %v11559_v9 = vunpack.i.l.bf16 %v11558_v23  ;;  %12291 = vrcp.f32 %v16321_v31  ;;  %v17467_v31 = vld [vmem:[#allocation79_spill] sm:$0xff] }
 0xb9f   : > { %v11535_v52 = vunpack.i.h.bf16 %v11533_v41  ;;  %v11534_v43 = vunpack.i.l.bf16 %v11533_v41 }
 0xba1   : > { %v12278_v1 = vpop.eup %12277  ;;  %v10960_v57 = vpack.c.bf16 %v11535_v52, %v11534_v43  ;;  %v11563_v3 = vpop.permute.xlu0 %11562 }
 0xba2   : > { %v11565_v7 = vunpack.i.h.bf16 %v11563_v3  ;;  %v11564_v50 = vunpack.i.l.bf16 %v11563_v3  ;;  %v11553_v15 = vpop.permute.xlu1 %11552  ;;  %v6705_v38 = vmul.f32 %v12278_v1, %v16196_v6  ;;  %v11560_v6 = vunpack.i.h.bf16 %v11558_v23  ;;  %v12280_v10 = vpop.eup %12279 }
 0xba3   : > { %v11555_v11 = vunpack.i.h.bf16 %v11553_v15  ;;  %v11554_v61 = vunpack.i.l.bf16 %v11553_v15  ;;  %10961 = vmatprep.subr.bf16.mxu1 %v10960_v57  ;;  %v12282_v22 = vpop.eup %12281  ;;  %v6711_v13 = vmul.f32 %v12280_v10, %v16130_v45  ;;  %v17468_v45 = vld [vmem:[#allocation74_spill] sm:$0xff] }
 0xba4   : > { %10153 = vmatprep.mubr.msk.f32.mxu0 %vm1488_vm2, %v6705_v38  ;;  %10963 = vmatpush3.bf16.msra.mxu1 %v10960_v57  ;;  %v16346_v27 = vsel %vm875_vm0, %v17463_v56, %v11564_v50  ;;  %v16350_v20 = vsel %vm875_vm0, %v17464_v40, %v11565_v7  ;;  %v12284_v12 = vpop.eup %12283  ;;  %v6713_v19 = vmul.f32 %v12282_v22, %v16176_v39  ;;  %v17474_v56 = vld [vmem:[#allocation80_spill] sm:$0xff]  ;;  %v7821_v22 = vld [vmem:[%s16846_s4 + $0x20] sm:$0xff] }
 0xba5   : > { %v11578_v16 = vpop.permute.xlu0 %11577  ;;  %10154 = vmatmul.mubr.msk.f32.gmra.mrb[162].mxu0 %vm1488_vm2, %v6707_v54  ;;  %10965 = vmatprep.subr.bf16.mxu1 %v10964_v47  ;;  %v7722_v29 = vsel %vm875_vm0, %v17465_v49, %v11554_v61  ;;  %v7723_v55 = vsel %vm875_vm0, %v17466_v51, %v11555_v11  ;;  %v12286_v44 = vpop.eup %12285  ;;  %v6715_v39 = vmul.f32 %v12284_v12, %v16150_v48  ;;  %v17472_v61 = vld [vmem:[#allocation72_spill] sm:$0xff]  ;;  %v7817_v49 = vld [vmem:[%s16846_s4] sm:$0xff]  ;;  %v7819_v51 = vld [vmem:[%s16846_s4 + $0x10] sm:$0xff] }
 0xba6   : > { %v16357_v37 = vpop.permute.xlu1 %11567  ;;  %v16360_v4 = vsel %vm1488_vm2, %v7722_v29, %v11559_v9  ;;  %v16363_v58 = vsel %vm1488_vm2, %v7723_v55, %v11560_v6  ;;  %v11580_v36 = vunpack.i.h.bf16 %v11578_v16  ;;  %v11579_v21 = vunpack.i.l.bf16 %v11578_v16  ;;  %v12288_v30 = vpop.eup %12287  ;;  %v17473_v9 = vld [vmem:[#allocation81_spill] sm:$0xff]  ;;  %v7820_v55 = vld [vmem:[%s16846_s4 + $0x18] sm:$0xff]  ;;  %v7823_v12 = vld [vmem:[%s16846_s4 + $0x30] sm:$0xff] }
 0xba7   : > { %v6717_v41 = vmul.f32 %v12286_v44, %v16192_v32  ;;  %v12290_v52 = vpop.eup %12289  ;;  %v6719_v43 = vmul.f32 %v12288_v30, %v16169_v33  ;;  %v10972_v10 = vpack.c.bf16 %v7820_v55, %v7819_v51 }
 0xba8   : > { %10967 = vmatpush3.bf16.msra.mxu1 %v10964_v47  ;;  %v12292_v24 = vpop.eup %12291  ;;  %v6721_v32 = vmul.f32 %v12290_v52, %v16200_v2  ;;  %v17471_v47 = vld [vmem:[#allocation83_spill] sm:$0xff] }
 0xba9   : > { %v11583_v34 = vpop.permute.xlu0 %11582  ;;  %v6723_v54 = vmul.f32 %v12292_v24, %v16186_v62  ;;  %v7818_v62 = vld [vmem:[%s16846_s4 + $0x8] sm:$0xff] }
 0xbaa   : > { %v11585_v28 = vunpack.i.h.bf16 %v11583_v34  ;;  %v11584_v60 = vunpack.i.l.bf16 %v11583_v34  ;;  %v11573_v63 = vpop.permute.xlu1 %11572  ;;  %v10968_v29 = vpack.c.bf16 %v7818_v62, %v7817_v49  ;;  %v17481_v62 = vld [vmem:[#allocation52_spill] sm:$0xff] }
 0xbab   : > { %v11575_v25 = vunpack.i.h.bf16 %v11573_v63  ;;  %v11574_v53 = vunpack.i.l.bf16 %v11573_v63  ;;  %10173 = vmatmul.mubr.msk.f32.vlgmr.msra.gmra.mrb[180].mxu1 %vm1488_vm2, %v6711_v13  ;;  %v7822_v13 = vld [vmem:[%s16846_s4 + $0x28] sm:$0xff]  ;;  %v7825_v63 = vld [vmem:[%s16846_s4 + $0x40] sm:$0xff] }
 0xbac   : > { %10175 = vmatprep.mubr.msk.f32.mxu1 %vm1488_vm2, %v6713_v19  ;;  %v16372_v26 = vsel %vm875_vm0, %v17467_v31, %v11584_v60  ;;  %v16376_v46 = vsel %vm875_vm0, %v17468_v45, %v11585_v28  ;;  %10969 = vmatprep.subr.bf16.mxu0 %v10968_v29  ;;  %v10976_v34 = vpack.c.bf16 %v7822_v13, %v7821_v22  ;;  %v7824_v28 = vld [vmem:[%s16846_s4 + $0x38] sm:$0xff]  ;;  %v7826_v19 = vld [vmem:[%s16846_s4 + $0x48] sm:$0xff] }
 0xbad   : > { %v11598_v18 = vpop.permute.xlu0 %11597  ;;  %v7726_v5 = vsel %vm875_vm0, %v17469_v17, %v11574_v53  ;;  %v7727_v8 = vsel %vm875_vm0, %v17470_v59, %v11575_v25  ;;  %10971 = vmatpush3.bf16.msra.mxu0 %v10968_v29  ;;  %v10980_v60 = vpack.c.bf16 %v7824_v28, %v7823_v12  ;;  %v10984_v44 = vpack.c.bf16 %v7826_v19, %v7825_v63  ;;  %v7827_v25 = vld [vmem:[%s16846_s4 + $0x50] sm:$0xff]  ;;  %v7828_v53 = vld [vmem:[%s16846_s4 + $0x58] sm:$0xff]  ;;  %v7830_v31 = vld [vmem:[%s16846_s4 + $0x68] sm:$0xff] }
 0xbae   : > { %v16383_v23 = vpop.permute.xlu1 %11587  ;;  %v16387_v14 = vsel %vm1488_vm2, %v7726_v5, %v11579_v21  ;;  %v16390_v0 = vsel %vm1488_vm2, %v7727_v8, %v11580_v36  ;;  %v11600_v15 = vunpack.i.h.bf16 %v11598_v18  ;;  %v11599_v38 = vunpack.i.l.bf16 %v11598_v18  ;;  %10973 = vmatprep.subr.bf16.mxu0 %v10972_v10  ;;  %v7829_v21 = vld [vmem:[%s16846_s4 + $0x60] sm:$0xff]  ;;  %v7831_v18 = vld [vmem:[%s16846_s4 + $0x70] sm:$0xff]  ;;  %v17482_v29 = vld [vmem:[#allocation56_spill] sm:$0xff] }
 0xbaf   : > { %10176 = vmatmul.mubr.msk.f32.gmra.mrb[182].mxu1 %vm1488_vm2, %v6715_v39  ;;  %v10988_v36 = vpack.c.bf16 %v7828_v53, %v7827_v25  ;;  %v10992_v45 = vpack.c.bf16 %v7830_v31, %v7829_v21  ;;  %v7832_v39 = vld [vmem:[%s16846_s4 + $0x78] sm:$0xff]  ;;  %v17483_v51 = vpack.i.bf16 %v17481_v62, %v17482_v29  ;;  %v17488_v19 = vld [vmem:[#allocation14_spill] sm:$0xff]  ;;  %v17490_v53 = vld [vmem:[#allocation25_spill] sm:$0xff]  ;;  %v11550_v62 = vunpack.i.h.bf16 %v16332_v35 }
 0xbb0   : > { %10178 = vmatprep.mubr.msk.f32.mxu1 %vm1488_vm2, %v6717_v41  ;;  %v10996_v17 = vpack.c.bf16 %v7832_v39, %v7831_v18  ;;  %v17484_v13 = vld [vmem:[#allocation8_spill] sm:$0xff]  ;;  %v17494_v39 = vld [vmem:[#allocation37_spill] sm:$0xff]  ;;  %v11549_v29 = vunpack.i.l.bf16 %v16332_v35 }
 0xbb1   : > { %v11603_v48 = vpop.permute.xlu0 %11602  ;;  %10975 = vmatpush3.bf16.msra.mxu0 %v10972_v10  ;;  %v17487_v63 = vld [vmem:[#allocation40_spill] sm:$0xff] }
 0xbb2   : > { %v11605_v1 = vunpack.i.h.bf16 %v11603_v48  ;;  %v11604_v57 = vunpack.i.l.bf16 %v11603_v48  ;;  %v11593_v3 = vpop.permute.xlu1 %11592  ;;  %10977 = vmatprep.subr.bf16.mxu0 %v10976_v34  ;;  %v17493_v18 = vld [vmem:[#allocation32_spill] sm:$0xff] }
 0xbb3   : > { %v11595_v7 = vunpack.i.h.bf16 %v11593_v3  ;;  %v11594_v50 = vunpack.i.l.bf16 %v11593_v3  ;;  %10179 = vmatmul.mubr.msk.f32.gmra.mrb[184].mxu1 %vm1488_vm2, %v6719_v43 }
 0xbb4   : > { %10181 = vmatprep.mubr.msk.f32.mxu1 %vm1488_vm2, %v6721_v32  ;;  %v16400_v11 = vsel %vm875_vm0, %v17471_v47, %v11604_v57  ;;  %v16404_v33 = vsel %vm875_vm0, %v17472_v61, %v11605_v1 }
 0xbb5   : > { %v7730_v2 = vsel %vm875_vm0, %v17473_v9, %v11594_v50  ;;  %v7731_v40 = vsel %vm875_vm0, %v17474_v56, %v11595_v7  ;;  %10979 = vmatpush3.bf16.msra.mxu0 %v10976_v34  ;;  %v17479_v56 = vld [vmem:[#allocation107_spill] sm:$0xff]  ;;  %v17485_v34 = vld [vmem:[#allocation10_spill] sm:$0xff] }
 0xbb6   : > { %v16412_v6 = vsel %vm1488_vm2, %v7730_v2, %v11599_v38  ;;  %v16415_v16 = vsel %vm1488_vm2, %v7731_v40, %v11600_v15  ;;  %10981 = vmatprep.subr.bf16.mxu0 %v10980_v60  ;;  %v17475_v15 = vld [vmem:[#allocation13_spill] sm:$0xff]  ;;  %v17486_v12 = vpack.i.bf16 %v17484_v13, %v17485_v34 }
 0xbb7   : > { %10182 = vmatmul.mubr.msk.f32.gmra.mrb[186].mxu1 %vm1488_vm2, %v6723_v54  ;;  %v17476_v38 = vld [vmem:[#allocation9_spill] sm:$0xff] }
 0xbb8   : > { %v17477_v47 = vpack.i.bf16 %v17475_v15, %v17476_v38  ;;  %v17478_v2 = vld [vmem:[#allocation49_spill] sm:$0xff]  ;;  %v17505_v15 = vld [vmem:[#allocation34_spill] sm:$0xff]  ;;  %v17506_v38 = vld [vmem:[#allocation12_spill] sm:$0xff] }
 0xbb9   : > { %10983 = vmatpush3.bf16.msra.mxu0 %v10980_v60  ;;  %v17480_v40 = vpack.i.bf16 %v17478_v2, %v17479_v56  ;;  %v16522_v2 = vpop.permute.xlu0 %11617  ;;  %v11545_v56 = vunpack.i.h.bf16 %v16329_v42 }
 0xbba   : > { %10985 = vmatprep.subr.bf16.mxu0 %v10984_v44 }
 0xbbd   : > { %10987 = vmatpush3.bf16.msra.mxu0 %v10984_v44  ;;  %v17489_v44 = vpack.i.bf16 %v17487_v63, %v17488_v19 }
 0xbbe   : > { %10989 = vmatprep.subr.bf16.mxu0 %v10988_v36 }
 0xbc1   : > { %10991 = vmatpush3.bf16.msra.mxu0 %v10988_v36  ;;  %v17491_v36 = vld [vmem:[#allocation47_spill] sm:$0xff] }
 0xbc2   : > { %10993 = vmatprep.subr.bf16.mxu0 %v10992_v45  ;;  %v17492_v21 = vpack.i.bf16 %v17490_v53, %v17491_v36  ;;  %v17510_v36 = vld [vmem:[#allocation15_spill] sm:$0xff] }
 0xbc5   : > { %10995 = vmatpush3.bf16.msra.mxu0 %v10992_v45 }
 0xbc6   : > { %10997 = vmatprep.subr.bf16.mxu0 %v10996_v17 }
 0xbc9   : > { %10999 = vmatpush3.bf16.msra.mxu0 %v10996_v17  ;;  %v17495_v17 = vpack.i.bf16 %v17493_v18, %v17494_v39 }
 0xc0b   : > { %v10090_v5 = vpop.f32.mrb[148].mxu0 }
 0xc0c   : > { %v6838_v59 = vpop.f32.mrb[149].mxu0 }
 0xc0d   : > { %v11621_v8 = vpack.i.bf16 %v10090_v5, %v6838_v59  ;;  %v17496_v5 = vld [vmem:[#allocation17_spill] sm:$0xff] }
 0xc0e   : > { %v17497_v59 = vld [vmem:[#allocation21_spill] sm:$0xff] }
 0xc0f   : > { %11622 = vrot.lane.b32.xlu0 %v11621_v8, %s12358_s9  ;;  %v17498_v8 = vpack.i.bf16 %v17496_v5, %v17497_v59  ;;  %v17514_v5 = vld [vmem:[#allocation5_spill] sm:$0xff] }
 0xc38   : > { %v10118_v30 = vpop.f32.mrb[172].mxu1 }
 0xc39   : > { %v6991_v41 = vpop.f32.mrb[173].mxu1 }
 0xc3a   : > { %v11626_v52 = vpack.i.bf16 %v10118_v30, %v6991_v41  ;;  %v17499_v41 = vld [vmem:[#allocation102_spill] sm:$0xff] }
 0xc3c   : > { %11627 = vrot.lane.b32.xlu0 %v11626_v52, %s12358_s9  ;;  %v17500_v52 = vld [vmem:[#allocation27_spill] sm:$0xff] }
 0xc40   : > { %v10093_v48 = vpop.f32.mrb[150].mxu0 }
 0xc41   : > { %v6848_v43 = vpop.f32.mrb[151].mxu0 }
 0xc42   : > { %v11631_v24 = vpack.i.bf16 %v10093_v48, %v6848_v43  ;;  %v17501_v48 = vpack.i.bf16 %v17499_v41, %v17500_v52  ;;  %v17517_v41 = vld [vmem:[#allocation53_spill] sm:$0xff] }
 0xc44   : > { %v10121_v1 = vpop.f32.mrb[174].mxu1  ;;  %11632 = vrot.lane.b32.xlu1 %v11631_v24, %s12358_s9 }
 0xc45   : > { %v7001_v57 = vpop.f32.mrb[175].mxu1 }
 0xc46   : > { %v11636_v3 = vpack.i.bf16 %v10121_v1, %v7001_v57  ;;  %v17502_v1 = vld [vmem:[#allocation31_spill] sm:$0xff] }
 0xc47   : > { %v17503_v57 = vld [vmem:[#allocation35_spill] sm:$0xff] }
 0xc48   : > { %11637 = vrot.lane.b32.xlu1 %v11636_v3, %s12358_s9  ;;  %v17504_v3 = vpack.i.bf16 %v17502_v1, %v17503_v57  ;;  %v17520_v1 = vld [vmem:[#allocation26_spill] sm:$0xff] }
 0xc49   : > { %v10096_v32 = vpop.f32.mrb[152].mxu0 }
 0xc4a   : > { %v6858_v7 = vpop.f32.mrb[153].mxu0 }
 0xc4b   : > { %v11641_v50 = vpack.i.bf16 %v10096_v32, %v6858_v7 }
 0xc4c   : > { %11652 = vrot.lane.b32.xlu1 %v17477_v47, %s12359_s12  ;;  %v17507_v47 = vpack.i.bf16 %v17505_v15, %v17506_v38 }
 0xc4d   : > { %11642 = vrot.lane.b32.xlu0 %v11641_v50, %s12358_s9  ;;  %v10124_v61 = vpop.f32.mrb[176].mxu1 }
 0xc4e   : > { %v7011_v54 = vpop.f32.mrb[177].mxu1 }
 0xc4f   : > { %v11656_v9 = vpack.i.bf16 %v10124_v61, %v7011_v54 }
 0xc51   : > { %11647 = vrot.lane.b32.xlu0 %v17480_v40, %s12360_s16  ;;  %v11544_v40 = vunpack.i.l.bf16 %v16329_v42 }
 0xc55   : > { %11657 = vrot.lane.b32.xlu0 %v11656_v9, %s12358_s9 }
 0xc58   : > { %v10099_v49 = vpop.f32.mrb[154].mxu0 }
 0xc59   : > { %11672 = vrot.lane.b32.xlu0 %v17483_v51, %s12359_s12  ;;  %v6868_v55 = vpop.f32.mrb[155].mxu0 }
 0xc5a   : > { %v11661_v10 = vpack.i.bf16 %v10099_v49, %v6868_v55 }
 0xc5c   : > { %11662 = vrot.lane.b32.xlu1 %v11661_v10, %s12358_s9  ;;  %v10127_v22 = vpop.f32.mrb[178].mxu1 }
 0xc5d   : > { %11677 = vrot.lane.b32.xlu0 %v17486_v12, %s12360_s16  ;;  %v7021_v28 = vpop.f32.mrb[179].mxu1 }
 0xc5e   : > { %v11696_v60 = vpack.i.bf16 %v10127_v22, %v7021_v28  ;;  %v17508_v22 = vld [vmem:[#allocation63_spill] sm:$0xff] }
 0xc5f   : > { %v7721_v13 = vsel %vm875_vm0, %v17508_v22, %v11545_v56 }
 0xc60   : > { %11667 = vrot.lane.b32.xlu1 %v17489_v44, %s12360_s16  ;;  %v10146_v25 = vpop.f32.mrb[156].mxu0  ;;  %v7753_v63 = vsel %vm1488_vm2, %v7721_v13, %v11550_v62 }
 0xc61   : > { %11692 = vrot.lane.b32.xlu0 %v17492_v21, %s12359_s12  ;;  %v7144_v31 = vpop.f32.mrb[157].mxu0  ;;  %v17511_v21 = vld [vmem:[#allocation44_spill] sm:$0xff] }
 0xc62   : > { %v11701_v45 = vpack.i.bf16 %v10146_v25, %v7144_v31  ;;  %v17512_v31 = vpack.i.bf16 %v17510_v36, %v17511_v21 }
 0xc64   : > { %11682 = vrot.lane.b32.xlu1 %v17495_v17, %s12359_s12  ;;  %v17513_v17 = vld [vmem:[#allocation103_spill] sm:$0xff] }
 0xc65   : > { %11702 = vrot.lane.b32.xlu0 %v11701_v45, %s12358_s9  ;;  %v17515_v59 = vpack.i.bf16 %v17513_v17, %v17514_v5 }
 0xc68   : > { %11687 = vrot.lane.b32.xlu1 %v17498_v8, %s12360_s16  ;;  %v10149_v30 = vpop.f32.mrb[158].mxu0 }
 0xc69   : > { %11707 = vrot.lane.b32.xlu0 %v17501_v48, %s12360_s16  ;;  %v7154_v43 = vpop.f32.mrb[159].mxu0 }
 0xc6a   : > { %v11716_v24 = vpack.i.bf16 %v10149_v30, %v7154_v43  ;;  %v17516_v30 = vld [vmem:[#allocation38_spill] sm:$0xff] }
 0xc6b   : > { %v17518_v52 = vpack.i.bf16 %v17516_v30, %v17517_v41 }
 0xc6c   : > { %11697 = vrot.lane.b32.xlu1 %v11696_v60, %s12358_s9  ;;  %v17509_v60 = vld [vmem:[#allocation65_spill] sm:$0xff] }
 0xc6d   : > { %v7720_v42 = vsel %vm875_vm0, %v17509_v60, %v11544_v40  ;;  %v11570_v40 = vunpack.i.h.bf16 %v16357_v37 }
 0xc6e   : > { %v7752_v35 = vsel %vm1488_vm2, %v7720_v42, %v11549_v29 }
 0xc70   : > { %11712 = vrot.lane.b32.xlu1 %v17504_v3, %s12359_s12  ;;  %v10152_v32 = vpop.f32.mrb[160].mxu0  ;;  %v17522_v3 = vld [vmem:[#allocation6_spill] sm:$0xff] }
 0xc71   : > { %v7164_v7 = vpop.f32.mrb[161].mxu0 }
 0xc72   : > { %v11721_v50 = vpack.i.bf16 %v10152_v32, %v7164_v7  ;;  %v17523_v32 = vld [vmem:[#allocation18_spill] sm:$0xff] }
 0xc73   : > { %v17524_v7 = vpack.i.bf16 %v17522_v3, %v17523_v32  ;;  %v17526_v3 = vld [vmem:[#allocation71_spill] sm:$0xff] }
 0xc74   : > { %11717 = vrot.lane.b32.xlu1 %v11716_v24, %s12358_s9  ;;  %11722 = vrot.lane.b32.xlu0 %v11721_v50, %s12358_s9  ;;  %v17519_v24 = vld [vmem:[#allocation23_spill] sm:$0xff]  ;;  %v16560_v50 = vpop.permute.xlu1 %11607 }
 0xc75   : > { %v17521_v57 = vpack.i.bf16 %v17519_v24, %v17520_v1  ;;  %v11610_v5 = vunpack.i.h.bf16 %v16560_v50  ;;  %v17525_v1 = vld [vmem:[#allocation69_spill] sm:$0xff] }
 0xc77   : > { %v7765_v24 = vsel %vm1488_vm2, %v16404_v33, %v11610_v5  ;;  %v17527_v33 = vld [vmem:[#allocation76_spill] sm:$0xff] }
 0xc78   : > { %11732 = vrot.lane.b32.xlu1 %v17507_v47, %s12360_s16  ;;  %v10155_v61 = vpop.f32.mrb[162].mxu0  ;;  %v16562_v15 = vpop.permute.xlu1 %11612 }
 0xc79   : > { %v7174_v54 = vpop.f32.mrb[163].mxu0 }
 0xc7a   : > { %v11741_v9 = vpack.i.bf16 %v10155_v61, %v7174_v54 }
 0xc7c   : > { %11742 = vrot.lane.b32.xlu1 %v11741_v9, %s12358_s9 }
 0xc7e   : > { %v10174_v49 = vpop.f32.mrb[180].mxu1 }
 0xc7f   : > { %v7297_v51 = vpop.f32.mrb[181].mxu1 }
 0xc80   : > { %v11726_v55 = vpack.i.bf16 %v10174_v49, %v7297_v51  ;;  %v11569_v49 = vunpack.i.l.bf16 %v16357_v37 }
 0xc81   : > { %v11623_v10 = vpop.permute.xlu0 %11622 }
 0xc82   : > { %v11625_v34 = vunpack.i.h.bf16 %v11623_v10  ;;  %v11624_v12 = vunpack.i.l.bf16 %v11623_v10  ;;  %11727 = vrot.lane.b32.xlu0 %v11726_v55, %s12358_s9  ;;  %v10177_v28 = vpop.f32.mrb[182].mxu1  ;;  %v7756_v55 = vsel %vm1488_vm2, %v16346_v27, %v11569_v49  ;;  %v7757_v10 = vsel %vm1488_vm2, %v16350_v20, %v11570_v40 }
 0xc83   : > { %v7307_v19 = vpop.f32.mrb[183].mxu1 }
 0xc84   : > { %v11746_v44 = vpack.i.bf16 %v10177_v28, %v7307_v19  ;;  %v7785_v25 = vsel %vm7784_vm3, %v7752_v35, %v11624_v12  ;;  %v7786_v53 = vsel %vm7784_vm3, %v7753_v63, %v11625_v34  ;;  %v11589_v28 = vunpack.i.l.bf16 %v16383_v23 }
 0xc85   : > { %10216 = vmatprep.mubr.f32.mxu0 %v7785_v25  ;;  %v11590_v19 = vunpack.i.h.bf16 %v16383_v23 }
 0xc86   : > { %10217 = vmatmul.mubr.f32.vlgmr.msra.gmra.mrb[164].mxu0 %v7786_v53  ;;  %11737 = vrot.lane.b32.xlu0 %v17512_v31, %s12359_s12  ;;  %v10180_v45 = vpop.f32.mrb[184].mxu1  ;;  %v7760_v36 = vsel %vm1488_vm2, %v16372_v26, %v11589_v28 }
 0xc87   : > { %11747 = vrot.lane.b32.xlu1 %v11746_v44, %s12358_s9  ;;  %v7317_v18 = vpop.f32.mrb[185].mxu1  ;;  %v7761_v23 = vsel %vm1488_vm2, %v16376_v46, %v11590_v19  ;;  %v11614_v46 = vunpack.i.l.bf16 %v16562_v15 }
 0xc88   : > { %v11761_v39 = vpack.i.bf16 %v10180_v45, %v7317_v18 }
 0xc8a   : > { %11752 = vrot.lane.b32.xlu0 %v17515_v59, %s12360_s16  ;;  %v10183_v8 = vpop.f32.mrb[186].mxu1  ;;  %v11615_v59 = vunpack.i.h.bf16 %v16562_v15 }
 0xc8b   : > { %11757 = vrot.lane.b32.xlu1 %v17518_v52, %s12359_s12  ;;  %v7327_v48 = vpop.f32.mrb[187].mxu1 }
 0xc8c   : > { %v11776_v43 = vpack.i.bf16 %v10183_v8, %v7327_v48  ;;  %v7735_v32 = vsel %vm875_vm0, %v17526_v3, %v11615_v59 }
 0xc8e   : > { %11762 = vrot.lane.b32.xlu0 %v11761_v39, %s12358_s9 }
 0xc8f   : > { %11767 = vrot.lane.b32.xlu1 %v17521_v57, %s12360_s16  ;;  %v7734_v57 = vsel %vm875_vm0, %v17525_v1, %v11614_v46  ;;  %v17534_v1 = vld [vmem:[#allocation92_spill] sm:$0xff] }
 0xc92   : > { %11772 = vrot.lane.b32.xlu0 %v17524_v7, %s12359_s12 }
 0xc93   : > { %11777 = vrot.lane.b32.xlu1 %v11776_v43, %s12358_s9  ;;  %s245_s9 = sand.u32 1, %s12347_s22  }
 0xc94   : > { %s8178_s12 = sshll.u32 %s245_s9, 8  ;;  %s16801_s25 = scalar_lea.sflag [#allocation3], %s245_s9 }
 0xc95   : > { %s16726_s28 = scalar_lea.vmem [#allocation2], %s8178_s12 }
 0xc96   : > { %s8112_s10 = sshll.u32 %s16726_s28, 4  ;;  %s16794_s10 = int_to_ptr.vmem [resolvable:$true] %s8112_s10 }
 0xc97   : > { %s12293_s15 = scalar_lea.vmem %s16794_s10, 4096  ;;  %p12300_p0 = scmp.lt.s32.totalorder %s16794_s10, %s12298_s18 }
 0xc98   : > { %p12294_p11 = scmp.ne.s32.totalorder %s16794_s10, %s12293_s15  ;;  %p12301_p1 = scmp.lt.s32.totalorder %s12299_s19, %s12293_s15 }
 0xc9a   : > { %p12295_p12 = pnand %p12294_p11, %p12437_p5  ;;  %p12302_p2 = por %p12301_p1, %p12300_p0 }
 0xc9c   : > { %p12296_p13 = pneg %p12295_p12 }
 0xc9e   : > { %p12303_p3 = pnand %p12302_p2, %p12296_p13 }
 0xcae   : > { %v11628_v56 = vpop.permute.xlu0 %11627 }
 0xcaf   : > { %v11629_v60 = vunpack.i.l.bf16 %v11628_v56  ;;  %v11630_v25 = vunpack.i.h.bf16 %v11628_v56 }
 0xcb1   : > { %v7793_v31 = vsel %vm7784_vm3, %v7760_v36, %v11629_v60  ;;  %v7794_v39 = vsel %vm7784_vm3, %v7761_v23, %v11630_v25  ;;  %v17529_v60 = vld [vmem:[#allocation87_spill] sm:$0xff] }
 0xcb6   : > { %v11633_v38 = vpop.permute.xlu1 %11632 }
 0xcb7   : > { %v11635_v47 = vunpack.i.h.bf16 %v11633_v38  ;;  %v11634_v61 = vunpack.i.l.bf16 %v11633_v38 }
 0xcb9   : > { %v7787_v54 = vsel %vm7784_vm3, %v16360_v4, %v11634_v61  ;;  %v7788_v9 = vsel %vm7784_vm3, %v16363_v58, %v11635_v47 }
 0xcba   : > { %10219 = vmatprep.mubr.f32.mxu0 %v7787_v54  ;;  %v11638_v13 = vpop.permute.xlu1 %11637 }
 0xcbb   : > { %10220 = vmatmul.mubr.f32.gmra.mrb[166].mxu0 %v7788_v9  ;;  %v11639_v21 = vunpack.i.l.bf16 %v11638_v13  ;;  %v11640_v45 = vunpack.i.h.bf16 %v11638_v13 }
 0xcbd   : > { %v7795_v26 = vsel %vm7784_vm3, %v16412_v6, %v11639_v21  ;;  %v7796_v41 = vsel %vm7784_vm3, %v16415_v16, %v11640_v45  ;;  %v11620_v16 = vunpack.i.h.bf16 %v16522_v2 }
 0xcbe   : > { %v16578_v37 = vpop.permute.xlu1 %11652 }
 0xcbf   : > { %v11643_v62 = vpop.permute.xlu0 %11642  ;;  %v11654_v9 = vunpack.i.l.bf16 %v16578_v37  ;;  %v7767_v40 = vsel %vm1488_vm2, %v7735_v32, %v11620_v16  ;;  %v11655_v13 = vunpack.i.h.bf16 %v16578_v37 }
 0xcc0   : > { %v11645_v29 = vunpack.i.h.bf16 %v11643_v62  ;;  %v11644_v51 = vunpack.i.l.bf16 %v11643_v62 }
 0xcc2   : > { %v7789_v4 = vsel %vm7784_vm3, %v7756_v55, %v11644_v51  ;;  %v7790_v58 = vsel %vm7784_vm3, %v7757_v10, %v11645_v29 }
 0xcc3   : > { %v16576_v22 = vpop.permute.xlu0 %11647  ;;  %10222 = vmatprep.mubr.f32.mxu0 %v7789_v4 }
 0xcc4   : > { %10223 = vmatmul.mubr.f32.gmra.mrb[168].mxu0 %v7790_v58  ;;  %v11649_v48 = vunpack.i.l.bf16 %v16576_v22  ;;  %v11650_v7 = vunpack.i.h.bf16 %v16576_v22  ;;  %v17528_v58 = vld [vmem:[#allocation77_spill] sm:$0xff] }
 0xcc6   : > { %v7736_v54 = vsel %vm875_vm0, %v17527_v33, %v11649_v48  ;;  %v7737_v22 = vsel %vm875_vm0, %v17528_v58, %v11650_v7  ;;  %v17532_v48 = vld [vmem:[#allocation90_spill] sm:$0xff] }
 0xcc7   : > { %v11658_v34 = vpop.permute.xlu0 %11657  ;;  %v7768_v4 = vsel %vm1488_vm2, %v7736_v54, %v11654_v9 }
 0xcc8   : > { %v11659_v17 = vunpack.i.l.bf16 %v11658_v34  ;;  %v11660_v8 = vunpack.i.h.bf16 %v11658_v34 }
 0xcca   : > { %v7798_v15 = vsel %vm7784_vm3, %v7765_v24, %v11660_v8  ;;  %v17533_v24 = vld [vmem:[#allocation93_spill] sm:$0xff] }
 0xccb   : > { %v16580_v12 = vpop.permute.xlu0 %11672 }
 0xcce   : > { %v11663_v27 = vpop.permute.xlu1 %11662 }
 0xccf   : > { %v11665_v42 = vunpack.i.h.bf16 %v11663_v27  ;;  %v11664_v20 = vunpack.i.l.bf16 %v11663_v27  ;;  %v16583_v63 = vpop.permute.xlu0 %11677  ;;  %v7769_v27 = vsel %vm1488_vm2, %v7737_v22, %v11655_v13 }
 0xcd0   : > { %v11679_v28 = vunpack.i.l.bf16 %v16583_v63  ;;  %v11680_v21 = vunpack.i.h.bf16 %v16583_v63 }
 0xcd1   : > { %v7791_v35 = vsel %vm7784_vm3, %v16387_v14, %v11664_v20  ;;  %v7792_v44 = vsel %vm7784_vm3, %v16390_v0, %v11665_v42  ;;  %v11609_v14 = vunpack.i.l.bf16 %v16560_v50  ;;  %v17530_v20 = vld [vmem:[#allocation86_spill] sm:$0xff] }
 0xcd2   : > { %v16590_v53 = vpop.permute.xlu1 %11667  ;;  %10225 = vmatprep.mubr.f32.mxu0 %v7791_v35  ;;  %v11675_v35 = vunpack.i.h.bf16 %v16580_v12 }
 0xcd3   : > { %10226 = vmatmul.mubr.f32.gmra.mrb[170].mxu0 %v7792_v44  ;;  %v16598_v18 = vpop.permute.xlu0 %11692  ;;  %v7764_v52 = vsel %vm1488_vm2, %v16400_v11, %v11609_v14  ;;  %v11619_v11 = vunpack.i.l.bf16 %v16522_v2  ;;  %v11670_v2 = vunpack.i.h.bf16 %v16590_v53  ;;  %v11669_v49 = vunpack.i.l.bf16 %v16590_v53 }
 0xcd4   : > { %10228 = vmatprep.mubr.f32.mxu0 %v7793_v31  ;;  %v7797_v6 = vsel %vm7784_vm3, %v7764_v52, %v11659_v17  ;;  %v11674_v44 = vunpack.i.l.bf16 %v16580_v12  ;;  %v11695_v3 = vunpack.i.h.bf16 %v16598_v18  ;;  %v11694_v32 = vunpack.i.l.bf16 %v16598_v18 }
 0xcd5   : > { %v7766_v56 = vsel %vm1488_vm2, %v7734_v57, %v11619_v11  ;;  %v7738_v42 = vsel %vm875_vm0, %v17529_v60, %v11669_v49  ;;  %v7739_v19 = vsel %vm875_vm0, %v17530_v20, %v11670_v2  ;;  %v17535_v49 = vld [vmem:[#allocation85_spill] sm:$0xff] }
 0xcd6   : > { %v16600_v0 = vpop.permute.xlu1 %11682  ;;  %v7771_v17 = vsel %vm1488_vm2, %v7739_v19, %v11675_v35  ;;  %v17537_v19 = vld [vmem:[#allocation89_spill] sm:$0xff] }
 0xcd7   : > { %10229 = vmatmul.mubr.f32.gmra.mrb[172].mxu0 %v7794_v39  ;;  %v11703_v43 = vpop.permute.xlu0 %11702  ;;  %v11684_v37 = vunpack.i.l.bf16 %v16600_v0  ;;  %v11685_v45 = vunpack.i.h.bf16 %v16600_v0  ;;  %v7770_v39 = vsel %vm1488_vm2, %v7738_v42, %v11674_v44  ;;  %v17538_v44 = vld [vmem:[#allocation88_spill] sm:$0xff] }
 0xcd8   : > { %10231 = vmatprep.mubr.f32.mxu0 %v7795_v26  ;;  %v11704_v38 = vunpack.i.l.bf16 %v11703_v43  ;;  %v11705_v51 = vunpack.i.h.bf16 %v11703_v43  ;;  %v17531_v26 = vld [vmem:[#allocation91_spill] sm:$0xff] }
 0xcd9   : > { %v7740_v12 = vsel %vm875_vm0, %v17531_v26, %v11679_v28  ;;  %v17539_v26 = vld [vmem:[#allocation95_spill] sm:$0xff] }
 0xcda   : > { %v16608_v30 = vpop.permute.xlu1 %11687  ;;  %v7801_v34 = vsel %vm7784_vm3, %v7768_v4, %v11704_v38  ;;  %v7802_v36 = vsel %vm7784_vm3, %v7769_v27, %v11705_v51  ;;  %v7772_v0 = vsel %vm1488_vm2, %v7740_v12, %v11684_v37 }
 0xcdb   : > { %10232 = vmatmul.mubr.f32.gmra.mrb[174].mxu0 %v7796_v41  ;;  %v16635_v55 = vpop.permute.xlu0 %11707  ;;  %v11690_v5 = vunpack.i.h.bf16 %v16608_v30  ;;  %v11689_v59 = vunpack.i.l.bf16 %v16608_v30 }
 0xcdc   : > { %10234 = vmatprep.mubr.f32.mxu0 %v7797_v6  ;;  %v7741_v6 = vsel %vm875_vm0, %v17532_v48, %v11680_v21 }
 0xcdd   : > { %v7773_v43 = vsel %vm1488_vm2, %v7741_v6, %v11685_v45  ;;  %v7742_v30 = vsel %vm875_vm0, %v17533_v24, %v11689_v59  ;;  %v7743_v57 = vsel %vm875_vm0, %v17534_v1, %v11690_v5  ;;  %v17540_v5 = vld [vmem:[#allocation94_spill] sm:$0xff] }
 0xcde   : > { %v11698_v50 = vpop.permute.xlu1 %11697  ;;  %v7775_v38 = vsel %vm1488_vm2, %v7743_v57, %v11695_v3 }
 0xcdf   : > { %v11700_v47 = vunpack.i.h.bf16 %v11698_v50  ;;  %v11699_v61 = vunpack.i.l.bf16 %v11698_v50  ;;  %10235 = vmatmul.mubr.f32.gmra.mrb[176].mxu0 %v7798_v15  ;;  %v7774_v15 = vsel %vm1488_vm2, %v7742_v30, %v11694_v32 }
 0xce1   : > { %v7799_v62 = vsel %vm7784_vm3, %v7766_v56, %v11699_v61  ;;  %v7800_v29 = vsel %vm7784_vm3, %v7767_v40, %v11700_v47  ;;  %v11710_v47 = vunpack.i.h.bf16 %v16635_v55  ;;  %v11709_v61 = vunpack.i.l.bf16 %v16635_v55 }
 0xce2   : > { %v16637_v10 = vpop.permute.xlu1 %11712  ;;  %10237 = vmatprep.mubr.f32.mxu0 %v7799_v62 }
 0xce3   : > { %10238 = vmatmul.mubr.f32.gmra.mrb[178].mxu0 %v7800_v29  ;;  %v11715_v18 = vunpack.i.h.bf16 %v16637_v10  ;;  %v11714_v9 = vunpack.i.l.bf16 %v16637_v10  ;;  %v7744_v62 = vsel %vm875_vm0, %v17535_v49, %v11709_v61  ;;  %v17536_v29 = vld [vmem:[#allocation84_spill] sm:$0xff] }
 0xce4   : > { %10240 = vmatprep.mubr.f32.mxu0 %v7801_v34  ;;  %v7745_v51 = vsel %vm875_vm0, %v17536_v29, %v11710_v47 }
 0xce5   : > { %v7776_v58 = vsel %vm1488_vm2, %v7744_v62, %v11714_v9  ;;  %v7777_v22 = vsel %vm1488_vm2, %v7745_v51, %v11715_v18 }
 0xce6   : > { %v11718_v25 = vpop.permute.xlu1 %11717  ;;  %v11723_v53 = vpop.permute.xlu0 %11722 }
 0xce7   : > { %v11720_v31 = vunpack.i.h.bf16 %v11718_v25  ;;  %v11719_v23 = vunpack.i.l.bf16 %v11718_v25  ;;  %v11724_v14 = vunpack.i.l.bf16 %v11723_v53  ;;  %10241 = vmatmul.mubr.f32.gmra.mrb[180].mxu0 %v7802_v36  ;;  %v11725_v8 = vunpack.i.h.bf16 %v11723_v53 }
 0xce9   : > { %v7803_v46 = vsel %vm7784_vm3, %v7770_v39, %v11719_v23  ;;  %v7804_v63 = vsel %vm7784_vm3, %v7771_v17, %v11720_v31  ;;  %v7805_v52 = vsel %vm7784_vm3, %v7772_v0, %v11724_v14  ;;  %v7806_v11 = vsel %vm7784_vm3, %v7773_v43, %v11725_v8 }
 0xcea   : > { %v11733_v41 = vpop.permute.xlu1 %11732  ;;  %10243 = vmatprep.mubr.f32.mxu0 %v7803_v46 }
 0xceb   : > { %10244 = vmatmul.mubr.f32.gmra.mrb[182].mxu0 %v7804_v63  ;;  %v11735_v55 = vunpack.i.h.bf16 %v11733_v41  ;;  %v11734_v4 = vunpack.i.l.bf16 %v11733_v41 }
 0xcec   : > { %10246 = vmatprep.mubr.f32.mxu0 %v7805_v52 }
 0xced   : > { %v7746_v35 = vsel %vm875_vm0, %v17537_v19, %v11734_v4  ;;  %v7747_v37 = vsel %vm875_vm0, %v17538_v44, %v11735_v55 }
 0xcee   : > { %v11743_v16 = vpop.permute.xlu1 %11742 }
 0xcef   : > { %v11745_v7 = vunpack.i.h.bf16 %v11743_v16  ;;  %v11744_v50 = vunpack.i.l.bf16 %v11743_v16  ;;  %10247 = vmatmul.mubr.f32.gmra.mrb[184].mxu0 %v7806_v11  ;;  %v17541_v11 = vld [vmem:[#allocation97_spill] sm:$0xff] }
 0xcf1   : > { %v7807_v33 = vsel %vm7784_vm3, %v7774_v15, %v11744_v50  ;;  %v7808_v54 = vsel %vm7784_vm3, %v7775_v38, %v11745_v7  ;;  %v17542_v50 = vld [vmem:[#allocation96_spill] sm:$0xff] }
 0xcf2   : > { %10249 = vmatprep.mubr.f32.mxu0 %v7807_v33 }
 0xcf3   : > { %10250 = vmatmul.mubr.f32.gmra.mrb[186].mxu0 %v7808_v54  ;;  %v16722_v54 = vld [vmem:[%s16847_s5] ss:$0 sm:$0xff] }
 0xcf4   : > { %v11728_v56 = vpop.permute.xlu0 %11727 }
 0xcf5   : > { %v11730_v40 = vunpack.i.h.bf16 %v11728_v56  ;;  %v11729_v2 = vunpack.i.l.bf16 %v11728_v56 }
 0xcf7   : > { %v7809_v13 = vsel %vm7784_vm3, %v7776_v58, %v11729_v2  ;;  %v7810_v10 = vsel %vm7784_vm3, %v7777_v22, %v11730_v40 }
 0xcf8   : > { %v11738_v34 = vpop.permute.xlu0 %11737  ;;  %10252 = vmatprep.mubr.f32.mxu0 %v7809_v13 }
 0xcf9   : > { %v11740_v28 = vunpack.i.h.bf16 %v11738_v34  ;;  %v11739_v27 = vunpack.i.l.bf16 %v11738_v34  ;;  %v11748_v60 = vpop.permute.xlu1 %11747  ;;  %10253 = vmatmul.mubr.f32.gmra.mrb[188].mxu0 %v7810_v10 }
 0xcfa   : > { %v11750_v42 = vunpack.i.h.bf16 %v11748_v60  ;;  %v11749_v20 = vunpack.i.l.bf16 %v11748_v60 }
 0xcfb   : > { %v7778_v25 = vsel %vm1488_vm2, %v7746_v35, %v11739_v27  ;;  %v7779_v53 = vsel %vm1488_vm2, %v7747_v37, %v11740_v28 }
 0xcfc   : > { %v11753_v36 = vpop.permute.xlu0 %11752  ;;  %v7811_v21 = vsel %vm7784_vm3, %v7778_v25, %v11749_v20  ;;  %v7812_v31 = vsel %vm7784_vm3, %v7779_v53, %v11750_v42 }
 0xcfd   : > { %v11755_v23 = vunpack.i.h.bf16 %v11753_v36  ;;  %v11754_v14 = vunpack.i.l.bf16 %v11753_v36  ;;  %v11758_v45 = vpop.permute.xlu1 %11757  ;;  %10255 = vmatprep.mubr.f32.mxu0 %v7811_v21 }
 0xcfe   : > { %v11760_v39 = vunpack.i.h.bf16 %v11758_v45  ;;  %v11759_v17 = vunpack.i.l.bf16 %v11758_v45  ;;  %10256 = vmatmul.mubr.f32.gmra.mrb[190].mxu0 %v7812_v31 }
 0xcff   : > { %v7748_v12 = vsel %vm875_vm0, %v17539_v26, %v11754_v14  ;;  %v7749_v59 = vsel %vm875_vm0, %v17540_v5, %v11755_v23 }
 0xd00   : > { %v11763_v46 = vpop.permute.xlu0 %11762  ;;  %v7780_v48 = vsel %vm1488_vm2, %v7748_v12, %v11759_v17  ;;  %v7781_v6 = vsel %vm1488_vm2, %v7749_v59, %v11760_v39 }
 0xd01   : > { %v11768_v63 = vpop.permute.xlu1 %11767  ;;  %v11765_v8 = vunpack.i.h.bf16 %v11763_v46  ;;  %v11764_v41 = vunpack.i.l.bf16 %v11763_v46 }
 0xd02   : > { %v11770_v0 = vunpack.i.h.bf16 %v11768_v63  ;;  %v11769_v52 = vunpack.i.l.bf16 %v11768_v63 }
 0xd03   : > { %v7813_v43 = vsel %vm7784_vm3, %v7780_v48, %v11764_v41  ;;  %v7814_v24 = vsel %vm7784_vm3, %v7781_v6, %v11765_v8 }
 0xd04   : > { %v11773_v30 = vpop.permute.xlu0 %11772  ;;  %10258 = vmatprep.mubr.f32.mxu0 %v7813_v43  ;;  %v7750_v7 = vsel %vm875_vm0, %v17541_v11, %v11769_v52  ;;  %v7751_v15 = vsel %vm875_vm0, %v17542_v50, %v11770_v0 }
 0xd05   : > { %v11775_v1 = vunpack.i.h.bf16 %v11773_v30  ;;  %v11774_v57 = vunpack.i.l.bf16 %v11773_v30  ;;  %v11778_v3 = vpop.permute.xlu1 %11777  ;;  %10259 = vmatmul.mubr.f32.gmra.mrb[192].mxu0 %v7814_v24 }
 0xd06   : > { %v11780_v32 = vunpack.i.h.bf16 %v11778_v3  ;;  %v11779_v16 = vunpack.i.l.bf16 %v11778_v3 }
 0xd07   : > { %v7782_v38 = vsel %vm1488_vm2, %v7750_v7, %v11774_v57  ;;  %v7783_v47 = vsel %vm1488_vm2, %v7751_v15, %v11775_v1 }
 0xd08   : > { %v7815_v61 = vsel %vm7784_vm3, %v7782_v38, %v11779_v16  ;;  %v7816_v33 = vsel %vm7784_vm3, %v7783_v47, %v11780_v32 }
 0xd09   : > { %10261 = vmatprep.mubr.f32.mxu0 %v7815_v61 }
 0xd0a   : > { %10262 = vmatmul.mubr.f32.gmra.mrb[194].mxu0 %v7816_v33 }
 0xd59   : > { %v10218_v18 = vpop.f32.mrb[164].mxu0 }
 0xd5a   : > { %v7912_v9 = vadd.f32 %v10218_v18, %v16722_v54  ;;  %v7906_v56 = vpop.f32.mrb[165].mxu0 }
 0xd5b   : > { %v7907_v40 = vadd.f32 %v16722_v54, %v7906_v56 }
 0xd5c   : > { %8066 = vst [vmem:[%s16726_s28 + $0x8] sm:$0xff] %v7912_v9 }
 0xd5d   : > { %8065 = vst [vmem:[%s16726_s28] sm:$0xff] %v7907_v40 }
 0xd8e   : > { %v10221_v2 = vpop.f32.mrb[166].mxu0 }
 0xd8f   : > { %v7922_v49 = vadd.f32 %v10221_v2, %v16722_v54  ;;  %v7916_v62 = vpop.f32.mrb[167].mxu0 }
 0xd90   : > { %v7917_v29 = vadd.f32 %v16722_v54, %v7916_v62 }
 0xd91   : > { %8068 = vst [vmem:[%s16726_s28 + $0x18] sm:$0xff] %v7922_v49 }
 0xd92   : > { %8067 = vst [vmem:[%s16726_s28 + $0x10] sm:$0xff] %v7917_v29 }
 0xd97   : > { %v10224_v51 = vpop.f32.mrb[168].mxu0 }
 0xd98   : > { %v7932_v55 = vadd.f32 %v10224_v51, %v16722_v54  ;;  %v7926_v4 = vpop.f32.mrb[169].mxu0 }
 0xd99   : > { %v7927_v58 = vadd.f32 %v16722_v54, %v7926_v4 }
 0xd9a   : > { %8070 = vst [vmem:[%s16726_s28 + $0x28] sm:$0xff] %v7932_v55 }
 0xd9b   : > { %8069 = vst [vmem:[%s16726_s28 + $0x20] sm:$0xff] %v7927_v58 }
 0xda6   : > { %v10227_v22 = vpop.f32.mrb[170].mxu0 }
 0xda7   : > { %v7942_v13 = vadd.f32 %v10227_v22, %v16722_v54  ;;  %v7936_v10 = vpop.f32.mrb[171].mxu0 }
 0xda8   : > { %v7937_v34 = vadd.f32 %v16722_v54, %v7936_v10 }
 0xda9   : > { %8072 = vst [vmem:[%s16726_s28 + $0x38] sm:$0xff] %v7942_v13 }
 0xdaa   : > { %8071 = vst [vmem:[%s16726_s28 + $0x30] sm:$0xff] %v7937_v34  ;;  %v10230_v28 = vpop.f32.mrb[172].mxu0 }
 0xdab   : > { %v7952_v27 = vadd.f32 %v10230_v28, %v16722_v54  ;;  %v7946_v60 = vpop.f32.mrb[173].mxu0 }
 0xdac   : > { %v7947_v42 = vadd.f32 %v16722_v54, %v7946_v60 }
 0xdad   : > { %8074 = vst [vmem:[%s16726_s28 + $0x48] sm:$0xff] %v7952_v27 }
 0xdae   : > { %8073 = vst [vmem:[%s16726_s28 + $0x40] sm:$0xff] %v7947_v42  ;;  %v10233_v20 = vpop.f32.mrb[174].mxu0 }
 0xdaf   : > { %v7962_v19 = vadd.f32 %v10233_v20, %v16722_v54  ;;  %v7956_v35 = vpop.f32.mrb[175].mxu0 }
 0xdb0   : > { %v7957_v44 = vadd.f32 %v16722_v54, %v7956_v35 }
 0xdb1   : > { %8076 = vst [vmem:[%s16726_s28 + $0x58] sm:$0xff] %v7962_v19 }
 0xdb2   : > { %8075 = vst [vmem:[%s16726_s28 + $0x50] sm:$0xff] %v7957_v44  ;;  %v10236_v37 = vpop.f32.mrb[176].mxu0 }
 0xdb3   : > { %v7972_v25 = vadd.f32 %v10236_v37, %v16722_v54  ;;  %v7966_v53 = vpop.f32.mrb[177].mxu0 }
 0xdb4   : > { %v7967_v36 = vadd.f32 %v16722_v54, %v7966_v53 }
 0xdb5   : > { %8078 = vst [vmem:[%s16726_s28 + $0x68] sm:$0xff] %v7972_v25 }
 0xdb6   : > { %8077 = vst [vmem:[%s16726_s28 + $0x60] sm:$0xff] %v7967_v36  ;;  %v10239_v21 = vpop.f32.mrb[178].mxu0 }
 0xdb7   : > { %v7982_v31 = vadd.f32 %v10239_v21, %v16722_v54  ;;  %v7976_v23 = vpop.f32.mrb[179].mxu0 }
 0xdb8   : > { %v7977_v14 = vadd.f32 %v16722_v54, %v7976_v23 }
 0xdb9   : > { %8080 = vst [vmem:[%s16726_s28 + $0x78] sm:$0xff] %v7982_v31 }
 0xdba   : > { %8079 = vst [vmem:[%s16726_s28 + $0x70] sm:$0xff] %v7977_v14  ;;  %v10242_v45 = vpop.f32.mrb[180].mxu0 }
 0xdbb   : > { %v7992_v39 = vadd.f32 %v10242_v45, %v16722_v54  ;;  %v7986_v17 = vpop.f32.mrb[181].mxu0 }
 0xdbc   : > { %v7987_v26 = vadd.f32 %v16722_v54, %v7986_v17 }
 0xdbd   : > { %8082 = vst [vmem:[%s16726_s28 + $0x88] sm:$0xff] %v7992_v39 }
 0xdbe   : > { %8081 = vst [vmem:[%s16726_s28 + $0x80] sm:$0xff] %v7987_v26  ;;  %v10245_v12 = vpop.f32.mrb[182].mxu0 }
 0xdbf   : > { %v8002_v5 = vadd.f32 %v10245_v12, %v16722_v54  ;;  %v7996_v59 = vpop.f32.mrb[183].mxu0 }
 0xdc0   : > { %v7997_v46 = vadd.f32 %v16722_v54, %v7996_v59 }
 0xdc1   : > { %8084 = vst [vmem:[%s16726_s28 + $0x98] sm:$0xff] %v8002_v5 }
 0xdc2   : > { %8083 = vst [vmem:[%s16726_s28 + $0x90] sm:$0xff] %v7997_v46  ;;  %v10248_v63 = vpop.f32.mrb[184].mxu0 }
 0xdc3   : > { %v8012_v8 = vadd.f32 %v10248_v63, %v16722_v54  ;;  %v8006_v41 = vpop.f32.mrb[185].mxu0 }
 0xdc4   : > { %v8007_v0 = vadd.f32 %v16722_v54, %v8006_v41 }
 0xdc5   : > { %8086 = vst [vmem:[%s16726_s28 + $0xa8] sm:$0xff] %v8012_v8 }
 0xdc6   : > { %8085 = vst [vmem:[%s16726_s28 + $0xa0] sm:$0xff] %v8007_v0  ;;  %v10251_v52 = vpop.f32.mrb[186].mxu0 }
 0xdc7   : > { %v8022_v48 = vadd.f32 %v10251_v52, %v16722_v54  ;;  %v8016_v6 = vpop.f32.mrb[187].mxu0 }
 0xdc8   : > { %v8017_v43 = vadd.f32 %v16722_v54, %v8016_v6 }
 0xdc9   : > { %8088 = vst [vmem:[%s16726_s28 + $0xb8] sm:$0xff] %v8022_v48 }
 0xdca   : > { %8087 = vst [vmem:[%s16726_s28 + $0xb0] sm:$0xff] %v8017_v43 }
 0xdcc   : > { %v10254_v24 = vpop.f32.mrb[188].mxu0 }
 0xdcd   : > { %v8032_v30 = vadd.f32 %v10254_v24, %v16722_v54  ;;  %v8026_v1 = vpop.f32.mrb[189].mxu0 }
 0xdce   : > { %v8027_v57 = vadd.f32 %v16722_v54, %v8026_v1 }
 0xdcf   : > { %8090 = vst [vmem:[%s16726_s28 + $0xc8] sm:$0xff] %v8032_v30 }
 0xdd0   : > { %8089 = vst [vmem:[%s16726_s28 + $0xc0] sm:$0xff] %v8027_v57 }
 0xdd1   : > { %v10257_v3 = vpop.f32.mrb[190].mxu0 }
 0xdd2   : > { %v8042_v32 = vadd.f32 %v10257_v3, %v16722_v54  ;;  %v8036_v16 = vpop.f32.mrb[191].mxu0 }
 0xdd3   : > { %v8037_v11 = vadd.f32 %v16722_v54, %v8036_v16 }
 0xdd4   : > { %8092 = vst [vmem:[%s16726_s28 + $0xd8] sm:$0xff] %v8042_v32 }
 0xdd5   : > { %8091 = vst [vmem:[%s16726_s28 + $0xd0] sm:$0xff] %v8037_v11 }
 0xdd8   : > { %v10260_v7 = vpop.f32.mrb[192].mxu0 }
 0xdd9   : > { %v8052_v50 = vadd.f32 %v10260_v7, %v16722_v54  ;;  %v8046_v15 = vpop.f32.mrb[193].mxu0 }
 0xdda   : > { %v8047_v38 = vadd.f32 %v16722_v54, %v8046_v15 }
 0xddb   : > { %8094 = vst [vmem:[%s16726_s28 + $0xe8] sm:$0xff] %v8052_v50 }
 0xddc   : > { %8093 = vst [vmem:[%s16726_s28 + $0xe0] sm:$0xff] %v8047_v38 }
 0xddd   : > { %v10263_v47 = vpop.f32.mrb[194].mxu0 }
 0xdde   : > { %v8062_v61 = vadd.f32 %v10263_v47, %v16722_v54  ;;  %v8056_v33 = vpop.f32.mrb[195].mxu0 }
 0xddf   : > { %v8057_v18 = vadd.f32 %v16722_v54, %v8056_v33 }
 0xde0   : > { %8096 = vst [vmem:[%s16726_s28 + $0xf8] sm:$0xff] %v8062_v61 }
 0xde1   : > { %8095 = vst [vmem:[%s16726_s28 + $0xf0] sm:$0xff] %v8057_v18 }
 0xde2   : > { %12306 = shalt.err (!%p12303_p3)
}
 0xde3   : > { %s12307_s20 = scalar_lea.hbm %s16792_s14, 4096  ;;  %s12311_s16 = scalar_lea.hbm %s16848_s6, 8192 }
 0xde4   : > { %p12308_p4 = scmp.ne.s32.totalorder %s16792_s14, %s12307_s20  ;;  %p12312_p9 = scmp.lt.u32.totalorder %s16792_s14, %s16848_s6 }
 0xde5   : > { %p12313_p10 = scmp.lt.u32.totalorder %s12311_s16, %s12307_s20  ;;  %p12315_p12 = scmp.lt.u32.totalorder %s12307_s20, %s16792_s14 }
 0xde6   : > { %p12309_p7 = pnand %p12308_p4, %p12437_p5 }
 0xde7   : > { %p12314_p11 = por %p12313_p10, %p12312_p9 }
 0xde8   : > { %p12310_p8 = pneg %p12309_p7 }
 0xde9   : > { %p12316_p13 = por %p12315_p12, %p12314_p11 }
 0xdeb   : > { %p12317_p0 = pnand %p12316_p13, %p12310_p8 }
 0xded   : > { %12320 = shalt.err (!%p12317_p0)
}
 0xdee   : > { %s12362_s29 = smov 128   ;;  %s12363_s11 = smov 8  }
 0xdef   : > { %11016 = dma.vmem_to_hbm [thread:$0]  (%p12437_p5), %s16794_s10, 4096, %s16792_s14, %s16801_s25, %s12362_s29, %s12362_s29, %s12363_s11  }
 0xdf0 PF: > { %p11022_p1 = scmp.ge.s32.totalorder %s12355_s24, 2  ;;  %s8127_s13 = sand.u32 1, %s12343_s21  }
 0xdf1   : > { %s8128_s15 = scalar_lea.sflag [#allocation3], %s8127_s13 }
 0xdf2   : > { %p11019_p2 = pnand %p11022_p1, %p12441_p6 }
 0xdf4   : > { %12338 = dma.done.wait (!%p11019_p2), %s8128_s15, 4096  }
 0xdf5   : > { %12340 = vsyncadd (!%p11019_p2), %s8128_s15, 4294963200  ;;  %p16_p3 = scmp.ge.s32.totalorder %s12424_s27, 4   ;;  %s17543_s21 = smov %s12347_s22 }
 0xdf6   : > { %s17544_s22 = smov %s12351_s23  ;;  %s17545_s23 = smov %s12435_s30 }
 0xdf7   : > { %s17546_s24 = smov %s12424_s27  ;;  %18 = sbr.rel (!%p16_p3) target bundleno = 3 (0x3), region = 82 }
 0xdfe   :  { %8133 = vsyncpa [#allocation3], 1 }
 0xdff   :  { %8135 = vsyncpa [#allocation3 + $0x1], 1 }

</bundles_post_ra>
